<compile_context>
chip_gen: v7x
topology: tpu7x:2x2x1
jax: 0.10.0
libtpu: 0.0.40
codegen_flags: <defaults>
</compile_context>

<pallas_src>
import functools

import jax
import jax.numpy as jnp
from jax.experimental import pallas as pl
from jax.experimental.pallas import tpu as pltpu


MATMUL_DTYPE = jnp.bfloat16   # MXU operand dtype; accumulation is always f32.


def _same_diff_kernel(*refs, nclasses, nh, nlayers, rounds_per_block):
    """One grid step processes `rounds_per_block` rounds: runs the MLP over a
    (TR*C*C, d) slab on the MXU, then reduces diag / off-diag means and writes
    a single lane-dense (TR, C*2*nh) output block."""
    fv_ref = refs[0]
    w_refs = refs[1:1 + 2 * nlayers]
    out_ref = refs[1 + 2 * nlayers]

    C = nclasses
    TR = rounds_per_block

    # ---- MLP hot path: chained MXU matmuls over the whole slab --------------
    # Cast to bf16 here (VMEM-resident), not in the wrapper: the HBM stream
    # stays a single f32 read instead of f32-read + bf16-write + bf16-read.
    h = fv_ref[...].astype(MATMUL_DTYPE)                 # (TR*C*C, ninput)
    for li in range(nlayers):
        w = w_refs[2 * li][...]                          # (d_in, d_out) bf16
        b = w_refs[2 * li + 1][...]                      # (1, d_out)    f32
        h = jnp.dot(h, w, preferred_element_type=jnp.float32) + b
        if li != nlayers - 1:
            # ReLU in f32 (VPU-friendly on v5e), cast back to bf16 only to feed
            # the next MXU matmul.
            h = jnp.maximum(h, 0.0).astype(MATMUL_DTYPE)
    # h: (TR*C*C, nh) f32

    # ---- diag / off-diagonal-mean epilogue -----------------------------------
    # One reduce over j plus C static diagonal slices (instead of C*C size-1
    # second-minor slivers).
    h4 = h.reshape(TR, C, C, nh)                         # (TR, i, j, nh)
    row_sum = jnp.sum(h4, axis=2)                        # (TR, C, nh)
    inv = jnp.float32(1.0 / (C - 1))

    cols = []
    for i in range(C):                                   # C is small; unrolled
        d = h4[:, i, i, :]                               # (TR, nh) diagonal
        off = (row_sum[:, i, :] - d) * inv               # mean over j != i
        cols.append(d)
        cols.append(off)
    # Lane-dense slab: [diag_0 | off_0 | diag_1 | off_1 | ...] -> (TR, C*2*nh).
    out_slab = jnp.concatenate(cols, axis=-1)
    out_ref[...] = out_slab.astype(out_ref.dtype)        # ONE full-block store


def _min_grid_steps():
    """v7x has 2 TensorCores -> want >= 2 balanced grid steps; v5e/v6e are
    single-core, where every extra step is pure per-step overhead."""
    try:
        kind = jax.devices()[0].device_kind.lower()
    except Exception:
        return 1
    return 2 if "v7" in kind else 1


def _choose_rounds_per_block(R, C, target_rows, min_steps):
    """Pick TR | R so each grid step feeds ~target_rows rows to the MXU.
    On single-TC parts (min_steps=1) this collapses to one big step when it
    fits; on v7x (min_steps=2) it keeps both TensorCores busy."""
    cap = max(1, target_rows // (C * C))
    divisors = [d for d in range(1, R + 1) if R % d == 0]
    ok = [d for d in divisors if d <= cap and R // d >= min_steps]
    tr = max(ok) if ok else max(d for d in divisors if d <= cap)
    # Block second-minor dims (TR*C*C input rows, TR output sublanes) must be a
    # multiple of 8 or the full extent.
    if tr != R and ((tr * C * C) % 8 != 0 or tr % 8 != 0):
        tr = R
    return tr


def same_diff_encoder_forward(fv, params, target_rows=2048):
    """fv: (R, C, C, ninput) f32.  params: flat list [W1, b1, W2, b2, ...] with
    W_i shaped (d_in, d_out) (i.e. PyTorch `linear.weight.T`)."""
    R, C, C2, ninput = fv.shape
    assert C == C2
    assert C > 1, "same_diff_encoder requires nclasses > 1 (off-diag mean)"
    nlayers = len(params) // 2
    nh = params[-1].shape[-1]

    TR = _choose_rounds_per_block(R, C, target_rows, _min_grid_steps())
    grid = (R // TR,)

    # Flatten all pair feature vectors onto the MXU row axis.  No dtype cast
    # here: the bf16 cast happens in-kernel (VMEM), so HBM sees one f32 read.
    fv_flat = fv.reshape(R * C * C, ninput)

    weight_args = []
    weight_specs = []
    for li in range(nlayers):
        w = params[2 * li].astype(MATMUL_DTYPE)                 # (d_in, d_out)
        b = params[2 * li + 1].reshape(1, -1).astype(jnp.float32)
        weight_args += [w, b]
        # Constant block index => fetched into VMEM once, reused every step.
        weight_specs += [pl.BlockSpec(w.shape, lambda r: (0, 0)),
                         pl.BlockSpec(b.shape, lambda r: (0, 0))]

    kernel = functools.partial(
        _same_diff_kernel, nclasses=C, nh=nh, nlayers=nlayers,
        rounds_per_block=TR)

    # VMEM per step: fv block (TR*C*C*ninput*4B, double-buffered) + tiny
    # weights + f32 intermediates + (TR, C*2*nh)*4B output — tens of KiB for
    # the demo shapes, far under the scoped default on v5e/v6e/v7x.
    out2d = pl.pallas_call(
        kernel,
        out_shape=jax.ShapeDtypeStruct((R, C * 2 * nh), jnp.float32),
        grid_spec=pltpu.PrefetchScalarGridSpec(
            num_scalar_prefetch=0,
            grid=grid,
            in_specs=[pl.BlockSpec((TR * C * C, ninput), lambda r: (r, 0))]
                     + weight_specs,
            out_specs=pl.BlockSpec((TR, C * 2 * nh), lambda r: (r, 0)),
        ),
        compiler_params=pltpu.CompilerParams(
            dimension_semantics=("parallel",)),
    )(fv_flat, *weight_args)

    # Free layout plumbing back to the module's (R, C, 2*nh) interface.
    return out2d.reshape(R, C, 2 * nh)


def init_params(key, ninput, nh, nlayers):
    """Deterministic init matching the shapes of MLP(ninput, nh, nh, nlayers)."""
    dims = [ninput] + [nh] * nlayers
    params = []
    for i in range(nlayers):
        key, k1, k2 = jax.random.split(key, 3)
        bound = 1.0 / float(dims[i]) ** 0.5
        w = jax.random.uniform(k1, (dims[i], dims[i + 1]), jnp.float32,
                               minval=-bound, maxval=bound)
        b = jax.random.uniform(k2, (dims[i + 1],), jnp.float32,
                               minval=-bound, maxval=bound)
        params += [w, b]
    return params


def reference_forward(fv, params, matmul_dtype=jnp.float32):
    """Pure-JAX reference mirroring the PyTorch forward; `matmul_dtype`
    optionally mimics the kernel's bf16 MXU-operand cast (f32 accumulation)."""
    R, C, _, ninput = fv.shape
    nlayers = len(params) // 2
    h = fv.reshape(R * C * C, ninput)
    for i in range(nlayers):
        w = params[2 * i].astype(matmul_dtype)
        b = params[2 * i + 1]
        h = jnp.dot(h.astype(matmul_dtype), w,
                    preferred_element_type=jnp.float32) + b
        if i != nlayers - 1:
            h = jnp.maximum(h, 0.0)
    nh = params[-1].shape[-1]
    h = h.reshape(R, C, C, nh)
    diag = h[:, jnp.arange(C), jnp.arange(C), :]
    off_mean = (h.sum(axis=2) - diag) / (C - 1)
    return jnp.concatenate([diag, off_mean], axis=-1)


if __name__ == "__main__":
    # Small shapes consistent with the module's forward.
    rounds, nclasses, ninput, nh, nlayers = 64, 4, 16, 32, 3

    key = jax.random.PRNGKey(0)
    key, kfv = jax.random.split(key)
    fv = jax.random.normal(kfv, (rounds, nclasses, nclasses, ninput), jnp.float32)
    params = init_params(key, ninput, nh, nlayers)

    out = jax.block_until_ready(same_diff_encoder_forward(fv, params))
    assert out.shape == (rounds, nclasses, 2 * nh)

    # Tight check vs a reference using the same bf16-operand / f32-accum math.
    ref_bf16 = reference_forward(fv, params, matmul_dtype=MATMUL_DTYPE)
    assert jnp.allclose(out, ref_bf16, rtol=2e-3, atol=2e-3), "mismatch vs bf16 ref"

    # Sanity check vs the full-f32 PyTorch-faithful math (looser tolerance only
    # because of the intentional bf16 matmul-operand cast).
    ref_f32 = reference_forward(fv, params, matmul_dtype=jnp.float32)
    assert jnp.allclose(out, ref_f32, rtol=2e-2, atol=2e-2), "mismatch vs f32 ref"

    print("KERNEL_OK")
</pallas_src>

<mosaic_0001>
module attributes {stable_mosaic.version = 11 : i64} {
  func.func @_same_diff_kernel(%arg0: i32, %arg1: memref<1024x16xf32, #tpu.memory_space<vmem>>, %arg2: memref<16x32xbf16, #tpu.memory_space<vmem>>, %arg3: memref<1x32xf32, #tpu.memory_space<vmem>>, %arg4: memref<32x32xbf16, #tpu.memory_space<vmem>>, %arg5: memref<1x32xf32, #tpu.memory_space<vmem>>, %arg6: memref<32x32xbf16, #tpu.memory_space<vmem>>, %arg7: memref<1x32xf32, #tpu.memory_space<vmem>>, %arg8: memref<64x256xf32, #tpu.memory_space<vmem>>) attributes {dimension_semantics = [#tpu.dimension_semantics<parallel>], iteration_bounds = array<i64: 1>, scalar_prefetch = 0 : i64, scratch_operands = 0 : i64, tpu.core_type = #tpu.core_type<tc>, window_params = [{transform_indices = @transform_0, window_bounds = array<i64: 1024, 16>}, {pipeline_mode = #tpu.pipeline_mode<synchronous>, transform_indices = @transform_1, window_bounds = array<i64: 16, 32>}, {pipeline_mode = #tpu.pipeline_mode<synchronous>, transform_indices = @transform_2, window_bounds = array<i64: 1, 32>}, {pipeline_mode = #tpu.pipeline_mode<synchronous>, transform_indices = @transform_3, window_bounds = array<i64: 32, 32>}, {pipeline_mode = #tpu.pipeline_mode<synchronous>, transform_indices = @transform_4, window_bounds = array<i64: 1, 32>}, {pipeline_mode = #tpu.pipeline_mode<synchronous>, transform_indices = @transform_5, window_bounds = array<i64: 32, 32>}, {pipeline_mode = #tpu.pipeline_mode<synchronous>, transform_indices = @transform_6, window_bounds = array<i64: 1, 32>}, {transform_indices = @transform_7, window_bounds = array<i64: 64, 256>}]} {
    %c0 = arith.constant 0 : index
    %c0_0 = arith.constant 0 : index
    %0 = vector.load %arg1[%c0, %c0_0] : memref<1024x16xf32, #tpu.memory_space<vmem>>, vector<1024x16xf32>
    %1 = arith.truncf %0 : vector<1024x16xf32> to vector<1024x16xbf16>
    %c0_1 = arith.constant 0 : index
    %c0_2 = arith.constant 0 : index
    %2 = vector.load %arg2[%c0_1, %c0_2] : memref<16x32xbf16, #tpu.memory_space<vmem>>, vector<16x32xbf16>
    %c0_3 = arith.constant 0 : index
    %c0_4 = arith.constant 0 : index
    %3 = vector.load %arg3[%c0_3, %c0_4] : memref<1x32xf32, #tpu.memory_space<vmem>>, vector<1x32xf32>
    %cst = arith.constant dense<0.000000e+00> : vector<1024x32xf32>
    %4 = tpu.matmul %1, %2, %cst {dimension_numbers = #tpu.dot_dimension_numbers<[1], [0], [0], [1], [0, 0, 1, 1], [], []>} : vector<1024x16xbf16>, vector<16x32xbf16>, vector<1024x32xf32> -> vector<1024x32xf32>
    %5 = vector.broadcast %3 : vector<1x32xf32> to vector<1024x32xf32>
    %6 = arith.addf %4, %5 : vector<1024x32xf32>
    %cst_5 = arith.constant 0.000000e+00 : f32
    %7 = vector.broadcast %cst_5 : f32 to vector<1024x32xf32>
    %8 = arith.maximumf %6, %7 : vector<1024x32xf32>
    %9 = arith.truncf %8 : vector<1024x32xf32> to vector<1024x32xbf16>
    %c0_6 = arith.constant 0 : index
    %c0_7 = arith.constant 0 : index
    %10 = vector.load %arg4[%c0_6, %c0_7] : memref<32x32xbf16, #tpu.memory_space<vmem>>, vector<32x32xbf16>
    %c0_8 = arith.constant 0 : index
    %c0_9 = arith.constant 0 : index
    %11 = vector.load %arg5[%c0_8, %c0_9] : memref<1x32xf32, #tpu.memory_space<vmem>>, vector<1x32xf32>
    %cst_10 = arith.constant dense<0.000000e+00> : vector<1024x32xf32>
    %12 = tpu.matmul %9, %10, %cst_10 {dimension_numbers = #tpu.dot_dimension_numbers<[1], [0], [0], [1], [0, 0, 1, 1], [], []>} : vector<1024x32xbf16>, vector<32x32xbf16>, vector<1024x32xf32> -> vector<1024x32xf32>
    %13 = vector.broadcast %11 : vector<1x32xf32> to vector<1024x32xf32>
    %14 = arith.addf %12, %13 : vector<1024x32xf32>
    %cst_11 = arith.constant 0.000000e+00 : f32
    %15 = vector.broadcast %cst_11 : f32 to vector<1024x32xf32>
    %16 = arith.maximumf %14, %15 : vector<1024x32xf32>
    %17 = arith.truncf %16 : vector<1024x32xf32> to vector<1024x32xbf16>
    %c0_12 = arith.constant 0 : index
    %c0_13 = arith.constant 0 : index
    %18 = vector.load %arg6[%c0_12, %c0_13] : memref<32x32xbf16, #tpu.memory_space<vmem>>, vector<32x32xbf16>
    %c0_14 = arith.constant 0 : index
    %c0_15 = arith.constant 0 : index
    %19 = vector.load %arg7[%c0_14, %c0_15] : memref<1x32xf32, #tpu.memory_space<vmem>>, vector<1x32xf32>
    %cst_16 = arith.constant dense<0.000000e+00> : vector<1024x32xf32>
    %20 = tpu.matmul %17, %18, %cst_16 {dimension_numbers = #tpu.dot_dimension_numbers<[1], [0], [0], [1], [0, 0, 1, 1], [], []>} : vector<1024x32xbf16>, vector<32x32xbf16>, vector<1024x32xf32> -> vector<1024x32xf32>
    %21 = vector.broadcast %19 : vector<1x32xf32> to vector<1024x32xf32>
    %22 = arith.addf %20, %21 : vector<1024x32xf32>
    %23 = vector.shape_cast %22 : vector<1024x32xf32> to vector<64x4x4x32xf32>
    %cst_17 = arith.constant dense<0.000000e+00> : vector<64x4x32xf32>
    %24 = vector.multi_reduction <add>, %23, %cst_17 [2] : vector<64x4x4x32xf32> to vector<64x4x32xf32>
    %25 = vector.extract_strided_slice %23 {offsets = [0, 0, 0, 0], sizes = [64, 1, 1, 32], strides = [1, 1, 1, 1]} : vector<64x4x4x32xf32> to vector<64x1x1x32xf32>
    %26 = vector.shape_cast %25 : vector<64x1x1x32xf32> to vector<64x32xf32>
    %27 = vector.extract_strided_slice %24 {offsets = [0, 0, 0], sizes = [64, 1, 32], strides = [1, 1, 1]} : vector<64x4x32xf32> to vector<64x1x32xf32>
    %28 = vector.shape_cast %27 : vector<64x1x32xf32> to vector<64x32xf32>
    %29 = arith.subf %28, %26 : vector<64x32xf32>
    %cst_18 = arith.constant 0.333333343 : f32
    %30 = vector.broadcast %cst_18 : f32 to vector<64x32xf32>
    %31 = arith.mulf %29, %30 : vector<64x32xf32>
    %32 = vector.extract_strided_slice %23 {offsets = [0, 1, 1, 0], sizes = [64, 1, 1, 32], strides = [1, 1, 1, 1]} : vector<64x4x4x32xf32> to vector<64x1x1x32xf32>
    %33 = vector.shape_cast %32 : vector<64x1x1x32xf32> to vector<64x32xf32>
    %34 = vector.extract_strided_slice %24 {offsets = [0, 1, 0], sizes = [64, 1, 32], strides = [1, 1, 1]} : vector<64x4x32xf32> to vector<64x1x32xf32>
    %35 = vector.shape_cast %34 : vector<64x1x32xf32> to vector<64x32xf32>
    %36 = arith.subf %35, %33 : vector<64x32xf32>
    %cst_19 = arith.constant 0.333333343 : f32
    %37 = vector.broadcast %cst_19 : f32 to vector<64x32xf32>
    %38 = arith.mulf %36, %37 : vector<64x32xf32>
    %39 = vector.extract_strided_slice %23 {offsets = [0, 2, 2, 0], sizes = [64, 1, 1, 32], strides = [1, 1, 1, 1]} : vector<64x4x4x32xf32> to vector<64x1x1x32xf32>
    %40 = vector.shape_cast %39 : vector<64x1x1x32xf32> to vector<64x32xf32>
    %41 = vector.extract_strided_slice %24 {offsets = [0, 2, 0], sizes = [64, 1, 32], strides = [1, 1, 1]} : vector<64x4x32xf32> to vector<64x1x32xf32>
    %42 = vector.shape_cast %41 : vector<64x1x32xf32> to vector<64x32xf32>
    %43 = arith.subf %42, %40 : vector<64x32xf32>
    %cst_20 = arith.constant 0.333333343 : f32
    %44 = vector.broadcast %cst_20 : f32 to vector<64x32xf32>
    %45 = arith.mulf %43, %44 : vector<64x32xf32>
    %46 = vector.extract_strided_slice %23 {offsets = [0, 3, 3, 0], sizes = [64, 1, 1, 32], strides = [1, 1, 1, 1]} : vector<64x4x4x32xf32> to vector<64x1x1x32xf32>
    %47 = vector.shape_cast %46 : vector<64x1x1x32xf32> to vector<64x32xf32>
    %48 = vector.extract_strided_slice %24 {offsets = [0, 3, 0], sizes = [64, 1, 32], strides = [1, 1, 1]} : vector<64x4x32xf32> to vector<64x1x32xf32>
    %49 = vector.shape_cast %48 : vector<64x1x32xf32> to vector<64x32xf32>
    %50 = arith.subf %49, %47 : vector<64x32xf32>
    %cst_21 = arith.constant 0.333333343 : f32
    %51 = vector.broadcast %cst_21 : f32 to vector<64x32xf32>
    %52 = arith.mulf %50, %51 : vector<64x32xf32>
    %53 = tpu.concatenate %26, %31, %33, %38, %40, %45, %47, %52 in 1 : vector<64x32xf32>, vector<64x32xf32>, vector<64x32xf32>, vector<64x32xf32>, vector<64x32xf32>, vector<64x32xf32>, vector<64x32xf32>, vector<64x32xf32> -> vector<64x256xf32>
    %c0_22 = arith.constant 0 : index
    %c0_23 = arith.constant 0 : index
    %54 = vector.load %arg8[%c0_22, %c0_23] : memref<64x256xf32, #tpu.memory_space<vmem>>, vector<64x256xf32>
    tpu.vector_store %arg8[%c0_22, %c0_23], %53 {strides = array<i32>} : memref<64x256xf32, #tpu.memory_space<vmem>>, vector<64x256xf32>,
    return
  }
  func.func @transform_0(%arg0: i32) -> (i32, i32) {
    %c0_i32 = arith.constant 0 : i32
    %c0_i32_0 = arith.constant 0 : i32
    return %arg0, %c0_i32 : i32, i32
  }
  func.func @transform_1(%arg0: i32) -> (i32, i32) {
    %c0_i32 = arith.constant 0 : i32
    %c0_i32_0 = arith.constant 0 : i32
    %c0_i32_1 = arith.constant 0 : i32
    return %c0_i32, %c0_i32_0 : i32, i32
  }
  func.func @transform_2(%arg0: i32) -> (i32, i32) {
    %c0_i32 = arith.constant 0 : i32
    %c0_i32_0 = arith.constant 0 : i32
    %c0_i32_1 = arith.constant 0 : i32
    return %c0_i32, %c0_i32_0 : i32, i32
  }
  func.func @transform_3(%arg0: i32) -> (i32, i32) {
    %c0_i32 = arith.constant 0 : i32
    %c0_i32_0 = arith.constant 0 : i32
    %c0_i32_1 = arith.constant 0 : i32
    return %c0_i32, %c0_i32_0 : i32, i32
  }
  func.func @transform_4(%arg0: i32) -> (i32, i32) {
    %c0_i32 = arith.constant 0 : i32
    %c0_i32_0 = arith.constant 0 : i32
    %c0_i32_1 = arith.constant 0 : i32
    return %c0_i32, %c0_i32_0 : i32, i32
  }
  func.func @transform_5(%arg0: i32) -> (i32, i32) {
    %c0_i32 = arith.constant 0 : i32
    %c0_i32_0 = arith.constant 0 : i32
    %c0_i32_1 = arith.constant 0 : i32
    return %c0_i32, %c0_i32_0 : i32, i32
  }
  func.func @transform_6(%arg0: i32) -> (i32, i32) {
    %c0_i32 = arith.constant 0 : i32
    %c0_i32_0 = arith.constant 0 : i32
    %c0_i32_1 = arith.constant 0 : i32
    return %c0_i32, %c0_i32_0 : i32, i32
  }
  func.func @transform_7(%arg0: i32) -> (i32, i32) {
    %c0_i32 = arith.constant 0 : i32
    %c0_i32_0 = arith.constant 0 : i32
    return %arg0, %c0_i32 : i32, i32
  }
}

</mosaic_0001>

<bundles_post_ra>
// kernel: tpu_custom_call.1
= control target key start
LH: loop header
LB: loop body
LE: loop exit
PB: predicated region body
PF: predicated region fallthrough
CT: control target
= control target key end

     0   :  { %vm235_vm0 = vcmask 130048   ;;  %s14099_s0 = inlined_call_operand.vmem [shape: f32[1024,16], index: 0, kind: input, shape index: {}]   ;;  %s14100_s1 = inlined_call_operand.vmem [shape: bf16[16,32], index: 1, kind: input, shape index: {}]   ;;  %s14101_s2 = inlined_call_operand.vmem [shape: f32[1,32], index: 2, kind: input, shape index: {}]   ;;  %s14102_s3 = inlined_call_operand.vmem [shape: bf16[32,32], index: 3, kind: input, shape index: {}]   ;;  %s14103_s4 = inlined_call_operand.vmem [shape: f32[1,32], index: 4, kind: input, shape index: {}]   ;;  %s14104_s5 = inlined_call_operand.vmem [shape: bf16[32,32], index: 5, kind: input, shape index: {}]   ;;  %s14105_s6 = inlined_call_operand.vmem [shape: f32[1,32], index: 6, kind: input, shape index: {}]   ;;  %s14106_s7 = inlined_call_operand.hbm [shape: f32[64,256], index: 7, kind: output, shape index: {}]  }
   0x1   :  { %v8759_v0 = vld [vmem:[%s14100_s1] sm:$0xff]   ;;  %v29_v2 = vld [vmem:[%s14099_s0 + $0x8] sm:$0xff]  ;;  %v30_v3 = vld [vmem:[%s14099_s0 + $0x10] sm:$0xff] }
   0x2   :  { %v28_v1 = vld [vmem:[%s14099_s0] sm:$0xff]  ;;  %8357 = vmatprep.subr.bf16.mxu0 %v8759_v0  ;;  %v31_v5 = vld [vmem:[%s14099_s0 + $0x18] sm:$0xff]  ;;  %v33_v7 = vld [vmem:[%s14099_s0 + $0x28] sm:$0xff]  ;;  %8751 = vmatprep.subr.bf16.mxu1 %v8759_v0 }
   0x3   :  { %v156_v4 = vpack.c.bf16 %v29_v2, %v28_v1  ;;  %v32_v6 = vld [vmem:[%s14099_s0 + $0x20] sm:$0xff]  ;;  %8358 = vmatpush3.bf16.msra.mxu0 %v8759_v0  ;;  %v157_v8 = vpack.c.bf16 %v31_v5, %v30_v3  ;;  %8752 = vmatpush3.bf16.msra.mxu1 %v8759_v0  ;;  %v34_v10 = vld [vmem:[%s14099_s0 + $0x30] sm:$0xff]  ;;  %v35_v11 = vld [vmem:[%s14099_s0 + $0x38] sm:$0xff] }
   0x4   :  { %v158_v9 = vpack.c.bf16 %v33_v7, %v32_v6  ;;  %v36_v12 = vld [vmem:[%s14099_s0 + $0x40] sm:$0xff]  ;;  %v37_v13 = vld [vmem:[%s14099_s0 + $0x48] sm:$0xff]  ;;  %v159_v14 = vpack.c.bf16 %v35_v11, %v34_v10  ;;  %v38_v16 = vld [vmem:[%s14099_s0 + $0x50] sm:$0xff] }
   0x5   :  { %8359 = vmatprep.mubr.msk.bf16.mxu0 %vm235_vm0, %v156_v4  ;;  %v160_v15 = vpack.c.bf16 %v37_v13, %v36_v12  ;;  %v39_v17 = vld [vmem:[%s14099_s0 + $0x58] sm:$0xff]  ;;  %v40_v18 = vld [vmem:[%s14099_s0 + $0x60] sm:$0xff]  ;;  %v41_v19 = vld [vmem:[%s14099_s0 + $0x68] sm:$0xff] }
   0x6   :  { %8360 = vmatmul.mubr.msk.bf16.vlgmr.msra.gmra.mrb[0].mxu0 %vm235_vm0, %v157_v8  ;;  %v92_v20 = vld [vmem:[%s14099_s0 + $0x200] sm:$0xff]  ;;  %v93_v21 = vld [vmem:[%s14099_s0 + $0x208] sm:$0xff]  ;;  %v94_v22 = vld [vmem:[%s14099_s0 + $0x210] sm:$0xff]  ;;  %v161_v23 = vpack.c.bf16 %v39_v17, %v38_v16  ;;  %v162_v26 = vpack.c.bf16 %v41_v19, %v40_v18 }
   0x7   :  { %8363 = vmatprep.mubr.msk.bf16.mxu0 %vm235_vm0, %v158_v9  ;;  %v188_v24 = vpack.c.bf16 %v93_v21, %v92_v20  ;;  %v95_v25 = vld [vmem:[%s14099_s0 + $0x218] sm:$0xff]  ;;  %v8760_v28 = vld [vmem:[%s14102_s3] sm:$0xff]   ;;  %v97_v30 = vld [vmem:[%s14099_s0 + $0x228] sm:$0xff] }
   0x8   :  { %v189_v27 = vpack.c.bf16 %v95_v25, %v94_v22  ;;  %v96_v29 = vld [vmem:[%s14099_s0 + $0x220] sm:$0xff]  ;;  %8487 = vmatprep.subr.bf16.mxu1 %v8760_v28  ;;  %v42_v31 = vld [vmem:[%s14099_s0 + $0x70] sm:$0xff]  ;;  %v99_v34 = vld [vmem:[%s14099_s0 + $0x238] sm:$0xff] }
   0x9   :  { %8423 = vmatprep.mubr.msk.bf16.mxu1 %vm235_vm0, %v188_v24  ;;  %v190_v32 = vpack.c.bf16 %v97_v30, %v96_v29  ;;  %v98_v33 = vld [vmem:[%s14099_s0 + $0x230] sm:$0xff]  ;;  %v43_v35 = vld [vmem:[%s14099_s0 + $0x78] sm:$0xff]  ;;  %v100_v36 = vld [vmem:[%s14099_s0 + $0x240] sm:$0xff] }
   0xa   :  { %8424 = vmatmul.mubr.msk.bf16.vlgmr.msra.gmra.mrb[0].mxu1 %vm235_vm0, %v189_v27  ;;  %v101_v37 = vld [vmem:[%s14099_s0 + $0x248] sm:$0xff]  ;;  %v44_v38 = vld [vmem:[%s14099_s0 + $0x80] sm:$0xff]  ;;  %v191_v40 = vpack.c.bf16 %v99_v34, %v98_v33  ;;  %v163_v41 = vpack.c.bf16 %v43_v35, %v42_v31  ;;  %v46_v44 = vld [vmem:[%s14099_s0 + $0x90] sm:$0xff] }
   0xb   :  { %8488 = vmatpush3.bf16.msra.mxu1 %v8760_v28  ;;  %v45_v39 = vld [vmem:[%s14099_s0 + $0x88] sm:$0xff]  ;;  %8427 = vmatprep.mubr.msk.bf16.mxu1 %vm235_vm0, %v190_v32  ;;  %v192_v42 = vpack.c.bf16 %v101_v37, %v100_v36  ;;  %v102_v45 = vld [vmem:[%s14099_s0 + $0x250] sm:$0xff]  ;;  %v103_v46 = vld [vmem:[%s14099_s0 + $0x258] sm:$0xff] }
   0xc   :  { %v164_v43 = vpack.c.bf16 %v45_v39, %v44_v38  ;;  %v47_v47 = vld [vmem:[%s14099_s0 + $0x98] sm:$0xff]  ;;  %v104_v48 = vld [vmem:[%s14099_s0 + $0x260] sm:$0xff]  ;;  %v105_v49 = vld [vmem:[%s14099_s0 + $0x268] sm:$0xff]  ;;  %v193_v52 = vpack.c.bf16 %v103_v46, %v102_v45 }
   0xd   :  { %v48_v50 = vld [vmem:[%s14099_s0 + $0xa0] sm:$0xff]  ;;  %v49_v51 = vld [vmem:[%s14099_s0 + $0xa8] sm:$0xff]  ;;  %v165_v53 = vpack.c.bf16 %v47_v47, %v46_v44  ;;  %v194_v54 = vpack.c.bf16 %v105_v49, %v104_v48  ;;  %v50_v57 = vld [vmem:[%s14099_s0 + $0xb0] sm:$0xff] }
   0xe   :  { %8364 = vmatmul.mubr.msk.bf16.gmra.mrb[4].mxu0 %vm235_vm0, %v159_v14  ;;  %v166_v55 = vpack.c.bf16 %v49_v51, %v48_v50  ;;  %v8761_v56 = vld [vmem:[%s14102_s3 + $0x8] sm:$0xff]   ;;  %v106_v58 = vld [vmem:[%s14099_s0 + $0x270] sm:$0xff]  ;;  %v107_v59 = vld [vmem:[%s14099_s0 + $0x278] sm:$0xff] }
   0xf   :  { %8367 = vmatprep.mubr.msk.bf16.mxu0 %vm235_vm0, %v160_v15  ;;  %v51_v60 = vld [vmem:[%s14099_s0 + $0xb8] sm:$0xff]  ;;  %v108_v61 = vld [vmem:[%s14099_s0 + $0x280] sm:$0xff]  ;;  %v109_v62 = vld [vmem:[%s14099_s0 + $0x288] sm:$0xff]  ;;  %8489 = vmatprep.subr.bf16.mxu1 %v8761_v56  ;;  %v195_v1 = vpack.c.bf16 %v107_v59, %v106_v58 }
  0x10   :  { %v52_v63 = vld [vmem:[%s14099_s0 + $0xc0] sm:$0xff]  ;;  %v53_v0 = vld [vmem:[%s14099_s0 + $0xc8] sm:$0xff]  ;;  %8490 = vmatpush3.bf16.msra.mxu1 %v8761_v56  ;;  %v167_v2 = vpack.c.bf16 %v51_v60, %v50_v57  ;;  %v196_v3 = vpack.c.bf16 %v109_v62, %v108_v61  ;;  %v110_v5 = vld [vmem:[%s14099_s0 + $0x290] sm:$0xff] }
  0x11   :  { %v168_v4 = vpack.c.bf16 %v53_v0, %v52_v63  ;;  %v54_v6 = vld [vmem:[%s14099_s0 + $0xd0] sm:$0xff]  ;;  %v111_v7 = vld [vmem:[%s14099_s0 + $0x298] sm:$0xff] }
  0x12   :  { %8428 = vmatmul.mubr.msk.bf16.gmra.mrb[4].mxu1 %vm235_vm0, %v191_v40 }
  0x13   :  { %8431 = vmatprep.mubr.msk.bf16.mxu1 %vm235_vm0, %v192_v42 }
  0x16   :  { %8368 = vmatmul.mubr.msk.bf16.gmra.mrb[8].mxu0 %vm235_vm0, %v161_v23 }
  0x17   :  { %8371 = vmatprep.mubr.msk.bf16.mxu0 %vm235_vm0, %v162_v26 }
  0x1a   :  { %8432 = vmatmul.mubr.msk.bf16.gmra.mrb[8].mxu1 %vm235_vm0, %v193_v52 }
  0x1b   :  { %8435 = vmatprep.mubr.msk.bf16.mxu1 %vm235_vm0, %v194_v54 }
  0x1e   :  { %8372 = vmatmul.mubr.msk.bf16.gmra.mrb[12].mxu0 %vm235_vm0, %v163_v41 }
  0x1f   :  { %8375 = vmatprep.mubr.msk.bf16.mxu0 %vm235_vm0, %v164_v43 }
  0x22   :  { %8436 = vmatmul.mubr.msk.bf16.gmra.mrb[12].mxu1 %vm235_vm0, %v195_v1 }
  0x23   :  { %8439 = vmatprep.mubr.msk.bf16.mxu1 %vm235_vm0, %v196_v3 }
  0x26   :  { %8376 = vmatmul.mubr.msk.bf16.gmra.mrb[16].mxu0 %vm235_vm0, %v165_v53 }
  0x27   :  { %8379 = vmatprep.mubr.msk.bf16.mxu0 %vm235_vm0, %v166_v55 }
  0x2e   :  { %8380 = vmatmul.mubr.msk.bf16.gmra.mrb[20].mxu0 %vm235_vm0, %v167_v2 }
  0x2f   :  { %12 = vsyncpa [#allocation3], 0  ;;  %8383 = vmatprep.mubr.msk.bf16.mxu0 %vm235_vm0, %v168_v4  ;;  %v55_v8 = vld [vmem:[%s14099_s0 + $0xd8] sm:$0xff]  ;;  %v112_v9 = vld [vmem:[%s14099_s0 + $0x2a0] sm:$0xff]  ;;  %v197_v13 = vpack.c.bf16 %v111_v7, %v110_v5  ;;  %vm1188_vm1 = vcmask 261120   ;;  %vm3262_vm2 = vcmask 257024  }
  0x30   :  { %v113_v10 = vld [vmem:[%s14099_s0 + $0x2a8] sm:$0xff]  ;;  %v56_v11 = vld [vmem:[%s14099_s0 + $0xe0] sm:$0xff]  ;;  %v169_v14 = vpack.c.bf16 %v55_v8, %v54_v6  ;;  %v58_v17 = vld [vmem:[%s14099_s0 + $0xf0] sm:$0xff]  ;;  %vm6783_vm3 = vcmask 1041409   ;;  %vm6785_vm4 = vcmask 1042434   ;;  %vm6787_vm5 = vcmask 1043459  }
  0x31   :  { %v57_v12 = vld [vmem:[%s14099_s0 + $0xe8] sm:$0xff]  ;;  %v198_v15 = vpack.c.bf16 %v113_v10, %v112_v9  ;;  %8440 = vmatmul.mubr.msk.bf16.gmra.mrb[16].mxu1 %vm235_vm0, %v197_v13  ;;  %v114_v18 = vld [vmem:[%s14099_s0 + $0x2b0] sm:$0xff]  ;;  %v115_v19 = vld [vmem:[%s14099_s0 + $0x2b8] sm:$0xff]  ;;  %vm6789_vm6 = vcmask 1044484   ;;  %vm6791_vm7 = vcmask 1045509   ;;  %vm6793_vm8 = vcmask 1046534  }
  0x32   :  { %v170_v16 = vpack.c.bf16 %v57_v12, %v56_v11  ;;  %v59_v20 = vld [vmem:[%s14099_s0 + $0xf8] sm:$0xff]  ;;  %v116_v21 = vld [vmem:[%s14099_s0 + $0x2c0] sm:$0xff]  ;;  %v117_v22 = vld [vmem:[%s14099_s0 + $0x2c8] sm:$0xff]  ;;  %v199_v25 = vpack.c.bf16 %v115_v19, %v114_v18  ;;  %vm6795_vm9 = vcmask 1047559   ;;  %s8795_s24 = smov 64   ;;  %s8796_s25 = smov 32  }
  0x33   :  { %8443 = vmatprep.mubr.msk.bf16.mxu1 %vm235_vm0, %v198_v15  ;;  %v60_v23 = vld [vmem:[%s14099_s0 + $0x100] sm:$0xff]  ;;  %v61_v24 = vld [vmem:[%s14099_s0 + $0x108] sm:$0xff]  ;;  %v171_v26 = vpack.c.bf16 %v59_v20, %v58_v17  ;;  %v200_v27 = vpack.c.bf16 %v117_v22, %v116_v21  ;;  %v62_v29 = vld [vmem:[%s14099_s0 + $0x110] sm:$0xff]  ;;  %s8797_s26 = smov 96   ;;  %vm7886_vm10 = vcmask 523264   ;;  %vm7895_vm11 = vcmask 785408  }
  0x34   :  { %v172_v28 = vpack.c.bf16 %v61_v24, %v60_v23  ;;  %v118_v30 = vld [vmem:[%s14099_s0 + $0x2d0] sm:$0xff]  ;;  %v119_v31 = vld [vmem:[%s14099_s0 + $0x2d8] sm:$0xff]  ;;  %v120_v33 = vld [vmem:[%s14099_s0 + $0x2e0] sm:$0xff] }
  0x35   :  { %v63_v32 = vld [vmem:[%s14099_s0 + $0x118] sm:$0xff]  ;;  %v121_v34 = vld [vmem:[%s14099_s0 + $0x2e8] sm:$0xff]  ;;  %v64_v35 = vld [vmem:[%s14099_s0 + $0x120] sm:$0xff]  ;;  %v201_v37 = vpack.c.bf16 %v119_v31, %v118_v30 }
  0x36   :  { %8384 = vmatmul.mubr.msk.bf16.gmra.mrb[24].mxu0 %vm235_vm0, %v169_v14  ;;  %v65_v36 = vld [vmem:[%s14099_s0 + $0x128] sm:$0xff]  ;;  %v173_v38 = vpack.c.bf16 %v63_v32, %v62_v29  ;;  %v202_v39 = vpack.c.bf16 %v121_v34, %v120_v33  ;;  %v66_v41 = vld [vmem:[%s14099_s0 + $0x130] sm:$0xff]  ;;  %v123_v43 = vld [vmem:[%s14099_s0 + $0x2f8] sm:$0xff] }
  0x37   :  { %8387 = vmatprep.mubr.msk.bf16.mxu0 %vm235_vm0, %v170_v16  ;;  %v174_v40 = vpack.c.bf16 %v65_v36, %v64_v35  ;;  %v122_v42 = vld [vmem:[%s14099_s0 + $0x2f0] sm:$0xff]  ;;  %v67_v44 = vld [vmem:[%s14099_s0 + $0x138] sm:$0xff]  ;;  %v124_v45 = vld [vmem:[%s14099_s0 + $0x300] sm:$0xff] }
  0x38   :  { %v125_v46 = vld [vmem:[%s14099_s0 + $0x308] sm:$0xff]  ;;  %v68_v47 = vld [vmem:[%s14099_s0 + $0x140] sm:$0xff]  ;;  %v203_v49 = vpack.c.bf16 %v123_v43, %v122_v42  ;;  %v175_v50 = vpack.c.bf16 %v67_v44, %v66_v41  ;;  %v70_v53 = vld [vmem:[%s14099_s0 + $0x150] sm:$0xff] }
  0x39   :  { %8444 = vmatmul.mubr.msk.bf16.gmra.mrb[20].mxu1 %vm235_vm0, %v199_v25  ;;  %v69_v48 = vld [vmem:[%s14099_s0 + $0x148] sm:$0xff]  ;;  %v204_v51 = vpack.c.bf16 %v125_v46, %v124_v45  ;;  %v126_v54 = vld [vmem:[%s14099_s0 + $0x310] sm:$0xff]  ;;  %v127_v55 = vld [vmem:[%s14099_s0 + $0x318] sm:$0xff] }
  0x3a   :  { %8447 = vmatprep.mubr.msk.bf16.mxu1 %vm235_vm0, %v200_v27  ;;  %v176_v52 = vpack.c.bf16 %v69_v48, %v68_v47  ;;  %v71_v56 = vld [vmem:[%s14099_s0 + $0x158] sm:$0xff]  ;;  %v128_v57 = vld [vmem:[%s14099_s0 + $0x320] sm:$0xff]  ;;  %v129_v58 = vld [vmem:[%s14099_s0 + $0x328] sm:$0xff]  ;;  %v205_v61 = vpack.c.bf16 %v127_v55, %v126_v54 }
  0x3b   :  { %v72_v59 = vld [vmem:[%s14099_s0 + $0x160] sm:$0xff]  ;;  %v73_v60 = vld [vmem:[%s14099_s0 + $0x168] sm:$0xff]  ;;  %v177_v62 = vpack.c.bf16 %v71_v56, %v70_v53  ;;  %v206_v63 = vpack.c.bf16 %v129_v58, %v128_v57  ;;  %v74_v1 = vld [vmem:[%s14099_s0 + $0x170] sm:$0xff] }
  0x3c   :  { %v178_v0 = vpack.c.bf16 %v73_v60, %v72_v59  ;;  %v130_v2 = vld [vmem:[%s14099_s0 + $0x330] sm:$0xff]  ;;  %v131_v3 = vld [vmem:[%s14099_s0 + $0x338] sm:$0xff]  ;;  %v132_v5 = vld [vmem:[%s14099_s0 + $0x340] sm:$0xff] }
  0x3d   :  { %v75_v4 = vld [vmem:[%s14099_s0 + $0x178] sm:$0xff]  ;;  %v133_v6 = vld [vmem:[%s14099_s0 + $0x348] sm:$0xff]  ;;  %v76_v7 = vld [vmem:[%s14099_s0 + $0x180] sm:$0xff]  ;;  %v207_v9 = vpack.c.bf16 %v131_v3, %v130_v2 }
  0x3e   :  { %8388 = vmatmul.mubr.msk.bf16.gmra.mrb[28].mxu0 %vm235_vm0, %v171_v26  ;;  %v77_v8 = vld [vmem:[%s14099_s0 + $0x188] sm:$0xff]  ;;  %v179_v10 = vpack.c.bf16 %v75_v4, %v74_v1  ;;  %v208_v11 = vpack.c.bf16 %v133_v6, %v132_v5  ;;  %v78_v13 = vld [vmem:[%s14099_s0 + $0x190] sm:$0xff]  ;;  %v135_v15 = vld [vmem:[%s14099_s0 + $0x358] sm:$0xff] }
  0x3f   :  { %8391 = vmatprep.mubr.msk.bf16.mxu0 %vm235_vm0, %v172_v28  ;;  %v180_v12 = vpack.c.bf16 %v77_v8, %v76_v7  ;;  %v134_v14 = vld [vmem:[%s14099_s0 + $0x350] sm:$0xff]  ;;  %v79_v16 = vld [vmem:[%s14099_s0 + $0x198] sm:$0xff]  ;;  %v136_v17 = vld [vmem:[%s14099_s0 + $0x360] sm:$0xff] }
  0x40   :  { %v137_v18 = vld [vmem:[%s14099_s0 + $0x368] sm:$0xff]  ;;  %v80_v19 = vld [vmem:[%s14099_s0 + $0x1a0] sm:$0xff]  ;;  %v209_v21 = vpack.c.bf16 %v135_v15, %v134_v14  ;;  %v181_v22 = vpack.c.bf16 %v79_v16, %v78_v13  ;;  %v82_v25 = vld [vmem:[%s14099_s0 + $0x1b0] sm:$0xff] }
  0x41   :  { %8448 = vmatmul.mubr.msk.bf16.gmra.mrb[24].mxu1 %vm235_vm0, %v201_v37  ;;  %v81_v20 = vld [vmem:[%s14099_s0 + $0x1a8] sm:$0xff]  ;;  %v210_v23 = vpack.c.bf16 %v137_v18, %v136_v17  ;;  %v138_v26 = vld [vmem:[%s14099_s0 + $0x370] sm:$0xff]  ;;  %v139_v27 = vld [vmem:[%s14099_s0 + $0x378] sm:$0xff] }
  0x42   :  { %8451 = vmatprep.mubr.msk.bf16.mxu1 %vm235_vm0, %v202_v39  ;;  %v182_v24 = vpack.c.bf16 %v81_v20, %v80_v19  ;;  %v83_v28 = vld [vmem:[%s14099_s0 + $0x1b8] sm:$0xff]  ;;  %v140_v29 = vld [vmem:[%s14099_s0 + $0x380] sm:$0xff]  ;;  %v141_v30 = vld [vmem:[%s14099_s0 + $0x388] sm:$0xff]  ;;  %v211_v33 = vpack.c.bf16 %v139_v27, %v138_v26 }
  0x43   :  { %v84_v31 = vld [vmem:[%s14099_s0 + $0x1c0] sm:$0xff]  ;;  %v85_v32 = vld [vmem:[%s14099_s0 + $0x1c8] sm:$0xff]  ;;  %v183_v34 = vpack.c.bf16 %v83_v28, %v82_v25  ;;  %v212_v35 = vpack.c.bf16 %v141_v30, %v140_v29  ;;  %v86_v37 = vld [vmem:[%s14099_s0 + $0x1d0] sm:$0xff] }
  0x44   :  { %v184_v36 = vpack.c.bf16 %v85_v32, %v84_v31  ;;  %v143_v39 = vld [vmem:[%s14099_s0 + $0x398] sm:$0xff]  ;;  %v144_v41 = vld [vmem:[%s14099_s0 + $0x3a0] sm:$0xff]  ;;  %v145_v42 = vld [vmem:[%s14099_s0 + $0x3a8] sm:$0xff] }
  0x45   :  { %v88_v43 = vld [vmem:[%s14099_s0 + $0x1e0] sm:$0xff]  ;;  %v89_v44 = vld [vmem:[%s14099_s0 + $0x1e8] sm:$0xff]  ;;  %v214_v47 = vpack.c.bf16 %v145_v42, %v144_v41  ;;  %v150_v58 = vld [vmem:[%s14099_s0 + $0x3d0] sm:$0xff] }
  0x46   :  { %8392 = vmatmul.mubr.msk.bf16.gmra.mrb[32].mxu0 %vm235_vm0, %v173_v38  ;;  %v142_v38 = vld [vmem:[%s14099_s0 + $0x390] sm:$0xff]  ;;  %v186_v48 = vpack.c.bf16 %v89_v44, %v88_v43  ;;  %v148_v53 = vld [vmem:[%s14099_s0 + $0x3c0] sm:$0xff]  ;;  %v149_v54 = vld [vmem:[%s14099_s0 + $0x3c8] sm:$0xff] }
  0x47   :  { %8395 = vmatprep.mubr.msk.bf16.mxu0 %vm235_vm0, %v174_v40  ;;  %v87_v40 = vld [vmem:[%s14099_s0 + $0x1d8] sm:$0xff]  ;;  %v213_v45 = vpack.c.bf16 %v143_v39, %v142_v38  ;;  %v216_v57 = vpack.c.bf16 %v149_v54, %v148_v53  ;;  %v152_v60 = vld [vmem:[%s14099_s0 + $0x3e0] sm:$0xff] }
  0x48   :  { %v185_v46 = vpack.c.bf16 %v87_v40, %v86_v37  ;;  %v151_v59 = vld [vmem:[%s14099_s0 + $0x3d8] sm:$0xff]  ;;  %v8762_v3 = vld [vmem:[%s14104_s5] sm:$0xff]  }
  0x49   :  { %8452 = vmatmul.mubr.msk.bf16.gmra.mrb[28].mxu1 %vm235_vm0, %v203_v49  ;;  %v90_v49 = vld [vmem:[%s14099_s0 + $0x1f0] sm:$0xff]  ;;  %v155_v1 = vld [vmem:[%s14099_s0 + $0x3f8] sm:$0xff]  ;;  %8619 = vmatprep.subr.bf16.mxu0 %v8762_v3  ;;  %v9304_v4 = vld [vmem:[%s14101_s2] ss:$0 sm:$0xff] }
  0x4a   :  { %8455 = vmatprep.mubr.msk.bf16.mxu1 %vm235_vm0, %v204_v51  ;;  %v147_v51 = vld [vmem:[%s14099_s0 + $0x3b8] sm:$0xff]  ;;  %8620 = vmatpush3.bf16.msra.mxu0 %v8762_v3 }
  0x4e   :  { %8396 = vmatmul.mubr.msk.bf16.gmra.mrb[36].mxu0 %vm235_vm0, %v175_v50  ;;  %v146_v50 = vld [vmem:[%s14099_s0 + $0x3b0] sm:$0xff] }
  0x4f   :  { %8399 = vmatprep.mubr.msk.bf16.mxu0 %vm235_vm0, %v176_v52  ;;  %v91_v52 = vld [vmem:[%s14099_s0 + $0x1f8] sm:$0xff]  ;;  %v215_v55 = vpack.c.bf16 %v147_v51, %v146_v50 }
  0x50   :  { %v187_v56 = vpack.c.bf16 %v91_v52, %v90_v49 }
  0x51   :  { %8456 = vmatmul.mubr.msk.bf16.gmra.mrb[32].mxu1 %vm235_vm0, %v205_v61  ;;  %v153_v61 = vld [vmem:[%s14099_s0 + $0x3e8] sm:$0xff] }
  0x52   :  { %8459 = vmatprep.mubr.msk.bf16.mxu1 %vm235_vm0, %v206_v63  ;;  %v218_v63 = vpack.c.bf16 %v153_v61, %v152_v60 }
  0x56   :  { %8400 = vmatmul.mubr.msk.bf16.gmra.mrb[40].mxu0 %vm235_vm0, %v177_v62  ;;  %v217_v62 = vpack.c.bf16 %v151_v59, %v150_v58 }
  0x57   :  { %8403 = vmatprep.mubr.msk.bf16.mxu0 %vm235_vm0, %v178_v0  ;;  %v154_v0 = vld [vmem:[%s14099_s0 + $0x3f0] sm:$0xff] }
  0x58   :  { %v219_v2 = vpack.c.bf16 %v155_v1, %v154_v0 }
  0x59   :  { %8460 = vmatmul.mubr.msk.bf16.gmra.mrb[36].mxu1 %vm235_vm0, %v207_v9 }
  0x5a   :  { %8463 = vmatprep.mubr.msk.bf16.mxu1 %vm235_vm0, %v208_v11 }
  0x5e   :  { %8404 = vmatmul.mubr.msk.bf16.gmra.mrb[44].mxu0 %vm235_vm0, %v179_v10 }
  0x5f   :  { %8407 = vmatprep.mubr.msk.bf16.mxu0 %vm235_vm0, %v180_v12 }
  0x61   :  { %8464 = vmatmul.mubr.msk.bf16.gmra.mrb[40].mxu1 %vm235_vm0, %v209_v21 }
  0x62   :  { %8467 = vmatprep.mubr.msk.bf16.mxu1 %vm235_vm0, %v210_v23 }
  0x66   :  { %8408 = vmatmul.mubr.msk.bf16.gmra.mrb[48].mxu0 %vm235_vm0, %v181_v22 }
  0x67   :  { %8411 = vmatprep.mubr.msk.bf16.mxu0 %vm235_vm0, %v182_v24 }
  0x69   :  { %8468 = vmatmul.mubr.msk.bf16.gmra.mrb[44].mxu1 %vm235_vm0, %v211_v33 }
  0x6a   :  { %8471 = vmatprep.mubr.msk.bf16.mxu1 %vm235_vm0, %v212_v35 }
  0x6e   :  { %8412 = vmatmul.mubr.msk.bf16.gmra.mrb[52].mxu0 %vm235_vm0, %v183_v34 }
  0x6f   :  { %8415 = vmatprep.mubr.msk.bf16.mxu0 %vm235_vm0, %v184_v36 }
  0x71   :  { %8472 = vmatmul.mubr.msk.bf16.gmra.mrb[48].mxu1 %vm235_vm0, %v213_v45 }
  0x72   :  { %8475 = vmatprep.mubr.msk.bf16.mxu1 %vm235_vm0, %v214_v47 }
  0x76   :  { %8416 = vmatmul.mubr.msk.bf16.gmra.mrb[56].mxu0 %vm235_vm0, %v185_v46 }
  0x77   :  { %8419 = vmatprep.mubr.msk.bf16.mxu0 %vm235_vm0, %v186_v48 }
  0x79   :  { %8476 = vmatmul.mubr.msk.bf16.gmra.mrb[52].mxu1 %vm235_vm0, %v215_v55 }
  0x7a   :  { %8479 = vmatprep.mubr.msk.bf16.mxu1 %vm235_vm0, %v216_v57 }
  0x7e   :  { %8420 = vmatmul.mubr.msk.bf16.gmra.mrb[60].mxu0 %vm235_vm0, %v187_v56 }
  0x81   :  { %8480 = vmatmul.mubr.msk.bf16.gmra.mrb[56].mxu1 %vm235_vm0, %v217_v62 }
  0x82   :  { %8483 = vmatprep.mubr.msk.bf16.mxu1 %vm235_vm0, %v218_v63 }
  0x89   :  { %8484 = vmatmul.mubr.msk.bf16.gmra.mrb[60].mxu1 %vm235_vm0, %v219_v2 }
  0xd9   :  { %v8361_v5 = vpop.f32.mrb[0].mxu0 }
  0xda   :  { %v471_v6 = vadd.f32 %v8361_v5, %v9304_v4  ;;  %v462_v7 = vpop.f32.mrb[1].mxu0 }
  0xdb   :  { %v463_v8 = vadd.f32 %v9304_v4, %v462_v7  ;;  %v8362_v9 = vpop.f32.mrb[2].mxu0 }
  0xdc   :  { %v474_v10 = vadd.f32 %v8362_v9, %v9304_v4  ;;  %v465_v11 = vpop.f32.mrb[3].mxu0  ;;  %v975_v13 = vmax.f32 %v471_v6, 0.0 }
  0xdd   :  { %v466_v12 = vadd.f32 %v9304_v4, %v465_v11  ;;  %v973_v15 = vmax.f32 %v463_v8, 0.0  ;;  %v8425_v32 = vpop.f32.mrb[0].mxu1 }
  0xde   :  { %v976_v14 = vmax.f32 %v474_v10, 0.0  ;;  %v727_v35 = vadd.f32 %v8425_v32, %v9304_v4  ;;  %v718_v36 = vpop.f32.mrb[1].mxu1 }
  0xdf   :  { %v974_v16 = vmax.f32 %v466_v12, 0.0  ;;  %v719_v39 = vadd.f32 %v9304_v4, %v718_v36  ;;  %v8426_v40 = vpop.f32.mrb[2].mxu1 }
  0xe0   :  { %v1102_v17 = vpack.c.bf16 %v976_v14, %v975_v13  ;;  %v1039_v43 = vmax.f32 %v727_v35, 0.0  ;;  %v730_v44 = vadd.f32 %v8426_v40, %v9304_v4  ;;  %v721_v45 = vpop.f32.mrb[3].mxu1 }
  0xe1   :  { %v1101_v18 = vpack.c.bf16 %v974_v16, %v973_v15  ;;  %v8365_v19 = vpop.f32.mrb[4].mxu0  ;;  %v1037_v48 = vmax.f32 %v719_v39, 0.0  ;;  %v722_v49 = vadd.f32 %v9304_v4, %v721_v45  ;;  %v8763_v45 = vld [vmem:[%s14104_s5 + $0x8] sm:$0xff]  }
  0xe2   :  { %v487_v20 = vadd.f32 %v8365_v19, %v9304_v4  ;;  %v478_v21 = vpop.f32.mrb[5].mxu0  ;;  %v1040_v51 = vmax.f32 %v730_v44, 0.0  ;;  %8621 = vmatprep.subr.bf16.mxu0 %v8763_v45 }
  0xe3   :  { %v479_v22 = vadd.f32 %v9304_v4, %v478_v21  ;;  %v8366_v23 = vpop.f32.mrb[6].mxu0  ;;  %8491 = vmatprep.mubr.msk.bf16.mxu1 %vm1188_vm1, %v1101_v18  ;;  %v1038_v54 = vmax.f32 %v722_v49, 0.0  ;;  %8622 = vmatpush3.bf16.msra.mxu0 %v8763_v45 }
  0xe4   :  { %v490_v24 = vadd.f32 %v8366_v23, %v9304_v4  ;;  %v481_v25 = vpop.f32.mrb[7].mxu0  ;;  %8492 = vmatmul.mubr.msk.bf16.vlgmr.msra.gmra.mrb[64].mxu1 %vm1188_vm1, %v1102_v17  ;;  %v979_v27 = vmax.f32 %v487_v20, 0.0  ;;  %v9326_v57 = vpack.c.bf16 %v1040_v51, %v1039_v43 }
  0xe5   :  { %v482_v26 = vadd.f32 %v9304_v4, %v481_v25  ;;  %v977_v29 = vmax.f32 %v479_v22, 0.0  ;;  %v9328_v59 = vpack.c.bf16 %v1038_v54, %v1037_v48  ;;  %v8429_v60 = vpop.f32.mrb[4].mxu1 }
  0xe6   :  { %v980_v28 = vmax.f32 %v490_v24, 0.0  ;;  %v743_v63 = vadd.f32 %v8429_v60, %v9304_v4  ;;  %v734_v0 = vpop.f32.mrb[5].mxu1 }
  0xe7   :  { %v978_v30 = vmax.f32 %v482_v26, 0.0  ;;  %v735_v3 = vadd.f32 %v9304_v4, %v734_v0  ;;  %v8430_v5 = vpop.f32.mrb[6].mxu1 }
  0xe8   :  { %v1104_v31 = vpack.c.bf16 %v980_v28, %v979_v27  ;;  %v1043_v8 = vmax.f32 %v743_v63, 0.0  ;;  %v746_v9 = vadd.f32 %v8430_v5, %v9304_v4  ;;  %v737_v10 = vpop.f32.mrb[7].mxu1 }
  0xe9   :  { %v1103_v33 = vpack.c.bf16 %v978_v30, %v977_v29  ;;  %v8369_v34 = vpop.f32.mrb[8].mxu0  ;;  %v1041_v13 = vmax.f32 %v735_v3, 0.0  ;;  %v738_v14 = vadd.f32 %v9304_v4, %v737_v10 }
  0xea   :  { %v503_v37 = vadd.f32 %v8369_v34, %v9304_v4  ;;  %v494_v38 = vpop.f32.mrb[9].mxu0  ;;  %v1044_v16 = vmax.f32 %v746_v9, 0.0 }
  0xeb   :  { %v495_v41 = vadd.f32 %v9304_v4, %v494_v38  ;;  %v8370_v42 = vpop.f32.mrb[10].mxu0  ;;  %8495 = vmatprep.mubr.msk.bf16.mxu1 %vm1188_vm1, %v1103_v33  ;;  %v1042_v19 = vmax.f32 %v738_v14, 0.0 }
  0xec   :  { %v506_v46 = vadd.f32 %v8370_v42, %v9304_v4  ;;  %v497_v47 = vpop.f32.mrb[11].mxu0  ;;  %8496 = vmatmul.mubr.msk.bf16.gmra.mrb[68].mxu1 %vm1188_vm1, %v1104_v31  ;;  %v983_v52 = vmax.f32 %v503_v37, 0.0  ;;  %v9340_v22 = vpack.c.bf16 %v1044_v16, %v1043_v8 }
  0xed   :  { %v498_v50 = vadd.f32 %v9304_v4, %v497_v47  ;;  %v981_v55 = vmax.f32 %v495_v41, 0.0  ;;  %v9342_v24 = vpack.c.bf16 %v1042_v19, %v1041_v13  ;;  %v8433_v25 = vpop.f32.mrb[8].mxu1 }
  0xee   :  { %v984_v53 = vmax.f32 %v506_v46, 0.0  ;;  %v759_v28 = vadd.f32 %v8433_v25, %v9304_v4  ;;  %v750_v29 = vpop.f32.mrb[9].mxu1 }
  0xef   :  { %v982_v56 = vmax.f32 %v498_v50, 0.0  ;;  %v751_v32 = vadd.f32 %v9304_v4, %v750_v29  ;;  %v8434_v33 = vpop.f32.mrb[10].mxu1 }
  0xf0   :  { %v1106_v58 = vpack.c.bf16 %v984_v53, %v983_v52  ;;  %v1047_v36 = vmax.f32 %v759_v28, 0.0  ;;  %v762_v37 = vadd.f32 %v8434_v33, %v9304_v4  ;;  %v753_v38 = vpop.f32.mrb[11].mxu1 }
  0xf1   :  { %v1105_v61 = vpack.c.bf16 %v982_v56, %v981_v55  ;;  %v8373_v62 = vpop.f32.mrb[12].mxu0  ;;  %v1045_v41 = vmax.f32 %v751_v32, 0.0  ;;  %v754_v42 = vadd.f32 %v9304_v4, %v753_v38 }
  0xf2   :  { %v519_v1 = vadd.f32 %v8373_v62, %v9304_v4  ;;  %v510_v2 = vpop.f32.mrb[13].mxu0  ;;  %v1048_v44 = vmax.f32 %v762_v37, 0.0 }
  0xf3   :  { %v511_v6 = vadd.f32 %v9304_v4, %v510_v2  ;;  %v8374_v7 = vpop.f32.mrb[14].mxu0  ;;  %8499 = vmatprep.mubr.msk.bf16.mxu1 %vm1188_vm1, %v1105_v61  ;;  %v1046_v48 = vmax.f32 %v754_v42, 0.0 }
  0xf4   :  { %v522_v11 = vadd.f32 %v8374_v7, %v9304_v4  ;;  %v513_v12 = vpop.f32.mrb[15].mxu0  ;;  %8500 = vmatmul.mubr.msk.bf16.gmra.mrb[72].mxu1 %vm1188_vm1, %v1106_v58  ;;  %v987_v17 = vmax.f32 %v519_v1, 0.0  ;;  %v9357_v51 = vpack.c.bf16 %v1048_v44, %v1047_v36 }
  0xf5   :  { %v514_v15 = vadd.f32 %v9304_v4, %v513_v12  ;;  %v985_v20 = vmax.f32 %v511_v6, 0.0  ;;  %v9359_v53 = vpack.c.bf16 %v1046_v48, %v1045_v41  ;;  %v8437_v54 = vpop.f32.mrb[12].mxu1 }
  0xf6   :  { %v988_v18 = vmax.f32 %v522_v11, 0.0  ;;  %v775_v58 = vadd.f32 %v8437_v54, %v9304_v4  ;;  %v766_v60 = vpop.f32.mrb[13].mxu1 }
  0xf7   :  { %v986_v21 = vmax.f32 %v514_v15, 0.0  ;;  %v767_v63 = vadd.f32 %v9304_v4, %v766_v60  ;;  %v8438_v0 = vpop.f32.mrb[14].mxu1 }
  0xf8   :  { %v1108_v23 = vpack.c.bf16 %v988_v18, %v987_v17  ;;  %v1051_v3 = vmax.f32 %v775_v58, 0.0  ;;  %v778_v5 = vadd.f32 %v8438_v0, %v9304_v4  ;;  %v769_v6 = vpop.f32.mrb[15].mxu1 }
  0xf9   :  { %v1107_v26 = vpack.c.bf16 %v986_v21, %v985_v20  ;;  %v8377_v27 = vpop.f32.mrb[16].mxu0  ;;  %v1049_v9 = vmax.f32 %v767_v63, 0.0  ;;  %v770_v10 = vadd.f32 %v9304_v4, %v769_v6 }
  0xfa   :  { %v535_v30 = vadd.f32 %v8377_v27, %v9304_v4  ;;  %v526_v31 = vpop.f32.mrb[17].mxu0  ;;  %v1052_v12 = vmax.f32 %v778_v5, 0.0 }
  0xfb   :  { %v527_v34 = vadd.f32 %v9304_v4, %v526_v31  ;;  %v8378_v35 = vpop.f32.mrb[18].mxu0  ;;  %8503 = vmatprep.mubr.msk.bf16.mxu1 %vm1188_vm1, %v1107_v26  ;;  %v1050_v15 = vmax.f32 %v770_v10, 0.0 }
  0xfc   :  { %v538_v39 = vadd.f32 %v8378_v35, %v9304_v4  ;;  %v529_v40 = vpop.f32.mrb[19].mxu0  ;;  %8504 = vmatmul.mubr.msk.bf16.gmra.mrb[76].mxu1 %vm1188_vm1, %v1108_v23  ;;  %v991_v46 = vmax.f32 %v535_v30, 0.0  ;;  %v9371_v18 = vpack.c.bf16 %v1052_v12, %v1051_v3 }
  0xfd   :  { %v530_v43 = vadd.f32 %v9304_v4, %v529_v40  ;;  %v989_v49 = vmax.f32 %v527_v34, 0.0  ;;  %v9373_v20 = vpack.c.bf16 %v1050_v15, %v1049_v9 }
  0xfe   :  { %v992_v47 = vmax.f32 %v538_v39, 0.0 }
  0xff   :  { %v990_v50 = vmax.f32 %v530_v43, 0.0 }
 0x100   :  { %v1110_v52 = vpack.c.bf16 %v992_v47, %v991_v46 }
 0x101   :  { %v1109_v55 = vpack.c.bf16 %v990_v50, %v989_v49  ;;  %v8381_v56 = vpop.f32.mrb[20].mxu0 }
 0x102   :  { %v551_v61 = vadd.f32 %v8381_v56, %v9304_v4  ;;  %v542_v62 = vpop.f32.mrb[21].mxu0 }
 0x103   :  { %v543_v1 = vadd.f32 %v9304_v4, %v542_v62  ;;  %v8382_v2 = vpop.f32.mrb[22].mxu0  ;;  %8507 = vmatprep.mubr.msk.bf16.mxu1 %vm1188_vm1, %v1109_v55 }
 0x104   :  { %v554_v7 = vadd.f32 %v8382_v2, %v9304_v4  ;;  %v545_v8 = vpop.f32.mrb[23].mxu0  ;;  %8508 = vmatmul.mubr.msk.bf16.gmra.mrb[80].mxu1 %vm1188_vm1, %v1110_v52  ;;  %v995_v13 = vmax.f32 %v551_v61, 0.0  ;;  %v8441_v21 = vpop.f32.mrb[16].mxu1 }
 0x105   :  { %v546_v11 = vadd.f32 %v9304_v4, %v545_v8  ;;  %v993_v16 = vmax.f32 %v543_v1, 0.0  ;;  %v791_v26 = vadd.f32 %v8441_v21, %v9304_v4  ;;  %v782_v27 = vpop.f32.mrb[17].mxu1 }
 0x106   :  { %v996_v14 = vmax.f32 %v554_v7, 0.0  ;;  %v783_v30 = vadd.f32 %v9304_v4, %v782_v27  ;;  %v8442_v31 = vpop.f32.mrb[18].mxu1 }
 0x107   :  { %v994_v17 = vmax.f32 %v546_v11, 0.0  ;;  %v1055_v34 = vmax.f32 %v791_v26, 0.0  ;;  %v794_v35 = vadd.f32 %v8442_v31, %v9304_v4  ;;  %v785_v36 = vpop.f32.mrb[19].mxu1 }
 0x108   :  { %v1112_v19 = vpack.c.bf16 %v996_v14, %v995_v13  ;;  %v1053_v39 = vmax.f32 %v783_v30, 0.0  ;;  %v786_v40 = vadd.f32 %v9304_v4, %v785_v36 }
 0x109   :  { %v1111_v23 = vpack.c.bf16 %v994_v17, %v993_v16  ;;  %v8385_v25 = vpop.f32.mrb[24].mxu0  ;;  %v1056_v42 = vmax.f32 %v794_v35, 0.0 }
 0x10a   :  { %v567_v28 = vadd.f32 %v8385_v25, %v9304_v4  ;;  %v558_v29 = vpop.f32.mrb[25].mxu0  ;;  %v1054_v45 = vmax.f32 %v786_v40, 0.0 }
 0x10b   :  { %v559_v32 = vadd.f32 %v9304_v4, %v558_v29  ;;  %v8386_v33 = vpop.f32.mrb[26].mxu0  ;;  %8511 = vmatprep.mubr.msk.bf16.mxu1 %vm1188_vm1, %v1111_v23  ;;  %v9385_v48 = vpack.c.bf16 %v1056_v42, %v1055_v34 }
 0x10c   :  { %v570_v37 = vadd.f32 %v8386_v33, %v9304_v4  ;;  %v561_v38 = vpop.f32.mrb[27].mxu0  ;;  %8512 = vmatmul.mubr.msk.bf16.gmra.mrb[84].mxu1 %vm1188_vm1, %v1112_v19  ;;  %v999_v43 = vmax.f32 %v567_v28, 0.0  ;;  %v9387_v50 = vpack.c.bf16 %v1054_v45, %v1053_v39  ;;  %v8445_v52 = vpop.f32.mrb[20].mxu1 }
 0x10d   :  { %v562_v41 = vadd.f32 %v9304_v4, %v561_v38  ;;  %v997_v46 = vmax.f32 %v559_v32, 0.0  ;;  %v807_v56 = vadd.f32 %v8445_v52, %v9304_v4  ;;  %v798_v58 = vpop.f32.mrb[21].mxu1 }
 0x10e   :  { %v1000_v44 = vmax.f32 %v570_v37, 0.0  ;;  %v799_v62 = vadd.f32 %v9304_v4, %v798_v58  ;;  %v8446_v63 = vpop.f32.mrb[22].mxu1 }
 0x10f   :  { %v998_v47 = vmax.f32 %v562_v41, 0.0  ;;  %v1059_v2 = vmax.f32 %v807_v56, 0.0  ;;  %v810_v3 = vadd.f32 %v8446_v63, %v9304_v4  ;;  %v801_v5 = vpop.f32.mrb[23].mxu1 }
 0x110   :  { %v1114_v49 = vpack.c.bf16 %v1000_v44, %v999_v43  ;;  %v1057_v8 = vmax.f32 %v799_v62, 0.0  ;;  %v802_v9 = vadd.f32 %v9304_v4, %v801_v5 }
 0x111   :  { %v1113_v54 = vpack.c.bf16 %v998_v47, %v997_v46  ;;  %v8389_v55 = vpop.f32.mrb[28].mxu0  ;;  %v1060_v11 = vmax.f32 %v810_v3, 0.0 }
 0x112   :  { %v583_v60 = vadd.f32 %v8389_v55, %v9304_v4  ;;  %v574_v61 = vpop.f32.mrb[29].mxu0  ;;  %v1058_v14 = vmax.f32 %v802_v9, 0.0 }
 0x113   :  { %v575_v0 = vadd.f32 %v9304_v4, %v574_v61  ;;  %v8390_v1 = vpop.f32.mrb[30].mxu0  ;;  %8515 = vmatprep.mubr.msk.bf16.mxu1 %vm1188_vm1, %v1113_v54  ;;  %v9399_v17 = vpack.c.bf16 %v1060_v11, %v1059_v2 }
 0x114   :  { %v586_v6 = vadd.f32 %v8390_v1, %v9304_v4  ;;  %v577_v7 = vpop.f32.mrb[31].mxu0  ;;  %8516 = vmatmul.mubr.msk.bf16.gmra.mrb[88].mxu1 %vm1188_vm1, %v1114_v49  ;;  %v1003_v12 = vmax.f32 %v583_v60, 0.0  ;;  %v9401_v21 = vpack.c.bf16 %v1058_v14, %v1057_v8  ;;  %v8449_v23 = vpop.f32.mrb[24].mxu1 }
 0x115   :  { %v578_v10 = vadd.f32 %v9304_v4, %v577_v7  ;;  %v1001_v15 = vmax.f32 %v575_v0, 0.0  ;;  %v823_v27 = vadd.f32 %v8449_v23, %v9304_v4  ;;  %v814_v28 = vpop.f32.mrb[25].mxu1 }
 0x116   :  { %v1004_v13 = vmax.f32 %v586_v6, 0.0  ;;  %v815_v31 = vadd.f32 %v9304_v4, %v814_v28  ;;  %v8450_v32 = vpop.f32.mrb[26].mxu1 }
 0x117   :  { %v1002_v16 = vmax.f32 %v578_v10, 0.0  ;;  %v1063_v35 = vmax.f32 %v823_v27, 0.0  ;;  %v826_v36 = vadd.f32 %v8450_v32, %v9304_v4  ;;  %v817_v37 = vpop.f32.mrb[27].mxu1 }
 0x118   :  { %v1116_v19 = vpack.c.bf16 %v1004_v13, %v1003_v12  ;;  %v1061_v40 = vmax.f32 %v815_v31, 0.0  ;;  %v818_v41 = vadd.f32 %v9304_v4, %v817_v37 }
 0x119   :  { %v1115_v25 = vpack.c.bf16 %v1002_v16, %v1001_v15  ;;  %v8393_v26 = vpop.f32.mrb[32].mxu0  ;;  %v1064_v43 = vmax.f32 %v826_v36, 0.0 }
 0x11a   :  { %v599_v29 = vadd.f32 %v8393_v26, %v9304_v4  ;;  %v590_v30 = vpop.f32.mrb[33].mxu0  ;;  %v1062_v46 = vmax.f32 %v818_v41, 0.0 }
 0x11b   :  { %v591_v33 = vadd.f32 %v9304_v4, %v590_v30  ;;  %v8394_v34 = vpop.f32.mrb[34].mxu0  ;;  %8519 = vmatprep.mubr.msk.bf16.mxu1 %vm1188_vm1, %v1115_v25  ;;  %v9413_v52 = vpack.c.bf16 %v1064_v43, %v1063_v35 }
 0x11c   :  { %v602_v38 = vadd.f32 %v8394_v34, %v9304_v4  ;;  %v593_v39 = vpop.f32.mrb[35].mxu0  ;;  %8520 = vmatmul.mubr.msk.bf16.gmra.mrb[92].mxu1 %vm1188_vm1, %v1116_v19  ;;  %v1007_v44 = vmax.f32 %v599_v29, 0.0  ;;  %v9415_v55 = vpack.c.bf16 %v1062_v46, %v1061_v40  ;;  %v8453_v56 = vpop.f32.mrb[28].mxu1 }
 0x11d   :  { %v594_v42 = vadd.f32 %v9304_v4, %v593_v39  ;;  %v1005_v47 = vmax.f32 %v591_v33, 0.0  ;;  %v839_v61 = vadd.f32 %v8453_v56, %v9304_v4  ;;  %v830_v62 = vpop.f32.mrb[29].mxu1 }
 0x11e   :  { %v1008_v45 = vmax.f32 %v602_v38, 0.0  ;;  %v831_v1 = vadd.f32 %v9304_v4, %v830_v62  ;;  %v8454_v2 = vpop.f32.mrb[30].mxu1 }
 0x11f   :  { %v1006_v49 = vmax.f32 %v594_v42, 0.0  ;;  %v1067_v6 = vmax.f32 %v839_v61, 0.0  ;;  %v842_v7 = vadd.f32 %v8454_v2, %v9304_v4  ;;  %v833_v8 = vpop.f32.mrb[31].mxu1 }
 0x120   :  { %v1118_v54 = vpack.c.bf16 %v1008_v45, %v1007_v44  ;;  %v1065_v11 = vmax.f32 %v831_v1, 0.0  ;;  %v834_v12 = vadd.f32 %v9304_v4, %v833_v8 }
 0x121   :  { %v1117_v58 = vpack.c.bf16 %v1006_v49, %v1005_v47  ;;  %v8397_v60 = vpop.f32.mrb[36].mxu0  ;;  %v1068_v14 = vmax.f32 %v842_v7, 0.0 }
 0x122   :  { %v615_v63 = vadd.f32 %v8397_v60, %v9304_v4  ;;  %v606_v0 = vpop.f32.mrb[37].mxu0  ;;  %v1066_v19 = vmax.f32 %v834_v12, 0.0 }
 0x123   :  { %v607_v3 = vadd.f32 %v9304_v4, %v606_v0  ;;  %v8398_v5 = vpop.f32.mrb[38].mxu0  ;;  %8523 = vmatprep.mubr.msk.bf16.mxu1 %vm1188_vm1, %v1117_v58  ;;  %v9427_v26 = vpack.c.bf16 %v1068_v14, %v1067_v6 }
 0x124   :  { %v618_v9 = vadd.f32 %v8398_v5, %v9304_v4  ;;  %v609_v10 = vpop.f32.mrb[39].mxu0  ;;  %8524 = vmatmul.mubr.msk.bf16.gmra.mrb[96].mxu1 %vm1188_vm1, %v1118_v54  ;;  %v1011_v15 = vmax.f32 %v615_v63, 0.0  ;;  %v9429_v28 = vpack.c.bf16 %v1066_v19, %v1065_v11  ;;  %v8457_v29 = vpop.f32.mrb[32].mxu1 }
 0x125   :  { %v610_v13 = vadd.f32 %v9304_v4, %v609_v10  ;;  %v1009_v23 = vmax.f32 %v607_v3, 0.0  ;;  %v855_v32 = vadd.f32 %v8457_v29, %v9304_v4  ;;  %v846_v33 = vpop.f32.mrb[33].mxu1 }
 0x126   :  { %v1012_v16 = vmax.f32 %v618_v9, 0.0  ;;  %v847_v36 = vadd.f32 %v9304_v4, %v846_v33  ;;  %v8458_v37 = vpop.f32.mrb[34].mxu1 }
 0x127   :  { %v1010_v25 = vmax.f32 %v610_v13, 0.0  ;;  %v1071_v40 = vmax.f32 %v855_v32, 0.0  ;;  %v858_v41 = vadd.f32 %v8458_v37, %v9304_v4  ;;  %v849_v42 = vpop.f32.mrb[35].mxu1 }
 0x128   :  { %v1120_v27 = vpack.c.bf16 %v1012_v16, %v1011_v15  ;;  %v1069_v45 = vmax.f32 %v847_v36, 0.0  ;;  %v850_v46 = vadd.f32 %v9304_v4, %v849_v42 }
 0x129   :  { %v1119_v30 = vpack.c.bf16 %v1010_v25, %v1009_v23  ;;  %v8401_v31 = vpop.f32.mrb[40].mxu0  ;;  %v1072_v49 = vmax.f32 %v858_v41, 0.0 }
 0x12a   :  { %v631_v34 = vadd.f32 %v8401_v31, %v9304_v4  ;;  %v622_v35 = vpop.f32.mrb[41].mxu0  ;;  %v1070_v58 = vmax.f32 %v850_v46, 0.0 }
 0x12b   :  { %v623_v38 = vadd.f32 %v9304_v4, %v622_v35  ;;  %v8402_v39 = vpop.f32.mrb[42].mxu0  ;;  %8527 = vmatprep.mubr.msk.bf16.mxu1 %vm1188_vm1, %v1119_v30  ;;  %v9441_v62 = vpack.c.bf16 %v1072_v49, %v1071_v40 }
 0x12c   :  { %v634_v43 = vadd.f32 %v8402_v39, %v9304_v4  ;;  %v625_v44 = vpop.f32.mrb[43].mxu0  ;;  %8528 = vmatmul.mubr.msk.bf16.gmra.mrb[100].mxu1 %vm1188_vm1, %v1120_v27  ;;  %v1015_v54 = vmax.f32 %v631_v34, 0.0  ;;  %v9443_v0 = vpack.c.bf16 %v1070_v58, %v1069_v45  ;;  %v8461_v1 = vpop.f32.mrb[36].mxu1 }
 0x12d   :  { %v626_v47 = vadd.f32 %v9304_v4, %v625_v44  ;;  %v1013_v60 = vmax.f32 %v623_v38, 0.0  ;;  %v871_v5 = vadd.f32 %v8461_v1, %v9304_v4  ;;  %v862_v6 = vpop.f32.mrb[37].mxu1 }
 0x12e   :  { %v1016_v56 = vmax.f32 %v634_v43, 0.0  ;;  %v863_v9 = vadd.f32 %v9304_v4, %v862_v6  ;;  %v8462_v10 = vpop.f32.mrb[38].mxu1 }
 0x12f   :  { %v1014_v61 = vmax.f32 %v626_v47, 0.0  ;;  %v1075_v13 = vmax.f32 %v871_v5, 0.0  ;;  %v874_v14 = vadd.f32 %v8462_v10, %v9304_v4  ;;  %v865_v15 = vpop.f32.mrb[39].mxu1 }
 0x130   :  { %v1122_v63 = vpack.c.bf16 %v1016_v56, %v1015_v54  ;;  %v1073_v23 = vmax.f32 %v863_v9, 0.0  ;;  %v866_v25 = vadd.f32 %v9304_v4, %v865_v15 }
 0x131   :  { %v1121_v2 = vpack.c.bf16 %v1014_v61, %v1013_v60  ;;  %v8405_v3 = vpop.f32.mrb[44].mxu0  ;;  %v1076_v29 = vmax.f32 %v874_v14, 0.0 }
 0x132   :  { %v647_v7 = vadd.f32 %v8405_v3, %v9304_v4  ;;  %v638_v8 = vpop.f32.mrb[45].mxu0  ;;  %v1074_v32 = vmax.f32 %v866_v25, 0.0 }
 0x133   :  { %v639_v11 = vadd.f32 %v9304_v4, %v638_v8  ;;  %v8406_v12 = vpop.f32.mrb[46].mxu0  ;;  %8531 = vmatprep.mubr.msk.bf16.mxu1 %vm1188_vm1, %v1121_v2  ;;  %v9455_v35 = vpack.c.bf16 %v1076_v29, %v1075_v13 }
 0x134   :  { %v650_v16 = vadd.f32 %v8406_v12, %v9304_v4  ;;  %v641_v19 = vpop.f32.mrb[47].mxu0  ;;  %8532 = vmatmul.mubr.msk.bf16.gmra.mrb[104].mxu1 %vm1188_vm1, %v1122_v63  ;;  %v1019_v30 = vmax.f32 %v647_v7, 0.0  ;;  %v9457_v37 = vpack.c.bf16 %v1074_v32, %v1073_v23  ;;  %v8465_v38 = vpop.f32.mrb[40].mxu1 }
 0x135   :  { %v642_v27 = vadd.f32 %v9304_v4, %v641_v19  ;;  %v1017_v33 = vmax.f32 %v639_v11, 0.0  ;;  %v887_v41 = vadd.f32 %v8465_v38, %v9304_v4  ;;  %v878_v42 = vpop.f32.mrb[41].mxu1 }
 0x136   :  { %v1020_v31 = vmax.f32 %v650_v16, 0.0  ;;  %v879_v45 = vadd.f32 %v9304_v4, %v878_v42  ;;  %v8466_v46 = vpop.f32.mrb[42].mxu1 }
 0x137   :  { %v1018_v34 = vmax.f32 %v642_v27, 0.0  ;;  %v1079_v54 = vmax.f32 %v887_v41, 0.0  ;;  %v890_v56 = vadd.f32 %v8466_v46, %v9304_v4  ;;  %v881_v58 = vpop.f32.mrb[43].mxu1 }
 0x138   :  { %v1124_v36 = vpack.c.bf16 %v1020_v31, %v1019_v30  ;;  %v1077_v63 = vmax.f32 %v879_v45, 0.0  ;;  %v882_v1 = vadd.f32 %v9304_v4, %v881_v58 }
 0x139   :  { %v1123_v39 = vpack.c.bf16 %v1018_v34, %v1017_v33  ;;  %v8409_v40 = vpop.f32.mrb[48].mxu0  ;;  %v1080_v3 = vmax.f32 %v890_v56, 0.0 }
 0x13a   :  { %v663_v43 = vadd.f32 %v8409_v40, %v9304_v4  ;;  %v654_v44 = vpop.f32.mrb[49].mxu0  ;;  %v1078_v7 = vmax.f32 %v882_v1, 0.0 }
 0x13b   :  { %v655_v47 = vadd.f32 %v9304_v4, %v654_v44  ;;  %v8410_v49 = vpop.f32.mrb[50].mxu0  ;;  %8535 = vmatprep.mubr.msk.bf16.mxu1 %vm1188_vm1, %v1123_v39  ;;  %v9469_v10 = vpack.c.bf16 %v1080_v3, %v1079_v54 }
 0x13c   :  { %v666_v60 = vadd.f32 %v8410_v49, %v9304_v4  ;;  %v657_v61 = vpop.f32.mrb[51].mxu0  ;;  %8536 = vmatmul.mubr.msk.bf16.gmra.mrb[108].mxu1 %vm1188_vm1, %v1124_v36  ;;  %v1023_v5 = vmax.f32 %v663_v43, 0.0  ;;  %v9471_v12 = vpack.c.bf16 %v1078_v7, %v1077_v63  ;;  %v8469_v13 = vpop.f32.mrb[44].mxu1 }
 0x13d   :  { %v658_v2 = vadd.f32 %v9304_v4, %v657_v61  ;;  %v1021_v8 = vmax.f32 %v655_v47, 0.0  ;;  %v903_v16 = vadd.f32 %v8469_v13, %v9304_v4  ;;  %v894_v19 = vpop.f32.mrb[45].mxu1 }
 0x13e   :  { %v1024_v6 = vmax.f32 %v666_v60, 0.0  ;;  %v895_v27 = vadd.f32 %v9304_v4, %v894_v19  ;;  %v8470_v29 = vpop.f32.mrb[46].mxu1 }
 0x13f   :  { %v1022_v9 = vmax.f32 %v658_v2, 0.0  ;;  %v1083_v32 = vmax.f32 %v903_v16, 0.0  ;;  %v906_v33 = vadd.f32 %v8470_v29, %v9304_v4  ;;  %v897_v34 = vpop.f32.mrb[47].mxu1 }
 0x140   :  { %v1126_v11 = vpack.c.bf16 %v1024_v6, %v1023_v5  ;;  %v1081_v39 = vmax.f32 %v895_v27, 0.0  ;;  %v898_v40 = vadd.f32 %v9304_v4, %v897_v34 }
 0x141   :  { %v1125_v14 = vpack.c.bf16 %v1022_v9, %v1021_v8  ;;  %v8413_v15 = vpop.f32.mrb[52].mxu0  ;;  %v1084_v42 = vmax.f32 %v906_v33, 0.0 }
 0x142   :  { %v679_v23 = vadd.f32 %v8413_v15, %v9304_v4  ;;  %v670_v25 = vpop.f32.mrb[53].mxu0  ;;  %v1082_v45 = vmax.f32 %v898_v40, 0.0 }
 0x143   :  { %v671_v30 = vadd.f32 %v9304_v4, %v670_v25  ;;  %v8414_v31 = vpop.f32.mrb[54].mxu0  ;;  %8539 = vmatprep.mubr.msk.bf16.mxu1 %vm1188_vm1, %v1125_v14  ;;  %v9483_v49 = vpack.c.bf16 %v1084_v42, %v1083_v32 }
 0x144   :  { %v682_v36 = vadd.f32 %v8414_v31, %v9304_v4  ;;  %v673_v38 = vpop.f32.mrb[55].mxu0  ;;  %8540 = vmatmul.mubr.msk.bf16.gmra.mrb[112].mxu1 %vm1188_vm1, %v1126_v11  ;;  %v1027_v43 = vmax.f32 %v679_v23, 0.0  ;;  %v9485_v56 = vpack.c.bf16 %v1082_v45, %v1081_v39  ;;  %v8473_v58 = vpop.f32.mrb[48].mxu1 }
 0x145   :  { %v674_v41 = vadd.f32 %v9304_v4, %v673_v38  ;;  %v1025_v46 = vmax.f32 %v671_v30, 0.0  ;;  %v919_v63 = vadd.f32 %v8473_v58, %v9304_v4  ;;  %v910_v1 = vpop.f32.mrb[49].mxu1 }
 0x146   :  { %v1028_v44 = vmax.f32 %v682_v36, 0.0  ;;  %v911_v5 = vadd.f32 %v9304_v4, %v910_v1  ;;  %v8474_v6 = vpop.f32.mrb[50].mxu1 }
 0x147   :  { %v1026_v47 = vmax.f32 %v674_v41, 0.0  ;;  %v1087_v9 = vmax.f32 %v919_v63, 0.0  ;;  %v922_v11 = vadd.f32 %v8474_v6, %v9304_v4  ;;  %v913_v13 = vpop.f32.mrb[51].mxu1 }
 0x148   :  { %v1128_v54 = vpack.c.bf16 %v1028_v44, %v1027_v43  ;;  %v1085_v16 = vmax.f32 %v911_v5, 0.0  ;;  %v914_v19 = vadd.f32 %v9304_v4, %v913_v13 }
 0x149   :  { %v1127_v60 = vpack.c.bf16 %v1026_v47, %v1025_v46  ;;  %v8417_v61 = vpop.f32.mrb[56].mxu0  ;;  %v1088_v25 = vmax.f32 %v922_v11, 0.0 }
 0x14a   :  { %v695_v2 = vadd.f32 %v8417_v61, %v9304_v4  ;;  %v686_v3 = vpop.f32.mrb[57].mxu0  ;;  %v1086_v30 = vmax.f32 %v914_v19, 0.0 }
 0x14b   :  { %v687_v7 = vadd.f32 %v9304_v4, %v686_v3  ;;  %v8418_v8 = vpop.f32.mrb[58].mxu0  ;;  %8543 = vmatprep.mubr.msk.bf16.mxu1 %vm1188_vm1, %v1127_v60  ;;  %v9497_v33 = vpack.c.bf16 %v1088_v25, %v1087_v9 }
 0x14c   :  { %v698_v14 = vadd.f32 %v8418_v8, %v9304_v4  ;;  %v689_v15 = vpop.f32.mrb[59].mxu0  ;;  %8544 = vmatmul.mubr.msk.bf16.gmra.mrb[116].mxu1 %vm1188_vm1, %v1128_v54  ;;  %v1031_v27 = vmax.f32 %v695_v2, 0.0  ;;  %v9499_v36 = vpack.c.bf16 %v1086_v30, %v1085_v16  ;;  %v8477_v38 = vpop.f32.mrb[52].mxu1 }
 0x14d   :  { %v690_v23 = vadd.f32 %v9304_v4, %v689_v15  ;;  %v1029_v31 = vmax.f32 %v687_v7, 0.0  ;;  %v935_v41 = vadd.f32 %v8477_v38, %v9304_v4  ;;  %v926_v42 = vpop.f32.mrb[53].mxu1 }
 0x14e   :  { %v1032_v29 = vmax.f32 %v698_v14, 0.0  ;;  %v927_v45 = vadd.f32 %v9304_v4, %v926_v42  ;;  %v8478_v46 = vpop.f32.mrb[54].mxu1 }
 0x14f   :  { %v1030_v32 = vmax.f32 %v690_v23, 0.0  ;;  %v1091_v58 = vmax.f32 %v935_v41, 0.0  ;;  %v938_v60 = vadd.f32 %v8478_v46, %v9304_v4  ;;  %v929_v61 = vpop.f32.mrb[55].mxu1 }
 0x150   :  { %v1130_v34 = vpack.c.bf16 %v1032_v29, %v1031_v27  ;;  %v1089_v2 = vmax.f32 %v927_v45, 0.0  ;;  %v930_v3 = vadd.f32 %v9304_v4, %v929_v61 }
 0x151   :  { %v1129_v39 = vpack.c.bf16 %v1030_v32, %v1029_v31  ;;  %v8421_v40 = vpop.f32.mrb[60].mxu0  ;;  %v1092_v6 = vmax.f32 %v938_v60, 0.0 }
 0x152   :  { %v711_v43 = vadd.f32 %v8421_v40, %v9304_v4  ;;  %v702_v44 = vpop.f32.mrb[61].mxu0  ;;  %v1090_v9 = vmax.f32 %v930_v3, 0.0 }
 0x153   :  { %v703_v47 = vadd.f32 %v9304_v4, %v702_v44  ;;  %v8422_v54 = vpop.f32.mrb[62].mxu0  ;;  %8547 = vmatprep.mubr.msk.bf16.mxu1 %vm1188_vm1, %v1129_v39  ;;  %v9511_v14 = vpack.c.bf16 %v1092_v6, %v1091_v58 }
 0x154   :  { %v714_v63 = vadd.f32 %v8422_v54, %v9304_v4  ;;  %v705_v1 = vpop.f32.mrb[63].mxu0  ;;  %8548 = vmatmul.mubr.msk.bf16.gmra.mrb[120].mxu1 %vm1188_vm1, %v1130_v34  ;;  %v1035_v7 = vmax.f32 %v711_v43, 0.0  ;;  %v9513_v16 = vpack.c.bf16 %v1090_v9, %v1089_v2  ;;  %v8481_v19 = vpop.f32.mrb[56].mxu1 }
 0x155   :  { %v706_v5 = vadd.f32 %v9304_v4, %v705_v1  ;;  %v1033_v11 = vmax.f32 %v703_v47, 0.0  ;;  %v951_v25 = vadd.f32 %v8481_v19, %v9304_v4  ;;  %v942_v27 = vpop.f32.mrb[57].mxu1 }
 0x156   :  { %v1036_v8 = vmax.f32 %v714_v63, 0.0  ;;  %v943_v29 = vadd.f32 %v9304_v4, %v942_v27  ;;  %v8482_v30 = vpop.f32.mrb[58].mxu1 }
 0x157   :  { %v1034_v13 = vmax.f32 %v706_v5, 0.0  ;;  %v1095_v31 = vmax.f32 %v951_v25, 0.0  ;;  %v954_v32 = vadd.f32 %v8482_v30, %v9304_v4  ;;  %v945_v34 = vpop.f32.mrb[59].mxu1 }
 0x158   :  { %v1132_v15 = vpack.c.bf16 %v1036_v8, %v1035_v7  ;;  %v1093_v38 = vmax.f32 %v943_v29, 0.0  ;;  %v946_v39 = vadd.f32 %v9304_v4, %v945_v34 }
 0x159   :  { %v1131_v23 = vpack.c.bf16 %v1034_v13, %v1033_v11  ;;  %v1096_v40 = vmax.f32 %v954_v32, 0.0 }
 0x15a   :  { %v1094_v41 = vmax.f32 %v946_v39, 0.0 }
 0x15b   :  { %8551 = vmatprep.mubr.msk.bf16.mxu1 %vm1188_vm1, %v1131_v23  ;;  %v9523_v42 = vpack.c.bf16 %v1096_v40, %v1095_v31 }
 0x15c   :  { %8552 = vmatmul.mubr.msk.bf16.gmra.mrb[124].mxu1 %vm1188_vm1, %v1132_v15  ;;  %v9525_v43 = vpack.c.bf16 %v1094_v41, %v1093_v38  ;;  %v8485_v44 = vpop.f32.mrb[60].mxu1 }
 0x15d   :  { %8555 = vmatprep.mubr.msk.bf16.mxu1 %vm1188_vm1, %v9328_v59  ;;  %v967_v45 = vadd.f32 %v8485_v44, %v9304_v4  ;;  %v958_v46 = vpop.f32.mrb[61].mxu1 }
 0x15e   :  { %v959_v47 = vadd.f32 %v9304_v4, %v958_v46  ;;  %v8486_v54 = vpop.f32.mrb[62].mxu1 }
 0x15f   :  { %v1099_v58 = vmax.f32 %v967_v45, 0.0  ;;  %v970_v60 = vadd.f32 %v8486_v54, %v9304_v4  ;;  %v961_v61 = vpop.f32.mrb[63].mxu1 }
 0x160   :  { %v1097_v59 = vmax.f32 %v959_v47, 0.0  ;;  %v962_v63 = vadd.f32 %v9304_v4, %v961_v61  ;;  %v9582_v4 = vld [vmem:[%s14103_s4] ss:$0 sm:$0xff] }
 0x161   :  { %v1100_v1 = vmax.f32 %v970_v60, 0.0 }
 0x162   :  { %v1098_v2 = vmax.f32 %v962_v63, 0.0 }
 0x163   :  { %v9535_v3 = vpack.c.bf16 %v1100_v1, %v1099_v58 }
 0x164   :  { %8556 = vmatmul.mubr.msk.bf16.gmra.mrb[128].mxu1 %vm1188_vm1, %v9326_v57  ;;  %v9537_v5 = vpack.c.bf16 %v1098_v2, %v1097_v59 }
 0x165   :  { %8559 = vmatprep.mubr.msk.bf16.mxu1 %vm1188_vm1, %v9342_v24 }
 0x16c   :  { %8560 = vmatmul.mubr.msk.bf16.gmra.mrb[132].mxu1 %vm1188_vm1, %v9340_v22 }
 0x16d   :  { %8563 = vmatprep.mubr.msk.bf16.mxu1 %vm1188_vm1, %v9359_v53 }
 0x174   :  { %8564 = vmatmul.mubr.msk.bf16.gmra.mrb[136].mxu1 %vm1188_vm1, %v9357_v51 }
 0x175   :  { %8567 = vmatprep.mubr.msk.bf16.mxu1 %vm1188_vm1, %v9373_v20 }
 0x17c   :  { %8568 = vmatmul.mubr.msk.bf16.gmra.mrb[140].mxu1 %vm1188_vm1, %v9371_v18 }
 0x17d   :  { %8571 = vmatprep.mubr.msk.bf16.mxu1 %vm1188_vm1, %v9387_v50 }
 0x184   :  { %8572 = vmatmul.mubr.msk.bf16.gmra.mrb[144].mxu1 %vm1188_vm1, %v9385_v48 }
 0x185   :  { %8575 = vmatprep.mubr.msk.bf16.mxu1 %vm1188_vm1, %v9401_v21 }
 0x18c   :  { %8576 = vmatmul.mubr.msk.bf16.gmra.mrb[148].mxu1 %vm1188_vm1, %v9399_v17 }
 0x18d   :  { %8579 = vmatprep.mubr.msk.bf16.mxu1 %vm1188_vm1, %v9415_v55 }
 0x194   :  { %8580 = vmatmul.mubr.msk.bf16.gmra.mrb[152].mxu1 %vm1188_vm1, %v9413_v52 }
 0x195   :  { %8583 = vmatprep.mubr.msk.bf16.mxu1 %vm1188_vm1, %v9429_v28 }
 0x19c   :  { %8584 = vmatmul.mubr.msk.bf16.gmra.mrb[156].mxu1 %vm1188_vm1, %v9427_v26 }
 0x19d   :  { %8587 = vmatprep.mubr.msk.bf16.mxu1 %vm1188_vm1, %v9443_v0 }
 0x1a4   :  { %8588 = vmatmul.mubr.msk.bf16.gmra.mrb[160].mxu1 %vm1188_vm1, %v9441_v62 }
 0x1a5   :  { %8591 = vmatprep.mubr.msk.bf16.mxu1 %vm1188_vm1, %v9457_v37 }
 0x1ac   :  { %8592 = vmatmul.mubr.msk.bf16.gmra.mrb[164].mxu1 %vm1188_vm1, %v9455_v35 }
 0x1ad   :  { %8595 = vmatprep.mubr.msk.bf16.mxu1 %vm1188_vm1, %v9471_v12 }
 0x1b4   :  { %8596 = vmatmul.mubr.msk.bf16.gmra.mrb[168].mxu1 %vm1188_vm1, %v9469_v10 }
 0x1b5   :  { %8599 = vmatprep.mubr.msk.bf16.mxu1 %vm1188_vm1, %v9485_v56 }
 0x1b7   :  { %v8493_v57 = vpop.f32.mrb[64].mxu1 }
 0x1b8   :  { %v1424_v22 = vadd.f32 %v8493_v57, %v9582_v4  ;;  %v1415_v24 = vpop.f32.mrb[65].mxu1 }
 0x1b9   :  { %v1416_v51 = vadd.f32 %v9582_v4, %v1415_v24  ;;  %v8494_v53 = vpop.f32.mrb[66].mxu1 }
 0x1ba   :  { %v1427_v18 = vadd.f32 %v8494_v53, %v9582_v4  ;;  %v1418_v20 = vpop.f32.mrb[67].mxu1  ;;  %v1928_v50 = vmax.f32 %v1424_v22, 0.0 }
 0x1bb   :  { %v1419_v48 = vadd.f32 %v9582_v4, %v1418_v20  ;;  %v1926_v21 = vmax.f32 %v1416_v51, 0.0 }
 0x1bc   :  { %v1929_v17 = vmax.f32 %v1427_v18, 0.0  ;;  %8600 = vmatmul.mubr.msk.bf16.gmra.mrb[172].mxu1 %vm1188_vm1, %v9483_v49 }
 0x1bd   :  { %v1927_v52 = vmax.f32 %v1419_v48, 0.0  ;;  %8603 = vmatprep.mubr.msk.bf16.mxu1 %vm1188_vm1, %v9499_v36 }
 0x1be   :  { %v2055_v55 = vpack.c.bf16 %v1929_v17, %v1928_v50 }
 0x1bf   :  { %v2054_v26 = vpack.c.bf16 %v1927_v52, %v1926_v21  ;;  %v8497_v28 = vpop.f32.mrb[68].mxu1 }
 0x1c0   :  { %v1440_v62 = vadd.f32 %v8497_v28, %v9582_v4  ;;  %v1431_v0 = vpop.f32.mrb[69].mxu1 }
 0x1c1   :  { %v1432_v35 = vadd.f32 %v9582_v4, %v1431_v0  ;;  %v8498_v37 = vpop.f32.mrb[70].mxu1  ;;  %8623 = vmatprep.mubr.msk.bf16.mxu0 %vm1188_vm1, %v2054_v26 }
 0x1c2   :  { %v1443_v10 = vadd.f32 %v8498_v37, %v9582_v4  ;;  %v1434_v12 = vpop.f32.mrb[71].mxu1  ;;  %8624 = vmatmul.mubr.msk.bf16.vlgmr.msra.gmra.mrb[64].mxu0 %vm1188_vm1, %v2055_v55  ;;  %v1932_v56 = vmax.f32 %v1440_v62, 0.0 }
 0x1c3   :  { %v1435_v49 = vadd.f32 %v9582_v4, %v1434_v12  ;;  %v1930_v6 = vmax.f32 %v1432_v35, 0.0 }
 0x1c4   :  { %v1933_v36 = vmax.f32 %v1443_v10, 0.0  ;;  %8604 = vmatmul.mubr.msk.bf16.gmra.mrb[176].mxu1 %vm1188_vm1, %v9497_v33 }
 0x1c5   :  { %v1931_v7 = vmax.f32 %v1435_v49, 0.0  ;;  %8607 = vmatprep.mubr.msk.bf16.mxu1 %vm1188_vm1, %v9513_v16 }
 0x1c6   :  { %v2057_v8 = vpack.c.bf16 %v1933_v36, %v1932_v56 }
 0x1c7   :  { %v2056_v9 = vpack.c.bf16 %v1931_v7, %v1930_v6  ;;  %v8501_v11 = vpop.f32.mrb[72].mxu1 }
 0x1c8   :  { %v1456_v13 = vadd.f32 %v8501_v11, %v9582_v4  ;;  %v1447_v15 = vpop.f32.mrb[73].mxu1 }
 0x1c9   :  { %v1448_v19 = vadd.f32 %v9582_v4, %v1447_v15  ;;  %v8502_v23 = vpop.f32.mrb[74].mxu1  ;;  %8627 = vmatprep.mubr.msk.bf16.mxu0 %vm1188_vm1, %v2056_v9 }
 0x1ca   :  { %v1459_v25 = vadd.f32 %v8502_v23, %v9582_v4  ;;  %v1450_v27 = vpop.f32.mrb[75].mxu1  ;;  %8628 = vmatmul.mubr.msk.bf16.gmra.mrb[68].mxu0 %vm1188_vm1, %v2057_v8  ;;  %v1936_v29 = vmax.f32 %v1456_v13, 0.0 }
 0x1cb   :  { %v1451_v33 = vadd.f32 %v9582_v4, %v1450_v27  ;;  %v1934_v30 = vmax.f32 %v1448_v19, 0.0 }
 0x1cc   :  { %v1937_v16 = vmax.f32 %v1459_v25, 0.0  ;;  %8608 = vmatmul.mubr.msk.bf16.gmra.mrb[180].mxu1 %vm1188_vm1, %v9511_v14 }
 0x1cd   :  { %v1935_v31 = vmax.f32 %v1451_v33, 0.0  ;;  %8611 = vmatprep.mubr.msk.bf16.mxu1 %vm1188_vm1, %v9525_v43 }
 0x1ce   :  { %v2059_v32 = vpack.c.bf16 %v1937_v16, %v1936_v29 }
 0x1cf   :  { %v2058_v34 = vpack.c.bf16 %v1935_v31, %v1934_v30  ;;  %v8505_v38 = vpop.f32.mrb[76].mxu1 }
 0x1d0   :  { %v1472_v39 = vadd.f32 %v8505_v38, %v9582_v4  ;;  %v1463_v40 = vpop.f32.mrb[77].mxu1 }
 0x1d1   :  { %v1464_v41 = vadd.f32 %v9582_v4, %v1463_v40  ;;  %v8506_v44 = vpop.f32.mrb[78].mxu1  ;;  %8631 = vmatprep.mubr.msk.bf16.mxu0 %vm1188_vm1, %v2058_v34 }
 0x1d2   :  { %v1475_v45 = vadd.f32 %v8506_v44, %v9582_v4  ;;  %v1466_v46 = vpop.f32.mrb[79].mxu1  ;;  %8632 = vmatmul.mubr.msk.bf16.gmra.mrb[72].mxu0 %vm1188_vm1, %v2059_v32  ;;  %v1940_v47 = vmax.f32 %v1472_v39, 0.0 }
 0x1d3   :  { %v1467_v14 = vadd.f32 %v9582_v4, %v1466_v46  ;;  %v1938_v54 = vmax.f32 %v1464_v41, 0.0 }
 0x1d4   :  { %v1941_v43 = vmax.f32 %v1475_v45, 0.0  ;;  %8612 = vmatmul.mubr.msk.bf16.gmra.mrb[184].mxu1 %vm1188_vm1, %v9523_v42 }
 0x1d5   :  { %v1939_v58 = vmax.f32 %v1467_v14, 0.0  ;;  %8615 = vmatprep.mubr.msk.bf16.mxu1 %vm1188_vm1, %v9537_v5 }
 0x1d6   :  { %v2061_v60 = vpack.c.bf16 %v1941_v43, %v1940_v47 }
 0x1d7   :  { %v2060_v61 = vpack.c.bf16 %v1939_v58, %v1938_v54  ;;  %v8509_v59 = vpop.f32.mrb[80].mxu1 }
 0x1d8   :  { %v1488_v63 = vadd.f32 %v8509_v59, %v9582_v4  ;;  %v1479_v1 = vpop.f32.mrb[81].mxu1 }
 0x1d9   :  { %v1480_v2 = vadd.f32 %v9582_v4, %v1479_v1  ;;  %v8510_v57 = vpop.f32.mrb[82].mxu1  ;;  %8635 = vmatprep.mubr.msk.bf16.mxu0 %vm1188_vm1, %v2060_v61 }
 0x1da   :  { %v1491_v22 = vadd.f32 %v8510_v57, %v9582_v4  ;;  %v1482_v24 = vpop.f32.mrb[83].mxu1  ;;  %8636 = vmatmul.mubr.msk.bf16.gmra.mrb[76].mxu0 %vm1188_vm1, %v2061_v60  ;;  %v1944_v51 = vmax.f32 %v1488_v63, 0.0 }
 0x1db   :  { %v1483_v42 = vadd.f32 %v9582_v4, %v1482_v24  ;;  %v1942_v53 = vmax.f32 %v1480_v2, 0.0 }
 0x1dc   :  { %v1945_v5 = vmax.f32 %v1491_v22, 0.0  ;;  %8616 = vmatmul.mubr.msk.bf16.gmra.mrb[188].mxu1 %vm1188_vm1, %v9535_v3 }
 0x1dd   :  { %v1943_v18 = vmax.f32 %v1483_v42, 0.0 }
 0x1de   :  { %v2063_v20 = vpack.c.bf16 %v1945_v5, %v1944_v51 }
 0x1df   :  { %v2062_v48 = vpack.c.bf16 %v1943_v18, %v1942_v53  ;;  %v8513_v50 = vpop.f32.mrb[84].mxu1 }
 0x1e0   :  { %v1504_v17 = vadd.f32 %v8513_v50, %v9582_v4  ;;  %v1495_v21 = vpop.f32.mrb[85].mxu1 }
 0x1e1   :  { %v1496_v52 = vadd.f32 %v9582_v4, %v1495_v21  ;;  %v8514_v55 = vpop.f32.mrb[86].mxu1  ;;  %8639 = vmatprep.mubr.msk.bf16.mxu0 %vm1188_vm1, %v2062_v48 }
 0x1e2   :  { %v1507_v26 = vadd.f32 %v8514_v55, %v9582_v4  ;;  %v1498_v28 = vpop.f32.mrb[87].mxu1  ;;  %8640 = vmatmul.mubr.msk.bf16.gmra.mrb[80].mxu0 %vm1188_vm1, %v2063_v20  ;;  %v1948_v62 = vmax.f32 %v1504_v17, 0.0 }
 0x1e3   :  { %v1499_v3 = vadd.f32 %v9582_v4, %v1498_v28  ;;  %v1946_v35 = vmax.f32 %v1496_v52, 0.0 }
 0x1e4   :  { %v1949_v0 = vmax.f32 %v1507_v26, 0.0 }
 0x1e5   :  { %v1947_v37 = vmax.f32 %v1499_v3, 0.0 }
 0x1e6   :  { %v2065_v10 = vpack.c.bf16 %v1949_v0, %v1948_v62 }
 0x1e7   :  { %v2064_v12 = vpack.c.bf16 %v1947_v37, %v1946_v35  ;;  %v8517_v49 = vpop.f32.mrb[88].mxu1 }
 0x1e8   :  { %v1520_v56 = vadd.f32 %v8517_v49, %v9582_v4  ;;  %v1511_v36 = vpop.f32.mrb[89].mxu1 }
 0x1e9   :  { %v1512_v6 = vadd.f32 %v9582_v4, %v1511_v36  ;;  %v8518_v7 = vpop.f32.mrb[90].mxu1  ;;  %8643 = vmatprep.mubr.msk.bf16.mxu0 %vm1188_vm1, %v2064_v12 }
 0x1ea   :  { %v1523_v8 = vadd.f32 %v8518_v7, %v9582_v4  ;;  %v1514_v9 = vpop.f32.mrb[91].mxu1  ;;  %8644 = vmatmul.mubr.msk.bf16.gmra.mrb[84].mxu0 %vm1188_vm1, %v2065_v10  ;;  %v1952_v13 = vmax.f32 %v1520_v56, 0.0 }
 0x1eb   :  { %v1515_v11 = vadd.f32 %v9582_v4, %v1514_v9  ;;  %v1950_v19 = vmax.f32 %v1512_v6, 0.0 }
 0x1ec   :  { %v1953_v15 = vmax.f32 %v1523_v8, 0.0 }
 0x1ed   :  { %v1951_v23 = vmax.f32 %v1515_v11, 0.0 }
 0x1ee   :  { %v2067_v25 = vpack.c.bf16 %v1953_v15, %v1952_v13 }
 0x1ef   :  { %v2066_v27 = vpack.c.bf16 %v1951_v23, %v1950_v19  ;;  %v8521_v33 = vpop.f32.mrb[92].mxu1 }
 0x1f0   :  { %v1536_v29 = vadd.f32 %v8521_v33, %v9582_v4  ;;  %v1527_v16 = vpop.f32.mrb[93].mxu1 }
 0x1f1   :  { %v1528_v30 = vadd.f32 %v9582_v4, %v1527_v16  ;;  %v8522_v31 = vpop.f32.mrb[94].mxu1  ;;  %8647 = vmatprep.mubr.msk.bf16.mxu0 %vm1188_vm1, %v2066_v27 }
 0x1f2   :  { %v1539_v32 = vadd.f32 %v8522_v31, %v9582_v4  ;;  %v1530_v34 = vpop.f32.mrb[95].mxu1  ;;  %8648 = vmatmul.mubr.msk.bf16.gmra.mrb[88].mxu0 %vm1188_vm1, %v2067_v25  ;;  %v1956_v39 = vmax.f32 %v1536_v29, 0.0 }
 0x1f3   :  { %v1531_v38 = vadd.f32 %v9582_v4, %v1530_v34  ;;  %v1954_v41 = vmax.f32 %v1528_v30, 0.0 }
 0x1f4   :  { %v1957_v40 = vmax.f32 %v1539_v32, 0.0 }
 0x1f5   :  { %v1955_v44 = vmax.f32 %v1531_v38, 0.0 }
 0x1f6   :  { %v2069_v45 = vpack.c.bf16 %v1957_v40, %v1956_v39 }
 0x1f7   :  { %v2068_v46 = vpack.c.bf16 %v1955_v44, %v1954_v41  ;;  %v8525_v14 = vpop.f32.mrb[96].mxu1 }
 0x1f8   :  { %v1552_v47 = vadd.f32 %v8525_v14, %v9582_v4  ;;  %v1543_v43 = vpop.f32.mrb[97].mxu1 }
 0x1f9   :  { %v1544_v54 = vadd.f32 %v9582_v4, %v1543_v43  ;;  %v8526_v58 = vpop.f32.mrb[98].mxu1  ;;  %8651 = vmatprep.mubr.msk.bf16.mxu0 %vm1188_vm1, %v2068_v46 }
 0x1fa   :  { %v1555_v60 = vadd.f32 %v8526_v58, %v9582_v4  ;;  %v1546_v61 = vpop.f32.mrb[99].mxu1  ;;  %8652 = vmatmul.mubr.msk.bf16.gmra.mrb[92].mxu0 %vm1188_vm1, %v2069_v45  ;;  %v1960_v63 = vmax.f32 %v1552_v47, 0.0 }
 0x1fb   :  { %v1547_v59 = vadd.f32 %v9582_v4, %v1546_v61  ;;  %v1958_v2 = vmax.f32 %v1544_v54, 0.0 }
 0x1fc   :  { %v1961_v1 = vmax.f32 %v1555_v60, 0.0 }
 0x1fd   :  { %v1959_v57 = vmax.f32 %v1547_v59, 0.0 }
 0x1fe   :  { %v2071_v22 = vpack.c.bf16 %v1961_v1, %v1960_v63 }
 0x1ff   :  { %v2070_v24 = vpack.c.bf16 %v1959_v57, %v1958_v2  ;;  %v8529_v42 = vpop.f32.mrb[100].mxu1 }
 0x200   :  { %v1568_v51 = vadd.f32 %v8529_v42, %v9582_v4  ;;  %v1559_v5 = vpop.f32.mrb[101].mxu1 }
 0x201   :  { %v1560_v53 = vadd.f32 %v9582_v4, %v1559_v5  ;;  %v8530_v18 = vpop.f32.mrb[102].mxu1  ;;  %8655 = vmatprep.mubr.msk.bf16.mxu0 %vm1188_vm1, %v2070_v24 }
 0x202   :  { %v1571_v20 = vadd.f32 %v8530_v18, %v9582_v4  ;;  %v1562_v48 = vpop.f32.mrb[103].mxu1  ;;  %8656 = vmatmul.mubr.msk.bf16.gmra.mrb[96].mxu0 %vm1188_vm1, %v2071_v22  ;;  %v1964_v17 = vmax.f32 %v1568_v51, 0.0 }
 0x203   :  { %v1563_v50 = vadd.f32 %v9582_v4, %v1562_v48  ;;  %v1962_v52 = vmax.f32 %v1560_v53, 0.0 }
 0x204   :  { %v1965_v21 = vmax.f32 %v1571_v20, 0.0 }
 0x205   :  { %v1963_v55 = vmax.f32 %v1563_v50, 0.0 }
 0x206   :  { %v2073_v26 = vpack.c.bf16 %v1965_v21, %v1964_v17 }
 0x207   :  { %v2072_v28 = vpack.c.bf16 %v1963_v55, %v1962_v52  ;;  %v8533_v3 = vpop.f32.mrb[104].mxu1 }
 0x208   :  { %v1584_v62 = vadd.f32 %v8533_v3, %v9582_v4  ;;  %v1575_v0 = vpop.f32.mrb[105].mxu1 }
 0x209   :  { %v1576_v35 = vadd.f32 %v9582_v4, %v1575_v0  ;;  %v8534_v37 = vpop.f32.mrb[106].mxu1  ;;  %8659 = vmatprep.mubr.msk.bf16.mxu0 %vm1188_vm1, %v2072_v28 }
 0x20a   :  { %v1587_v10 = vadd.f32 %v8534_v37, %v9582_v4  ;;  %v1578_v12 = vpop.f32.mrb[107].mxu1  ;;  %8660 = vmatmul.mubr.msk.bf16.gmra.mrb[100].mxu0 %vm1188_vm1, %v2073_v26  ;;  %v1968_v56 = vmax.f32 %v1584_v62, 0.0 }
 0x20b   :  { %v1579_v49 = vadd.f32 %v9582_v4, %v1578_v12  ;;  %v1966_v6 = vmax.f32 %v1576_v35, 0.0 }
 0x20c   :  { %v1969_v36 = vmax.f32 %v1587_v10, 0.0 }
 0x20d   :  { %v1967_v7 = vmax.f32 %v1579_v49, 0.0 }
 0x20e   :  { %v2075_v8 = vpack.c.bf16 %v1969_v36, %v1968_v56 }
 0x20f   :  { %v2074_v9 = vpack.c.bf16 %v1967_v7, %v1966_v6  ;;  %v8537_v11 = vpop.f32.mrb[108].mxu1 }
 0x210   :  { %v1600_v13 = vadd.f32 %v8537_v11, %v9582_v4  ;;  %v1591_v15 = vpop.f32.mrb[109].mxu1 }
 0x211   :  { %v1592_v19 = vadd.f32 %v9582_v4, %v1591_v15  ;;  %v8538_v23 = vpop.f32.mrb[110].mxu1  ;;  %8663 = vmatprep.mubr.msk.bf16.mxu0 %vm1188_vm1, %v2074_v9 }
 0x212   :  { %v1603_v25 = vadd.f32 %v8538_v23, %v9582_v4  ;;  %v1594_v27 = vpop.f32.mrb[111].mxu1  ;;  %8664 = vmatmul.mubr.msk.bf16.gmra.mrb[104].mxu0 %vm1188_vm1, %v2075_v8  ;;  %v1972_v29 = vmax.f32 %v1600_v13, 0.0 }
 0x213   :  { %v1595_v33 = vadd.f32 %v9582_v4, %v1594_v27  ;;  %v1970_v30 = vmax.f32 %v1592_v19, 0.0 }
 0x214   :  { %v1973_v16 = vmax.f32 %v1603_v25, 0.0 }
 0x215   :  { %v1971_v31 = vmax.f32 %v1595_v33, 0.0 }
 0x216   :  { %v2077_v32 = vpack.c.bf16 %v1973_v16, %v1972_v29 }
 0x217   :  { %v2076_v34 = vpack.c.bf16 %v1971_v31, %v1970_v30  ;;  %v8541_v38 = vpop.f32.mrb[112].mxu1 }
 0x218   :  { %v1616_v39 = vadd.f32 %v8541_v38, %v9582_v4  ;;  %v1607_v40 = vpop.f32.mrb[113].mxu1 }
 0x219   :  { %v1608_v41 = vadd.f32 %v9582_v4, %v1607_v40  ;;  %v8542_v44 = vpop.f32.mrb[114].mxu1  ;;  %8667 = vmatprep.mubr.msk.bf16.mxu0 %vm1188_vm1, %v2076_v34 }
 0x21a   :  { %v1619_v45 = vadd.f32 %v8542_v44, %v9582_v4  ;;  %v1610_v46 = vpop.f32.mrb[115].mxu1  ;;  %8668 = vmatmul.mubr.msk.bf16.gmra.mrb[108].mxu0 %vm1188_vm1, %v2077_v32  ;;  %v1976_v47 = vmax.f32 %v1616_v39, 0.0 }
 0x21b   :  { %v1611_v14 = vadd.f32 %v9582_v4, %v1610_v46  ;;  %v1974_v54 = vmax.f32 %v1608_v41, 0.0 }
 0x21c   :  { %v1977_v43 = vmax.f32 %v1619_v45, 0.0 }
 0x21d   :  { %v1975_v58 = vmax.f32 %v1611_v14, 0.0 }
 0x21e   :  { %v2079_v60 = vpack.c.bf16 %v1977_v43, %v1976_v47 }
 0x21f   :  { %v2078_v61 = vpack.c.bf16 %v1975_v58, %v1974_v54  ;;  %v8545_v59 = vpop.f32.mrb[116].mxu1 }
 0x220   :  { %v1632_v63 = vadd.f32 %v8545_v59, %v9582_v4  ;;  %v1623_v1 = vpop.f32.mrb[117].mxu1 }
 0x221   :  { %v1624_v2 = vadd.f32 %v9582_v4, %v1623_v1  ;;  %v8546_v57 = vpop.f32.mrb[118].mxu1  ;;  %8671 = vmatprep.mubr.msk.bf16.mxu0 %vm1188_vm1, %v2078_v61 }
 0x222   :  { %v1635_v22 = vadd.f32 %v8546_v57, %v9582_v4  ;;  %v1626_v24 = vpop.f32.mrb[119].mxu1  ;;  %8672 = vmatmul.mubr.msk.bf16.gmra.mrb[112].mxu0 %vm1188_vm1, %v2079_v60  ;;  %v1980_v51 = vmax.f32 %v1632_v63, 0.0 }
 0x223   :  { %v1627_v42 = vadd.f32 %v9582_v4, %v1626_v24  ;;  %v1978_v53 = vmax.f32 %v1624_v2, 0.0 }
 0x224   :  { %v1981_v5 = vmax.f32 %v1635_v22, 0.0 }
 0x225   :  { %v1979_v18 = vmax.f32 %v1627_v42, 0.0 }
 0x226   :  { %v2081_v20 = vpack.c.bf16 %v1981_v5, %v1980_v51 }
 0x227   :  { %v2080_v48 = vpack.c.bf16 %v1979_v18, %v1978_v53  ;;  %v8549_v50 = vpop.f32.mrb[120].mxu1 }
 0x228   :  { %v1648_v17 = vadd.f32 %v8549_v50, %v9582_v4  ;;  %v1639_v21 = vpop.f32.mrb[121].mxu1 }
 0x229   :  { %v1640_v52 = vadd.f32 %v9582_v4, %v1639_v21  ;;  %v8550_v55 = vpop.f32.mrb[122].mxu1  ;;  %8675 = vmatprep.mubr.msk.bf16.mxu0 %vm1188_vm1, %v2080_v48 }
 0x22a   :  { %v1651_v26 = vadd.f32 %v8550_v55, %v9582_v4  ;;  %v1642_v28 = vpop.f32.mrb[123].mxu1  ;;  %8676 = vmatmul.mubr.msk.bf16.gmra.mrb[116].mxu0 %vm1188_vm1, %v2081_v20  ;;  %v1984_v62 = vmax.f32 %v1648_v17, 0.0 }
 0x22b   :  { %v1643_v3 = vadd.f32 %v9582_v4, %v1642_v28  ;;  %v1982_v35 = vmax.f32 %v1640_v52, 0.0 }
 0x22c   :  { %v1985_v0 = vmax.f32 %v1651_v26, 0.0 }
 0x22d   :  { %v1983_v37 = vmax.f32 %v1643_v3, 0.0 }
 0x22e   :  { %v2083_v10 = vpack.c.bf16 %v1985_v0, %v1984_v62 }
 0x22f   :  { %v2082_v12 = vpack.c.bf16 %v1983_v37, %v1982_v35  ;;  %v8553_v49 = vpop.f32.mrb[124].mxu1 }
 0x230   :  { %v1664_v56 = vadd.f32 %v8553_v49, %v9582_v4  ;;  %v1655_v36 = vpop.f32.mrb[125].mxu1 }
 0x231   :  { %v1656_v6 = vadd.f32 %v9582_v4, %v1655_v36  ;;  %v8554_v7 = vpop.f32.mrb[126].mxu1  ;;  %8679 = vmatprep.mubr.msk.bf16.mxu0 %vm1188_vm1, %v2082_v12 }
 0x232   :  { %v1667_v8 = vadd.f32 %v8554_v7, %v9582_v4  ;;  %v1658_v9 = vpop.f32.mrb[127].mxu1  ;;  %8680 = vmatmul.mubr.msk.bf16.gmra.mrb[120].mxu0 %vm1188_vm1, %v2083_v10  ;;  %v1988_v13 = vmax.f32 %v1664_v56, 0.0 }
 0x233   :  { %v1659_v11 = vadd.f32 %v9582_v4, %v1658_v9  ;;  %v1986_v19 = vmax.f32 %v1656_v6, 0.0 }
 0x234   :  { %v1989_v15 = vmax.f32 %v1667_v8, 0.0 }
 0x235   :  { %v1987_v23 = vmax.f32 %v1659_v11, 0.0 }
 0x236   :  { %v2085_v25 = vpack.c.bf16 %v1989_v15, %v1988_v13 }
 0x237   :  { %v2084_v27 = vpack.c.bf16 %v1987_v23, %v1986_v19  ;;  %v8557_v33 = vpop.f32.mrb[128].mxu1 }
 0x238   :  { %v1680_v29 = vadd.f32 %v8557_v33, %v9582_v4  ;;  %v1671_v16 = vpop.f32.mrb[129].mxu1 }
 0x239   :  { %v1672_v30 = vadd.f32 %v9582_v4, %v1671_v16  ;;  %v8558_v31 = vpop.f32.mrb[130].mxu1  ;;  %8683 = vmatprep.mubr.msk.bf16.mxu0 %vm1188_vm1, %v2084_v27 }
 0x23a   :  { %v1683_v32 = vadd.f32 %v8558_v31, %v9582_v4  ;;  %v1674_v34 = vpop.f32.mrb[131].mxu1  ;;  %8684 = vmatmul.mubr.msk.bf16.gmra.mrb[124].mxu0 %vm1188_vm1, %v2085_v25  ;;  %v1992_v39 = vmax.f32 %v1680_v29, 0.0 }
 0x23b   :  { %v1675_v38 = vadd.f32 %v9582_v4, %v1674_v34  ;;  %v1990_v41 = vmax.f32 %v1672_v30, 0.0 }
 0x23c   :  { %v1993_v40 = vmax.f32 %v1683_v32, 0.0 }
 0x23d   :  { %v1991_v44 = vmax.f32 %v1675_v38, 0.0 }
 0x23e   :  { %v2087_v45 = vpack.c.bf16 %v1993_v40, %v1992_v39 }
 0x23f   :  { %v2086_v46 = vpack.c.bf16 %v1991_v44, %v1990_v41  ;;  %v8561_v14 = vpop.f32.mrb[132].mxu1 }
 0x240   :  { %v1696_v47 = vadd.f32 %v8561_v14, %v9582_v4  ;;  %v1687_v43 = vpop.f32.mrb[133].mxu1 }
 0x241   :  { %v1688_v54 = vadd.f32 %v9582_v4, %v1687_v43  ;;  %v8562_v58 = vpop.f32.mrb[134].mxu1  ;;  %8687 = vmatprep.mubr.msk.bf16.mxu0 %vm1188_vm1, %v2086_v46 }
 0x242   :  { %v1699_v60 = vadd.f32 %v8562_v58, %v9582_v4  ;;  %v1690_v61 = vpop.f32.mrb[135].mxu1  ;;  %8688 = vmatmul.mubr.msk.bf16.gmra.mrb[128].mxu0 %vm1188_vm1, %v2087_v45  ;;  %v1996_v63 = vmax.f32 %v1696_v47, 0.0 }
 0x243   :  { %v1691_v59 = vadd.f32 %v9582_v4, %v1690_v61  ;;  %v1994_v2 = vmax.f32 %v1688_v54, 0.0 }
 0x244   :  { %v1997_v1 = vmax.f32 %v1699_v60, 0.0 }
 0x245   :  { %v1995_v57 = vmax.f32 %v1691_v59, 0.0 }
 0x246   :  { %v2089_v22 = vpack.c.bf16 %v1997_v1, %v1996_v63 }
 0x247   :  { %v2088_v24 = vpack.c.bf16 %v1995_v57, %v1994_v2  ;;  %v8565_v42 = vpop.f32.mrb[136].mxu1 }
 0x248   :  { %v1712_v51 = vadd.f32 %v8565_v42, %v9582_v4  ;;  %v1703_v5 = vpop.f32.mrb[137].mxu1 }
 0x249   :  { %v1704_v53 = vadd.f32 %v9582_v4, %v1703_v5  ;;  %v8566_v18 = vpop.f32.mrb[138].mxu1  ;;  %8691 = vmatprep.mubr.msk.bf16.mxu0 %vm1188_vm1, %v2088_v24 }
 0x24a   :  { %v1715_v20 = vadd.f32 %v8566_v18, %v9582_v4  ;;  %v1706_v48 = vpop.f32.mrb[139].mxu1  ;;  %8692 = vmatmul.mubr.msk.bf16.gmra.mrb[132].mxu0 %vm1188_vm1, %v2089_v22  ;;  %v2000_v17 = vmax.f32 %v1712_v51, 0.0 }
 0x24b   :  { %v1707_v50 = vadd.f32 %v9582_v4, %v1706_v48  ;;  %v1998_v52 = vmax.f32 %v1704_v53, 0.0 }
 0x24c   :  { %v2001_v21 = vmax.f32 %v1715_v20, 0.0 }
 0x24d   :  { %v1999_v55 = vmax.f32 %v1707_v50, 0.0 }
 0x24e   :  { %v2091_v26 = vpack.c.bf16 %v2001_v21, %v2000_v17 }
 0x24f   :  { %v2090_v28 = vpack.c.bf16 %v1999_v55, %v1998_v52  ;;  %v8569_v3 = vpop.f32.mrb[140].mxu1 }
 0x250   :  { %v1728_v62 = vadd.f32 %v8569_v3, %v9582_v4  ;;  %v1719_v0 = vpop.f32.mrb[141].mxu1 }
 0x251   :  { %v1720_v35 = vadd.f32 %v9582_v4, %v1719_v0  ;;  %v8570_v37 = vpop.f32.mrb[142].mxu1  ;;  %8695 = vmatprep.mubr.msk.bf16.mxu0 %vm1188_vm1, %v2090_v28 }
 0x252   :  { %v1731_v10 = vadd.f32 %v8570_v37, %v9582_v4  ;;  %v1722_v12 = vpop.f32.mrb[143].mxu1  ;;  %8696 = vmatmul.mubr.msk.bf16.gmra.mrb[136].mxu0 %vm1188_vm1, %v2091_v26  ;;  %v2004_v56 = vmax.f32 %v1728_v62, 0.0 }
 0x253   :  { %v1723_v49 = vadd.f32 %v9582_v4, %v1722_v12  ;;  %v2002_v6 = vmax.f32 %v1720_v35, 0.0 }
 0x254   :  { %v2005_v36 = vmax.f32 %v1731_v10, 0.0 }
 0x255   :  { %v2003_v7 = vmax.f32 %v1723_v49, 0.0 }
 0x256   :  { %v2093_v8 = vpack.c.bf16 %v2005_v36, %v2004_v56 }
 0x257   :  { %v2092_v9 = vpack.c.bf16 %v2003_v7, %v2002_v6  ;;  %v8573_v11 = vpop.f32.mrb[144].mxu1 }
 0x258   :  { %v1744_v13 = vadd.f32 %v8573_v11, %v9582_v4  ;;  %v1735_v15 = vpop.f32.mrb[145].mxu1 }
 0x259   :  { %v1736_v19 = vadd.f32 %v9582_v4, %v1735_v15  ;;  %v8574_v23 = vpop.f32.mrb[146].mxu1  ;;  %8699 = vmatprep.mubr.msk.bf16.mxu0 %vm1188_vm1, %v2092_v9 }
 0x25a   :  { %v1747_v25 = vadd.f32 %v8574_v23, %v9582_v4  ;;  %v1738_v27 = vpop.f32.mrb[147].mxu1  ;;  %8700 = vmatmul.mubr.msk.bf16.gmra.mrb[140].mxu0 %vm1188_vm1, %v2093_v8  ;;  %v2008_v29 = vmax.f32 %v1744_v13, 0.0 }
 0x25b   :  { %v1739_v33 = vadd.f32 %v9582_v4, %v1738_v27  ;;  %v2006_v30 = vmax.f32 %v1736_v19, 0.0 }
 0x25c   :  { %v2009_v16 = vmax.f32 %v1747_v25, 0.0 }
 0x25d   :  { %v2007_v31 = vmax.f32 %v1739_v33, 0.0 }
 0x25e   :  { %v2095_v32 = vpack.c.bf16 %v2009_v16, %v2008_v29 }
 0x25f   :  { %v2094_v34 = vpack.c.bf16 %v2007_v31, %v2006_v30  ;;  %v8577_v38 = vpop.f32.mrb[148].mxu1 }
 0x260   :  { %v1760_v39 = vadd.f32 %v8577_v38, %v9582_v4  ;;  %v1751_v40 = vpop.f32.mrb[149].mxu1 }
 0x261   :  { %v1752_v41 = vadd.f32 %v9582_v4, %v1751_v40  ;;  %v8578_v44 = vpop.f32.mrb[150].mxu1  ;;  %8703 = vmatprep.mubr.msk.bf16.mxu0 %vm1188_vm1, %v2094_v34 }
 0x262   :  { %v1763_v45 = vadd.f32 %v8578_v44, %v9582_v4  ;;  %v1754_v46 = vpop.f32.mrb[151].mxu1  ;;  %8704 = vmatmul.mubr.msk.bf16.gmra.mrb[144].mxu0 %vm1188_vm1, %v2095_v32  ;;  %v2012_v47 = vmax.f32 %v1760_v39, 0.0 }
 0x263   :  { %v1755_v14 = vadd.f32 %v9582_v4, %v1754_v46  ;;  %v2010_v54 = vmax.f32 %v1752_v41, 0.0 }
 0x264   :  { %v2013_v43 = vmax.f32 %v1763_v45, 0.0 }
 0x265   :  { %v2011_v58 = vmax.f32 %v1755_v14, 0.0 }
 0x266   :  { %v2097_v60 = vpack.c.bf16 %v2013_v43, %v2012_v47 }
 0x267   :  { %v2096_v61 = vpack.c.bf16 %v2011_v58, %v2010_v54  ;;  %v8581_v59 = vpop.f32.mrb[152].mxu1 }
 0x268   :  { %v1776_v63 = vadd.f32 %v8581_v59, %v9582_v4  ;;  %v1767_v1 = vpop.f32.mrb[153].mxu1 }
 0x269   :  { %v1768_v2 = vadd.f32 %v9582_v4, %v1767_v1  ;;  %v8582_v57 = vpop.f32.mrb[154].mxu1  ;;  %8707 = vmatprep.mubr.msk.bf16.mxu0 %vm1188_vm1, %v2096_v61 }
 0x26a   :  { %v1779_v22 = vadd.f32 %v8582_v57, %v9582_v4  ;;  %v1770_v24 = vpop.f32.mrb[155].mxu1  ;;  %8708 = vmatmul.mubr.msk.bf16.gmra.mrb[148].mxu0 %vm1188_vm1, %v2097_v60  ;;  %v2016_v51 = vmax.f32 %v1776_v63, 0.0 }
 0x26b   :  { %v1771_v42 = vadd.f32 %v9582_v4, %v1770_v24  ;;  %v2014_v53 = vmax.f32 %v1768_v2, 0.0  ;;  %v5183_v2 = vlaneseq }
 0x26c   :  { %v2017_v5 = vmax.f32 %v1779_v22, 0.0 }
 0x26d   :  { %v2015_v18 = vmax.f32 %v1771_v42, 0.0 }
 0x26e   :  { %v2099_v20 = vpack.c.bf16 %v2017_v5, %v2016_v51 }
 0x26f   :  { %v2098_v48 = vpack.c.bf16 %v2015_v18, %v2014_v53  ;;  %v8585_v50 = vpop.f32.mrb[156].mxu1  ;;  %v5184_v18 = vshrl.u32 %v5183_v2, 7 }
 0x270   :  { %v1792_v17 = vadd.f32 %v8585_v50, %v9582_v4  ;;  %v1783_v21 = vpop.f32.mrb[157].mxu1 }
 0x271   :  { %v1784_v52 = vadd.f32 %v9582_v4, %v1783_v21  ;;  %v8586_v55 = vpop.f32.mrb[158].mxu1  ;;  %8711 = vmatprep.mubr.msk.bf16.mxu0 %vm1188_vm1, %v2098_v48  ;;  %v9820_v2 = vsub.s32 3, %v5184_v18 }
 0x272   :  { %v1795_v26 = vadd.f32 %v8586_v55, %v9582_v4  ;;  %v1786_v28 = vpop.f32.mrb[159].mxu1  ;;  %8712 = vmatmul.mubr.msk.bf16.gmra.mrb[152].mxu0 %vm1188_vm1, %v2099_v20  ;;  %v2020_v62 = vmax.f32 %v1792_v17, 0.0 }
 0x273   :  { %v1787_v3 = vadd.f32 %v9582_v4, %v1786_v28  ;;  %v2018_v35 = vmax.f32 %v1784_v52, 0.0  ;;  %v9771_v52 = vld [vmem:[%s14105_s6] ss:$0 sm:$0xff]  ;;  %v9773_v28 = vsub.s32 0, %v5184_v18 }
 0x274   :  { %v2021_v0 = vmax.f32 %v1795_v26, 0.0 }
 0x275   :  { %v2019_v37 = vmax.f32 %v1787_v3, 0.0 }
 0x276   :  { %v2101_v10 = vpack.c.bf16 %v2021_v0, %v2020_v62 }
 0x277   :  { %v2100_v12 = vpack.c.bf16 %v2019_v37, %v2018_v35  ;;  %v8589_v49 = vpop.f32.mrb[160].mxu1 }
 0x278   :  { %v1808_v56 = vadd.f32 %v8589_v49, %v9582_v4  ;;  %v1799_v36 = vpop.f32.mrb[161].mxu1 }
 0x279   :  { %v1800_v6 = vadd.f32 %v9582_v4, %v1799_v36  ;;  %v8590_v7 = vpop.f32.mrb[162].mxu1  ;;  %8715 = vmatprep.mubr.msk.bf16.mxu0 %vm1188_vm1, %v2100_v12 }
 0x27a   :  { %v1811_v8 = vadd.f32 %v8590_v7, %v9582_v4  ;;  %v1802_v9 = vpop.f32.mrb[163].mxu1  ;;  %8716 = vmatmul.mubr.msk.bf16.gmra.mrb[156].mxu0 %vm1188_vm1, %v2101_v10  ;;  %v2024_v13 = vmax.f32 %v1808_v56, 0.0 }
 0x27b   :  { %v1803_v11 = vadd.f32 %v9582_v4, %v1802_v9  ;;  %v2022_v19 = vmax.f32 %v1800_v6, 0.0 }
 0x27c   :  { %v2025_v15 = vmax.f32 %v1811_v8, 0.0 }
 0x27d   :  { %v2023_v23 = vmax.f32 %v1803_v11, 0.0 }
 0x27e   :  { %v2103_v25 = vpack.c.bf16 %v2025_v15, %v2024_v13 }
 0x27f   :  { %v2102_v27 = vpack.c.bf16 %v2023_v23, %v2022_v19  ;;  %v8593_v33 = vpop.f32.mrb[164].mxu1 }
 0x280   :  { %v1824_v29 = vadd.f32 %v8593_v33, %v9582_v4  ;;  %v1815_v16 = vpop.f32.mrb[165].mxu1  ;;  %v9797_v33 = vsub.s32 1, %v5184_v18 }
 0x281   :  { %v1816_v30 = vadd.f32 %v9582_v4, %v1815_v16  ;;  %v8594_v31 = vpop.f32.mrb[166].mxu1  ;;  %8719 = vmatprep.mubr.msk.bf16.mxu0 %vm1188_vm1, %v2102_v27 }
 0x282   :  { %v1827_v32 = vadd.f32 %v8594_v31, %v9582_v4  ;;  %v1818_v34 = vpop.f32.mrb[167].mxu1  ;;  %8720 = vmatmul.mubr.msk.bf16.gmra.mrb[160].mxu0 %vm1188_vm1, %v2103_v25  ;;  %v2028_v39 = vmax.f32 %v1824_v29, 0.0 }
 0x283   :  { %v1819_v38 = vadd.f32 %v9582_v4, %v1818_v34  ;;  %v2026_v41 = vmax.f32 %v1816_v30, 0.0  ;;  %v9803_v34 = vsub.s32 2, %v5184_v18 }
 0x284   :  { %v2029_v40 = vmax.f32 %v1827_v32, 0.0 }
 0x285   :  { %v2027_v44 = vmax.f32 %v1819_v38, 0.0 }
 0x286   :  { %v2105_v45 = vpack.c.bf16 %v2029_v40, %v2028_v39 }
 0x287   :  { %v2104_v46 = vpack.c.bf16 %v2027_v44, %v2026_v41  ;;  %v8597_v14 = vpop.f32.mrb[168].mxu1 }
 0x288   :  { %v1840_v47 = vadd.f32 %v8597_v14, %v9582_v4  ;;  %v1831_v43 = vpop.f32.mrb[169].mxu1 }
 0x289   :  { %v1832_v54 = vadd.f32 %v9582_v4, %v1831_v43  ;;  %v8598_v58 = vpop.f32.mrb[170].mxu1  ;;  %8723 = vmatprep.mubr.msk.bf16.mxu0 %vm1188_vm1, %v2104_v46 }
 0x28a   :  { %v1843_v60 = vadd.f32 %v8598_v58, %v9582_v4  ;;  %v1834_v61 = vpop.f32.mrb[171].mxu1  ;;  %8724 = vmatmul.mubr.msk.bf16.gmra.mrb[164].mxu0 %vm1188_vm1, %v2105_v45  ;;  %v2032_v63 = vmax.f32 %v1840_v47, 0.0 }
 0x28b   :  { %v1835_v59 = vadd.f32 %v9582_v4, %v1834_v61  ;;  %v2030_v57 = vmax.f32 %v1832_v54, 0.0 }
 0x28c   :  { %v2033_v1 = vmax.f32 %v1843_v60, 0.0 }
 0x28d   :  { %v2031_v22 = vmax.f32 %v1835_v59, 0.0 }
 0x28e   :  { %v2107_v24 = vpack.c.bf16 %v2033_v1, %v2032_v63 }
 0x28f   :  { %v2106_v42 = vpack.c.bf16 %v2031_v22, %v2030_v57  ;;  %v8601_v51 = vpop.f32.mrb[172].mxu1 }
 0x290   :  { %v1856_v5 = vadd.f32 %v8601_v51, %v9582_v4  ;;  %v1847_v53 = vpop.f32.mrb[173].mxu1 }
 0x291   :  { %v1848_v20 = vadd.f32 %v9582_v4, %v1847_v53  ;;  %v8602_v48 = vpop.f32.mrb[174].mxu1  ;;  %8727 = vmatprep.mubr.msk.bf16.mxu0 %vm1188_vm1, %v2106_v42 }
 0x292   :  { %v1859_v50 = vadd.f32 %v8602_v48, %v9582_v4  ;;  %v1850_v17 = vpop.f32.mrb[175].mxu1  ;;  %8728 = vmatmul.mubr.msk.bf16.gmra.mrb[168].mxu0 %vm1188_vm1, %v2107_v24  ;;  %v2036_v55 = vmax.f32 %v1856_v5, 0.0 }
 0x293   :  { %v1851_v21 = vadd.f32 %v9582_v4, %v1850_v17  ;;  %v2034_v3 = vmax.f32 %v1848_v20, 0.0 }
 0x294   :  { %v2037_v26 = vmax.f32 %v1859_v50, 0.0 }
 0x295   :  { %v2035_v62 = vmax.f32 %v1851_v21, 0.0  ;;  %v8625_v0 = vpop.f32.mrb[64].mxu0 }
 0x296   :  { %v2109_v35 = vpack.c.bf16 %v2037_v26, %v2036_v55  ;;  %v9776_v37 = vadd.f32 %v8625_v0, %v9771_v52  ;;  %v2367_v10 = vpop.f32.mrb[65].mxu0 }
 0x297   :  { %v2108_v12 = vpack.c.bf16 %v2035_v62, %v2034_v3  ;;  %v9779_v49 = vadd.f32 %v9771_v52, %v2367_v10  ;;  %v8605_v56 = vpop.f32.mrb[176].mxu1  ;;  %v8626_v36 = vpop.f32.mrb[66].mxu0 }
 0x298   :  { %v3008_v6 = vcombine.high %v9776_v37, %v9776_v37  ;;  %v3291_v7 = vsel %vm3262_vm2, %v9776_v37, 0.0  ;;  %v6534_v8 = vrot.slane %v9776_v37, %v9773_v28  ;;  %v1863_v9 = vpop.f32.mrb[177].mxu1  ;;  %v2370_v11 = vpop.f32.mrb[67].mxu0  ;;  %v2379_v41 = vadd.f32 %v8626_v36, %v9771_v52  ;;  %v9847_v36 = vld [vmem:[%s14103_s4] ss:$0 sm:$0xff] }
 0x299   :  { %v3292_v13 = vrot.slane %v3291_v7, 4  ;;  %v3006_v15 = vcombine.high %v9779_v49, %v9779_v49  ;;  %v3263_v19 = vsel %vm3262_vm2, %v9779_v49, 0.0  ;;  %v6530_v23 = vrot.slane %v9779_v49, %v9773_v28  ;;  %v9793_v25 = vpop.f32.mrb[178].mxu1  ;;  %8731 = vmatprep.mubr.msk.bf16.mxu0 %vm1188_vm1, %v2108_v12 }
 0x29a   :  { %v3298_v27 = vsel %vm3262_vm2, %v3008_v6, 0.0  ;;  %v3264_v29 = vrot.slane %v3263_v19, 4  ;;  %v9799_v16 = vpop.f32.mrb[179].mxu1  ;;  %8732 = vmatmul.mubr.msk.bf16.gmra.mrb[172].mxu0 %vm1188_vm1, %v2109_v35  ;;  %v9810_v46 = vadd.f32 %v8605_v56, %v9582_v4  ;;  %v9813_v14 = vadd.f32 %v9771_v52, %v2370_v11 }
 0x29b   :  { %v3293_v30 = vadd.f32 %v3292_v13, %v3291_v7  ;;  %v3299_v31 = vrot.slane %v3298_v27, 4  ;;  %v3270_v32 = vsel %vm3262_vm2, %v3006_v15, 0.0  ;;  %v9806_v40 = vsel %vm6783_vm3, %v6534_v8, %v6530_v23 }
 0x29c   :  { %v3265_v38 = vadd.f32 %v3264_v29, %v3263_v19  ;;  %v3271_v39 = vrot.slane %v3270_v32, 4  ;;  %v3009_v58 = vcombine.high %v2379_v41, %v2379_v41  ;;  %v3305_v60 = vsel %vm3262_vm2, %v2379_v41, 0.0 }
 0x29d   :  { %v3294_v44 = vrot.slane %v3293_v30, 2  ;;  %v3300_v45 = vadd.f32 %v3299_v31, %v3298_v27  ;;  %v9815_v47 = vpop.f32.mrb[68].mxu0  ;;  %v3306_v1 = vrot.slane %v3305_v60, 4  ;;  %v9827_v22 = vrot.slane %v3008_v6, %v9797_v33 }
 0x29e   :  { %v3266_v43 = vrot.slane %v3265_v38, 2  ;;  %v3272_v54 = vadd.f32 %v3271_v39, %v3270_v32  ;;  %v9818_v61 = vpop.f32.mrb[69].mxu0  ;;  %v3312_v51 = vsel %vm3262_vm2, %v3009_v58, 0.0  ;;  %v2040_v48 = vmax.f32 %v9810_v46, 0.0 }
 0x29f   :  { %v3295_v59 = vadd.f32 %v3294_v44, %v3293_v30  ;;  %v3301_v63 = vrot.slane %v3300_v45, 2  ;;  %v9822_v57 = vpop.f32.mrb[180].mxu1  ;;  %v9824_v4 = vpop.f32.mrb[70].mxu0  ;;  %14262 = vst [vmem:[#allocation5_spill] sm:$0xff] %v9827_v22  ;;  %v3307_v18 = vadd.f32 %v3306_v1, %v3305_v60  ;;  %v3313_v50 = vrot.slane %v3312_v51, 4 }
 0x2a0   :  { %v3267_v24 = vadd.f32 %v3266_v43, %v3265_v38  ;;  %v3273_v42 = vrot.slane %v3272_v54, 2  ;;  %v9830_v5 = vpop.f32.mrb[181].mxu1  ;;  %v9832_v53 = vpop.f32.mrb[71].mxu0  ;;  %v9838_v26 = vrot.slane %v3006_v15, %v9797_v33  ;;  %v3007_v3 = vcombine.high %v9813_v14, %v9813_v14 }
 0x2a1   :  { %v3296_v20 = vrot.slane %v3295_v59, 1  ;;  %v9835_v17 = vpop.f32.mrb[182].mxu1  ;;  %v3302_v21 = vadd.f32 %v3301_v63, %v3300_v45  ;;  %v3308_v10 = vrot.slane %v3307_v18, 2  ;;  %v3314_v12 = vadd.f32 %v3313_v50, %v3312_v51 }
 0x2a2   :  { %v3268_v55 = vrot.slane %v3267_v24, 1  ;;  %14263 = vst [vmem:[#allocation6_spill] sm:$0xff] %v9838_v26  ;;  %v9842_v62 = vpop.f32.mrb[183].mxu1  ;;  %v3274_v35 = vadd.f32 %v3273_v42, %v3272_v54  ;;  %v9850_v6 = vadd.f32 %v9847_v36, %v1863_v9  ;;  %v3277_v7 = vsel %vm3262_vm2, %v9813_v14, 0.0 }
 0x2a3   :  { %v3297_v0 = vadd.f32 %v3296_v20, %v3295_v59  ;;  %v3284_v8 = vsel %vm3262_vm2, %v3007_v3, 0.0  ;;  %v3309_v13 = vadd.f32 %v3308_v10, %v3307_v18  ;;  %v3315_v15 = vrot.slane %v3314_v12, 2 }
 0x2a4   :  { %v3269_v56 = vadd.f32 %v3268_v55, %v3267_v24  ;;  %v5638_v19 = vrot.slane %v2379_v41, %v9803_v34  ;;  %v3303_v27 = vrot.slane %v3302_v21, 1  ;;  %v3278_v30 = vrot.slane %v3277_v7, 4 }
 0x2a5   :  { %v5056_v11 = vsub.f32 %v3297_v0, %v9776_v37  ;;  %v9857_v23 = vpop.f32.mrb[72].mxu0  ;;  %v3285_v31 = vrot.slane %v3284_v8, 4  ;;  %v3275_v38 = vrot.slane %v3274_v35, 1  ;;  %v3310_v39 = vrot.slane %v3309_v13, 1 }
 0x2a6   :  { %v5055_v29 = vsub.f32 %v3269_v56, %v9779_v49  ;;  %v9860_v9 = vpop.f32.mrb[73].mxu0  ;;  %v3316_v44 = vadd.f32 %v3315_v15, %v3314_v12  ;;  %v6086_v41 = vrot.slane %v3009_v58, %v9820_v2  ;;  %v3279_v54 = vadd.f32 %v3278_v30, %v3277_v7 }
 0x2a7   :  { %v5120_v32 = vmul.f32 0.33333334, %v5056_v11  ;;  %v9862_v45 = vpop.f32.mrb[184].mxu1  ;;  %v9864_v37 = vpop.f32.mrb[74].mxu0  ;;  %v3286_v60 = vadd.f32 %v3285_v31, %v3284_v8  ;;  %v3311_v1 = vadd.f32 %v3310_v39, %v3309_v13  ;;  %v2038_v42 = vmax.f32 %v9850_v6, 0.0 }
 0x2a8   :  { %v5119_v43 = vmul.f32 0.33333334, %v5055_v29  ;;  %v9867_v59 = vpop.f32.mrb[185].mxu1  ;;  %v9869_v49 = vpop.f32.mrb[75].mxu0  ;;  %v3317_v24 = vrot.slane %v3316_v44, 1  ;;  %v3304_v20 = vadd.f32 %v3303_v27, %v3302_v21  ;;  %v3280_v18 = vrot.slane %v3279_v54, 2 }
 0x2a9   :  { %v6918_v63 = vrot.slane %v5120_v32, 7  ;;  %v9872_v51 = vpop.f32.mrb[186].mxu1  ;;  %v3287_v50 = vrot.slane %v3286_v60, 2  ;;  %v5634_v55 = vrot.slane %v9813_v14, %v9803_v34  ;;  %v3276_v0 = vadd.f32 %v3275_v38, %v3274_v35 }
 0x2aa   :  { %v9876_v58 = vpop.f32.mrb[187].mxu1  ;;  %v3318_v12 = vadd.f32 %v3317_v24, %v3316_v44  ;;  %v5952_v56 = vsub.f32 %v3311_v1, %v5638_v19  ;;  %v3281_v7 = vadd.f32 %v3280_v18, %v3279_v54  ;;  %v6082_v6 = vrot.slane %v3007_v3, %v9820_v2 }
 0x2ab   :  { %v9879_v10 = vsel %vm6783_vm3, %v6918_v63, %v5119_v43  ;;  %v3288_v8 = vadd.f32 %v3287_v50, %v3286_v60  ;;  %v9883_v11 = vsel %vm6783_vm3, %v5638_v19, %v5634_v55  ;;  %v1875_v14 = vadd.f32 %v9847_v36, %v9793_v25 }
 0x2ac   :  { %14264 = vst [vmem:[#allocation7_spill] sm:$0xff] %v9879_v10  ;;  %v6016_v21 = vmul.f32 0.33333334, %v5952_v56  ;;  %v6400_v13 = vsub.f32 %v3318_v12, %v6086_v41  ;;  %v1867_v35 = vadd.f32 %v9847_v36, %v9799_v16  ;;  %v3282_v27 = vrot.slane %v3281_v7, 1 }
 0x2ad   :  { %v9889_v15 = vpop.f32.mrb[76].mxu0  ;;  %v3289_v29 = vrot.slane %v3288_v8, 1  ;;  %v9892_v30 = vsel %vm6783_vm3, %v6086_v41, %v6082_v6  ;;  %v9896_v3 = vadd.f32 %v9815_v47, %v9771_v52  ;;  %v5504_v31 = vsub.f32 %v3304_v20, %v9827_v22 }
 0x2ae   :  { %v9898_v19 = vpop.f32.mrb[77].mxu0  ;;  %v6464_v25 = vmul.f32 0.33333334, %v6400_v13  ;;  %v2041_v32 = vmax.f32 %v1875_v14, 0.0  ;;  %v2039_v38 = vmax.f32 %v1867_v35, 0.0  ;;  %v3283_v39 = vadd.f32 %v3282_v27, %v3281_v7 }
 0x2af   :  { %14265 = vst [vmem:[#allocation8_spill] sm:$0xff] %v9896_v3  ;;  %v9901_v16 = vpop.f32.mrb[188].mxu1  ;;  %v3290_v44 = vadd.f32 %v3289_v29, %v3288_v8  ;;  %v3012_v43 = vcombine.high %v9896_v3, %v9896_v3  ;;  %v3347_v41 = vsel %vm3262_vm2, %v9896_v3, 0.0  ;;  %v9907_v54 = vpop.f32.mrb[78].mxu0  ;;  %v7462_v60 = vrot.slane %v6016_v21, 7 }
 0x2b0   :  { %v9909_v47 = vpop.f32.mrb[189].mxu1  ;;  %v2111_v63 = vpack.c.bf16 %v2041_v32, %v2040_v48  ;;  %v2110_v1 = vpack.c.bf16 %v2039_v38, %v2038_v42  ;;  %v3348_v24 = vrot.slane %v3347_v41, 4  ;;  %v9913_v20 = vpop.f32.mrb[79].mxu0  ;;  %v7742_v50 = vrot.slane %v6464_v25, 7 }
 0x2b1   :  { %v9915_v18 = vpop.f32.mrb[190].mxu1  ;;  %v5951_v12 = vsub.f32 %v3283_v39, %v5634_v55  ;;  %v6399_v56 = vsub.f32 %v3290_v44, %v6082_v6  ;;  %v3354_v7 = vsel %vm3262_vm2, %v3012_v43, 0.0  ;;  %v5503_v13 = vsub.f32 %v3276_v0, %v9838_v26 }
 0x2b2   :  { %v9918_v8 = vpop.f32.mrb[191].mxu1  ;;  %v3349_v14 = vadd.f32 %v3348_v24, %v3347_v41  ;;  %v3355_v21 = vrot.slane %v3354_v7, 4  ;;  %v9923_v46 = vadd.f32 %v9771_v52, %v9818_v61  ;;  %8735 = vmatprep.mubr.msk.bf16.mxu0 %vm1188_vm1, %v2110_v1  ;;  %v9926_v48 = vmul.f32 0.33333334, %v5504_v31 }
 0x2b3   :  { %v6015_v42 = vmul.f32 0.33333334, %v5951_v12  ;;  %v6463_v35 = vmul.f32 0.33333334, %v6399_v56  ;;  %v2395_v55 = vadd.f32 %v9824_v4, %v9771_v52  ;;  %8736 = vmatmul.mubr.msk.bf16.gmra.mrb[176].mxu0 %vm1188_vm1, %v2111_v63  ;;  %v9947_v39 = vmul.f32 0.33333334, %v5503_v13 }
 0x2b4   :  { %14266 = vst [vmem:[#allocation9_spill] sm:$0xff] %v9926_v48  ;;  %v3350_v6 = vrot.slane %v3349_v14, 2  ;;  %v3356_v27 = vadd.f32 %v3355_v21, %v3354_v7  ;;  %v3010_v0 = vcombine.high %v9923_v46, %v9923_v46  ;;  %v3319_v61 = vsel %vm3262_vm2, %v9923_v46, 0.0 }
 0x2b5   :  { %v9935_v29 = vpop.f32.mrb[80].mxu0  ;;  %v9938_v31 = vsel %vm6783_vm3, %v7462_v60, %v6015_v42  ;;  %v9941_v25 = vsel %vm6783_vm3, %v7742_v50, %v6463_v35  ;;  %v3320_v32 = vrot.slane %v3319_v61, 4  ;;  %v6538_v4 = vrot.slane %v9923_v46, %v9773_v28  ;;  %14268 = vst [vmem:[#allocation11_spill] sm:$0xff] %v9947_v39 }
 0x2b6   :  { %14267 = vst [vmem:[#allocation10_spill] sm:$0xff] %v9941_v25  ;;  %v9945_v38 = vpop.f32.mrb[81].mxu0  ;;  %v3351_v44 = vadd.f32 %v3350_v6, %v3349_v14  ;;  %v3357_v41 = vrot.slane %v3356_v27, 2  ;;  %v3326_v63 = vsel %vm3262_vm2, %v3010_v0, 0.0  ;;  %v3013_v13 = vcombine.high %v2395_v55, %v2395_v55 }
 0x2b7   :  { %v9950_v1 = vpop.f32.mrb[82].mxu0  ;;  %v3321_v24 = vadd.f32 %v3320_v32, %v3319_v61  ;;  %v3327_v12 = vrot.slane %v3326_v63, 4  ;;  %v9955_v50 = vsel %vm6785_vm4, %v6538_v4, %v9806_v40  ;;  %v3361_v14 = vsel %vm3262_vm2, %v2395_v55, 0.0 }
 0x2b8   :  { %14269 = vst [vmem:[#allocation12_spill] sm:$0xff] %v9955_v50  ;;  %v9957_v56 = vpop.f32.mrb[83].mxu0  ;;  %v3352_v7 = vrot.slane %v3351_v44, 1  ;;  %v3358_v21 = vadd.f32 %v3357_v41, %v3356_v27  ;;  %v9961_v42 = vrot.slane %v3012_v43, %v9797_v33  ;;  %v3362_v25 = vrot.slane %v3361_v14, 4 }
 0x2b9   :  { %14270 = vst [vmem:[#allocation13_spill] sm:$0xff] %v9957_v56  ;;  %v3322_v35 = vrot.slane %v3321_v24, 2  ;;  %v3328_v6 = vadd.f32 %v3327_v12, %v3326_v63  ;;  %v9965_v32 = vadd.f32 %v9847_v36, %v9822_v57  ;;  %v3368_v40 = vsel %vm3262_vm2, %v3013_v13, 0.0 }
 0x2ba   :  { %14271 = vst [vmem:[#allocation14_spill] sm:$0xff] %v9961_v42  ;;  %v3353_v60 = vadd.f32 %v3352_v7, %v3351_v44  ;;  %v3359_v61 = vrot.slane %v3358_v21, 1  ;;  %v3363_v27 = vadd.f32 %v3362_v25, %v3361_v14  ;;  %v3369_v41 = vrot.slane %v3368_v40, 4 }
 0x2bb   :  { %v3323_v4 = vadd.f32 %v3322_v35, %v3321_v24  ;;  %v3329_v50 = vrot.slane %v3328_v6, 2  ;;  %v2387_v44 = vadd.f32 %v9771_v52, %v9832_v53  ;;  %v9978_v25 = vrot.slane %v3010_v0, %v9797_v33 }
 0x2bc   :  { %v3360_v48 = vadd.f32 %v3359_v61, %v3358_v21  ;;  %v5058_v39 = vsub.f32 %v3353_v60, %v9896_v3  ;;  %v3364_v7 = vrot.slane %v3363_v27, 2  ;;  %v3370_v10 = vadd.f32 %v3369_v41, %v3368_v40 }
 0x2bd   :  { %v9973_v63 = vpop.f32.mrb[84].mxu0  ;;  %v3324_v12 = vrot.slane %v3323_v4, 1  ;;  %v3330_v57 = vadd.f32 %v3329_v50, %v3328_v6  ;;  %v2044_v24 = vmax.f32 %v9965_v32, 0.0  ;;  %v1880_v60 = vadd.f32 %v9847_v36, %v9830_v5 }
 0x2be   :  { %14272 = vst [vmem:[#allocation15_spill] sm:$0xff] %v9973_v63  ;;  %v9975_v56 = vpop.f32.mrb[85].mxu0  ;;  %v3011_v21 = vcombine.high %v2387_v44, %v2387_v44  ;;  %v5506_v53 = vsub.f32 %v3360_v48, %v9961_v42  ;;  %v3365_v61 = vadd.f32 %v3364_v7, %v3363_v27  ;;  %v3371_v50 = vrot.slane %v3370_v10, 2 }
 0x2bf   :  { %14273 = vst [vmem:[#allocation16_spill] sm:$0xff] %v9975_v56  ;;  %v9983_v14 = vpop.f32.mrb[86].mxu0  ;;  %v3331_v35 = vrot.slane %v3330_v57, 1  ;;  %v9988_v40 = vmul.f32 0.33333334, %v5058_v39  ;;  %v9991_v0 = vrot.slane %v2395_v55, %v9803_v34  ;;  %v3333_v32 = vsel %vm3262_vm2, %v2387_v44, 0.0 }
 0x2c0   :  { %14274 = vst [vmem:[#allocation17_spill] sm:$0xff] %v9983_v14  ;;  %v9986_v6 = vpop.f32.mrb[87].mxu0  ;;  %v3340_v41 = vsel %vm3262_vm2, %v3011_v21, 0.0  ;;  %v3325_v5 = vadd.f32 %v3324_v12, %v3323_v4  ;;  %v3366_v3 = vrot.slane %v3365_v61, 1  ;;  %v3372_v14 = vadd.f32 %v3371_v50, %v3370_v10 }
 0x2c1   :  { %14275 = vst [vmem:[#allocation18_spill] sm:$0xff] %v9986_v6  ;;  %v3332_v43 = vadd.f32 %v3331_v35, %v3330_v57  ;;  %v9996_v48 = vrot.slane %v3013_v13, %v9820_v2  ;;  %v3334_v27 = vrot.slane %v3333_v32, 4  ;;  %v3341_v7 = vrot.slane %v3340_v41, 4 }
 0x2c2   :  { %v5642_v6 = vrot.slane %v2387_v44, %v9803_v34  ;;  %v9999_v39 = vmul.f32 0.33333334, %v5506_v53  ;;  %v3367_v56 = vadd.f32 %v3366_v3, %v3365_v61  ;;  %v3373_v55 = vrot.slane %v3372_v14, 1 }
 0x2c3   :  { %v2042_v63 = vmax.f32 %v1880_v60, 0.0  ;;  %v3335_v42 = vadd.f32 %v3334_v27, %v3333_v32  ;;  %v3342_v22 = vadd.f32 %v3341_v7, %v3340_v41  ;;  %v10002_v26 = vrot.slane %v3011_v21, %v9820_v2 }
 0x2c4   :  { %14276 = vst [vmem:[#allocation19_spill] sm:$0xff] %v9999_v39  ;;  %v10006_v10 = vsel %vm6785_vm4, %v5642_v6, %v9883_v11  ;;  %v5057_v44 = vsub.f32 %v3325_v5, %v9923_v46  ;;  %v5505_v12 = vsub.f32 %v3332_v43, %v9978_v25  ;;  %v3374_v3 = vadd.f32 %v3373_v55, %v3372_v14 }
 0x2c5   :  { %v10008_v13 = vpop.f32.mrb[88].mxu0  ;;  %v3336_v60 = vrot.slane %v3335_v42, 2  ;;  %v3343_v53 = vrot.slane %v3342_v22, 2  ;;  %v10018_v21 = vsel %vm6785_vm4, %v10002_v26, %v9892_v30  ;;  %v1891_v11 = vadd.f32 %v9847_v36, %v9835_v17 }
 0x2c6   :  { %v10013_v57 = vpop.f32.mrb[89].mxu0  ;;  %v5954_v46 = vsub.f32 %v3367_v56, %v9991_v0  ;;  %v6402_v43 = vsub.f32 %v3374_v3, %v9996_v48  ;;  %v1883_v14 = vadd.f32 %v9847_v36, %v9842_v62  ;;  %v10031_v30 = vadd.f32 %v9857_v23, %v9771_v52 }
 0x2c7   :  { %v10022_v35 = vpop.f32.mrb[90].mxu0  ;;  %v3337_v50 = vadd.f32 %v3336_v60, %v3335_v42  ;;  %v3344_v32 = vadd.f32 %v3343_v53, %v3342_v22  ;;  %v2045_v41 = vmax.f32 %v1891_v11, 0.0  ;;  %v10033_v5 = vmul.f32 0.33333334, %v5057_v44 }
 0x2c8   :  { %14277 = vst [vmem:[#allocation20_spill] sm:$0xff] %v10031_v30  ;;  %v10035_v17 = vmul.f32 0.33333334, %v5505_v12  ;;  %v2043_v27 = vmax.f32 %v1883_v14, 0.0  ;;  %v10039_v56 = vadd.f32 %v9771_v52, %v9860_v9  ;;  %v10043_v22 = vcombine.high %v10031_v30, %v10031_v30  ;;  %v10051_v12 = vpop.f32.mrb[91].mxu0 }
 0x2c9   :  { %v3338_v7 = vrot.slane %v3337_v50, 1  ;;  %v3345_v55 = vrot.slane %v3344_v32, 1  ;;  %v2113_v3 = vpack.c.bf16 %v2045_v41, %v2044_v24  ;;  %v10045_v62 = vmul.f32 0.33333334, %v5954_v46 }
 0x2ca   :  { %14278 = vst [vmem:[#allocation21_spill] sm:$0xff] %v10035_v17  ;;  %14279 = vst [vmem:[#allocation22_spill] sm:$0xff] %v10039_v56  ;;  %v10047_v23 = vmul.f32 0.33333334, %v6402_v43  ;;  %v2112_v42 = vpack.c.bf16 %v2043_v27, %v2042_v63  ;;  %v3403_v44 = vsel %vm3262_vm2, %v10031_v30, 0.0  ;;  %v3410_v24 = vsel %vm3262_vm2, %v10043_v22, 0.0 }
 0x2cb   :  { %14280 = vst [vmem:[#allocation23_spill] sm:$0xff] %v10045_v62  ;;  %v3339_v60 = vadd.f32 %v3338_v7, %v3337_v50  ;;  %v3346_v9 = vadd.f32 %v3345_v55, %v3344_v32  ;;  %v3404_v53 = vrot.slane %v3403_v44, 4  ;;  %v3411_v14 = vrot.slane %v3410_v24, 4 }
 0x2cc   :  { %14281 = vst [vmem:[#allocation24_spill] sm:$0xff] %v10047_v23  ;;  %v3014_v46 = vcombine.high %v10039_v56, %v10039_v56  ;;  %v3375_v63 = vsel %vm3262_vm2, %v10039_v56, 0.0  ;;  %8739 = vmatprep.mubr.msk.bf16.mxu0 %vm1188_vm1, %v2112_v42 }
 0x2cd   :  { %v5953_v41 = vsub.f32 %v3339_v60, %v5642_v6  ;;  %v3405_v50 = vadd.f32 %v3404_v53, %v3403_v44  ;;  %v3376_v32 = vrot.slane %v3375_v63, 4  ;;  %8740 = vmatmul.mubr.msk.bf16.gmra.mrb[180].mxu0 %vm1188_vm1, %v2113_v3  ;;  %v6401_v55 = vsub.f32 %v3346_v9, %v10002_v26  ;;  %v10088_v23 = vpop.f32.mrb[92].mxu0 }
 0x2ce   :  { %v3382_v61 = vsel %vm3262_vm2, %v3014_v46, 0.0  ;;  %v3412_v6 = vadd.f32 %v3411_v14, %v3410_v24  ;;  %v2411_v3 = vadd.f32 %v9864_v37, %v9771_v52  ;;  %v10075_v26 = vadd.f32 %v9847_v36, %v9862_v45  ;;  %14284 = vst [vmem:[#allocation27_spill] sm:$0xff] %v10088_v23 }
 0x2cf   :  { %v6017_v4 = vmul.f32 0.33333334, %v5953_v41  ;;  %v3406_v11 = vrot.slane %v3405_v50, 2  ;;  %v3377_v43 = vadd.f32 %v3376_v32, %v3375_v63  ;;  %v3383_v44 = vrot.slane %v3382_v61, 4 }
 0x2d0   :  { %v10077_v9 = vmul.f32 0.33333334, %v6401_v55  ;;  %v3017_v42 = vcombine.high %v2411_v3, %v2411_v3  ;;  %v3417_v24 = vsel %vm3262_vm2, %v2411_v3, 0.0 }
 0x2d1   :  { %v7464_v53 = vrot.slane %v6017_v4, 6  ;;  %v3407_v7 = vadd.f32 %v3406_v11, %v3405_v50  ;;  %v3378_v27 = vrot.slane %v3377_v43, 2  ;;  %v3384_v41 = vadd.f32 %v3383_v44, %v3382_v61 }
 0x2d2   :  { %14282 = vst [vmem:[#allocation25_spill] sm:$0xff] %v10077_v9  ;;  %v3418_v37 = vrot.slane %v3417_v24, 4  ;;  %v3413_v4 = vrot.slane %v3412_v6, 2  ;;  %v10085_v50 = vrot.slane %v3014_v46, %v9797_v33  ;;  %v3424_v45 = vsel %vm3262_vm2, %v3017_v42, 0.0 }
 0x2d3   :  { %v10082_v14 = vsel %vm6785_vm4, %v7464_v53, %v9938_v31  ;;  %v3408_v63 = vrot.slane %v3407_v7, 1  ;;  %v3379_v32 = vadd.f32 %v3378_v27, %v3377_v43  ;;  %v3385_v11 = vrot.slane %v3384_v41, 2  ;;  %v10096_v27 = vpop.f32.mrb[93].mxu0 }
 0x2d4   :  { %14283 = vst [vmem:[#allocation26_spill] sm:$0xff] %v10082_v14  ;;  %v3419_v44 = vadd.f32 %v3418_v37, %v3417_v24  ;;  %v3425_v60 = vrot.slane %v3424_v45, 4  ;;  %v2048_v31 = vmax.f32 %v10075_v26, 0.0  ;;  %v2403_v43 = vadd.f32 %v9771_v52, %v9869_v49  ;;  %14285 = vst [vmem:[#allocation28_spill] sm:$0xff] %v10096_v27 }
 0x2d5   :  { %v3409_v55 = vadd.f32 %v3408_v63, %v3407_v7  ;;  %v3380_v61 = vrot.slane %v3379_v32, 1  ;;  %v3386_v39 = vadd.f32 %v3385_v11, %v3384_v41  ;;  %v7336_v46 = vsel %vm6787_vm5, %v9991_v0, %v10006_v10 }
 0x2d6   :  { %v3420_v24 = vrot.slane %v3419_v44, 2  ;;  %v3426_v63 = vadd.f32 %v3425_v60, %v3424_v45  ;;  %v1896_v41 = vadd.f32 %v9847_v36, %v9867_v59  ;;  %v3015_v26 = vcombine.high %v2403_v43, %v2403_v43 }
 0x2d7   :  { %v5060_v7 = vsub.f32 %v3409_v55, %v10031_v30  ;;  %v3381_v37 = vadd.f32 %v3380_v61, %v3379_v32  ;;  %v3389_v11 = vsel %vm3262_vm2, %v2403_v43, 0.0  ;;  %v10103_v49 = vadd.f32 %v3413_v4, %v3412_v6 }
 0x2d8   :  { %v3387_v23 = vrot.slane %v3386_v39, 1  ;;  %v3421_v17 = vadd.f32 %v3420_v24, %v3419_v44  ;;  %v3427_v0 = vrot.slane %v3426_v63, 2  ;;  %v3390_v27 = vrot.slane %v3389_v11, 4 }
 0x2d9   :  { %v10105_v10 = vmul.f32 0.33333334, %v5060_v7  ;;  %v3396_v53 = vsel %vm3262_vm2, %v3015_v26, 0.0  ;;  %v5650_v55 = vrot.slane %v2403_v43, %v9803_v34  ;;  %v10110_v45 = vrot.slane %v2411_v3, %v9803_v34 }
 0x2da   :  { %v3422_v60 = vrot.slane %v3421_v17, 1  ;;  %v3428_v32 = vadd.f32 %v3427_v0, %v3426_v63  ;;  %v10113_v59 = vrot.slane %v3017_v42, %v9820_v2  ;;  %v5059_v6 = vsub.f32 %v3381_v37, %v10039_v56  ;;  %v10122_v42 = vpop.f32.mrb[94].mxu0 }
 0x2db   :  { %14286 = vst [vmem:[#allocation29_spill] sm:$0xff] %v10110_v45  ;;  %v2046_v4 = vmax.f32 %v1896_v41, 0.0  ;;  %v3391_v61 = vadd.f32 %v3390_v27, %v3389_v11  ;;  %v3397_v44 = vrot.slane %v3396_v53, 4  ;;  %v3388_v7 = vadd.f32 %v3387_v23, %v3386_v39  ;;  %14288 = vst [vmem:[#allocation31_spill] sm:$0xff] %v10122_v42 }
 0x2dc   :  { %v3423_v24 = vadd.f32 %v3422_v60, %v3421_v17  ;;  %v3429_v30 = vrot.slane %v3428_v32, 1  ;;  %v10117_v9 = vsel %vm6789_vm6, %v5650_v55, %v7336_v46  ;;  %v1907_v3 = vadd.f32 %v9847_v36, %v9872_v51 }
 0x2dd   :  { %14287 = vst [vmem:[#allocation30_spill] sm:$0xff] %v10117_v9  ;;  %v3392_v63 = vrot.slane %v3391_v61, 2  ;;  %v3398_v0 = vadd.f32 %v3397_v44, %v3396_v53  ;;  %v1899_v39 = vadd.f32 %v9847_v36, %v9876_v58  ;;  %v10129_v17 = vadd.f32 %v9889_v15, %v9771_v52 }
 0x2de   :  { %v3430_v62 = vadd.f32 %v3429_v30, %v3428_v32  ;;  %v5956_v37 = vsub.f32 %v3423_v24, %v10110_v45  ;;  %v2049_v27 = vmax.f32 %v1907_v3, 0.0  ;;  %v10133_v53 = vadd.f32 %v9771_v52, %v9898_v19 }
 0x2df   :  { %14289 = vst [vmem:[#allocation32_spill] sm:$0xff] %v10129_v17  ;;  %v3393_v23 = vadd.f32 %v3392_v63, %v3391_v61  ;;  %v3399_v46 = vrot.slane %v3398_v0, 2  ;;  %v10135_v51 = vmul.f32 0.33333334, %v5059_v6  ;;  %v2047_v41 = vmax.f32 %v1899_v39, 0.0 }
 0x2e0   :  { %14290 = vst [vmem:[#allocation33_spill] sm:$0xff] %v10133_v53  ;;  %v6404_v30 = vsub.f32 %v3430_v62, %v10113_v59  ;;  %v3459_v11 = vsel %vm3262_vm2, %v10129_v17, 0.0  ;;  %v2115_v32 = vpack.c.bf16 %v2049_v27, %v2048_v31  ;;  %v5507_v61 = vsub.f32 %v3388_v7, %v10085_v50 }
 0x2e1   :  { %v3394_v58 = vrot.slane %v3393_v23, 1  ;;  %v3400_v60 = vadd.f32 %v3399_v46, %v3398_v0  ;;  %v3460_v15 = vrot.slane %v3459_v11, 4  ;;  %v10142_v44 = vrot.slane %v3015_v26, %v9820_v2 }
 0x2e2   :  { %v2114_v24 = vpack.c.bf16 %v2047_v41, %v2046_v4  ;;  %v10146_v19 = vcombine.high %v10133_v53, %v10133_v53  ;;  %v10148_v6 = vmul.f32 0.33333334, %v5956_v37  ;;  %v3431_v3 = vsel %vm3262_vm2, %v10133_v53, 0.0  ;;  %v10158_v4 = vpop.f32.mrb[95].mxu0 }
 0x2e3   :  { %v3395_v62 = vadd.f32 %v3394_v58, %v3393_v23  ;;  %v3401_v63 = vrot.slane %v3400_v60, 1  ;;  %v10153_v0 = vmul.f32 0.33333334, %v6404_v30  ;;  %v3432_v7 = vrot.slane %v3431_v3, 4  ;;  %14293 = vst [vmem:[#allocation36_spill] sm:$0xff] %v10158_v4 }
 0x2e4   :  { %14291 = vst [vmem:[#allocation34_spill] sm:$0xff] %v10148_v6  ;;  %v3438_v26 = vsel %vm3262_vm2, %v10146_v19, 0.0  ;;  %8743 = vmatprep.mubr.msk.bf16.mxu0 %vm1188_vm1, %v2114_v24  ;;  %v10160_v46 = vadd.f32 %v3460_v15, %v3459_v11  ;;  %v10163_v27 = vmul.f32 0.33333334, %v5507_v61  ;;  %v1920_v30 = vadd.f32 %v9847_v36, %v9901_v16 }
 0x2e5   :  { %14292 = vst [vmem:[#allocation35_spill] sm:$0xff] %v10153_v0  ;;  %v3402_v39 = vadd.f32 %v3401_v63, %v3400_v60  ;;  %v5955_v37 = vsub.f32 %v3395_v62, %v5650_v55  ;;  %v3439_v23 = vrot.slane %v3438_v26, 4  ;;  %8744 = vmatmul.mubr.msk.bf16.gmra.mrb[184].mxu0 %vm1188_vm1, %v2115_v32  ;;  %v3433_v41 = vadd.f32 %v3432_v7, %v3431_v3  ;;  %v10184_v3 = vpop.f32.mrb[96].mxu0 }
 0x2e6   :  { %14294 = vst [vmem:[#allocation37_spill] sm:$0xff] %v10163_v27  ;;  %v2427_v58 = vadd.f32 %v9907_v54, %v9771_v52  ;;  %v2419_v11 = vadd.f32 %v9771_v52, %v9913_v20  ;;  %14296 = vst [vmem:[#allocation39_spill] sm:$0xff] %v10184_v3  ;;  %v1915_v3 = vadd.f32 %v9847_v36, %v9918_v8  ;;  %v10204_v4 = vpop.f32.mrb[97].mxu0  ;;  %v3415_v14 = vrot.slane %v10103_v49, 1 }
 0x2e7   :  { %v10170_v43 = vmul.f32 0.33333334, %v5955_v37  ;;  %v6403_v55 = vsub.f32 %v3402_v39, %v10142_v44  ;;  %v3434_v60 = vrot.slane %v3433_v41, 2  ;;  %v10175_v32 = vadd.f32 %v3439_v23, %v3438_v26  ;;  %14299 = vst [vmem:[#allocation42_spill] sm:$0xff] %v10204_v4 }
 0x2e8   :  { %v10177_v15 = vcombine.high %v2427_v58, %v2427_v58  ;;  %v3473_v61 = vsel %vm3262_vm2, %v2427_v58, 0.0  ;;  %v2052_v39 = vmax.f32 %v1920_v30, 0.0  ;;  %v1912_v26 = vadd.f32 %v9847_v36, %v9909_v47 }
 0x2e9   :  { %14295 = vst [vmem:[#allocation38_spill] sm:$0xff] %v10170_v43  ;;  %v3474_v63 = vrot.slane %v3473_v61, 4  ;;  %v3435_v7 = vadd.f32 %v3434_v60, %v3433_v41  ;;  %v10190_v37 = vmul.f32 0.33333334, %v6403_v55  ;;  %v3019_v24 = vcombine.high %v2419_v11, %v2419_v11 }
 0x2ea   :  { %v3480_v20 = vsel %vm3262_vm2, %v10177_v15, 0.0  ;;  %v3445_v54 = vsel %vm3262_vm2, %v2419_v11, 0.0  ;;  %v1923_v41 = vadd.f32 %v9847_v36, %v9915_v18  ;;  %v10199_v47 = vrot.slane %v2427_v58, %v9803_v34 }
 0x2eb   :  { %14297 = vst [vmem:[#allocation40_spill] sm:$0xff] %v10190_v37  ;;  %v3475_v23 = vadd.f32 %v3474_v63, %v3473_v61  ;;  %v3481_v16 = vrot.slane %v3480_v20, 4  ;;  %v3436_v30 = vrot.slane %v3435_v7, 1  ;;  %v3446_v45 = vrot.slane %v3445_v54, 4 }
 0x2ec   :  { %v3452_v9 = vsel %vm3262_vm2, %v3019_v24, 0.0  ;;  %14298 = vst [vmem:[#allocation41_spill] sm:$0xff] %v10199_v47  ;;  %v2050_v55 = vmax.f32 %v1912_v26, 0.0  ;;  %v2053_v63 = vmax.f32 %v1923_v41, 0.0  ;;  %v10208_v27 = vadd.f32 %v9935_v29, %v9771_v52 }
 0x2ed   :  { %v3476_v60 = vrot.slane %v3475_v23, 2  ;;  %v3453_v61 = vrot.slane %v3452_v9, 4  ;;  %v3482_v56 = vadd.f32 %v3481_v16, %v3480_v20  ;;  %v3447_v62 = vadd.f32 %v3446_v45, %v3445_v54 }
 0x2ee   :  { %v2117_v0 = vpack.c.bf16 %v2053_v63, %v2052_v39  ;;  %v10210_v58 = vadd.f32 %v3436_v30, %v3435_v7  ;;  %v10213_v41 = vrot.slane %v2419_v11, %v9803_v34  ;;  %v2051_v16 = vmax.f32 %v1915_v3, 0.0 }
 0x2ef   :  { %v3477_v18 = vadd.f32 %v3476_v60, %v3475_v23  ;;  %v3454_v42 = vadd.f32 %v3453_v61, %v3452_v9  ;;  %v3448_v26 = vrot.slane %v3447_v62, 2  ;;  %v10216_v54 = vrot.slane %v3019_v24, %v9820_v2  ;;  %v10222_v9 = vpop.f32.mrb[98].mxu0 }
 0x2f0   :  { %14300 = vst [vmem:[#allocation43_spill] sm:$0xff] %v10213_v41  ;;  %v3024_v36 = vcombine.high %v10208_v27, %v10208_v27  ;;  %v3515_v8 = vsel %vm3262_vm2, %v10208_v27, 0.0  ;;  %14302 = vst [vmem:[#allocation45_spill] sm:$0xff] %v10222_v9  ;;  %v3483_v29 = vrot.slane %v3482_v56, 2  ;;  %v2116_v39 = vpack.c.bf16 %v2051_v16, %v2050_v55 }
 0x2f1   :  { %v3455_v45 = vrot.slane %v3454_v42, 2  ;;  %14301 = vst [vmem:[#allocation44_spill] sm:$0xff] %v10216_v54  ;;  %v3449_v7 = vadd.f32 %v3448_v26, %v3447_v62  ;;  %v3516_v20 = vrot.slane %v3515_v8, 4  ;;  %v3478_v23 = vrot.slane %v3477_v18, 1 }
 0x2f2   :  { %v3522_v11 = vsel %vm3262_vm2, %v3024_v36, 0.0  ;;  %v6566_v3 = vrot.slane %v10208_v27, %v9773_v28  ;;  %v10229_v24 = vadd.f32 %v9771_v52, %v9945_v38  ;;  %8747 = vmatprep.mubr.msk.bf16.mxu0 %vm1188_vm1, %v2116_v39  ;;  %v5222_v62 = vrot.slane %v3024_v36, %v9797_v33 }
 0x2f3   :  { %v3450_v30 = vrot.slane %v3449_v7, 1  ;;  %v3456_v60 = vadd.f32 %v3455_v45, %v3454_v42  ;;  %v3517_v61 = vadd.f32 %v3516_v20, %v3515_v8  ;;  %v3523_v63 = vrot.slane %v3522_v11, 4  ;;  %8748 = vmatmul.mubr.msk.bf16.gmra.mrb[188].mxu0 %vm1188_vm1, %v2117_v0 }
 0x2f4   :  { %v3022_v55 = vcombine.high %v10229_v24, %v10229_v24  ;;  %v3487_v26 = vsel %vm3262_vm2, %v10229_v24, 0.0  ;;  %v6562_v16 = vrot.slane %v10229_v24, %v9773_v28  ;;  %v10249_v9 = vadd.f32 %v3478_v23, %v3477_v18 }
 0x2f5   :  { %v3518_v42 = vrot.slane %v3517_v61, 2  ;;  %v3524_v45 = vadd.f32 %v3523_v63, %v3522_v11  ;;  %v3488_v8 = vrot.slane %v3487_v26, 4  ;;  %v3451_v39 = vadd.f32 %v3450_v30, %v3449_v7 }
 0x2f6   :  { %v3494_v36 = vsel %vm3262_vm2, %v3022_v55, 0.0  ;;  %v10244_v20 = vrot.slane %v3022_v55, %v9797_v33  ;;  %v10247_v31 = vsel %vm6783_vm3, %v6566_v3, %v6562_v16  ;;  %v3457_v6 = vrot.slane %v3456_v60, 1 }
 0x2f7   :  { %v3519_v4 = vadd.f32 %v3518_v42, %v3517_v61  ;;  %v3525_v37 = vrot.slane %v3524_v45, 2  ;;  %v3489_v0 = vadd.f32 %v3488_v8, %v3487_v26  ;;  %v3495_v43 = vrot.slane %v3494_v36, 4 }
 0x2f8   :  { %v10253_v11 = vsel %vm6783_vm3, %v5222_v62, %v10244_v20  ;;  %v2443_v7 = vadd.f32 %v9950_v1, %v9771_v52  ;;  %v10257_v30 = vadd.f32 %v3483_v29, %v3482_v56  ;;  %v5957_v18 = vsub.f32 %v3451_v39, %v10213_v41 }
 0x2f9   :  { %14303 = vst [vmem:[#allocation46_spill] sm:$0xff] %v10253_v11  ;;  %v3520_v63 = vrot.slane %v3519_v4, 1  ;;  %v3526_v55 = vadd.f32 %v3525_v37, %v3524_v45  ;;  %v3490_v3 = vrot.slane %v3489_v0, 2  ;;  %v3496_v23 = vadd.f32 %v3495_v43, %v3494_v36  ;;  %v10263_v11 = vpop.f32.mrb[99].mxu0 }
 0x2fa   :  { %v3025_v61 = vcombine.high %v2443_v7, %v2443_v7  ;;  %v3529_v26 = vsel %vm3262_vm2, %v2443_v7, 0.0  ;;  %14304 = vst [vmem:[#allocation47_spill] sm:$0xff] %v10263_v11  ;;  %v10265_v52 = vadd.f32 %v3457_v6, %v3456_v60  ;;  %v10269_v36 = vmul.f32 0.33333334, %v5957_v18 }
 0x2fb   :  { %v3521_v42 = vadd.f32 %v3520_v63, %v3519_v4  ;;  %v3527_v8 = vrot.slane %v3526_v55, 1  ;;  %v3491_v38 = vadd.f32 %v3490_v3, %v3489_v0  ;;  %v3497_v1 = vrot.slane %v3496_v23, 2 }
 0x2fc   :  { %14305 = vst [vmem:[#allocation48_spill] sm:$0xff] %v10265_v52  ;;  %v3530_v56 = vrot.slane %v3529_v26, 4  ;;  %v3536_v37 = vsel %vm3262_vm2, %v3025_v61, 0.0  ;;  %v3020_v4 = vcombine.high %v10129_v17, %v10129_v17 }
 0x2fd   :  { %v3528_v29 = vadd.f32 %v3527_v8, %v3526_v55  ;;  %v5064_v43 = vsub.f32 %v3521_v42, %v10208_v27  ;;  %v3492_v45 = vrot.slane %v3491_v38, 1  ;;  %v3537_v39 = vrot.slane %v3536_v37, 4 }
 0x2fe   :  { %v3498_v41 = vadd.f32 %v3497_v1, %v3496_v23  ;;  %v3531_v16 = vadd.f32 %v3530_v56, %v3529_v26  ;;  %v14306_v27 = vrot.slane %v10175_v32, 2 }
 0x2ff   :  { %v5128_v0 = vmul.f32 0.33333334, %v5064_v43  ;;  %v5512_v63 = vsub.f32 %v3528_v29, %v5222_v62  ;;  %v3493_v6 = vadd.f32 %v3492_v45, %v3491_v38  ;;  %v3538_v60 = vadd.f32 %v3537_v39, %v3536_v37  ;;  %v14322_v45 = vld [vmem:[#allocation16_spill] sm:$0xff] }
 0x300   :  { %v3499_v3 = vrot.slane %v3498_v41, 1  ;;  %v3532_v11 = vrot.slane %v3531_v16, 2  ;;  %v3442_v55 = vadd.f32 %v14306_v27, %v10175_v32  ;;  %v3466_v62 = vsel %vm3262_vm2, %v3020_v4, 0.0  ;;  %v10283_v32 = vpop.f32.mrb[100].mxu0 }
 0x301   :  { %v10277_v42 = vmul.f32 0.33333334, %v5512_v63  ;;  %v6932_v18 = vrot.slane %v5128_v0, 7  ;;  %v5063_v23 = vsub.f32 %v3493_v6, %v10229_v24  ;;  %v3539_v26 = vrot.slane %v3538_v60, 2  ;;  %14308 = vst [vmem:[#allocation50_spill] sm:$0xff] %v10283_v32 }
 0x302   :  { %v3500_v8 = vadd.f32 %v3499_v3, %v3498_v41  ;;  %v3533_v1 = vadd.f32 %v3532_v11, %v3531_v16  ;;  %v3443_v56 = vrot.slane %v3442_v55, 1  ;;  %v3467_v43 = vrot.slane %v3466_v62, 4 }
 0x303   :  { %14307 = vst [vmem:[#allocation49_spill] sm:$0xff] %v10277_v42  ;;  %v5127_v37 = vmul.f32 0.33333334, %v5063_v23  ;;  %v3540_v29 = vadd.f32 %v3539_v26, %v3538_v60  ;;  %v5670_v41 = vrot.slane %v2443_v7, %v9803_v34  ;;  %v6118_v0 = vrot.slane %v3025_v61, %v9820_v2  ;;  %v14311_v26 = vld [vmem:[#allocation5_spill] sm:$0xff] }
 0x304   :  { %v5511_v24 = vsub.f32 %v3500_v8, %v10244_v20  ;;  %v3534_v39 = vrot.slane %v3533_v1, 1  ;;  %v3468_v63 = vadd.f32 %v3467_v43, %v3466_v62  ;;  %v10294_v3 = vadd.f32 %v3415_v14, %v10103_v49  ;;  %v10316_v49 = vld [vmem:[%s14105_s6] ss:$0 sm:$0xff] }
 0x305   :  { %v10289_v11 = vsel %vm6783_vm3, %v6932_v18, %v5127_v37  ;;  %v3541_v16 = vrot.slane %v3540_v29, 1  ;;  %v10296_v27 = vadd.f32 %v3443_v56, %v3442_v55  ;;  %v10300_v7 = vrot.slane %v10043_v22, %v9797_v33  ;;  %v14310_v18 = vld [vmem:[#allocation6_spill] sm:$0xff]  ;;  %v14313_v22 = vld [vmem:[#allocation13_spill] sm:$0xff] }
 0x306   :  { %14309 = vst [vmem:[#allocation51_spill] sm:$0xff] %v10289_v11  ;;  %v3535_v60 = vadd.f32 %v3534_v39, %v3533_v1  ;;  %v3469_v23 = vrot.slane %v3468_v63, 2  ;;  %v7054_v8 = vsel %vm6783_vm3, %v14311_v26, %v14310_v18  ;;  %v10305_v61 = vmul.f32 0.33333334, %v5511_v24 }
 0x307   :  { %v3542_v20 = vadd.f32 %v3541_v16, %v3540_v29  ;;  %v10309_v1 = vrot.slane %v10146_v19, %v9797_v33  ;;  %v7055_v14 = vsel %vm6785_vm4, %v9978_v25, %v7054_v8  ;;  %v2435_v55 = vadd.f32 %v10316_v49, %v14313_v22  ;;  %v14314_v29 = vld [vmem:[#allocation14_spill] sm:$0xff] }
 0x308   :  { %14312 = vst [vmem:[#allocation6_spill] sm:$0xff] %v10305_v61  ;;  %v3470_v62 = vadd.f32 %v3469_v23, %v3468_v63  ;;  %v10321_v37 = vrot.slane %v3020_v4, %v9797_v33  ;;  %v7056_v19 = vsel %vm6787_vm5, %v14314_v29, %v7055_v14  ;;  %v5960_v43 = vsub.f32 %v3535_v60, %v5670_v41  ;;  %v10334_v23 = vpop.f32.mrb[101].mxu0 }
 0x309   :  { %v6408_v56 = vsub.f32 %v3542_v20, %v6118_v0  ;;  %v7057_v25 = vsel %vm6789_vm6, %v10085_v50, %v7056_v19  ;;  %v3023_v24 = vcombine.high %v2435_v55, %v2435_v55  ;;  %v3501_v39 = vsel %vm3262_vm2, %v2435_v55, 0.0  ;;  %14315 = vst [vmem:[#allocation5_spill] sm:$0xff] %v10334_v23  ;;  %v10340_v8 = vpop.f32.mrb[102].mxu0 }
 0x30a   :  { %v7058_v4 = vsel %vm6791_vm7, %v10300_v7, %v7057_v25  ;;  %v3502_v63 = vrot.slane %v3501_v39, 4  ;;  %v3471_v18 = vrot.slane %v3470_v62, 1  ;;  %v5666_v26 = vrot.slane %v2435_v55, %v9803_v34  ;;  %14316 = vst [vmem:[#allocation13_spill] sm:$0xff] %v10340_v8  ;;  %v10349_v25 = vpop.f32.mrb[103].mxu0 }
 0x30b   :  { %v7059_v60 = vsel %vm6793_vm8, %v10309_v1, %v7058_v4  ;;  %v3508_v50 = vsel %vm3262_vm2, %v3023_v24, 0.0  ;;  %v3485_v29 = vrot.slane %v10257_v30, 1  ;;  %v10347_v19 = vrot.slane %v10177_v15, %v9820_v2  ;;  %14317 = vst [vmem:[#allocation14_spill] sm:$0xff] %v10349_v25 }
 0x30c   :  { %v7060_v14 = vsel %vm6795_vm9, %v10321_v37, %v7059_v60  ;;  %v3503_v22 = vadd.f32 %v3502_v63, %v3501_v39  ;;  %v6024_v6 = vmul.f32 0.33333334, %v5960_v43  ;;  %v3509_v4 = vrot.slane %v3508_v50, 4  ;;  %v14318_v63 = vld [vmem:[#allocation15_spill] sm:$0xff] }
 0x30d   :  { %7110 = vrot.lane.b32.xlu0 %v7060_v14, %s8795_s24  ;;  %v6114_v55 = vrot.slane %v3023_v24, %v9820_v2  ;;  %v10354_v38 = vsel %vm6783_vm3, %v5670_v41, %v5666_v26  ;;  %v10356_v60 = vmul.f32 0.33333334, %v6408_v56  ;;  %v7600_v15 = vsel %vm6787_vm5, %v9996_v48, %v10018_v21 }
 0x30e   :  { %v3504_v39 = vrot.slane %v3503_v22, 2  ;;  %v10363_v20 = vadd.f32 %v10316_v49, %v14318_v63  ;;  %v10365_v43 = vadd.f32 %v3471_v18, %v3470_v62  ;;  %v3510_v14 = vadd.f32 %v3509_v4, %v3508_v50  ;;  %v10380_v50 = vpop.f32.mrb[104].mxu0 }
 0x30f   :  { %v10368_v16 = vsel %vm6783_vm3, %v6118_v0, %v6114_v55  ;;  %v7601_v41 = vsel %vm6789_vm6, %v10142_v44, %v7600_v15  ;;  %v7476_v63 = vrot.slane %v6024_v6, 7  ;;  %14320 = vst [vmem:[#allocation52_spill] sm:$0xff] %v10380_v50  ;;  %v7756_v44 = vrot.slane %v10356_v60, 7 }
 0x310   :  { %14319 = vst [vmem:[#allocation15_spill] sm:$0xff] %v10363_v20  ;;  %v3505_v56 = vadd.f32 %v3504_v39, %v3503_v22  ;;  %v7602_v24 = vsel %vm6791_vm7, %v10113_v59, %v7601_v41  ;;  %v3028_v48 = vcombine.high %v10363_v20, %v10363_v20  ;;  %v3571_v21 = vsel %vm3262_vm2, %v10363_v20, 0.0  ;;  %v10386_v39 = vpop.f32.mrb[105].mxu0 }
 0x311   :  { %v3511_v62 = vrot.slane %v3510_v14, 2  ;;  %v7603_v18 = vsel %vm6793_vm8, %v10216_v54, %v7602_v24  ;;  %v3572_v0 = vrot.slane %v3571_v21, 4  ;;  %14321 = vst [vmem:[#allocation53_spill] sm:$0xff] %v10386_v39  ;;  %v10391_v24 = vadd.f32 %v10316_v49, %v14322_v45 }
 0x312   :  { %v3506_v22 = vrot.slane %v3505_v56, 1  ;;  %v7604_v59 = vsel %vm6795_vm9, %v10347_v19, %v7603_v18  ;;  %v3578_v4 = vsel %vm3262_vm2, %v3028_v48, 0.0  ;;  %v10396_v61 = vadd.f32 %v3485_v29, %v10257_v30  ;;  %v14323_v18 = vld [vmem:[#allocation17_spill] sm:$0xff] }
 0x313   :  { %v3512_v15 = vadd.f32 %v3511_v62, %v3510_v14  ;;  %7654 = vrot.lane.b32.xlu1 %v7604_v59, %s8795_s24  ;;  %v3573_v6 = vadd.f32 %v3572_v0, %v3571_v21  ;;  %v3579_v41 = vrot.slane %v3578_v4, 4  ;;  %v2459_v11 = vadd.f32 %v10316_v49, %v14323_v18 }
 0x314   :  { %v3507_v42 = vadd.f32 %v3506_v22, %v3505_v56  ;;  %v3026_v21 = vcombine.high %v10391_v24, %v10391_v24  ;;  %v3543_v45 = vsel %vm3262_vm2, %v10391_v24, 0.0  ;;  %v6570_v59 = vrot.slane %v10391_v24, %v9773_v28 }
 0x315   :  { %v3513_v39 = vrot.slane %v3512_v15, 1  ;;  %v3574_v14 = vrot.slane %v3573_v6, 2  ;;  %v3580_v62 = vadd.f32 %v3579_v41, %v3578_v4  ;;  %v3029_v56 = vcombine.high %v2459_v11, %v2459_v11  ;;  %v14325_v41 = vld [vmem:[#allocation18_spill] sm:$0xff] }
 0x316   :  { %v5959_v0 = vsub.f32 %v3507_v42, %v5666_v26  ;;  %v3544_v60 = vrot.slane %v3543_v45, 4  ;;  %v3550_v18 = vsel %vm3262_vm2, %v3026_v21, 0.0  ;;  %v10409_v4 = vsel %vm6785_vm4, %v6570_v59, %v10247_v31 }
 0x317   :  { %v3514_v22 = vadd.f32 %v3513_v39, %v3512_v15  ;;  %v3575_v30 = vadd.f32 %v3574_v14, %v3573_v6  ;;  %v3581_v29 = vrot.slane %v3580_v62, 2  ;;  %14324 = vst [vmem:[#allocation16_spill] sm:$0xff] %v10409_v4  ;;  %v2451_v42 = vadd.f32 %v10316_v49, %v14325_v41 }
 0x318   :  { %v6023_v50 = vmul.f32 0.33333334, %v5959_v0  ;;  %v3545_v23 = vadd.f32 %v3544_v60, %v3543_v45  ;;  %v3551_v39 = vrot.slane %v3550_v18, 4  ;;  %v3585_v15 = vsel %vm3262_vm2, %v2459_v11, 0.0 }
 0x319   :  { %v6407_v26 = vsub.f32 %v3514_v22, %v6114_v55  ;;  %v3576_v25 = vrot.slane %v3575_v30, 1  ;;  %v3582_v8 = vadd.f32 %v3581_v29, %v3580_v62  ;;  %v3592_v6 = vsel %vm3262_vm2, %v3029_v56, 0.0 }
 0x31a   :  { %v10414_v32 = vsel %vm6783_vm3, %v7476_v63, %v6023_v50  ;;  %v3546_v31 = vrot.slane %v3545_v23, 2  ;;  %v10419_v59 = vrot.slane %v3028_v48, %v9797_v33  ;;  %v3552_v41 = vadd.f32 %v3551_v39, %v3550_v18 }
 0x31b   :  { %v6471_v14 = vmul.f32 0.33333334, %v6407_v26  ;;  %v3577_v0 = vadd.f32 %v3576_v25, %v3575_v30  ;;  %v3583_v54 = vrot.slane %v3582_v8, 1  ;;  %v3586_v55 = vrot.slane %v3585_v15, 4 }
 0x31c   :  { %v3593_v22 = vrot.slane %v3592_v6, 4  ;;  %v3547_v50 = vadd.f32 %v3546_v31, %v3545_v23  ;;  %v10426_v62 = vadd.f32 %v10316_v49, %v10008_v13  ;;  %v3553_v45 = vrot.slane %v3552_v41, 2 }
 0x31d   :  { %v10422_v60 = vsel %vm6783_vm3, %v7756_v44, %v6471_v14  ;;  %v3584_v63 = vadd.f32 %v3583_v54, %v3582_v8  ;;  %v10429_v25 = vrot.slane %v3026_v21, %v9797_v33  ;;  %v3587_v30 = vadd.f32 %v3586_v55, %v3585_v15 }
 0x31e   :  { %14326 = vst [vmem:[#allocation17_spill] sm:$0xff] %v10422_v60  ;;  %14327 = vst [vmem:[#allocation18_spill] sm:$0xff] %v10426_v62  ;;  %v3594_v29 = vadd.f32 %v3593_v22, %v3592_v6  ;;  %v5066_v48 = vsub.f32 %v3577_v0, %v10363_v20  ;;  %v3548_v18 = vrot.slane %v3547_v50, 1  ;;  %v10433_v26 = vrot.slane %v2459_v11, %v9803_v34 }
 0x31f   :  { %v3027_v44 = vcombine.high %v2451_v42, %v2451_v42  ;;  %v3554_v39 = vadd.f32 %v3553_v45, %v3552_v41  ;;  %v3588_v54 = vrot.slane %v3587_v30, 2  ;;  %v3557_v8 = vsel %vm3262_vm2, %v2451_v42, 0.0 }
 0x320   :  { %v3595_v23 = vrot.slane %v3594_v29, 2  ;;  %v5514_v13 = vsub.f32 %v3584_v63, %v10419_v59  ;;  %v3549_v14 = vadd.f32 %v3548_v18, %v3547_v50  ;;  %v10438_v21 = vrot.slane %v3029_v56, %v9820_v2 }
 0x321   :  { %v3558_v15 = vrot.slane %v3557_v8, 4  ;;  %v3555_v6 = vrot.slane %v3554_v39, 1  ;;  %v3589_v31 = vadd.f32 %v3588_v54, %v3587_v30  ;;  %v3564_v55 = vsel %vm3262_vm2, %v3027_v44, 0.0 }
 0x322   :  { %v3596_v0 = vadd.f32 %v3595_v23, %v3594_v29  ;;  %v10441_v11 = vmul.f32 0.33333334, %v5066_v48  ;;  %v5065_v41 = vsub.f32 %v3549_v14, %v10391_v24  ;;  %v3565_v45 = vrot.slane %v3564_v55, 4  ;;  %v10454_v23 = vpop.f32.mrb[106].mxu0 }
 0x323   :  { %v3559_v22 = vadd.f32 %v3558_v15, %v3557_v8  ;;  %v3556_v4 = vadd.f32 %v3555_v6, %v3554_v39  ;;  %v3590_v60 = vrot.slane %v3589_v31, 1  ;;  %v5674_v63 = vrot.slane %v2451_v42, %v9803_v34 }
 0x324   :  { %v3597_v52 = vrot.slane %v3596_v0, 1  ;;  %v10445_v50 = vmul.f32 0.33333334, %v5514_v13  ;;  %v3566_v18 = vadd.f32 %v3565_v45, %v3564_v55  ;;  %v6122_v30 = vrot.slane %v3027_v44, %v9820_v2  ;;  %v14332_v44 = vld [vmem:[#allocation7_spill] sm:$0xff] }
 0x325   :  { %v3560_v56 = vrot.slane %v3559_v22, 2  ;;  %v10448_v29 = vmul.f32 0.33333334, %v5065_v41  ;;  %v3591_v54 = vadd.f32 %v3590_v60, %v3589_v31  ;;  %v10452_v24 = vsel %vm6785_vm4, %v5674_v63, %v10354_v38 }
 0x326   :  { %v3598_v48 = vadd.f32 %v3597_v52, %v3596_v0  ;;  %v5513_v39 = vsub.f32 %v3556_v4, %v10429_v25  ;;  %v3567_v42 = vrot.slane %v3566_v18, 2  ;;  %v10459_v13 = vsel %vm6785_vm4, %v6122_v30, %v10368_v16 }
 0x327   :  { %v3561_v8 = vadd.f32 %v3560_v56, %v3559_v22  ;;  %v5962_v60 = vsub.f32 %v3591_v54, %v10433_v26  ;;  %v3032_v38 = vcombine.high %v10426_v62, %v10426_v62  ;;  %v3627_v6 = vsel %vm3262_vm2, %v10426_v62, 0.0 }
 0x328   :  { %v6410_v14 = vsub.f32 %v3598_v48, %v10438_v21  ;;  %v3568_v15 = vadd.f32 %v3567_v42, %v3566_v18  ;;  %v3628_v55 = vrot.slane %v3627_v6, 4  ;;  %v10474_v41 = vmul.f32 0.33333334, %v5513_v39 }
 0x329   :  { %v3562_v4 = vrot.slane %v3561_v8, 1  ;;  %v3634_v56 = vsel %vm3262_vm2, %v3032_v38, 0.0  ;;  %v10477_v54 = vmul.f32 0.33333334, %v5962_v60  ;;  %v10485_v0 = vadd.f32 %v10316_v49, %v10013_v57 }
 0x32a   :  { %v3569_v45 = vrot.slane %v3568_v15, 1  ;;  %v3629_v48 = vadd.f32 %v3628_v55, %v3627_v6  ;;  %v3635_v18 = vrot.slane %v3634_v56, 4  ;;  %v10481_v52 = vmul.f32 0.33333334, %v6410_v14 }
 0x32b   :  { %v3563_v22 = vadd.f32 %v3562_v4, %v3561_v8  ;;  %14328 = vst [vmem:[#allocation54_spill] sm:$0xff] %v10477_v54  ;;  %14330 = vst [vmem:[#allocation56_spill] sm:$0xff] %v10485_v0  ;;  %v14331_v4 = vrot.slane %v10160_v46, 2  ;;  %v14333_v6 = vrot.slane %v10033_v5, 6  ;;  %v3599_v57 = vsel %vm3262_vm2, %v10485_v0, 0.0 }
 0x32c   :  { %14329 = vst [vmem:[#allocation55_spill] sm:$0xff] %v10481_v52  ;;  %v3570_v16 = vadd.f32 %v3569_v45, %v3568_v15  ;;  %v3630_v39 = vrot.slane %v3629_v48, 2  ;;  %v3636_v8 = vadd.f32 %v3635_v18, %v3634_v56  ;;  %v10498_v15 = vpop.f32.mrb[107].mxu0  ;;  %v3600_v56 = vrot.slane %v3599_v57, 4 }
 0x32d   :  { %v5961_v31 = vsub.f32 %v3563_v22, %v5674_v63  ;;  %v3463_v60 = vadd.f32 %v14331_v4, %v10160_v46  ;;  %v6921_v55 = vsel %vm6785_vm4, %v14333_v6, %v14332_v44  ;;  %v3030_v63 = vcombine.high %v10485_v0, %v10485_v0 }
 0x32e   :  { %v6409_v14 = vsub.f32 %v3570_v16, %v6122_v30  ;;  %v3631_v45 = vadd.f32 %v3630_v39, %v3629_v48  ;;  %v10502_v46 = vrot.slane %v3032_v38, %v9797_v33  ;;  %v14334_v16 = vsub.f32 %v10210_v58, %v10133_v53 }
 0x32f   :  { %v6025_v42 = vmul.f32 0.33333334, %v5961_v31  ;;  %v3606_v30 = vsel %vm3262_vm2, %v3030_v63, 0.0  ;;  %v3637_v4 = vrot.slane %v3636_v8, 2  ;;  %v3601_v6 = vadd.f32 %v3600_v56, %v3599_v57 }
 0x330   :  { %v5125_v31 = vmul.f32 0.33333334, %v14334_v16  ;;  %v3632_v18 = vrot.slane %v3631_v45, 1  ;;  %v3607_v20 = vrot.slane %v3606_v30, 4  ;;  %v3464_v48 = vrot.slane %v3463_v60, 1 }
 0x331   :  { %v7478_v44 = vrot.slane %v6025_v42, 6  ;;  %v14336_v39 = vrot.slane %v9988_v40, 5  ;;  %v10517_v5 = vmul.f32 0.33333334, %v6409_v14  ;;  %v3602_v58 = vrot.slane %v3601_v6, 2 }
 0x332   :  { %v3633_v54 = vadd.f32 %v3632_v18, %v3631_v45  ;;  %v3608_v16 = vadd.f32 %v3607_v20, %v3606_v30  ;;  %v3465_v53 = vadd.f32 %v3464_v48, %v3463_v60  ;;  %v14338_v57 = vrot.slane %v10135_v51, 4 }
 0x333   :  { %v10512_v38 = vsel %vm6785_vm4, %v7478_v44, %v10414_v32  ;;  %v6923_v42 = vsel %vm6787_vm5, %v14336_v39, %v6921_v55  ;;  %14337 = vst [vmem:[#allocation57_spill] sm:$0xff] %v10517_v5  ;;  %v6928_v22 = vrot.slane %v5125_v31, 2  ;;  %v2475_v32 = vadd.f32 %v10316_v49, %v10022_v35 }
 0x334   :  { %14335 = vst [vmem:[#allocation7_spill] sm:$0xff] %v10512_v38  ;;  %v6925_v56 = vsel %vm6789_vm6, %v14338_v57, %v6923_v42  ;;  %v10524_v44 = vadd.f32 %v3637_v4, %v3636_v8  ;;  %v3603_v52 = vadd.f32 %v3602_v58, %v3601_v6  ;;  %v3609_v40 = vrot.slane %v3608_v16, 2 }
 0x335   :  { %v14339_v55 = vrot.slane %v10105_v10, 3  ;;  %v5062_v45 = vsub.f32 %v3465_v53, %v10129_v17  ;;  %v3033_v60 = vcombine.high %v2475_v32, %v2475_v32  ;;  %v3641_v51 = vsel %vm3262_vm2, %v2475_v32, 0.0  ;;  %v14395_v17 = vld [vmem:[#allocation42_spill] sm:$0xff] }
 0x336   :  { %v5068_v30 = vsub.f32 %v3633_v54, %v10426_v62  ;;  %v3604_v31 = vrot.slane %v3603_v52, 1  ;;  %v3610_v18 = vadd.f32 %v3609_v40, %v3608_v16  ;;  %v3642_v35 = vrot.slane %v3641_v51, 4 }
 0x337   :  { %v6927_v14 = vsel %vm6791_vm7, %v14339_v55, %v6925_v56  ;;  %v10534_v8 = vrot.slane %v3030_v63, %v9797_v33  ;;  %v5126_v4 = vmul.f32 0.33333334, %v5062_v45  ;;  %v3648_v6 = vsel %vm3262_vm2, %v3033_v60, 0.0 }
 0x338   :  { %v6929_v20 = vsel %vm6793_vm8, %v6928_v22, %v6927_v14  ;;  %v3605_v48 = vadd.f32 %v3604_v31, %v3603_v52  ;;  %v3643_v39 = vadd.f32 %v3642_v35, %v3641_v51  ;;  %v3649_v54 = vrot.slane %v3648_v6, 4 }
 0x339   :  { %v6930_v42 = vrot.slane %v5126_v4, 1  ;;  %v2467_v58 = vadd.f32 %v10316_v49, %v10051_v12  ;;  %v7343_v63 = vsel %vm6787_vm5, %v10433_v26, %v10452_v24  ;;  %v10546_v16 = vmul.f32 0.33333334, %v5068_v30  ;;  %v14350_v4 = vld [vmem:[#allocation34_spill] sm:$0xff] }
 0x33a   :  { %v3611_v57 = vrot.slane %v3610_v18, 1  ;;  %v3644_v56 = vrot.slane %v3643_v39, 2  ;;  %v10549_v40 = vrot.slane %v2475_v32, %v9803_v34  ;;  %v3650_v52 = vadd.f32 %v3649_v54, %v3648_v6 }
 0x33b   :  { %v6931_v55 = vsel %vm6795_vm9, %v6930_v42, %v6929_v20  ;;  %v3031_v14 = vcombine.high %v2467_v58, %v2467_v58  ;;  %v3613_v45 = vsel %vm3262_vm2, %v2467_v58, 0.0  ;;  %v5067_v51 = vsub.f32 %v3605_v48, %v10485_v0 }
 0x33c   :  { %14340 = vst [vmem:[#allocation58_spill] sm:$0xff] %v10549_v40  ;;  %7030 = vrot.lane.b32.xlu0 %v6931_v55, %s8796_s25  ;;  %v3645_v12 = vadd.f32 %v3644_v56, %v3643_v39  ;;  %v10556_v26 = vrot.slane %v3033_v60, %v9820_v2  ;;  %v3614_v24 = vrot.slane %v3613_v45, 4  ;;  %v3651_v30 = vrot.slane %v3650_v52, 2  ;;  %v10566_v39 = vpop.f32.mrb[108].mxu0  ;;  %v14344_v55 = vld [vmem:[#allocation26_spill] sm:$0xff] }
 0x33d   :  { %v3620_v32 = vsel %vm3262_vm2, %v3031_v14, 0.0  ;;  %v10560_v31 = vrot.slane %v2467_v58, %v9803_v34  ;;  %v14341_v20 = vsub.f32 %v10249_v9, %v10199_v47  ;;  %v3612_v6 = vadd.f32 %v3611_v57, %v3610_v18  ;;  %14342 = vst [vmem:[#allocation59_spill] sm:$0xff] %v10566_v39  ;;  %v14345_v58 = vld [vmem:[#allocation23_spill] sm:$0xff]  ;;  %v10576_v9 = vpop.f32.mrb[109].mxu0 }
 0x33e   :  { %v3646_v48 = vrot.slane %v3645_v12, 1  ;;  %v3615_v42 = vadd.f32 %v3614_v24, %v3613_v45  ;;  %v3652_v60 = vadd.f32 %v3651_v30, %v3650_v52  ;;  %v3621_v54 = vrot.slane %v3620_v32, 4  ;;  %14347 = vst [vmem:[#allocation26_spill] sm:$0xff] %v10576_v9  ;;  %v14348_v45 = vld [vmem:[#allocation38_spill] sm:$0xff] }
 0x33f   :  { %v6022_v35 = vmul.f32 0.33333334, %v14341_v20  ;;  %v10570_v56 = vsel %vm6789_vm6, %v10560_v31, %v7343_v63  ;;  %v14346_v10 = vrot.slane %v14345_v58, 5  ;;  %v10578_v20 = vmul.f32 0.33333334, %v5067_v51 }
 0x340   :  { %14343 = vst [vmem:[#allocation60_spill] sm:$0xff] %v10570_v56  ;;  %v3647_v18 = vadd.f32 %v3646_v48, %v3645_v12  ;;  %v3616_v57 = vrot.slane %v3615_v42, 2  ;;  %v14349_v24 = vrot.slane %v14348_v45, 4  ;;  %v3653_v30 = vrot.slane %v3652_v60, 1 }
 0x341   :  { %v7467_v53 = vsel %vm6787_vm5, %v14346_v10, %v14344_v55  ;;  %v3622_v22 = vadd.f32 %v3621_v54, %v3620_v32  ;;  %v14351_v63 = vrot.slane %v14350_v4, 3  ;;  %v7474_v62 = vrot.slane %v6022_v35, 1 }
 0x342   :  { %v7469_v52 = vsel %vm6789_vm6, %v14349_v24, %v7467_v53  ;;  %v3617_v58 = vadd.f32 %v3616_v57, %v3615_v42  ;;  %v14352_v10 = vrot.slane %v10269_v36, 2  ;;  %v14353_v51 = vsub.f32 %v10294_v3, %v10300_v7  ;;  %v14357_v3 = vld [vmem:[#allocation9_spill] sm:$0xff] }
 0x343   :  { %v7471_v56 = vsel %vm6791_vm7, %v14351_v63, %v7469_v52  ;;  %v14354_v48 = vsub.f32 %v10296_v27, %v10309_v1  ;;  %v3654_v45 = vadd.f32 %v3653_v30, %v3652_v60  ;;  %v5964_v32 = vsub.f32 %v3647_v18, %v10549_v40  ;;  %v14359_v27 = vld [vmem:[#allocation37_spill] sm:$0xff]  ;;  %v10611_v63 = vpop.f32.mrb[110].mxu0 }
 0x344   :  { %v7473_v55 = vsel %vm6793_vm8, %v14352_v10, %v7471_v56  ;;  %v5572_v12 = vmul.f32 0.33333334, %v14353_v51  ;;  %v3623_v4 = vrot.slane %v3622_v22, 2  ;;  %v3618_v35 = vrot.slane %v3617_v58, 1  ;;  %v14356_v56 = vld [vmem:[#allocation11_spill] sm:$0xff]  ;;  %14362 = vst [vmem:[#allocation23_spill] sm:$0xff] %v10611_v63 }
 0x345   :  { %v5573_v53 = vmul.f32 0.33333334, %v14354_v48  ;;  %v7475_v54 = vsel %vm6795_vm9, %v7474_v62, %v7473_v55  ;;  %v14355_v36 = vsub.f32 %v10365_v43, %v10321_v37  ;;  %v14358_v7 = vrot.slane %v14357_v3, 7  ;;  %v14360_v62 = vld [vmem:[#allocation21_spill] sm:$0xff]  ;;  %v14363_v43 = vld [vmem:[#allocation19_spill] sm:$0xff] }
 0x346   :  { %7574 = vrot.lane.b32.xlu1 %v7475_v54, %s8796_s25  ;;  %v7204_v1 = vrot.slane %v14359_v27, 4  ;;  %v5515_v60 = vsub.f32 %v3612_v6, %v10534_v8  ;;  %v6412_v18 = vsub.f32 %v3654_v45, %v10556_v26  ;;  %v3624_v24 = vadd.f32 %v3623_v4, %v3622_v22 }
 0x347   :  { %v5574_v42 = vmul.f32 0.33333334, %v14355_v36  ;;  %v7199_v57 = vsel %vm6783_vm3, %v14358_v7, %v14356_v56  ;;  %v14361_v52 = vrot.slane %v14360_v62, 6  ;;  %v3619_v37 = vadd.f32 %v3618_v35, %v3617_v58  ;;  %v14366_v56 = vld [vmem:[#allocation27_spill] sm:$0xff]  ;;  %v14368_v35 = vld [vmem:[#allocation28_spill] sm:$0xff] }
 0x348   :  { %v14364_v10 = vrot.slane %v14363_v43, 5  ;;  %v7206_v51 = vrot.slane %v5572_v12, 3  ;;  %v7208_v48 = vrot.slane %v5573_v53, 2  ;;  %v10616_v54 = vmul.f32 0.33333334, %v5964_v32  ;;  %v10631_v12 = vpop.f32.mrb[111].mxu0 }
 0x349   :  { %v7201_v30 = vsel %vm6785_vm4, %v14361_v52, %v7199_v57  ;;  %v3625_v36 = vrot.slane %v3624_v24, 1  ;;  %v10619_v6 = vrot.slane %v3031_v14, %v9820_v2  ;;  %v7210_v4 = vrot.slane %v5574_v42, 1  ;;  %14370 = vst [vmem:[#allocation9_spill] sm:$0xff] %v10631_v12  ;;  %v14373_v62 = vld [vmem:[#allocation44_spill] sm:$0xff] }
 0x34a   :  { %v7203_v55 = vsel %vm6787_vm5, %v14364_v10, %v7201_v30  ;;  %14365 = vst [vmem:[#allocation38_spill] sm:$0xff] %v10616_v54  ;;  %v10625_v58 = vadd.f32 %v10316_v49, %v14366_v56  ;;  %v10629_v3 = vadd.f32 %v10316_v49, %v14368_v35  ;;  %v10633_v53 = vmul.f32 0.33333334, %v6412_v18 }
 0x34b   :  { %v7205_v22 = vsel %vm6789_vm6, %v7204_v1, %v7203_v55  ;;  %v3626_v32 = vadd.f32 %v3625_v36, %v3624_v24  ;;  %v5963_v14 = vsub.f32 %v3619_v37, %v10560_v31  ;;  %v14372_v1 = vld [vmem:[#allocation48_spill] sm:$0xff]  ;;  %v10647_v18 = vmul.f32 0.33333334, %v5515_v60 }
 0x34c   :  { %v7207_v45 = vsel %vm6791_vm7, %v7206_v51, %v7205_v22  ;;  %14367 = vst [vmem:[#allocation34_spill] sm:$0xff] %v10625_v58  ;;  %14369 = vst [vmem:[#allocation11_spill] sm:$0xff] %v10629_v3  ;;  %v3683_v42 = vsel %vm3262_vm2, %v10625_v58, 0.0  ;;  %v10642_v27 = vcombine.high %v10629_v3, %v10629_v3  ;;  %v14374_v52 = vsub.f32 %v14372_v1, %v14373_v62  ;;  %v14385_v36 = vld [vmem:[#allocation40_spill] sm:$0xff] }
 0x34d   :  { %14371 = vst [vmem:[#allocation37_spill] sm:$0xff] %v10633_v53  ;;  %v7209_v7 = vsel %vm6793_vm8, %v7208_v48, %v7207_v45  ;;  %14375 = vst [vmem:[#allocation21_spill] sm:$0xff] %v10647_v18  ;;  %v6411_v24 = vsub.f32 %v3626_v32, %v10619_v6  ;;  %v3684_v31 = vrot.slane %v3683_v42, 4  ;;  %v3655_v37 = vsel %vm3262_vm2, %v10629_v3, 0.0  ;;  %v14377_v45 = vld [vmem:[#allocation10_spill] sm:$0xff] }
 0x34e   :  { %v7211_v57 = vsel %vm6795_vm9, %v7210_v4, %v7209_v7  ;;  %v6469_v30 = vmul.f32 0.33333334, %v14374_v52  ;;  %v3656_v10 = vrot.slane %v3655_v37, 4  ;;  %v3662_v55 = vsel %vm3262_vm2, %v10642_v27, 0.0  ;;  %v14378_v4 = vld [vmem:[#allocation25_spill] sm:$0xff] }
 0x34f   :  { %7310 = vrot.lane.b32.xlu0 %v7211_v57, %s8797_s26  ;;  %v14376_v51 = vsub.f32 %v10396_v61, %v10347_v19  ;;  %v3663_v22 = vrot.slane %v3662_v55, 4  ;;  %v14379_v56 = vrot.slane %v14378_v4, 6  ;;  %v10665_v32 = vmul.f32 0.33333334, %v5963_v14  ;;  %v14381_v57 = vld [vmem:[#allocation24_spill] sm:$0xff]  ;;  %v10670_v61 = vpop.f32.mrb[112].mxu0 }
 0x350   :  { %v3657_v7 = vadd.f32 %v3656_v10, %v3655_v37  ;;  %v14382_v1 = vrot.slane %v14381_v57, 5  ;;  %v7752_v52 = vrot.slane %v6469_v30, 2  ;;  %14383 = vst [vmem:[#allocation27_spill] sm:$0xff] %v10670_v61  ;;  %v10672_v19 = vmul.f32 0.33333334, %v6411_v24  ;;  %v14387_v14 = vld [vmem:[#allocation35_spill] sm:$0xff] }
 0x351   :  { %v6470_v60 = vmul.f32 0.33333334, %v14376_v51  ;;  %v7745_v35 = vsel %vm6785_vm4, %v14379_v56, %v14377_v45  ;;  %14380 = vst [vmem:[#allocation19_spill] sm:$0xff] %v10665_v32  ;;  %v10674_v51 = vadd.f32 %v3684_v31, %v3683_v42  ;;  %v14386_v48 = vrot.slane %v14385_v36, 4  ;;  %v14389_v10 = vld [vmem:[#allocation31_spill] sm:$0xff]  ;;  %v14390_v30 = vld [vmem:[#allocation36_spill] sm:$0xff] }
 0x352   :  { %v7747_v62 = vsel %vm6787_vm5, %v14382_v1, %v7745_v35  ;;  %14384 = vst [vmem:[#allocation28_spill] sm:$0xff] %v10672_v19  ;;  %v3658_v45 = vrot.slane %v3657_v7, 2  ;;  %v14388_v56 = vrot.slane %v14387_v14, 3  ;;  %v2491_v35 = vadd.f32 %v10316_v49, %v14389_v10  ;;  %v10699_v14 = vpop.f32.mrb[113].mxu0 }
 0x353   :  { %v7749_v4 = vsel %vm6789_vm6, %v14386_v48, %v7747_v62  ;;  %v7754_v43 = vrot.slane %v6470_v60, 1  ;;  %v2483_v57 = vadd.f32 %v10316_v49, %v14390_v30  ;;  %v10686_v24 = vadd.f32 %v3663_v22, %v3662_v55  ;;  %v14391_v48 = vld [vmem:[#allocation39_spill] sm:$0xff]  ;;  %14392 = vst [vmem:[#allocation48_spill] sm:$0xff] %v10699_v14 }
 0x354   :  { %v7751_v37 = vsel %vm6791_vm7, %v14388_v56, %v7749_v4  ;;  %v10693_v60 = vadd.f32 %v10316_v49, %v14391_v48  ;;  %v3659_v36 = vadd.f32 %v3658_v45, %v3657_v7  ;;  %v10696_v62 = vcombine.high %v2491_v35, %v2491_v35 }
 0x355   :  { %v7753_v31 = vsel %vm6793_vm8, %v7752_v52, %v7751_v37  ;;  %v3697_v4 = vsel %vm3262_vm2, %v2491_v35, 0.0  ;;  %v3035_v56 = vcombine.high %v2483_v57, %v2483_v57  ;;  %v3669_v52 = vsel %vm3262_vm2, %v2483_v57, 0.0  ;;  %v10704_v37 = vpop.f32.mrb[114].mxu0 }
 0x356   :  { %v7755_v1 = vsel %vm6795_vm9, %v7754_v43, %v7753_v31  ;;  %v3698_v22 = vrot.slane %v3697_v4, 4  ;;  %14393 = vst [vmem:[#allocation44_spill] sm:$0xff] %v10704_v37  ;;  %v3704_v45 = vsel %vm3262_vm2, %v10696_v62, 0.0  ;;  %v3670_v10 = vrot.slane %v3669_v52, 4  ;;  %v10747_v32 = vpop.f32.mrb[115].mxu0 }
 0x357   :  { %7854 = vrot.lane.b32.xlu0 %v7755_v1, %s8797_s26  ;;  %v3660_v30 = vrot.slane %v3659_v36, 1  ;;  %v3705_v48 = vrot.slane %v3704_v45, 4  ;;  %v3676_v42 = vsel %vm3262_vm2, %v3035_v56, 0.0  ;;  %v3040_v0 = vcombine.high %v10693_v60, %v10693_v60  ;;  %14399 = vst [vmem:[#allocation35_spill] sm:$0xff] %v10747_v32 }
 0x358   :  { %v3699_v31 = vadd.f32 %v3698_v22, %v3697_v4  ;;  %v3671_v55 = vadd.f32 %v3670_v10, %v3669_v52  ;;  %v3677_v40 = vrot.slane %v3676_v42, 4  ;;  %v10715_v7 = vrot.slane %v2491_v35, %v9803_v34 }
 0x359   :  { %v3739_v43 = vsel %vm3262_vm2, %v10693_v60, 0.0  ;;  %v10721_v4 = vadd.f32 %v10316_v49, %v14395_v17  ;;  %v10724_v1 = vrot.slane %v2483_v57, %v9803_v34  ;;  %v10726_v10 = vadd.f32 %v3660_v30, %v3659_v36 }
 0x35a   :  { %v3700_v47 = vrot.slane %v3699_v31, 2  ;;  %14394 = vst [vmem:[#allocation10_spill] sm:$0xff] %v10715_v7  ;;  %v3672_v22 = vrot.slane %v3671_v55, 2  ;;  %v3678_v37 = vadd.f32 %v3677_v40, %v3676_v42  ;;  %v3740_v52 = vrot.slane %v3739_v43, 4 }
 0x35b   :  { %14396 = vst [vmem:[#allocation25_spill] sm:$0xff] %v10724_v1  ;;  %v3706_v14 = vadd.f32 %v3705_v48, %v3704_v45  ;;  %v10729_v61 = vrot.slane %v3035_v56, %v9820_v2  ;;  %v3746_v35 = vsel %vm3262_vm2, %v3040_v0, 0.0  ;;  %v6598_v40 = vrot.slane %v10693_v60, %v9773_v28 }
 0x35c   :  { %v3673_v12 = vadd.f32 %v3672_v22, %v3671_v55  ;;  %v3679_v63 = vrot.slane %v3678_v37, 2  ;;  %v3741_v53 = vadd.f32 %v3740_v52, %v3739_v43  ;;  %v3747_v9 = vrot.slane %v3746_v35, 4 }
 0x35d   :  { %14397 = vst [vmem:[#allocation24_spill] sm:$0xff] %v10729_v61  ;;  %v3701_v17 = vadd.f32 %v3700_v47, %v3699_v31  ;;  %v3038_v57 = vcombine.high %v10721_v4, %v10721_v4  ;;  %v3711_v42 = vsel %vm3262_vm2, %v10721_v4, 0.0  ;;  %v5254_v48 = vrot.slane %v3040_v0, %v9797_v33 }
 0x35e   :  { %v3674_v36 = vrot.slane %v3673_v12, 1  ;;  %v3680_v45 = vadd.f32 %v3679_v63, %v3678_v37  ;;  %v3742_v56 = vrot.slane %v3741_v53, 2  ;;  %v3748_v30 = vadd.f32 %v3747_v9, %v3746_v35 }
 0x35f   :  { %v3712_v55 = vrot.slane %v3711_v42, 4  ;;  %v3718_v43 = vsel %vm3262_vm2, %v3038_v57, 0.0  ;;  %v10741_v47 = vrot.slane %v3038_v57, %v9797_v33  ;;  %v3707_v31 = vrot.slane %v3706_v14, 2 }
 0x360   :  { %v3681_v22 = vrot.slane %v3680_v45, 1  ;;  %v3743_v52 = vadd.f32 %v3742_v56, %v3741_v53  ;;  %v3749_v39 = vrot.slane %v3748_v30, 2  ;;  %v3675_v19 = vadd.f32 %v3674_v36, %v3673_v12 }
 0x361   :  { %v3713_v5 = vadd.f32 %v3712_v55, %v3711_v42  ;;  %v3719_v54 = vrot.slane %v3718_v43, 4  ;;  %v6594_v63 = vrot.slane %v10721_v4, %v9773_v28  ;;  %v3702_v37 = vrot.slane %v3701_v17, 1 }
 0x362   :  { %v10745_v9 = vadd.f32 %v3681_v22, %v3680_v45  ;;  %v3744_v0 = vrot.slane %v3743_v52, 1  ;;  %v3750_v35 = vadd.f32 %v3749_v39, %v3748_v30  ;;  %v10754_v12 = vsel %vm6783_vm3, %v5254_v48, %v10741_v47 }
 0x363   :  { %v3714_v38 = vrot.slane %v3713_v5, 2  ;;  %v3720_v57 = vadd.f32 %v3719_v54, %v3718_v43  ;;  %v10750_v18 = vsel %vm6783_vm3, %v6598_v40, %v6594_v63  ;;  %14400 = vst [vmem:[#allocation31_spill] sm:$0xff] %v10754_v12  ;;  %v5965_v39 = vsub.f32 %v3675_v19, %v10724_v1  ;;  %v14401_v54 = vld [vmem:[#allocation45_spill] sm:$0xff] }
 0x364   :  { %14398 = vst [vmem:[#allocation40_spill] sm:$0xff] %v10745_v9  ;;  %v3745_v36 = vadd.f32 %v3744_v0, %v3743_v52  ;;  %v3751_v45 = vrot.slane %v3750_v35, 1  ;;  %v2507_v40 = vadd.f32 %v10316_v49, %v14401_v54  ;;  %v10763_v55 = vadd.f32 %v3702_v37, %v3701_v17 }
 0x365   :  { %v3715_v56 = vadd.f32 %v3714_v38, %v3713_v5  ;;  %v3721_v30 = vrot.slane %v3720_v57, 2  ;;  %v10765_v43 = vadd.f32 %v3707_v31, %v3706_v14  ;;  %v3036_v5 = vcombine.high %v10625_v58, %v10625_v58 }
 0x366   :  { %v3752_v22 = vadd.f32 %v3751_v45, %v3750_v35  ;;  %v5072_v63 = vsub.f32 %v3745_v36, %v10693_v60  ;;  %v3041_v12 = vcombine.high %v2507_v40, %v2507_v40  ;;  %v3753_v52 = vsel %vm3262_vm2, %v2507_v40, 0.0 }
 0x367   :  { %v3716_v53 = vrot.slane %v3715_v56, 1  ;;  %v3722_v32 = vadd.f32 %v3721_v30, %v3720_v57  ;;  %v3754_v19 = vrot.slane %v3753_v52, 4  ;;  %v10771_v38 = vmul.f32 0.33333334, %v5965_v39 }
 0x368   :  { %v5136_v0 = vmul.f32 0.33333334, %v5072_v63  ;;  %v5520_v42 = vsub.f32 %v3752_v22, %v5254_v48  ;;  %v3760_v14 = vsel %vm3262_vm2, %v3041_v12, 0.0  ;;  %v5702_v60 = vrot.slane %v2507_v40, %v9803_v34  ;;  %v14403_v63 = vld [vmem:[#allocation46_spill] sm:$0xff] }
 0x369   :  { %v3717_v17 = vadd.f32 %v3716_v53, %v3715_v56  ;;  %v3723_v37 = vrot.slane %v3722_v32, 1  ;;  %v3755_v31 = vadd.f32 %v3754_v19, %v3753_v52  ;;  %v3761_v35 = vrot.slane %v3760_v14, 4 }
 0x36a   :  { %v10777_v57 = vrot.slane %v10642_v27, %v9797_v33  ;;  %v6946_v36 = vrot.slane %v5136_v0, 7  ;;  %v6150_v39 = vrot.slane %v3041_v12, %v9820_v2  ;;  %v10783_v30 = vmul.f32 0.33333334, %v5520_v42 }
 0x36b   :  { %v10779_v48 = vadd.f32 %v3723_v37, %v3722_v32  ;;  %v5071_v45 = vsub.f32 %v3717_v17, %v10721_v4  ;;  %v3756_v53 = vrot.slane %v3755_v31, 2  ;;  %v3762_v56 = vadd.f32 %v3761_v35, %v3760_v14  ;;  %v14404_v32 = vld [vmem:[#allocation47_spill] sm:$0xff] }
 0x36c   :  { %14402 = vst [vmem:[#allocation36_spill] sm:$0xff] %v10783_v30  ;;  %v3690_v54 = vsel %vm3262_vm2, %v3036_v5, 0.0  ;;  %v7062_v27 = vsel %vm6785_vm4, %v10429_v25, %v14403_v63  ;;  %v2499_v52 = vadd.f32 %v10316_v49, %v14404_v32  ;;  %v10794_v12 = vrot.slane %v3036_v5, %v9797_v33  ;;  %v10803_v25 = vpop.f32.mrb[116].mxu0 }
 0x36d   :  { %v5135_v22 = vmul.f32 0.33333334, %v5071_v45  ;;  %v3757_v4 = vadd.f32 %v3756_v53, %v3755_v31  ;;  %v3763_v0 = vrot.slane %v3762_v56, 2  ;;  %v7063_v42 = vsel %vm6787_vm5, %v10419_v59, %v7062_v27  ;;  %14406 = vst [vmem:[#allocation42_spill] sm:$0xff] %v10803_v25 }
 0x36e   :  { %v3691_v17 = vrot.slane %v3690_v54, 4  ;;  %v7064_v37 = vsel %vm6789_vm6, %v10534_v8, %v7063_v42  ;;  %v3039_v14 = vcombine.high %v2499_v52, %v2499_v52  ;;  %v3725_v5 = vsel %vm3262_vm2, %v2499_v52, 0.0 }
 0x36f   :  { %v10799_v19 = vsel %vm6783_vm3, %v6946_v36, %v5135_v22  ;;  %v3758_v35 = vrot.slane %v3757_v4, 1  ;;  %v3764_v45 = vadd.f32 %v3763_v0, %v3762_v56  ;;  %v7065_v31 = vsel %vm6791_vm7, %v10502_v46, %v7064_v37 }
 0x370   :  { %14405 = vst [vmem:[#allocation39_spill] sm:$0xff] %v10799_v19  ;;  %v7066_v59 = vsel %vm6793_vm8, %v10777_v57, %v7065_v31  ;;  %v3726_v53 = vrot.slane %v3725_v5, 4  ;;  %v3732_v36 = vsel %vm3262_vm2, %v3039_v14, 0.0  ;;  %v5698_v22 = vrot.slane %v2499_v52, %v9803_v34 }
 0x371   :  { %v3759_v63 = vadd.f32 %v3758_v35, %v3757_v4  ;;  %v3765_v8 = vrot.slane %v3764_v45, 1  ;;  %v7067_v27 = vsel %vm6795_vm9, %v10794_v12, %v7066_v59  ;;  %v3733_v32 = vrot.slane %v3732_v36, 4  ;;  %v10826_v59 = vpop.f32.mrb[117].mxu0 }
 0x372   :  { %7112 = vrot.lane.b32.xlu1 %v7067_v27, %s8795_s24  ;;  %v3727_v56 = vadd.f32 %v3726_v53, %v3725_v5  ;;  %v6146_v0 = vrot.slane %v3039_v14, %v9820_v2  ;;  %v10817_v42 = vsel %vm6783_vm3, %v5702_v60, %v5698_v22  ;;  %v10821_v37 = vrot.slane %v10696_v62, %v9820_v2  ;;  %v14409_v53 = vld [vmem:[#allocation50_spill] sm:$0xff] }
 0x373   :  { %v3766_v31 = vadd.f32 %v3765_v8, %v3764_v45  ;;  %v5968_v52 = vsub.f32 %v3759_v63, %v5702_v60  ;;  %v3734_v4 = vadd.f32 %v3733_v32, %v3732_v36  ;;  %v7607_v35 = vsel %vm6787_vm5, %v10438_v21, %v10459_v13  ;;  %14408 = vst [vmem:[#allocation46_spill] sm:$0xff] %v10826_v59  ;;  %v10837_v45 = vpop.f32.mrb[118].mxu0  ;;  %v14415_v59 = vld [vmem:[#allocation13_spill] sm:$0xff] }
 0x374   :  { %14407 = vst [vmem:[#allocation45_spill] sm:$0xff] %v10821_v37  ;;  %v3728_v27 = vrot.slane %v3727_v56, 2  ;;  %v10829_v5 = vsel %vm6783_vm3, %v6150_v39, %v6146_v0  ;;  %v7608_v14 = vsel %vm6789_vm6, %v10619_v6, %v7607_v35  ;;  %v10835_v62 = vadd.f32 %v10316_v49, %v14409_v53  ;;  %14411 = vst [vmem:[#allocation50_spill] sm:$0xff] %v10837_v45  ;;  %v10841_v13 = vpop.f32.mrb[119].mxu0 }
 0x375   :  { %v6032_v60 = vmul.f32 0.33333334, %v5968_v52  ;;  %v6416_v36 = vsub.f32 %v3766_v31, %v6150_v39  ;;  %v3735_v63 = vrot.slane %v3734_v4, 2  ;;  %v7609_v21 = vsel %vm6791_vm7, %v10556_v26, %v7608_v14  ;;  %14412 = vst [vmem:[#allocation61_spill] sm:$0xff] %v10841_v13  ;;  %v10863_v14 = vpop.f32.mrb[120].mxu0 }
 0x376   :  { %14410 = vst [vmem:[#allocation47_spill] sm:$0xff] %v10835_v62  ;;  %v3729_v8 = vadd.f32 %v3728_v27, %v3727_v56  ;;  %v7610_v32 = vsel %vm6793_vm8, %v10729_v61, %v7609_v21  ;;  %v3044_v6 = vcombine.high %v10835_v62, %v10835_v62  ;;  %v3795_v35 = vsel %vm3262_vm2, %v10835_v62, 0.0 }
 0x377   :  { %v6480_v39 = vmul.f32 0.33333334, %v6416_v36  ;;  %v3736_v31 = vadd.f32 %v3735_v63, %v3734_v4  ;;  %v7611_v26 = vsel %vm6795_vm9, %v10821_v37, %v7610_v32  ;;  %v3796_v27 = vrot.slane %v3795_v35, 4  ;;  %v14413_v63 = vld [vmem:[#allocation5_spill] sm:$0xff] }
 0x378   :  { %v3730_v56 = vrot.slane %v3729_v8, 1  ;;  %7656 = vrot.lane.b32.xlu0 %v7611_v26, %s8795_s24  ;;  %v3802_v53 = vsel %vm3262_vm2, %v3044_v6, 0.0  ;;  %v10857_v40 = vadd.f32 %v3691_v17, %v3690_v54  ;;  %v7490_v52 = vrot.slane %v6032_v60, 7  ;;  %14414 = vst [vmem:[#allocation5_spill] sm:$0xff] %v10863_v14  ;;  %v10869_v54 = vpop.f32.mrb[121].mxu0 }
 0x379   :  { %v3737_v1 = vrot.slane %v3736_v31, 1  ;;  %v3803_v19 = vrot.slane %v3802_v53, 4  ;;  %v3797_v4 = vadd.f32 %v3796_v27, %v3795_v35  ;;  %v10861_v32 = vadd.f32 %v10316_v49, %v14413_v63  ;;  %14416 = vst [vmem:[#allocation13_spill] sm:$0xff] %v10869_v54 }
 0x37a   :  { %v3731_v36 = vadd.f32 %v3730_v56, %v3729_v8  ;;  %v7770_v13 = vrot.slane %v6480_v39, 7  ;;  %v10867_v25 = vadd.f32 %v10316_v49, %v14415_v59  ;;  %v14417_v59 = vld [vmem:[#allocation14_spill] sm:$0xff] }
 0x37b   :  { %v3738_v26 = vadd.f32 %v3737_v1, %v3736_v31  ;;  %v3804_v45 = vadd.f32 %v3803_v19, %v3802_v53  ;;  %v3798_v21 = vrot.slane %v3797_v4, 2  ;;  %v3042_v60 = vcombine.high %v10861_v32, %v10861_v32 }
 0x37c   :  { %v5967_v17 = vsub.f32 %v3731_v36, %v5698_v22  ;;  %v3767_v8 = vsel %vm3262_vm2, %v10861_v32, 0.0  ;;  %v6602_v1 = vrot.slane %v10861_v32, %v9773_v28  ;;  %v10881_v22 = vld [vmem:[%s14105_s6] ss:$0 sm:$0xff] }
 0x37d   :  { %v6415_v35 = vsub.f32 %v3738_v26, %v6146_v0  ;;  %v3805_v56 = vrot.slane %v3804_v45, 2  ;;  %v3768_v27 = vrot.slane %v3767_v8, 4  ;;  %v3799_v39 = vadd.f32 %v3798_v21, %v3797_v4 }
 0x37e   :  { %v6031_v19 = vmul.f32 0.33333334, %v5967_v17  ;;  %v3774_v49 = vsel %vm3262_vm2, %v3042_v60, 0.0  ;;  %v2515_v31 = vadd.f32 %v10881_v22, %v14417_v59  ;;  %v10890_v21 = vsel %vm6785_vm4, %v6602_v1, %v10750_v18 }
 0x37f   :  { %v6479_v53 = vmul.f32 0.33333334, %v6415_v35  ;;  %v3806_v36 = vadd.f32 %v3805_v56, %v3804_v45  ;;  %v3769_v0 = vadd.f32 %v3768_v27, %v3767_v8  ;;  %v3775_v63 = vrot.slane %v3774_v49, 4  ;;  %14418 = vst [vmem:[#allocation14_spill] sm:$0xff] %v10890_v21 }
 0x380   :  { %v10886_v26 = vsel %vm6783_vm3, %v7490_v52, %v6031_v19  ;;  %v3800_v30 = vrot.slane %v3799_v39, 1  ;;  %v3045_v4 = vcombine.high %v10867_v25, %v10867_v25  ;;  %v14420_v45 = vsub.f32 %v10779_v48, %v10741_v47 }
 0x381   :  { %v10895_v17 = vsel %vm6783_vm3, %v7770_v13, %v6479_v53  ;;  %v3807_v54 = vrot.slane %v3806_v36, 1  ;;  %v3770_v59 = vrot.slane %v3769_v0, 2  ;;  %v3776_v35 = vadd.f32 %v3775_v63, %v3774_v49 }
 0x382   :  { %14419 = vst [vmem:[#allocation62_spill] sm:$0xff] %v10895_v17  ;;  %v10900_v8 = vmul.f32 0.33333334, %v14420_v45  ;;  %v3801_v52 = vadd.f32 %v3800_v30, %v3799_v39  ;;  %v3809_v56 = vsel %vm3262_vm2, %v10867_v25, 0.0  ;;  %v3816_v18 = vsel %vm3262_vm2, %v3045_v4, 0.0 }
 0x383   :  { %v3808_v27 = vadd.f32 %v3807_v54, %v3806_v36  ;;  %v3771_v1 = vadd.f32 %v3770_v59, %v3769_v0  ;;  %v3777_v19 = vrot.slane %v3776_v35, 2  ;;  %v3810_v21 = vrot.slane %v3809_v56, 4  ;;  %v14423_v36 = vld [vmem:[#allocation52_spill] sm:$0xff] }
 0x384   :  { %14421 = vst [vmem:[#allocation63_spill] sm:$0xff] %v10900_v8  ;;  %v10906_v13 = vrot.slane %v3044_v6, %v9797_v33  ;;  %v3817_v53 = vrot.slane %v3816_v18, 4  ;;  %v3043_v47 = vcombine.high %v2515_v31, %v2515_v31  ;;  %v5074_v48 = vsub.f32 %v3801_v52, %v10835_v62 }
 0x385   :  { %v3772_v30 = vrot.slane %v3771_v1, 1  ;;  %v3778_v39 = vadd.f32 %v3777_v19, %v3776_v35  ;;  %v3811_v63 = vadd.f32 %v3810_v21, %v3809_v56  ;;  %v3781_v17 = vsel %vm3262_vm2, %v2515_v31, 0.0 }
 0x386   :  { %14422 = vst [vmem:[#allocation64_spill] sm:$0xff] %v10906_v13  ;;  %v3818_v45 = vadd.f32 %v3817_v53, %v3816_v18  ;;  %v3788_v54 = vsel %vm3262_vm2, %v3043_v47, 0.0  ;;  %v10915_v0 = vadd.f32 %v10881_v22, %v14423_v36  ;;  %v5522_v6 = vsub.f32 %v3808_v27, %v10906_v13 }
 0x387   :  { %v3773_v59 = vadd.f32 %v3772_v30, %v3771_v1  ;;  %v3779_v49 = vrot.slane %v3778_v39, 1  ;;  %v3812_v8 = vrot.slane %v3811_v63, 2  ;;  %v10919_v14 = vrot.slane %v3042_v60, %v9797_v33 }
 0x388   :  { %14424 = vst [vmem:[#allocation52_spill] sm:$0xff] %v10915_v0  ;;  %v3819_v52 = vrot.slane %v3818_v45, 2  ;;  %v3782_v35 = vrot.slane %v3781_v17, 4  ;;  %v3789_v21 = vrot.slane %v3788_v54, 4  ;;  %v10921_v56 = vmul.f32 0.33333334, %v5074_v48 }
 0x389   :  { %v3780_v18 = vadd.f32 %v3779_v49, %v3778_v39  ;;  %v5073_v19 = vsub.f32 %v3773_v59, %v10861_v32  ;;  %v3813_v53 = vadd.f32 %v3812_v8, %v3811_v63  ;;  %v5706_v27 = vrot.slane %v2515_v31, %v9803_v34  ;;  %v10953_v59 = vpop.f32.mrb[122].mxu0 }
 0x38a   :  { %v3820_v62 = vadd.f32 %v3819_v52, %v3818_v45  ;;  %v3783_v36 = vadd.f32 %v3782_v35, %v3781_v17  ;;  %v3790_v37 = vadd.f32 %v3789_v21, %v3788_v54  ;;  %v10925_v1 = vmul.f32 0.33333334, %v5522_v6 }
 0x38b   :  { %v5521_v30 = vsub.f32 %v3780_v18, %v10919_v14  ;;  %v3814_v60 = vrot.slane %v3813_v53, 1  ;;  %v6154_v13 = vrot.slane %v3043_v47, %v9820_v2  ;;  %v10931_v49 = vsel %vm6785_vm4, %v5706_v27, %v10817_v42 }
 0x38c   :  { %14425 = vst [vmem:[#allocation65_spill] sm:$0xff] %v10925_v1  ;;  %v3821_v61 = vrot.slane %v3820_v62, 1  ;;  %v3784_v9 = vrot.slane %v3783_v36, 2  ;;  %v3791_v48 = vrot.slane %v3790_v37, 2  ;;  %v10933_v32 = vmul.f32 0.33333334, %v5073_v19 }
 0x38d   :  { %v3815_v17 = vadd.f32 %v3814_v60, %v3813_v53  ;;  %v10937_v31 = vrot.slane %v10867_v25, %v9803_v34  ;;  %v10941_v8 = vsel %vm6785_vm4, %v6154_v13, %v10829_v5  ;;  %v10943_v39 = vmul.f32 0.33333334, %v5521_v30 }
 0x38e   :  { %v3785_v47 = vadd.f32 %v3784_v9, %v3783_v36  ;;  %v3792_v63 = vadd.f32 %v3791_v48, %v3790_v37  ;;  %v3048_v45 = vcombine.high %v10915_v0, %v10915_v0  ;;  %v3822_v54 = vadd.f32 %v3821_v61, %v3820_v62  ;;  %v14427_v61 = vld [vmem:[#allocation53_spill] sm:$0xff] }
 0x38f   :  { %14426 = vst [vmem:[#allocation66_spill] sm:$0xff] %v10943_v39  ;;  %v10949_v6 = vrot.slane %v3045_v4, %v9820_v2  ;;  %v3851_v25 = vsel %vm3262_vm2, %v10915_v0, 0.0  ;;  %v5970_v21 = vsub.f32 %v3815_v17, %v10937_v31  ;;  %v10961_v62 = vadd.f32 %v10881_v22, %v14427_v61  ;;  %v10988_v39 = vpop.f32.mrb[123].mxu0 }
 0x390   :  { %v3786_v52 = vrot.slane %v3785_v47, 1  ;;  %v3793_v35 = vrot.slane %v3792_v63, 1  ;;  %v3852_v9 = vrot.slane %v3851_v25, 4  ;;  %v3858_v18 = vsel %vm3262_vm2, %v3048_v45, 0.0 }
 0x391   :  { %14428 = vst [vmem:[#allocation53_spill] sm:$0xff] %v10961_v62  ;;  %v6418_v30 = vsub.f32 %v3822_v54, %v10949_v6  ;;  %v3859_v60 = vrot.slane %v3858_v18, 4  ;;  %v3046_v48 = vcombine.high %v10961_v62, %v10961_v62  ;;  %v3823_v17 = vsel %vm3262_vm2, %v10961_v62, 0.0 }
 0x392   :  { %v3787_v19 = vadd.f32 %v3786_v52, %v3785_v47  ;;  %v3794_v53 = vadd.f32 %v3793_v35, %v3792_v63  ;;  %v3853_v36 = vadd.f32 %v3852_v9, %v3851_v25  ;;  %v10971_v1 = vmul.f32 0.33333334, %v5970_v21 }
 0x393   :  { %v3860_v47 = vadd.f32 %v3859_v60, %v3858_v18  ;;  %v3824_v63 = vrot.slane %v3823_v17, 4  ;;  %v3830_v25 = vsel %vm3262_vm2, %v3046_v48, 0.0  ;;  %v10975_v35 = vrot.slane %v3048_v45, %v9797_v33 }
 0x394   :  { %v5969_v5 = vsub.f32 %v3787_v19, %v5706_v27  ;;  %v6417_v42 = vsub.f32 %v3794_v53, %v6154_v13  ;;  %v3854_v37 = vrot.slane %v3853_v36, 2  ;;  %14429 = vst [vmem:[#allocation67_spill] sm:$0xff] %v10971_v1  ;;  %v3831_v9 = vrot.slane %v3830_v25, 4 }
 0x395   :  { %v10977_v4 = vmul.f32 0.33333334, %v6418_v30  ;;  %v3861_v27 = vrot.slane %v3860_v47, 2  ;;  %v3825_v13 = vadd.f32 %v3824_v63, %v3823_v17  ;;  %v14431_v19 = vrot.slane %v10674_v51, 2  ;;  %v14435_v63 = vld [vmem:[#allocation51_spill] sm:$0xff] }
 0x396   :  { %v6033_v54 = vmul.f32 0.33333334, %v5969_v5  ;;  %v3855_v52 = vadd.f32 %v3854_v37, %v3853_v36  ;;  %v10982_v21 = vmul.f32 0.33333334, %v6417_v42  ;;  %v3832_v61 = vadd.f32 %v3831_v9, %v3830_v25 }
 0x397   :  { %14430 = vst [vmem:[#allocation68_spill] sm:$0xff] %v10977_v4  ;;  %v3687_v53 = vadd.f32 %v14431_v19, %v10674_v51  ;;  %v3826_v37 = vrot.slane %v3825_v13, 2  ;;  %v14433_v45 = vsub.f32 %v10726_v10, %v10629_v3  ;;  %v10998_v9 = vadd.f32 %v3861_v27, %v3860_v47 }
 0x398   :  { %14432 = vst [vmem:[#allocation69_spill] sm:$0xff] %v10982_v21  ;;  %v7492_v18 = vrot.slane %v6033_v54, 6  ;;  %v3856_v60 = vrot.slane %v3855_v52, 1  ;;  %v3833_v42 = vrot.slane %v3832_v61, 2  ;;  %v14436_v54 = vrot.slane %v10448_v29, 6 }
 0x399   :  { %v3688_v36 = vrot.slane %v3687_v53, 1  ;;  %v5133_v30 = vmul.f32 0.33333334, %v14433_v45  ;;  %v3827_v19 = vadd.f32 %v3826_v37, %v3825_v13  ;;  %v14437_v10 = vrot.slane %v10441_v11, 5  ;;  %v14445_v13 = vld [vmem:[#allocation49_spill] sm:$0xff] }
 0x39a   :  { %v10992_v17 = vsel %vm6785_vm4, %v7492_v18, %v10886_v26  ;;  %v3857_v51 = vadd.f32 %v3856_v60, %v3855_v52  ;;  %v6935_v25 = vsel %vm6785_vm4, %v14436_v54, %v14435_v63  ;;  %v3834_v1 = vadd.f32 %v3833_v42, %v3832_v61 }
 0x39b   :  { %14434 = vst [vmem:[#allocation70_spill] sm:$0xff] %v10992_v17  ;;  %v3689_v5 = vadd.f32 %v3688_v36, %v3687_v53  ;;  %v6937_v45 = vsel %vm6787_vm5, %v14437_v10, %v6935_v25  ;;  %v14438_v26 = vrot.slane %v10578_v20, 4  ;;  %v6942_v18 = vrot.slane %v5133_v30, 2 }
 0x39c   :  { %v5076_v3 = vsub.f32 %v3857_v51, %v10915_v0  ;;  %v3828_v60 = vrot.slane %v3827_v19, 1  ;;  %v14439_v47 = vrot.slane %v10546_v16, 3  ;;  %v2539_v11 = vadd.f32 %v10881_v22, %v10454_v23 }
 0x39d   :  { %v6939_v52 = vsel %vm6789_vm6, %v14438_v26, %v6937_v45  ;;  %v5070_v29 = vsub.f32 %v3689_v5, %v10625_v58  ;;  %v2531_v20 = vadd.f32 %v10881_v22, %v10498_v15  ;;  %v3835_v37 = vrot.slane %v3834_v1, 1 }
 0x39e   :  { %v6941_v27 = vsel %vm6791_vm7, %v14439_v47, %v6939_v52  ;;  %v11014_v53 = vmul.f32 0.33333334, %v5076_v3  ;;  %v3049_v30 = vcombine.high %v2539_v11, %v2539_v11  ;;  %v3865_v5 = vsel %vm3262_vm2, %v2539_v11, 0.0 }
 0x39f   :  { %v6943_v61 = vsel %vm6793_vm8, %v6942_v18, %v6941_v27  ;;  %v5134_v36 = vmul.f32 0.33333334, %v5070_v29  ;;  %v11022_v51 = vrot.slane %v3046_v48, %v9797_v33  ;;  %v3866_v3 = vrot.slane %v3865_v5, 4 }
 0x3a0   :  { %v3829_v63 = vadd.f32 %v3828_v60, %v3827_v19  ;;  %v3872_v15 = vsel %vm3262_vm2, %v3049_v30, 0.0  ;;  %v3047_v26 = vcombine.high %v2531_v20, %v2531_v20  ;;  %v3836_v52 = vadd.f32 %v3835_v37, %v3834_v1 }
 0x3a1   :  { %v6944_v54 = vrot.slane %v5134_v36, 1  ;;  %v3867_v10 = vadd.f32 %v3866_v3, %v3865_v5  ;;  %v3873_v45 = vrot.slane %v3872_v15, 4  ;;  %v3837_v48 = vsel %vm3262_vm2, %v2531_v20, 0.0 }
 0x3a2   :  { %v11032_v29 = vrot.slane %v2531_v20, %v9803_v34  ;;  %v11036_v60 = vrot.slane %v2539_v11, %v9803_v34  ;;  %v3838_v27 = vrot.slane %v3837_v48, 4  ;;  %v5075_v36 = vsub.f32 %v3829_v63, %v10961_v62 }
 0x3a3   :  { %v6945_v18 = vsel %vm6795_vm9, %v6944_v54, %v6943_v61  ;;  %v3868_v47 = vrot.slane %v3867_v10, 2  ;;  %v3874_v19 = vadd.f32 %v3873_v45, %v3872_v15  ;;  %v11040_v5 = vrot.slane %v3049_v30, %v9820_v2 }
 0x3a4   :  { %7032 = vrot.lane.b32.xlu0 %v6945_v18, %s8796_s25  ;;  %14440 = vst [vmem:[#allocation51_spill] sm:$0xff] %v11036_v60  ;;  %v3844_v1 = vsel %vm3262_vm2, %v3047_v26, 0.0  ;;  %v7350_v61 = vsel %vm6787_vm5, %v10937_v31, %v10931_v49  ;;  %v3839_v3 = vadd.f32 %v3838_v27, %v3837_v48  ;;  %v14442_v63 = vrot.slane %v10524_v44, 1 }
 0x3a5   :  { %v3869_v20 = vadd.f32 %v3868_v47, %v3867_v10  ;;  %v3875_v37 = vrot.slane %v3874_v19, 2  ;;  %v3845_v54 = vrot.slane %v3844_v1, 4  ;;  %v11048_v11 = vsel %vm6789_vm6, %v11032_v29, %v7350_v61  ;;  %v14444_v61 = vld [vmem:[#allocation6_spill] sm:$0xff] }
 0x3a6   :  { %14441 = vst [vmem:[#allocation71_spill] sm:$0xff] %v11048_v11  ;;  %v3640_v15 = vadd.f32 %v14442_v63, %v10524_v44  ;;  %v14443_v30 = vrot.slane %v10686_v24, 2  ;;  %v3693_v18 = vrot.slane %v10857_v40, 2  ;;  %v3840_v31 = vrot.slane %v3839_v3, 2 }
 0x3a7   :  { %v3870_v23 = vrot.slane %v3869_v20, 1  ;;  %v3876_v49 = vadd.f32 %v3875_v37, %v3874_v19  ;;  %v3846_v10 = vadd.f32 %v3845_v54, %v3844_v1  ;;  %v14446_v16 = vrot.slane %v14445_v13, 7 }
 0x3a8   :  { %v3666_v45 = vadd.f32 %v14443_v30, %v10686_v24  ;;  %v3694_v47 = vadd.f32 %v3693_v18, %v10857_v40  ;;  %v5516_v27 = vsub.f32 %v3640_v15, %v10502_v46  ;;  %v3841_v25 = vadd.f32 %v3840_v31, %v3839_v3  ;;  %v11063_v30 = vpop.f32.mrb[124].mxu0  ;;  %v14451_v18 = vld [vmem:[#allocation21_spill] sm:$0xff] }
 0x3a9   :  { %v7213_v44 = vsel %vm6783_vm3, %v14446_v16, %v14444_v61  ;;  %v3871_v63 = vadd.f32 %v3870_v23, %v3869_v20  ;;  %v3877_v42 = vrot.slane %v3876_v49, 1  ;;  %v3847_v24 = vrot.slane %v3846_v10, 2  ;;  %14447 = vst [vmem:[#allocation6_spill] sm:$0xff] %v11063_v30  ;;  %v11068_v54 = vpop.f32.mrb[125].mxu0 }
 0x3aa   :  { %v3667_v48 = vrot.slane %v3666_v45, 1  ;;  %v3695_v19 = vrot.slane %v3694_v47, 1  ;;  %v5580_v37 = vmul.f32 0.33333334, %v5516_v27  ;;  %v14448_v1 = vrot.slane %v10474_v41, 6  ;;  %14449 = vst [vmem:[#allocation49_spill] sm:$0xff] %v11068_v54 }
 0x3ab   :  { %v5523_v46 = vsub.f32 %v3836_v52, %v11022_v51  ;;  %v3878_v13 = vadd.f32 %v3877_v42, %v3876_v49  ;;  %v5972_v16 = vsub.f32 %v3871_v63, %v11036_v60  ;;  %v3848_v23 = vadd.f32 %v3847_v24, %v3846_v10 }
 0x3ac   :  { %v3668_v11 = vadd.f32 %v3667_v48, %v3666_v45  ;;  %v7215_v40 = vsel %vm6785_vm4, %v14448_v1, %v7213_v44  ;;  %v3696_v20 = vadd.f32 %v3695_v19, %v3694_v47  ;;  %v14450_v15 = vrot.slane %v10445_v50, 5  ;;  %v11093_v19 = vpop.f32.mrb[126].mxu0 }
 0x3ad   :  { %v7218_v31 = vrot.slane %v14451_v18, 4  ;;  %v11077_v41 = vmul.f32 0.33333334, %v5075_v36  ;;  %v6420_v48 = vsub.f32 %v3878_v13, %v11040_v5  ;;  %v3842_v27 = vrot.slane %v3841_v25, 1  ;;  %14454 = vst [vmem:[#allocation72_spill] sm:$0xff] %v11093_v19  ;;  %v14456_v13 = vld [vmem:[#allocation54_spill] sm:$0xff] }
 0x3ae   :  { %v5517_v3 = vsub.f32 %v3668_v11, %v10777_v57  ;;  %v7217_v45 = vsel %vm6787_vm5, %v14450_v15, %v7215_v40  ;;  %v3849_v61 = vrot.slane %v3848_v23, 1  ;;  %v5518_v42 = vsub.f32 %v3696_v20, %v10794_v12  ;;  %v14459_v15 = vld [vmem:[#allocation19_spill] sm:$0xff]  ;;  %v11107_v18 = vpop.f32.mrb[127].mxu0 }
 0x3af   :  { %v7219_v49 = vsel %vm6789_vm6, %v7218_v31, %v7217_v45  ;;  %v7220_v10 = vrot.slane %v5580_v37, 3  ;;  %v11082_v47 = vmul.f32 0.33333334, %v5523_v46  ;;  %v11084_v57 = vmul.f32 0.33333334, %v5972_v16  ;;  %v14455_v46 = vld [vmem:[#allocation7_spill] sm:$0xff] }
 0x3b0   :  { %v5581_v52 = vmul.f32 0.33333334, %v5517_v3  ;;  %v3850_v50 = vadd.f32 %v3849_v61, %v3848_v23  ;;  %v11087_v11 = vrot.slane %v3047_v26, %v9820_v2  ;;  %v5582_v36 = vmul.f32 0.33333334, %v5518_v42  ;;  %14461 = vst [vmem:[#allocation54_spill] sm:$0xff] %v11107_v18  ;;  %v14462_v31 = vld [vmem:[#allocation38_spill] sm:$0xff] }
 0x3b1   :  { %14452 = vst [vmem:[#allocation21_spill] sm:$0xff] %v11084_v57  ;;  %v7221_v44 = vsel %vm6791_vm7, %v7220_v10, %v7219_v49  ;;  %v14453_v24 = vsub.f32 %v10763_v55, %v10715_v7  ;;  %v3843_v1 = vadd.f32 %v3842_v27, %v3841_v25  ;;  %v14457_v16 = vrot.slane %v14456_v13, 5  ;;  %v14490_v7 = vld [vmem:[#allocation27_spill] sm:$0xff] }
 0x3b2   :  { %v7222_v63 = vrot.slane %v5581_v52, 2  ;;  %v6419_v40 = vsub.f32 %v3850_v50, %v11087_v11  ;;  %v11101_v23 = vmul.f32 0.33333334, %v6420_v48  ;;  %v7224_v3 = vrot.slane %v5582_v36, 1  ;;  %v14465_v50 = vld [vmem:[#allocation40_spill] sm:$0xff] }
 0x3b3   :  { %v6030_v12 = vmul.f32 0.33333334, %v14453_v24  ;;  %v7481_v26 = vsel %vm6787_vm5, %v14457_v16, %v14455_v46  ;;  %v14460_v55 = vrot.slane %v14459_v15, 4  ;;  %v14463_v27 = vrot.slane %v14462_v31, 3  ;;  %v14466_v36 = vld [vmem:[#allocation24_spill] sm:$0xff]  ;;  %v14468_v24 = vld [vmem:[#allocation17_spill] sm:$0xff] }
 0x3b4   :  { %14458 = vst [vmem:[#allocation7_spill] sm:$0xff] %v11101_v23  ;;  %v7223_v20 = vsel %vm6793_vm8, %v7222_v63, %v7221_v44  ;;  %v3709_v52 = vrot.slane %v10765_v43, 1  ;;  %v14464_v49 = vrot.slane %v10771_v38, 2  ;;  %v14467_v44 = vsub.f32 %v14465_v50, %v14466_v36  ;;  %v14469_v46 = vld [vmem:[#allocation57_spill] sm:$0xff]  ;;  %v14471_v38 = vld [vmem:[#allocation55_spill] sm:$0xff] }
 0x3b5   :  { %v7483_v45 = vsel %vm6789_vm6, %v14460_v55, %v7481_v26  ;;  %v7488_v42 = vrot.slane %v6030_v12, 1  ;;  %v7225_v48 = vsel %vm6795_vm9, %v7224_v3, %v7223_v20  ;;  %v14470_v13 = vrot.slane %v14469_v46, 6  ;;  %v14473_v55 = vld [vmem:[#allocation28_spill] sm:$0xff]  ;;  %v14482_v50 = vld [vmem:[#allocation23_spill] sm:$0xff] }
 0x3b6   :  { %v7485_v61 = vsel %vm6791_vm7, %v14463_v27, %v7483_v45  ;;  %v6477_v63 = vmul.f32 0.33333334, %v14467_v44  ;;  %v5971_v26 = vsub.f32 %v3843_v1, %v11032_v29  ;;  %7312 = vrot.lane.b32.xlu1 %v7225_v48, %s8797_s26  ;;  %v3710_v20 = vadd.f32 %v3709_v52, %v10765_v43  ;;  %v14477_v1 = vld [vmem:[#allocation26_spill] sm:$0xff]  ;;  %v14479_v43 = vld [vmem:[#allocation45_spill] sm:$0xff] }
 0x3b7   :  { %v7487_v10 = vsel %vm6793_vm8, %v14464_v49, %v7485_v61  ;;  %v7759_v16 = vsel %vm6785_vm4, %v14470_v13, %v14468_v24  ;;  %v14472_v3 = vrot.slane %v14471_v38, 5  ;;  %v14474_v45 = vrot.slane %v14473_v55, 4  ;;  %v14475_v61 = vld [vmem:[#allocation59_spill] sm:$0xff]  ;;  %v14480_v48 = vld [vmem:[#allocation37_spill] sm:$0xff] }
 0x3b8   :  { %v7489_v12 = vsel %vm6795_vm9, %v7488_v42, %v7487_v10  ;;  %v7766_v27 = vrot.slane %v6477_v63, 2  ;;  %v11138_v29 = vadd.f32 %v10881_v22, %v14475_v61  ;;  %v11142_v42 = vadd.f32 %v10881_v22, %v14477_v1  ;;  %v14483_v44 = vld [vmem:[#allocation9_spill] sm:$0xff] }
 0x3b9   :  { %v7761_v15 = vsel %vm6787_vm5, %v14472_v3, %v7759_v16  ;;  %7576 = vrot.lane.b32.xlu0 %v7489_v12, %s8796_s25  ;;  %v6414_v52 = vsub.f32 %v3710_v20, %v14479_v43  ;;  %v14481_v49 = vrot.slane %v14480_v48, 3  ;;  %v2555_v36 = vadd.f32 %v10881_v22, %v14482_v50 }
 0x3ba   :  { %v7763_v31 = vsel %vm6789_vm6, %v14474_v45, %v7761_v15  ;;  %14476 = vst [vmem:[#allocation19_spill] sm:$0xff] %v11138_v29  ;;  %14478 = vst [vmem:[#allocation38_spill] sm:$0xff] %v11142_v42  ;;  %v2547_v63 = vadd.f32 %v10881_v22, %v14483_v44  ;;  %v3907_v46 = vsel %vm3262_vm2, %v11138_v29, 0.0  ;;  %v11157_v13 = vcombine.high %v11142_v42, %v11142_v42  ;;  %v11162_v15 = vpop.f32.mrb[128].mxu0 }
 0x3bb   :  { %v7765_v10 = vsel %vm6791_vm7, %v14481_v49, %v7763_v31  ;;  %v3879_v16 = vsel %vm3262_vm2, %v11142_v42, 0.0  ;;  %v6478_v20 = vmul.f32 0.33333334, %v6414_v52  ;;  %v3908_v38 = vrot.slane %v3907_v46, 4  ;;  %14484 = vst [vmem:[#allocation40_spill] sm:$0xff] %v11162_v15  ;;  %v11181_v37 = vpop.f32.mrb[129].mxu0 }
 0x3bc   :  { %v7767_v24 = vsel %vm6793_vm8, %v7766_v27, %v7765_v10  ;;  %v3880_v3 = vrot.slane %v3879_v16, 4  ;;  %v11164_v55 = vmul.f32 0.33333334, %v5971_v26  ;;  %v3886_v45 = vsel %vm3262_vm2, %v11157_v13, 0.0  ;;  %14487 = vst [vmem:[#allocation57_spill] sm:$0xff] %v11181_v37  ;;  %v11185_v60 = vpop.f32.mrb[130].mxu0 }
 0x3bd   :  { %v11168_v31 = vcombine.high %v2555_v36, %v2555_v36  ;;  %v3921_v27 = vsel %vm3262_vm2, %v2555_v36, 0.0  ;;  %v11171_v61 = vmul.f32 0.33333334, %v6419_v40  ;;  %v7768_v1 = vrot.slane %v6478_v20, 1  ;;  %14488 = vst [vmem:[#allocation55_spill] sm:$0xff] %v11185_v60 }
 0x3be   :  { %14485 = vst [vmem:[#allocation24_spill] sm:$0xff] %v11164_v55  ;;  %v3881_v43 = vadd.f32 %v3880_v3, %v3879_v16  ;;  %v3887_v48 = vrot.slane %v3886_v45, 4  ;;  %v3922_v49 = vrot.slane %v3921_v27, 4  ;;  %v3051_v10 = vcombine.high %v2547_v63, %v2547_v63 }
 0x3bf   :  { %14486 = vst [vmem:[#allocation17_spill] sm:$0xff] %v11171_v61  ;;  %v3928_v52 = vsel %vm3262_vm2, %v11168_v31, 0.0  ;;  %v3893_v26 = vsel %vm3262_vm2, %v2547_v63, 0.0  ;;  %v7769_v50 = vsel %vm6795_vm9, %v7768_v1, %v7767_v24  ;;  %v11177_v44 = vadd.f32 %v3908_v38, %v3907_v46  ;;  %v14494_v24 = vld [vmem:[#allocation44_spill] sm:$0xff] }
 0x3c0   :  { %v3882_v12 = vrot.slane %v3881_v43, 2  ;;  %v11179_v25 = vadd.f32 %v3887_v48, %v3886_v45  ;;  %7856 = vrot.lane.b32.xlu1 %v7769_v50, %s8797_s26  ;;  %v3923_v40 = vadd.f32 %v3922_v49, %v3921_v27  ;;  %v3929_v16 = vrot.slane %v3928_v52, 4 }
 0x3c1   :  { %v3894_v20 = vrot.slane %v3893_v26, 4  ;;  %v3900_v3 = vsel %vm3262_vm2, %v3051_v10, 0.0  ;;  %v11192_v48 = vrot.slane %v2555_v36, %v9803_v34  ;;  %v11199_v0 = vadd.f32 %v10881_v22, %v14490_v7 }
 0x3c2   :  { %v3901_v38 = vrot.slane %v3900_v3, 4  ;;  %v3883_v45 = vadd.f32 %v3882_v12, %v3881_v43  ;;  %v3924_v1 = vrot.slane %v3923_v40, 2  ;;  %v11195_v50 = vadd.f32 %v3929_v16, %v3928_v52 }
 0x3c3   :  { %14489 = vst [vmem:[#allocation28_spill] sm:$0xff] %v11192_v48  ;;  %v3895_v27 = vadd.f32 %v3894_v20, %v3893_v26  ;;  %v11203_v12 = vrot.slane %v2547_v63, %v9803_v34  ;;  %v3056_v36 = vcombine.high %v11199_v0, %v11199_v0  ;;  %v3963_v52 = vsel %vm3262_vm2, %v11199_v0, 0.0  ;;  %v14492_v26 = vld [vmem:[#allocation48_spill] sm:$0xff] }
 0x3c4   :  { %v3902_v62 = vadd.f32 %v3901_v38, %v3900_v3  ;;  %v3925_v58 = vadd.f32 %v3924_v1, %v3923_v40  ;;  %v11211_v16 = vadd.f32 %v10881_v22, %v14492_v26  ;;  %v3884_v7 = vrot.slane %v3883_v45, 1 }
 0x3c5   :  { %v3896_v46 = vrot.slane %v3895_v27, 2  ;;  %14491 = vst [vmem:[#allocation59_spill] sm:$0xff] %v11203_v12  ;;  %v11214_v3 = vrot.slane %v3051_v10, %v9820_v2  ;;  %v3964_v40 = vrot.slane %v3963_v52, 4  ;;  %v3931_v63 = vrot.slane %v11195_v50, 2 }
 0x3c6   :  { %v3903_v43 = vrot.slane %v3902_v62, 2  ;;  %v3970_v1 = vsel %vm3262_vm2, %v3056_v36, 0.0  ;;  %v2571_v49 = vadd.f32 %v10881_v22, %v14494_v24  ;;  %v3926_v60 = vrot.slane %v3925_v58, 1 }
 0x3c7   :  { %v3897_v20 = vadd.f32 %v3896_v46, %v3895_v27  ;;  %14493 = vst [vmem:[#allocation26_spill] sm:$0xff] %v11214_v3  ;;  %v3965_v15 = vadd.f32 %v3964_v40, %v3963_v52  ;;  %v3971_v18 = vrot.slane %v3970_v1, 4  ;;  %v11221_v23 = vrot.slane %v3056_v36, %v9797_v33 }
 0x3c8   :  { %v3904_v38 = vadd.f32 %v3903_v43, %v3902_v62  ;;  %v3054_v10 = vcombine.high %v11211_v16, %v11211_v16  ;;  %v3935_v46 = vsel %vm3262_vm2, %v11211_v16, 0.0  ;;  %v6630_v24 = vrot.slane %v11199_v0, %v9773_v28 }
 0x3c9   :  { %v3898_v37 = vrot.slane %v3897_v20, 1  ;;  %v3966_v27 = vrot.slane %v3965_v15, 2  ;;  %v3972_v43 = vadd.f32 %v3971_v18, %v3970_v1  ;;  %v3936_v52 = vrot.slane %v3935_v46, 4 }
 0x3ca   :  { %v3905_v26 = vrot.slane %v3904_v38, 1  ;;  %v3942_v40 = vsel %vm3262_vm2, %v3054_v10, 0.0  ;;  %v11233_v36 = vrot.slane %v3054_v10, %v9797_v33  ;;  %v11245_v1 = vadd.f32 %v3884_v7, %v3883_v45 }
 0x3cb   :  { %v3899_v62 = vadd.f32 %v3898_v37, %v3897_v20  ;;  %v3967_v61 = vadd.f32 %v3966_v27, %v3965_v15  ;;  %v3973_v30 = vrot.slane %v3972_v43, 2  ;;  %v3943_v4 = vrot.slane %v3942_v40, 4 }
 0x3cc   :  { %v11229_v19 = vadd.f32 %v3905_v26, %v3904_v38  ;;  %v3937_v18 = vadd.f32 %v3936_v52, %v3935_v46  ;;  %v6626_v20 = vrot.slane %v11211_v16, %v9773_v28  ;;  %v11243_v38 = vsel %vm6783_vm3, %v11221_v23, %v11233_v36  ;;  %v11251_v52 = vpop.f32.mrb[131].mxu0 }
 0x3cd   :  { %v5973_v54 = vsub.f32 %v3899_v62, %v11203_v12  ;;  %14496 = vst [vmem:[#allocation37_spill] sm:$0xff] %v11243_v38  ;;  %v3968_v26 = vrot.slane %v3967_v61, 1  ;;  %v3974_v10 = vadd.f32 %v3973_v30, %v3972_v43  ;;  %v3944_v62 = vadd.f32 %v3943_v4, %v3942_v40  ;;  %14497 = vst [vmem:[#allocation23_spill] sm:$0xff] %v11251_v52 }
 0x3ce   :  { %14495 = vst [vmem:[#allocation45_spill] sm:$0xff] %v11229_v19  ;;  %v3938_v15 = vrot.slane %v3937_v18, 2  ;;  %v11248_v27 = vsel %vm6783_vm3, %v6630_v24, %v6626_v20  ;;  %v3057_v12 = vcombine.high %v2571_v49, %v2571_v49  ;;  %v3977_v46 = vsel %vm3262_vm2, %v2571_v49, 0.0 }
 0x3cf   :  { %v11253_v37 = vadd.f32 %v3926_v60, %v3925_v58  ;;  %v3969_v21 = vadd.f32 %v3968_v26, %v3967_v61  ;;  %v3975_v19 = vrot.slane %v3974_v10, 1  ;;  %v3945_v57 = vrot.slane %v3944_v62, 2 }
 0x3d0   :  { %v11255_v38 = vmul.f32 0.33333334, %v5973_v54  ;;  %v3939_v45 = vadd.f32 %v3938_v15, %v3937_v18  ;;  %v3978_v7 = vrot.slane %v3977_v46, 4  ;;  %v3984_v4 = vsel %vm3262_vm2, %v3057_v12, 0.0 }
 0x3d1   :  { %v3976_v30 = vadd.f32 %v3975_v19, %v3974_v10  ;;  %v5080_v43 = vsub.f32 %v3969_v21, %v11199_v0  ;;  %v3946_v24 = vadd.f32 %v3945_v57, %v3944_v62  ;;  %v3985_v40 = vrot.slane %v3984_v4, 4 }
 0x3d2   :  { %14498 = vst [vmem:[#allocation9_spill] sm:$0xff] %v11255_v38  ;;  %v11262_v58 = vadd.f32 %v3931_v63, %v11195_v50  ;;  %v3940_v60 = vrot.slane %v3939_v45, 1  ;;  %v3979_v61 = vadd.f32 %v3978_v7, %v3977_v46  ;;  %v3052_v21 = vcombine.high %v11138_v29, %v11138_v29 }
 0x3d3   :  { %v5144_v26 = vmul.f32 0.33333334, %v5080_v43  ;;  %v5528_v54 = vsub.f32 %v3976_v30, %v11221_v23  ;;  %v3947_v18 = vrot.slane %v3946_v24, 1  ;;  %v3986_v15 = vadd.f32 %v3985_v40, %v3984_v4  ;;  %v14500_v40 = vld [vmem:[#allocation31_spill] sm:$0xff] }
 0x3d4   :  { %14499 = vst [vmem:[#allocation27_spill] sm:$0xff] %v11262_v58  ;;  %v3941_v10 = vadd.f32 %v3940_v60, %v3939_v45  ;;  %v3980_v0 = vrot.slane %v3979_v61, 2  ;;  %v5734_v63 = vrot.slane %v2571_v49, %v9803_v34  ;;  %v6182_v4 = vrot.slane %v3057_v12, %v9820_v2  ;;  %v11284_v60 = vpop.f32.mrb[132].mxu0  ;;  %v14502_v12 = vld [vmem:[#allocation64_spill] sm:$0xff] }
 0x3d5   :  { %v11270_v62 = vadd.f32 %v3947_v18, %v3946_v24  ;;  %v3987_v50 = vrot.slane %v3986_v15, 2  ;;  %v6960_v46 = vrot.slane %v5144_v26, 7  ;;  %v11279_v43 = vrot.slane %v11157_v13, %v9797_v33  ;;  %14501 = vst [vmem:[#allocation48_spill] sm:$0xff] %v11284_v60 }
 0x3d6   :  { %v5079_v23 = vsub.f32 %v3941_v10, %v11211_v16  ;;  %v3981_v7 = vadd.f32 %v3980_v0, %v3979_v61  ;;  %v7069_v24 = vsel %vm6785_vm4, %v10919_v14, %v14500_v40  ;;  %v11287_v16 = vsel %vm3262_vm2, %v3052_v21, 0.0  ;;  %v14504_v10 = vld [vmem:[#allocation35_spill] sm:$0xff] }
 0x3d7   :  { %v3988_v30 = vadd.f32 %v3987_v50, %v3986_v15  ;;  %v7070_v61 = vsel %vm6787_vm5, %v14502_v12, %v7069_v24  ;;  %v11291_v18 = vmul.f32 0.33333334, %v5528_v54  ;;  %v2563_v0 = vadd.f32 %v10881_v22, %v14504_v10 }
 0x3d8   :  { %v5143_v49 = vmul.f32 0.33333334, %v5079_v23  ;;  %v3982_v26 = vrot.slane %v3981_v7, 1  ;;  %v7071_v13 = vsel %vm6789_vm6, %v11022_v51, %v7070_v61  ;;  %v11301_v23 = vrot.slane %v3052_v21, %v9797_v33 }
 0x3d9   :  { %14503 = vst [vmem:[#allocation44_spill] sm:$0xff] %v11291_v18  ;;  %v3989_v15 = vrot.slane %v3988_v30, 1  ;;  %v7072_v40 = vsel %vm6791_vm7, %v10975_v35, %v7071_v13  ;;  %v3055_v12 = vcombine.high %v2563_v0, %v2563_v0  ;;  %v3949_v51 = vsel %vm3262_vm2, %v2563_v0, 0.0 }
 0x3da   :  { %v11298_v14 = vsel %vm6783_vm3, %v6960_v46, %v5143_v49  ;;  %v3983_v50 = vadd.f32 %v3982_v26, %v3981_v7  ;;  %v7073_v54 = vsel %vm6793_vm8, %v11279_v43, %v7072_v40  ;;  %v3950_v46 = vrot.slane %v3949_v51, 4 }
 0x3db   :  { %14505 = vst [vmem:[#allocation31_spill] sm:$0xff] %v11298_v14  ;;  %v3990_v24 = vadd.f32 %v3989_v15, %v3988_v30  ;;  %v7074_v10 = vsel %vm6795_vm9, %v11301_v23, %v7073_v54  ;;  %v5730_v7 = vrot.slane %v2563_v0, %v9803_v34  ;;  %v3956_v30 = vsel %vm3262_vm2, %v3055_v12, 0.0  ;;  %v11323_v0 = vpop.f32.mrb[133].mxu0 }
 0x3dc   :  { %v5976_v61 = vsub.f32 %v3983_v50, %v5734_v63  ;;  %7114 = vrot.lane.b32.xlu0 %v7074_v10, %s8795_s24  ;;  %v11315_v26 = vrot.slane %v3055_v12, %v9820_v2  ;;  %v3951_v15 = vadd.f32 %v3950_v46, %v3949_v51  ;;  %v3957_v13 = vrot.slane %v3956_v30, 4  ;;  %14506 = vst [vmem:[#allocation64_spill] sm:$0xff] %v11323_v0  ;;  %v14507_v10 = vld [vmem:[#allocation42_spill] sm:$0xff] }
 0x3dd   :  { %v6424_v49 = vsub.f32 %v3990_v24, %v6182_v4  ;;  %v11318_v50 = vsel %vm6783_vm3, %v5734_v63, %v5730_v7  ;;  %v7614_v40 = vsel %vm6787_vm5, %v10949_v6, %v10941_v8  ;;  %v11333_v51 = vadd.f32 %v10881_v22, %v14507_v10  ;;  %v11341_v6 = vpop.f32.mrb[134].mxu0 }
 0x3de   :  { %v6040_v24 = vmul.f32 0.33333334, %v5976_v61  ;;  %v11327_v54 = vsel %vm6783_vm3, %v6182_v4, %v11315_v26  ;;  %v7615_v12 = vsel %vm6789_vm6, %v11087_v11, %v7614_v40  ;;  %v3952_v63 = vrot.slane %v3951_v15, 2  ;;  %14510 = vst [vmem:[#allocation73_spill] sm:$0xff] %v11341_v6  ;;  %v14512_v4 = vld [vmem:[#allocation46_spill] sm:$0xff] }
 0x3df   :  { %14508 = vst [vmem:[#allocation35_spill] sm:$0xff] %v11333_v51  ;;  %v3958_v46 = vadd.f32 %v3957_v13, %v3956_v30  ;;  %v11337_v57 = vrot.slane %v11168_v31, %v9820_v2  ;;  %v7616_v8 = vsel %vm6791_vm7, %v11040_v5, %v7615_v12  ;;  %v3060_v61 = vcombine.high %v11333_v51, %v11333_v51  ;;  %v11350_v13 = vpop.f32.mrb[135].mxu0 }
 0x3e0   :  { %v7617_v11 = vsel %vm6793_vm8, %v11214_v3, %v7616_v8  ;;  %v4019_v30 = vsel %vm3262_vm2, %v11333_v51, 0.0  ;;  %14511 = vst [vmem:[#allocation74_spill] sm:$0xff] %v11350_v13  ;;  %v3953_v31 = vadd.f32 %v3952_v63, %v3951_v15  ;;  %v6488_v10 = vmul.f32 0.33333334, %v6424_v49  ;;  %v11368_v0 = vpop.f32.mrb[136].mxu0 }
 0x3e1   :  { %14509 = vst [vmem:[#allocation42_spill] sm:$0xff] %v11337_v57  ;;  %v3959_v40 = vrot.slane %v3958_v46, 2  ;;  %v7618_v5 = vsel %vm6795_vm9, %v11337_v57, %v7617_v11  ;;  %v4020_v12 = vrot.slane %v4019_v30, 4  ;;  %v7504_v19 = vrot.slane %v6040_v24, 7  ;;  %v14513_v24 = vld [vmem:[#allocation50_spill] sm:$0xff]  ;;  %14514 = vst [vmem:[#allocation46_spill] sm:$0xff] %v11368_v0 }
 0x3e2   :  { %7658 = vrot.lane.b32.xlu1 %v7618_v5, %s8795_s24  ;;  %v4026_v8 = vsel %vm3262_vm2, %v3060_v61, 0.0  ;;  %v11358_v20 = vadd.f32 %v10881_v22, %v14512_v4  ;;  %v3954_v45 = vrot.slane %v3953_v31, 1  ;;  %v2587_v11 = vadd.f32 %v10881_v22, %v14513_v24  ;;  %v11375_v60 = vpop.f32.mrb[137].mxu0 }
 0x3e3   :  { %v3960_v21 = vadd.f32 %v3959_v40, %v3958_v46  ;;  %v4021_v18 = vadd.f32 %v4020_v12, %v4019_v30  ;;  %v4027_v14 = vrot.slane %v4026_v8, 4  ;;  %v7784_v46 = vrot.slane %v6488_v10, 7 }
 0x3e4   :  { %v3058_v15 = vcombine.high %v11358_v20, %v11358_v20  ;;  %v3991_v63 = vsel %vm3262_vm2, %v11358_v20, 0.0  ;;  %v6634_v49 = vrot.slane %v11358_v20, %v9773_v28  ;;  %v3955_v5 = vadd.f32 %v3954_v45, %v3953_v31 }
 0x3e5   :  { %v3961_v13 = vrot.slane %v3960_v21, 1  ;;  %v4022_v4 = vrot.slane %v4021_v18, 2  ;;  %v4028_v6 = vadd.f32 %v4027_v14, %v4026_v8  ;;  %v3992_v30 = vrot.slane %v3991_v63, 4 }
 0x3e6   :  { %v3998_v40 = vsel %vm3262_vm2, %v3058_v15, 0.0  ;;  %v11373_v12 = vsel %vm6785_vm4, %v6634_v49, %v11248_v27  ;;  %v5975_v57 = vsub.f32 %v3955_v5, %v5730_v7  ;;  %v3061_v58 = vcombine.high %v2587_v11, %v2587_v11 }
 0x3e7   :  { %14515 = vst [vmem:[#allocation50_spill] sm:$0xff] %v11373_v12  ;;  %v3962_v52 = vadd.f32 %v3961_v13, %v3960_v21  ;;  %v4023_v3 = vadd.f32 %v4022_v4, %v4021_v18  ;;  %v4029_v24 = vrot.slane %v4028_v6, 2  ;;  %v3993_v45 = vadd.f32 %v3992_v30, %v3991_v63 }
 0x3e8   :  { %v3999_v31 = vrot.slane %v3998_v40, 4  ;;  %v4033_v14 = vsel %vm3262_vm2, %v2587_v11, 0.0  ;;  %v6039_v8 = vmul.f32 0.33333334, %v5975_v57  ;;  %v4040_v49 = vsel %vm3262_vm2, %v3061_v58, 0.0 }
 0x3e9   :  { %v6423_v10 = vsub.f32 %v3962_v52, %v11315_v26  ;;  %v4024_v0 = vrot.slane %v4023_v3, 1  ;;  %v4030_v38 = vadd.f32 %v4029_v24, %v4028_v6  ;;  %v3994_v55 = vrot.slane %v3993_v45, 2 }
 0x3ea   :  { %v4000_v17 = vadd.f32 %v3999_v31, %v3998_v40  ;;  %v4034_v27 = vrot.slane %v4033_v14, 4  ;;  %v11381_v7 = vsel %vm6783_vm3, %v7504_v19, %v6039_v8  ;;  %v4041_v4 = vrot.slane %v4040_v49, 4  ;;  %v14520_v31 = vld [vmem:[#allocation61_spill] sm:$0xff] }
 0x3eb   :  { %v6487_v12 = vmul.f32 0.33333334, %v6423_v10  ;;  %v4025_v18 = vadd.f32 %v4024_v0, %v4023_v3  ;;  %v4031_v21 = vrot.slane %v4030_v38, 1  ;;  %v3995_v13 = vadd.f32 %v3994_v55, %v3993_v45 }
 0x3ec   :  { %v4001_v63 = vrot.slane %v4000_v17, 2  ;;  %v4035_v5 = vadd.f32 %v4034_v27, %v4033_v14  ;;  %v14516_v52 = vrot.slane %v11287_v16, 4  ;;  %v11392_v30 = vrot.slane %v3060_v61, %v9797_v33 }
 0x3ed   :  { %v11389_v26 = vsel %vm6783_vm3, %v7784_v46, %v6487_v12  ;;  %v4032_v6 = vadd.f32 %v4031_v21, %v4030_v38  ;;  %v3996_v19 = vrot.slane %v3995_v13, 1  ;;  %v4042_v0 = vadd.f32 %v4041_v4, %v4040_v49 }
 0x3ee   :  { %v11386_v57 = vadd.f32 %v14516_v52, %v11287_v16  ;;  %14517 = vst [vmem:[#allocation75_spill] sm:$0xff] %v11389_v26  ;;  %v4002_v40 = vadd.f32 %v4001_v63, %v4000_v17  ;;  %v4036_v3 = vrot.slane %v4035_v5, 2  ;;  %v14518_v55 = vsub.f32 %v11270_v62, %v11233_v36 }
 0x3ef   :  { %v5082_v45 = vsub.f32 %v4025_v18, %v11333_v51  ;;  %v5530_v16 = vsub.f32 %v4032_v6, %v11392_v30  ;;  %v2579_v46 = vadd.f32 %v10881_v22, %v14520_v31  ;;  %v3997_v38 = vadd.f32 %v3996_v19, %v3995_v13 }
 0x3f0   :  { %v11397_v24 = vmul.f32 0.33333334, %v14518_v55  ;;  %v4003_v12 = vrot.slane %v4002_v40, 1  ;;  %v4037_v61 = vadd.f32 %v4036_v3, %v4035_v5  ;;  %v4043_v14 = vrot.slane %v4042_v0, 2 }
 0x3f1   :  { %v11404_v17 = vrot.slane %v3058_v15, %v9797_v33  ;;  %v11407_v8 = vrot.slane %v2587_v11, %v9803_v34  ;;  %v3059_v36 = vcombine.high %v2579_v46, %v2579_v46  ;;  %v4005_v62 = vsel %vm3262_vm2, %v2579_v46, 0.0 }
 0x3f2   :  { %14519 = vst [vmem:[#allocation76_spill] sm:$0xff] %v11397_v24  ;;  %v4004_v10 = vadd.f32 %v4003_v12, %v4002_v40  ;;  %v5081_v27 = vsub.f32 %v3997_v38, %v11358_v20  ;;  %v4038_v49 = vrot.slane %v4037_v61, 1  ;;  %v4044_v18 = vadd.f32 %v4043_v14, %v4042_v0  ;;  %v14523_v38 = vld [vmem:[#allocation5_spill] sm:$0xff] }
 0x3f3   :  { %v11411_v21 = vmul.f32 0.33333334, %v5082_v45  ;;  %v4006_v13 = vrot.slane %v4005_v62, 4  ;;  %v4012_v63 = vsel %vm3262_vm2, %v3059_v36, 0.0  ;;  %v5738_v5 = vrot.slane %v2579_v46, %v9803_v34  ;;  %v11448_v14 = vld [vmem:[%s14105_s6] ss:$0 sm:$0xff] }
 0x3f4   :  { %v5529_v15 = vsub.f32 %v4004_v10, %v11404_v17  ;;  %v4039_v4 = vadd.f32 %v4038_v49, %v4037_v61  ;;  %v4045_v11 = vrot.slane %v4044_v18, 1  ;;  %v11417_v52 = vrot.slane %v3061_v58, %v9820_v2  ;;  %v11458_v49 = vpop.f32.mrb[138].mxu0 }
 0x3f5   :  { %14521 = vst [vmem:[#allocation61_spill] sm:$0xff] %v11411_v21  ;;  %v4007_v6 = vadd.f32 %v4006_v13, %v4005_v62  ;;  %v4013_v19 = vrot.slane %v4012_v63, 4  ;;  %v11420_v20 = vrot.slane %v3059_v36, %v9820_v2  ;;  %v11424_v40 = vsel %vm6785_vm4, %v5738_v5, %v11318_v50  ;;  %v14526_v36 = vld [vmem:[#allocation13_spill] sm:$0xff]  ;;  %14528 = vst [vmem:[#allocation79_spill] sm:$0xff] %v11458_v49 }
 0x3f6   :  { %v11426_v3 = vmul.f32 0.33333334, %v5530_v16  ;;  %v11428_v0 = vmul.f32 0.33333334, %v5081_v27  ;;  %v4046_v55 = vadd.f32 %v4045_v11, %v4044_v18  ;;  %v5978_v45 = vsub.f32 %v4039_v4, %v11407_v8 }
 0x3f7   :  { %v4008_v31 = vrot.slane %v4007_v6, 2  ;;  %v4014_v46 = vadd.f32 %v4013_v19, %v4012_v63  ;;  %v11434_v58 = vsel %vm6785_vm4, %v11420_v20, %v11327_v54  ;;  %v11438_v12 = vadd.f32 %v10881_v22, %v14523_v38 }
 0x3f8   :  { %14522 = vst [vmem:[#allocation77_spill] sm:$0xff] %v11426_v3  ;;  %v11442_v16 = vmul.f32 0.33333334, %v5529_v15  ;;  %v6426_v61 = vsub.f32 %v4046_v55, %v11417_v52  ;;  %v11452_v54 = vadd.f32 %v11448_v14, %v14526_v36  ;;  %v11463_v4 = vmul.f32 0.33333334, %v5978_v45 }
 0x3f9   :  { %14524 = vst [vmem:[#allocation5_spill] sm:$0xff] %v11438_v12  ;;  %v4009_v62 = vadd.f32 %v4008_v31, %v4007_v6  ;;  %v4015_v10 = vrot.slane %v4014_v46, 2  ;;  %v3064_v22 = vcombine.high %v11438_v12, %v11438_v12  ;;  %v4075_v27 = vsel %vm3262_vm2, %v11438_v12, 0.0 }
 0x3fa   :  { %14525 = vst [vmem:[#allocation78_spill] sm:$0xff] %v11442_v16  ;;  %14527 = vst [vmem:[#allocation13_spill] sm:$0xff] %v11452_v54  ;;  %v4076_v15 = vrot.slane %v4075_v27, 4  ;;  %v3062_v36 = vcombine.high %v11452_v54, %v11452_v54  ;;  %v11469_v50 = vmul.f32 0.33333334, %v6426_v61  ;;  %v4047_v63 = vsel %vm3262_vm2, %v11452_v54, 0.0 }
 0x3fb   :  { %v4010_v11 = vrot.slane %v4009_v62, 1  ;;  %v4016_v6 = vadd.f32 %v4015_v10, %v4014_v46  ;;  %v4082_v19 = vsel %vm3262_vm2, %v3064_v22, 0.0  ;;  %v4048_v26 = vrot.slane %v4047_v63, 4 }
 0x3fc   :  { %v4077_v31 = vadd.f32 %v4076_v15, %v4075_v27  ;;  %v4083_v38 = vrot.slane %v4082_v19, 4  ;;  %14529 = vst [vmem:[#allocation80_spill] sm:$0xff] %v11469_v50  ;;  %v4054_v46 = vsel %vm3262_vm2, %v3062_v36, 0.0  ;;  %v11482_v10 = vrot.slane %v3064_v22, %v9797_v33 }
 0x3fd   :  { %v4011_v18 = vadd.f32 %v4010_v11, %v4009_v62  ;;  %v4017_v13 = vrot.slane %v4016_v6, 1  ;;  %v4055_v15 = vrot.slane %v4054_v46, 4  ;;  %v4049_v16 = vadd.f32 %v4048_v26, %v4047_v63 }
 0x3fe   :  { %v4078_v45 = vrot.slane %v4077_v31, 2  ;;  %v4084_v51 = vadd.f32 %v4083_v38, %v4082_v19  ;;  %v14530_v62 = vrot.slane %v11177_v44, 2  ;;  %v14531_v26 = vsub.f32 %v11245_v1, %v11142_v42 }
 0x3ff   :  { %v4018_v55 = vadd.f32 %v4017_v13, %v4016_v6  ;;  %v5977_v27 = vsub.f32 %v4011_v18, %v5738_v5  ;;  %v4056_v49 = vadd.f32 %v4055_v15, %v4054_v46  ;;  %v4050_v5 = vrot.slane %v4049_v16, 2 }
 0x400   :  { %v4079_v3 = vadd.f32 %v4078_v45, %v4077_v31  ;;  %v3911_v11 = vadd.f32 %v14530_v62, %v11177_v44  ;;  %v4085_v38 = vrot.slane %v4084_v51, 2  ;;  %v5141_v63 = vmul.f32 0.33333334, %v14531_v26  ;;  %v14532_v31 = vld [vmem:[#allocation39_spill] sm:$0xff] }
 0x401   :  { %v6041_v24 = vmul.f32 0.33333334, %v5977_v27  ;;  %v6425_v19 = vsub.f32 %v4018_v55, %v11420_v20  ;;  %v4057_v6 = vrot.slane %v4056_v49, 2  ;;  %v14533_v44 = vrot.slane %v10933_v32, 6  ;;  %v11491_v20 = vpop.f32.mrb[139].mxu0 }
 0x402   :  { %v4080_v21 = vrot.slane %v4079_v3, 1  ;;  %v3912_v18 = vrot.slane %v3911_v11, 1  ;;  %v4051_v46 = vadd.f32 %v4050_v5, %v4049_v16  ;;  %v11494_v22 = vrot.slane %v3062_v36, %v9797_v33 }
 0x403   :  { %v7506_v13 = vrot.slane %v6041_v24, 6  ;;  %v6949_v45 = vsel %vm6785_vm4, %v14533_v44, %v14532_v31  ;;  %v11500_v15 = vadd.f32 %v4085_v38, %v4084_v51  ;;  %v4058_v1 = vadd.f32 %v4057_v6, %v4056_v49 }
 0x404   :  { %v4081_v55 = vadd.f32 %v4080_v21, %v4079_v3  ;;  %v3913_v27 = vadd.f32 %v3912_v18, %v3911_v11  ;;  %v14534_v62 = vrot.slane %v10921_v56, 5  ;;  %v4052_v31 = vrot.slane %v4051_v46, 1 }
 0x405   :  { %v11498_v24 = vsel %vm6785_vm4, %v7506_v13, %v11381_v7  ;;  %v14535_v3 = vrot.slane %v11077_v41, 4  ;;  %v4059_v36 = vrot.slane %v4058_v1, 1  ;;  %v14536_v7 = vrot.slane %v11014_v53, 3 }
 0x406   :  { %v6951_v32 = vsel %vm6787_vm5, %v14534_v62, %v6949_v45  ;;  %v5084_v26 = vsub.f32 %v4081_v55, %v11438_v12  ;;  %v5078_v21 = vsub.f32 %v3913_v27, %v11138_v29  ;;  %v6956_v11 = vrot.slane %v5141_v63, 2 }
 0x407   :  { %v6953_v16 = vsel %vm6789_vm6, %v14535_v3, %v6951_v32  ;;  %v2603_v56 = vadd.f32 %v11448_v14, %v10953_v59  ;;  %v11515_v49 = vmul.f32 0.33333334, %v6425_v19  ;;  %v2595_v18 = vadd.f32 %v11448_v14, %v10988_v39  ;;  %v14545_v19 = vld [vmem:[#allocation36_spill] sm:$0xff] }
 0x408   :  { %v6955_v51 = vsel %vm6791_vm7, %v14536_v7, %v6953_v16  ;;  %v11517_v38 = vmul.f32 0.33333334, %v5084_v26  ;;  %v5142_v5 = vmul.f32 0.33333334, %v5078_v21  ;;  %v11521_v41 = vadd.f32 %v4059_v36, %v4058_v1  ;;  %v11540_v16 = vpop.f32.mrb[140].mxu0 }
 0x409   :  { %14537 = vst [vmem:[#allocation39_spill] sm:$0xff] %v11515_v49  ;;  %v6957_v13 = vsel %vm6793_vm8, %v6956_v11, %v6955_v51  ;;  %v3065_v6 = vcombine.high %v2603_v56, %v2603_v56  ;;  %v4089_v53 = vsel %vm3262_vm2, %v2603_v56, 0.0  ;;  %v4053_v44 = vadd.f32 %v4052_v31, %v4051_v46  ;;  %14538 = vst [vmem:[#allocation81_spill] sm:$0xff] %v11540_v16 }
 0x40a   :  { %v6958_v45 = vrot.slane %v5142_v5, 1  ;;  %v4090_v59 = vrot.slane %v4089_v53, 4  ;;  %v3063_v31 = vcombine.high %v2595_v18, %v2595_v18  ;;  %v4061_v21 = vsel %vm3262_vm2, %v2595_v18, 0.0 }
 0x40b   :  { %v4096_v27 = vsel %vm3262_vm2, %v3065_v6, 0.0  ;;  %v11538_v3 = vrot.slane %v2595_v18, %v9803_v34  ;;  %v5083_v36 = vsub.f32 %v4053_v44, %v11452_v54  ;;  %v4062_v11 = vrot.slane %v4061_v21, 4 }
 0x40c   :  { %v6959_v62 = vsel %vm6795_vm9, %v6958_v45, %v6957_v13  ;;  %v4091_v32 = vadd.f32 %v4090_v59, %v4089_v53  ;;  %v4097_v26 = vrot.slane %v4096_v27, 4  ;;  %v11544_v5 = vrot.slane %v2603_v56, %v9803_v34  ;;  %v11553_v59 = vpop.f32.mrb[141].mxu0 }
 0x40d   :  { %7034 = vrot.lane.b32.xlu1 %v6959_v62, %s8796_s25  ;;  %v4068_v13 = vsel %vm3262_vm2, %v3063_v31, 0.0  ;;  %v7357_v53 = vsel %vm6787_vm5, %v11407_v8, %v11424_v40  ;;  %v14540_v18 = vrot.slane %v10998_v9, 1  ;;  %14541 = vst [vmem:[#allocation83_spill] sm:$0xff] %v11553_v59  ;;  %v4063_v61 = vadd.f32 %v4062_v11, %v4061_v21  ;;  %v14544_v11 = vld [vmem:[#allocation63_spill] sm:$0xff] }
 0x40e   :  { %v4092_v7 = vrot.slane %v4091_v32, 2  ;;  %v4098_v51 = vadd.f32 %v4097_v26, %v4096_v27  ;;  %14539 = vst [vmem:[#allocation82_spill] sm:$0xff] %v11544_v5  ;;  %v4069_v27 = vrot.slane %v4068_v13, 4  ;;  %v11557_v56 = vsel %vm6789_vm6, %v11538_v3, %v7357_v53 }
 0x40f   :  { %v3864_v45 = vadd.f32 %v14540_v18, %v10998_v9  ;;  %14542 = vst [vmem:[#allocation84_spill] sm:$0xff] %v11557_v56  ;;  %v14543_v26 = vrot.slane %v11179_v25, 2  ;;  %v3917_v8 = vrot.slane %v11386_v57, 2  ;;  %v4064_v18 = vrot.slane %v4063_v61, 2 }
 0x410   :  { %v4093_v62 = vadd.f32 %v4092_v7, %v4091_v32  ;;  %v4099_v44 = vrot.slane %v4098_v51, 2  ;;  %v4070_v1 = vadd.f32 %v4069_v27, %v4068_v13  ;;  %v14546_v53 = vrot.slane %v14545_v19, 7 }
 0x411   :  { %v3890_v39 = vadd.f32 %v14543_v26, %v11179_v25  ;;  %v5524_v40 = vsub.f32 %v3864_v45, %v10975_v35  ;;  %v3918_v21 = vadd.f32 %v3917_v8, %v11386_v57  ;;  %v4065_v25 = vadd.f32 %v4064_v18, %v4063_v61  ;;  %v14547_v35 = vld [vmem:[#allocation66_spill] sm:$0xff] }
 0x412   :  { %v4094_v63 = vrot.slane %v4093_v62, 1  ;;  %v4100_v9 = vadd.f32 %v4099_v44, %v4098_v51  ;;  %v7227_v46 = vsel %vm6783_vm3, %v14546_v53, %v14544_v11  ;;  %v4071_v26 = vrot.slane %v4070_v1, 2 }
 0x413   :  { %v3891_v32 = vrot.slane %v3890_v39, 1  ;;  %v5588_v7 = vmul.f32 0.33333334, %v5524_v40  ;;  %v3919_v54 = vrot.slane %v3918_v21, 1  ;;  %v14548_v45 = vrot.slane %v14547_v35, 6  ;;  %v14556_v35 = vld [vmem:[#allocation67_spill] sm:$0xff] }
 0x414   :  { %v4095_v55 = vadd.f32 %v4094_v63, %v4093_v62  ;;  %v4101_v56 = vrot.slane %v4100_v9, 1  ;;  %v7232_v13 = vrot.slane %v11082_v47, 4  ;;  %v11574_v57 = vrot.slane %v3065_v6, %v9820_v2  ;;  %v14549_v62 = vld [vmem:[#allocation65_spill] sm:$0xff] }
 0x415   :  { %v3892_v12 = vadd.f32 %v3891_v32, %v3890_v39  ;;  %v7229_v51 = vsel %vm6785_vm4, %v14548_v45, %v7227_v46  ;;  %v4066_v27 = vrot.slane %v4065_v25, 1  ;;  %v4072_v19 = vadd.f32 %v4071_v26, %v4070_v1  ;;  %v14555_v26 = vld [vmem:[#allocation70_spill] sm:$0xff] }
 0x416   :  { %v4102_v44 = vadd.f32 %v4101_v56, %v4100_v9  ;;  %v11576_v8 = vmul.f32 0.33333334, %v5083_v36  ;;  %v3920_v63 = vadd.f32 %v3919_v54, %v3918_v21  ;;  %v14550_v39 = vrot.slane %v14549_v62, 5  ;;  %v11584_v9 = vpop.f32.mrb[142].mxu0 }
 0x417   :  { %v5525_v61 = vsub.f32 %v3892_v12, %v11279_v43  ;;  %v5980_v18 = vsub.f32 %v4095_v55, %v11544_v5  ;;  %v4073_v47 = vrot.slane %v4072_v19, 1  ;;  %v7234_v56 = vrot.slane %v5588_v7, 3  ;;  %14551 = vst [vmem:[#allocation63_spill] sm:$0xff] %v11584_v9 }
 0x418   :  { %v7231_v40 = vsel %vm6787_vm5, %v14550_v39, %v7229_v51  ;;  %v6428_v46 = vsub.f32 %v4102_v44, %v11574_v57  ;;  %v5526_v6 = vsub.f32 %v3920_v63, %v11301_v23  ;;  %v14552_v43 = vsub.f32 %v11253_v37, %v11192_v48  ;;  %v14560_v63 = vld [vmem:[#allocation21_spill] sm:$0xff] }
 0x419   :  { %v5589_v1 = vmul.f32 0.33333334, %v5525_v61  ;;  %v7233_v36 = vsel %vm6789_vm6, %v7232_v13, %v7231_v40  ;;  %v14553_v54 = vsub.f32 %v11521_v41, %v11494_v22  ;;  %v4067_v55 = vadd.f32 %v4066_v27, %v4065_v25  ;;  %v14558_v25 = vld [vmem:[#allocation24_spill] sm:$0xff] }
 0x41a   :  { %v6038_v12 = vmul.f32 0.33333334, %v14552_v43  ;;  %v4074_v21 = vadd.f32 %v4073_v47, %v4072_v19  ;;  %v11597_v7 = vrot.slane %v3063_v31, %v9820_v2  ;;  %v5590_v11 = vmul.f32 0.33333334, %v5526_v6  ;;  %v11622_v43 = vpop.f32.mrb[143].mxu0 }
 0x41b   :  { %v11594_v32 = vmul.f32 0.33333334, %v14553_v54  ;;  %v7235_v23 = vsel %vm6791_vm7, %v7234_v56, %v7233_v36  ;;  %v7236_v53 = vrot.slane %v5589_v1, 2  ;;  %v14557_v45 = vrot.slane %v14556_v35, 5  ;;  %v14565_v1 = vld [vmem:[#allocation27_spill] sm:$0xff]  ;;  %14566 = vst [vmem:[#allocation65_spill] sm:$0xff] %v11622_v43 }
 0x41c   :  { %v11605_v13 = vmul.f32 0.33333334, %v5980_v18  ;;  %v6427_v41 = vsub.f32 %v4074_v21, %v11597_v7  ;;  %v14559_v44 = vrot.slane %v14558_v25, 4  ;;  %v7238_v19 = vrot.slane %v5590_v11, 1  ;;  %v14563_v18 = vld [vmem:[#allocation9_spill] sm:$0xff] }
 0x41d   :  { %14554 = vst [vmem:[#allocation36_spill] sm:$0xff] %v11594_v32  ;;  %v7495_v37 = vsel %vm6787_vm5, %v14557_v45, %v14555_v26  ;;  %v7237_v27 = vsel %vm6793_vm8, %v7236_v53, %v7235_v23  ;;  %v14561_v61 = vrot.slane %v14560_v63, 3  ;;  %v7502_v39 = vrot.slane %v6038_v12, 1  ;;  %v14567_v11 = vld [vmem:[#allocation45_spill] sm:$0xff]  ;;  %v14568_v23 = vld [vmem:[#allocation26_spill] sm:$0xff] }
 0x41e   :  { %v7497_v31 = vsel %vm6789_vm6, %v14559_v44, %v7495_v37  ;;  %v11615_v40 = vmul.f32 0.33333334, %v6428_v46  ;;  %v5979_v47 = vsub.f32 %v4067_v55, %v11538_v3  ;;  %v14564_v56 = vrot.slane %v14563_v18, 2  ;;  %v14570_v46 = vld [vmem:[#allocation62_spill] sm:$0xff]  ;;  %v14571_v26 = vld [vmem:[#allocation69_spill] sm:$0xff]  ;;  %v14573_v37 = vld [vmem:[#allocation68_spill] sm:$0xff] }
 0x41f   :  { %v7499_v62 = vsel %vm6791_vm7, %v14561_v61, %v7497_v31  ;;  %v3933_v36 = vrot.slane %v14565_v1, 1  ;;  %v7239_v54 = vsel %vm6795_vm9, %v7238_v19, %v7237_v27  ;;  %v14569_v53 = vsub.f32 %v14567_v11, %v14568_v23  ;;  %v14575_v31 = vld [vmem:[#allocation6_spill] sm:$0xff]  ;;  %v14577_v19 = vld [vmem:[#allocation17_spill] sm:$0xff] }
 0x420   :  { %14562 = vst [vmem:[#allocation66_spill] sm:$0xff] %v11615_v40  ;;  %v7501_v6 = vsel %vm6793_vm8, %v14564_v56, %v7499_v62  ;;  %v14572_v35 = vrot.slane %v14571_v26, 6  ;;  %7314 = vrot.lane.b32.xlu0 %v7239_v54, %s8797_s26  ;;  %v14574_v25 = vrot.slane %v14573_v37, 5  ;;  %v11642_v27 = vadd.f32 %v11448_v14, %v14575_v31  ;;  %v14581_v56 = vld [vmem:[#allocation72_spill] sm:$0xff] }
 0x421   :  { %v7503_v21 = vsel %vm6795_vm9, %v7502_v39, %v7501_v6  ;;  %v6485_v12 = vmul.f32 0.33333334, %v14569_v53  ;;  %v3934_v45 = vadd.f32 %v3933_v36, %v14565_v1  ;;  %v14578_v63 = vrot.slane %v14577_v19, 4  ;;  %v14579_v39 = vld [vmem:[#allocation49_spill] sm:$0xff]  ;;  %v14582_v36 = vld [vmem:[#allocation42_spill] sm:$0xff] }
 0x422   :  { %v7773_v3 = vsel %vm6785_vm4, %v14572_v35, %v14570_v46  ;;  %7578 = vrot.lane.b32.xlu1 %v7503_v21, %s8796_s25  ;;  %14576 = vst [vmem:[#allocation70_spill] sm:$0xff] %v11642_v27  ;;  %v11649_v18 = vadd.f32 %v11448_v14, %v14579_v39  ;;  %v2619_v6 = vadd.f32 %v11448_v14, %v14581_v56  ;;  %v11653_v1 = vmul.f32 0.33333334, %v5979_v47  ;;  %v14583_v21 = vld [vmem:[#allocation7_spill] sm:$0xff]  ;;  %v14585_v47 = vld [vmem:[#allocation54_spill] sm:$0xff] }
 0x423   :  { %v7775_v44 = vsel %vm6787_vm5, %v14574_v25, %v7773_v3  ;;  %v7780_v62 = vrot.slane %v6485_v12, 2  ;;  %v6422_v54 = vsub.f32 %v3934_v45, %v14582_v36  ;;  %v14584_v11 = vrot.slane %v14583_v21, 3  ;;  %v11678_v36 = vpop.f32.mrb[144].mxu0 }
 0x424   :  { %v7777_v61 = vsel %vm6789_vm6, %v14578_v63, %v7775_v44  ;;  %14580 = vst [vmem:[#allocation67_spill] sm:$0xff] %v11649_v18  ;;  %v4131_v53 = vsel %vm3262_vm2, %v11642_v27, 0.0  ;;  %v11664_v46 = vcombine.high %v11649_v18, %v11649_v18  ;;  %v4103_v26 = vsel %vm3262_vm2, %v11649_v18, 0.0  ;;  %14587 = vst [vmem:[#allocation21_spill] sm:$0xff] %v11678_v36 }
 0x425   :  { %v7779_v23 = vsel %vm6791_vm7, %v14584_v11, %v7777_v61  ;;  %v2611_v35 = vadd.f32 %v11448_v14, %v14585_v47  ;;  %v6486_v3 = vmul.f32 0.33333334, %v6422_v54  ;;  %v4132_v45 = vrot.slane %v4131_v53, 4 }
 0x426   :  { %v7781_v12 = vsel %vm6793_vm8, %v7780_v62, %v7779_v23  ;;  %v4104_v37 = vrot.slane %v4103_v26, 4  ;;  %v11670_v25 = vcombine.high %v2619_v6, %v2619_v6  ;;  %v11673_v31 = vmul.f32 0.33333334, %v6427_v41 }
 0x427   :  { %v4110_v19 = vsel %vm3262_vm2, %v11664_v46, 0.0  ;;  %v4145_v63 = vsel %vm3262_vm2, %v2619_v6, 0.0  ;;  %v7782_v61 = vrot.slane %v6486_v3, 1  ;;  %v3067_v11 = vcombine.high %v2611_v35, %v2611_v35 }
 0x428   :  { %14586 = vst [vmem:[#allocation24_spill] sm:$0xff] %v11673_v31  ;;  %v4105_v62 = vadd.f32 %v4104_v37, %v4103_v26  ;;  %v4111_v39 = vrot.slane %v4110_v19, 4  ;;  %v4146_v56 = vrot.slane %v4145_v63, 4  ;;  %v4152_v21 = vsel %vm3262_vm2, %v11670_v25, 0.0 }
 0x429   :  { %v4117_v41 = vsel %vm3262_vm2, %v2611_v35, 0.0  ;;  %v7783_v23 = vsel %vm6795_vm9, %v7782_v61, %v7781_v12  ;;  %v11685_v47 = vadd.f32 %v4132_v45, %v4131_v53  ;;  %v4153_v3 = vrot.slane %v4152_v21, 4  ;;  %v11694_v12 = vpop.f32.mrb[145].mxu0  ;;  %v14590_v61 = vld [vmem:[#allocation40_spill] sm:$0xff] }
 0x42a   :  { %v4106_v44 = vrot.slane %v4105_v62, 2  ;;  %v4147_v55 = vadd.f32 %v4146_v56, %v4145_v63  ;;  %7858 = vrot.lane.b32.xlu0 %v7783_v23, %s8797_s26  ;;  %v4118_v37 = vrot.slane %v4117_v41, 4  ;;  %v4124_v54 = vsel %vm3262_vm2, %v3067_v11, 0.0  ;;  %14588 = vst [vmem:[#allocation9_spill] sm:$0xff] %v11694_v12  ;;  %v11704_v29 = vpop.f32.mrb[146].mxu0 }
 0x42b   :  { %v11690_v51 = vadd.f32 %v4111_v39, %v4110_v19  ;;  %v4125_v42 = vrot.slane %v4124_v54, 4  ;;  %v11697_v45 = vrot.slane %v2619_v6, %v9803_v34  ;;  %v11701_v56 = vadd.f32 %v11448_v14, %v14590_v61  ;;  %14591 = vst [vmem:[#allocation45_spill] sm:$0xff] %v11704_v29 }
 0x42c   :  { %v4148_v48 = vrot.slane %v4147_v55, 2  ;;  %v4107_v53 = vadd.f32 %v4106_v44, %v4105_v62  ;;  %v4119_v63 = vadd.f32 %v4118_v37, %v4117_v41  ;;  %v4154_v39 = vadd.f32 %v4153_v3, %v4152_v21  ;;  %v14592_v44 = vld [vmem:[#allocation57_spill] sm:$0xff] }
 0x42d   :  { %14589 = vst [vmem:[#allocation27_spill] sm:$0xff] %v11697_v45  ;;  %v4126_v26 = vadd.f32 %v4125_v42, %v4124_v54  ;;  %v3072_v12 = vcombine.high %v11701_v56, %v11701_v56  ;;  %v4187_v6 = vsel %vm3262_vm2, %v11701_v56, 0.0  ;;  %v11712_v62 = vadd.f32 %v11448_v14, %v14592_v44 }
 0x42e   :  { %v4149_v19 = vadd.f32 %v4148_v48, %v4147_v55  ;;  %v4120_v5 = vrot.slane %v4119_v63, 2  ;;  %v11716_v48 = vrot.slane %v2611_v35, %v9803_v34  ;;  %v4188_v42 = vrot.slane %v4187_v6, 4 }
 0x42f   :  { %v4127_v37 = vrot.slane %v4126_v26, 2  ;;  %v4108_v55 = vrot.slane %v4107_v53, 1  ;;  %v11719_v21 = vrot.slane %v3067_v11, %v9820_v2  ;;  %v4194_v3 = vsel %vm3262_vm2, %v3072_v12, 0.0 }
 0x430   :  { %14593 = vst [vmem:[#allocation26_spill] sm:$0xff] %v11716_v48  ;;  %v4121_v54 = vadd.f32 %v4120_v5, %v4119_v63  ;;  %v4150_v61 = vrot.slane %v4149_v19, 1  ;;  %v4155_v23 = vrot.slane %v4154_v39, 2  ;;  %v4189_v36 = vadd.f32 %v4188_v42, %v4187_v6 }
 0x431   :  { %14594 = vst [vmem:[#allocation62_spill] sm:$0xff] %v11719_v21  ;;  %v4128_v29 = vadd.f32 %v4127_v37, %v4126_v26  ;;  %v4195_v43 = vrot.slane %v4194_v3, 4  ;;  %v11723_v41 = vrot.slane %v3072_v12, %v9797_v33  ;;  %v3070_v35 = vcombine.high %v11712_v62, %v11712_v62 }
 0x432   :  { %v4122_v44 = vrot.slane %v4121_v54, 1  ;;  %v4190_v31 = vrot.slane %v4189_v36, 2  ;;  %v6662_v5 = vrot.slane %v11701_v56, %v9773_v28  ;;  %v4159_v11 = vsel %vm3262_vm2, %v11712_v62, 0.0 }
 0x433   :  { %v4129_v40 = vrot.slane %v4128_v29, 1  ;;  %v4196_v9 = vadd.f32 %v4195_v43, %v4194_v3  ;;  %v4160_v26 = vrot.slane %v4159_v11, 4  ;;  %v4166_v6 = vsel %vm3262_vm2, %v3070_v35, 0.0  ;;  %v14598_v43 = vld [vmem:[#allocation55_spill] sm:$0xff] }
 0x434   :  { %v4123_v63 = vadd.f32 %v4122_v44, %v4121_v54  ;;  %v4191_v12 = vadd.f32 %v4190_v31, %v4189_v36  ;;  %v4167_v42 = vrot.slane %v4166_v6, 4  ;;  %v11735_v50 = vrot.slane %v3070_v35, %v9797_v33 }
 0x435   :  { %v11732_v37 = vadd.f32 %v4129_v40, %v4128_v29  ;;  %v4197_v59 = vrot.slane %v4196_v9, 2  ;;  %v4161_v16 = vadd.f32 %v4160_v26, %v4159_v11  ;;  %v6658_v32 = vrot.slane %v11712_v62, %v9773_v28  ;;  %v11747_v40 = vpop.f32.mrb[147].mxu0 }
 0x436   :  { %v5981_v49 = vsub.f32 %v4123_v63, %v11716_v48  ;;  %v4192_v54 = vrot.slane %v4191_v12, 1  ;;  %v4168_v3 = vadd.f32 %v4167_v42, %v4166_v6  ;;  %v11745_v29 = vsel %vm6783_vm3, %v11723_v41, %v11735_v50  ;;  %14597 = vst [vmem:[#allocation6_spill] sm:$0xff] %v11747_v40 }
 0x437   :  { %14595 = vst [vmem:[#allocation69_spill] sm:$0xff] %v11732_v37  ;;  %14596 = vst [vmem:[#allocation68_spill] sm:$0xff] %v11745_v29  ;;  %v11749_v31 = vadd.f32 %v4108_v55, %v4107_v53  ;;  %v4198_v36 = vadd.f32 %v4197_v59, %v4196_v9  ;;  %v4162_v44 = vrot.slane %v4161_v16, 2  ;;  %v11752_v35 = vsel %vm6783_vm3, %v6662_v5, %v6658_v32 }
 0x438   :  { %v11754_v11 = vadd.f32 %v4150_v61, %v4149_v19  ;;  %v4193_v63 = vadd.f32 %v4192_v54, %v4191_v12  ;;  %v4169_v26 = vrot.slane %v4168_v3, 2  ;;  %v2635_v6 = vadd.f32 %v11448_v14, %v14598_v43 }
 0x439   :  { %v11758_v42 = vadd.f32 %v4155_v23, %v4154_v39  ;;  %v11760_v48 = vmul.f32 0.33333334, %v5981_v49  ;;  %v4199_v29 = vrot.slane %v4198_v36, 1  ;;  %v4163_v40 = vadd.f32 %v4162_v44, %v4161_v16 }
 0x43a   :  { %v5088_v53 = vsub.f32 %v4193_v63, %v11701_v56  ;;  %v4170_v59 = vadd.f32 %v4169_v26, %v4168_v3  ;;  %v3073_v9 = vcombine.high %v2635_v6, %v2635_v6  ;;  %v4201_v32 = vsel %vm3262_vm2, %v2635_v6, 0.0 }
 0x43b   :  { %v4200_v55 = vadd.f32 %v4199_v29, %v4198_v36  ;;  %v4164_v61 = vrot.slane %v4163_v40, 1  ;;  %v4202_v5 = vrot.slane %v4201_v32, 4  ;;  %v3068_v29 = vcombine.high %v11642_v27, %v11642_v27 }
 0x43c   :  { %v5152_v39 = vmul.f32 0.33333334, %v5088_v53  ;;  %v4171_v49 = vrot.slane %v4170_v59, 1  ;;  %v4208_v12 = vsel %vm3262_vm2, %v3073_v9, 0.0  ;;  %v11775_v36 = vrot.slane %v11664_v46, %v9797_v33 }
 0x43d   :  { %v5536_v16 = vsub.f32 %v4200_v55, %v11723_v41  ;;  %v4165_v56 = vadd.f32 %v4164_v61, %v4163_v40  ;;  %v4203_v43 = vadd.f32 %v4202_v5, %v4201_v32  ;;  %v4209_v54 = vrot.slane %v4208_v12, 4  ;;  %v14599_v32 = vld [vmem:[#allocation37_spill] sm:$0xff]  ;;  %v14600_v55 = vld [vmem:[#allocation23_spill] sm:$0xff] }
 0x43e   :  { %v4172_v44 = vadd.f32 %v4171_v49, %v4170_v59  ;;  %v6974_v63 = vrot.slane %v5152_v39, 7  ;;  %v5766_v40 = vrot.slane %v2635_v6, %v9803_v34  ;;  %v7076_v59 = vsel %vm6785_vm4, %v11404_v17, %v14599_v32 }
 0x43f   :  { %v5087_v26 = vsub.f32 %v4165_v56, %v11712_v62  ;;  %v4204_v53 = vrot.slane %v4203_v43, 2  ;;  %v4210_v23 = vadd.f32 %v4209_v54, %v4208_v12  ;;  %v2627_v61 = vadd.f32 %v11448_v14, %v14600_v55 }
 0x440   :  { %v5535_v41 = vsub.f32 %v4172_v44, %v11735_v50  ;;  %v6214_v39 = vrot.slane %v3073_v9, %v9820_v2  ;;  %v11787_v62 = vsel %vm3262_vm2, %v3068_v29, 0.0  ;;  %v11790_v12 = vrot.slane %v3068_v29, %v9797_v33  ;;  %v11799_v44 = vpop.f32.mrb[148].mxu0 }
 0x441   :  { %v5151_v5 = vmul.f32 0.33333334, %v5087_v26  ;;  %v4205_v49 = vadd.f32 %v4204_v53, %v4203_v43  ;;  %v4211_v46 = vrot.slane %v4210_v23, 2  ;;  %v7077_v50 = vsel %vm6787_vm5, %v11392_v30, %v7076_v59  ;;  %14602 = vst [vmem:[#allocation49_spill] sm:$0xff] %v11799_v44 }
 0x442   :  { %v3071_v6 = vcombine.high %v2627_v61, %v2627_v61  ;;  %v7078_v43 = vsel %vm6789_vm6, %v11494_v22, %v7077_v50  ;;  %v4173_v29 = vsel %vm3262_vm2, %v2627_v61, 0.0  ;;  %v5762_v30 = vrot.slane %v2627_v61, %v9803_v34 }
 0x443   :  { %v11795_v17 = vsel %vm6783_vm3, %v6974_v63, %v5151_v5  ;;  %v4206_v56 = vrot.slane %v4205_v49, 1  ;;  %v4212_v54 = vadd.f32 %v4211_v46, %v4210_v23  ;;  %v7079_v9 = vsel %vm6791_vm7, %v11482_v10, %v7078_v43 }
 0x444   :  { %14601 = vst [vmem:[#allocation17_spill] sm:$0xff] %v11795_v17  ;;  %v4180_v26 = vsel %vm3262_vm2, %v3071_v6, 0.0  ;;  %v7080_v63 = vsel %vm6793_vm8, %v11775_v36, %v7079_v9  ;;  %v4174_v23 = vrot.slane %v4173_v29, 4  ;;  %v6210_v55 = vrot.slane %v3071_v6, %v9820_v2  ;;  %v14610_v17 = vld [vmem:[#allocation73_spill] sm:$0xff] }
 0x445   :  { %v4207_v53 = vadd.f32 %v4206_v56, %v4205_v49  ;;  %v4213_v32 = vrot.slane %v4212_v54, 1  ;;  %v7081_v22 = vsel %vm6795_vm9, %v11790_v12, %v7080_v63  ;;  %v4181_v59 = vrot.slane %v4180_v26, 4  ;;  %v14604_v63 = vld [vmem:[#allocation48_spill] sm:$0xff] }
 0x446   :  { %v11812_v5 = vsel %vm6783_vm3, %v5766_v40, %v5762_v30  ;;  %v11814_v46 = vmul.f32 0.33333334, %v5536_v16  ;;  %7116 = vrot.lane.b32.xlu1 %v7081_v22, %s8795_s24  ;;  %v4175_v61 = vadd.f32 %v4174_v23, %v4173_v29  ;;  %v11818_v56 = vsel %vm6783_vm3, %v6214_v39, %v6210_v55 }
 0x447   :  { %v4214_v50 = vadd.f32 %v4213_v32, %v4212_v54  ;;  %v5984_v43 = vsub.f32 %v4207_v53, %v5766_v40  ;;  %v4182_v49 = vadd.f32 %v4181_v59, %v4180_v26  ;;  %v7621_v9 = vsel %vm6787_vm5, %v11417_v52, %v11434_v58 }
 0x448   :  { %14603 = vst [vmem:[#allocation72_spill] sm:$0xff] %v11814_v46  ;;  %v11825_v6 = vadd.f32 %v11448_v14, %v14604_v63  ;;  %v4176_v16 = vrot.slane %v4175_v61, 2  ;;  %v11829_v40 = vrot.slane %v11670_v25, %v9820_v2  ;;  %v7622_v54 = vsel %vm6789_vm6, %v11597_v7, %v7621_v9 }
 0x449   :  { %v6432_v3 = vsub.f32 %v4214_v50, %v6214_v39  ;;  %v4183_v29 = vrot.slane %v4182_v49, 2  ;;  %v7623_v26 = vsel %vm6791_vm7, %v11574_v57, %v7622_v54  ;;  %v6048_v53 = vmul.f32 0.33333334, %v5984_v43  ;;  %v14608_v54 = vld [vmem:[#allocation64_spill] sm:$0xff] }
 0x44a   :  { %14605 = vst [vmem:[#allocation42_spill] sm:$0xff] %v11825_v6  ;;  %14606 = vst [vmem:[#allocation7_spill] sm:$0xff] %v11829_v40  ;;  %v3076_v52 = vcombine.high %v11825_v6, %v11825_v6  ;;  %v4243_v58 = vsel %vm3262_vm2, %v11825_v6, 0.0  ;;  %v4139_v39 = vrot.slane %v11787_v62, 4  ;;  %v4177_v32 = vadd.f32 %v4176_v16, %v4175_v61 }
 0x44b   :  { %v7624_v25 = vsel %vm6793_vm8, %v11719_v21, %v7623_v26  ;;  %v4184_v23 = vadd.f32 %v4183_v29, %v4182_v49  ;;  %v4244_v22 = vrot.slane %v4243_v58, 4  ;;  %v11846_v50 = vmul.f32 0.33333334, %v5535_v41  ;;  %v11853_v29 = vpop.f32.mrb[149].mxu0 }
 0x44c   :  { %v7625_v7 = vsel %vm6795_vm9, %v11829_v40, %v7624_v25  ;;  %v4250_v57 = vsel %vm3262_vm2, %v3076_v52, 0.0  ;;  %v4178_v9 = vrot.slane %v4177_v32, 1  ;;  %v6496_v63 = vmul.f32 0.33333334, %v6432_v3  ;;  %14609 = vst [vmem:[#allocation40_spill] sm:$0xff] %v11853_v29 }
 0x44d   :  { %14607 = vst [vmem:[#allocation54_spill] sm:$0xff] %v11846_v50  ;;  %7660 = vrot.lane.b32.xlu0 %v7625_v7, %s8795_s24  ;;  %v4251_v43 = vrot.slane %v4250_v57, 4  ;;  %v4185_v61 = vrot.slane %v4184_v23, 1  ;;  %v4245_v16 = vadd.f32 %v4244_v22, %v4243_v58  ;;  %v11851_v49 = vadd.f32 %v11448_v14, %v14608_v54 }
 0x44e   :  { %v7518_v26 = vrot.slane %v6048_v53, 7  ;;  %v4179_v25 = vadd.f32 %v4178_v9, %v4177_v32  ;;  %v2651_v41 = vadd.f32 %v11448_v14, %v14610_v17  ;;  %v7798_v53 = vrot.slane %v6496_v63, 7  ;;  %v11864_v17 = vpop.f32.mrb[150].mxu0 }
 0x44f   :  { %v4252_v19 = vadd.f32 %v4251_v43, %v4250_v57  ;;  %v4186_v59 = vadd.f32 %v4185_v61, %v4184_v23  ;;  %v4246_v46 = vrot.slane %v4245_v16, 2  ;;  %v3074_v7 = vcombine.high %v11851_v49, %v11851_v49  ;;  %14611 = vst [vmem:[#allocation57_spill] sm:$0xff] %v11864_v17  ;;  %v11873_v63 = vpop.f32.mrb[151].mxu0 }
 0x450   :  { %v4215_v3 = vsel %vm3262_vm2, %v11851_v49, 0.0  ;;  %v5983_v58 = vsub.f32 %v4179_v25, %v5762_v30  ;;  %v6666_v50 = vrot.slane %v11851_v49, %v9773_v28  ;;  %v3077_v25 = vcombine.high %v2651_v41, %v2651_v41  ;;  %14613 = vst [vmem:[#allocation37_spill] sm:$0xff] %v11873_v63  ;;  %v11895_v63 = vpop.f32.mrb[152].mxu0 }
 0x451   :  { %v4253_v22 = vrot.slane %v4252_v19, 2  ;;  %v4216_v54 = vrot.slane %v4215_v3, 4  ;;  %v6431_v32 = vsub.f32 %v4186_v59, %v6210_v55  ;;  %v4247_v57 = vadd.f32 %v4246_v46, %v4245_v16  ;;  %14616 = vst [vmem:[#allocation48_spill] sm:$0xff] %v11895_v63 }
 0x452   :  { %v4222_v9 = vsel %vm3262_vm2, %v3074_v7, 0.0  ;;  %v6047_v23 = vmul.f32 0.33333334, %v5983_v58  ;;  %v11868_v30 = vsel %vm6785_vm4, %v6666_v50, %v11752_v35  ;;  %v14615_v58 = vld [vmem:[#allocation74_spill] sm:$0xff] }
 0x453   :  { %v4254_v43 = vadd.f32 %v4253_v22, %v4252_v19  ;;  %v4217_v61 = vadd.f32 %v4216_v54, %v4215_v3  ;;  %v4223_v29 = vrot.slane %v4222_v9, 4  ;;  %v6495_v44 = vmul.f32 0.33333334, %v6431_v32  ;;  %14612 = vst [vmem:[#allocation55_spill] sm:$0xff] %v11868_v30 }
 0x454   :  { %v4248_v40 = vrot.slane %v4247_v57, 1  ;;  %v11871_v21 = vsel %vm6783_vm3, %v7518_v26, %v6047_v23  ;;  %v4257_v19 = vsel %vm3262_vm2, %v2651_v41, 0.0  ;;  %v4264_v3 = vsel %vm3262_vm2, %v3077_v25, 0.0 }
 0x455   :  { %v4255_v55 = vrot.slane %v4254_v43, 1  ;;  %v4218_v46 = vrot.slane %v4217_v61, 2  ;;  %v4224_v59 = vadd.f32 %v4223_v29, %v4222_v9  ;;  %v11876_v16 = vsel %vm6783_vm3, %v7798_v53, %v6495_v44 }
 0x456   :  { %14614 = vst [vmem:[#allocation23_spill] sm:$0xff] %v11876_v16  ;;  %v2643_v35 = vadd.f32 %v11448_v14, %v14615_v58  ;;  %v4249_v50 = vadd.f32 %v4248_v40, %v4247_v57  ;;  %v4258_v26 = vrot.slane %v4257_v19, 4  ;;  %v11883_v32 = vadd.f32 %v4139_v39, %v11787_v62 }
 0x457   :  { %v4219_v22 = vadd.f32 %v4218_v46, %v4217_v61  ;;  %v4225_v54 = vrot.slane %v4224_v59, 2  ;;  %v11886_v29 = vrot.slane %v3076_v52, %v9797_v33  ;;  %v4265_v53 = vrot.slane %v4264_v3, 4 }
 0x458   :  { %v4256_v9 = vadd.f32 %v4255_v55, %v4254_v43  ;;  %v4259_v16 = vadd.f32 %v4258_v26, %v4257_v19  ;;  %v11891_v58 = vrot.slane %v3074_v7, %v9797_v33  ;;  %v3075_v57 = vcombine.high %v2643_v35, %v2643_v35 }
 0x459   :  { %v4220_v23 = vrot.slane %v4219_v22, 1  ;;  %v4226_v30 = vadd.f32 %v4225_v54, %v4224_v59  ;;  %v4266_v40 = vadd.f32 %v4265_v53, %v4264_v3  ;;  %v4229_v61 = vsel %vm3262_vm2, %v2643_v35, 0.0 }
 0x45a   :  { %v5090_v62 = vsub.f32 %v4249_v50, %v11825_v6  ;;  %v4260_v46 = vrot.slane %v4259_v16, 2  ;;  %v11898_v43 = vrot.slane %v2651_v41, %v9803_v34  ;;  %v4230_v55 = vrot.slane %v4229_v61, 4 }
 0x45b   :  { %v4221_v39 = vadd.f32 %v4220_v23, %v4219_v22  ;;  %v4227_v52 = vrot.slane %v4226_v30, 1  ;;  %v4267_v44 = vrot.slane %v4266_v40, 2  ;;  %v4236_v59 = vsel %vm3262_vm2, %v3075_v57, 0.0 }
 0x45c   :  { %v5538_v7 = vsub.f32 %v4256_v9, %v11886_v29  ;;  %v4261_v54 = vadd.f32 %v4260_v46, %v4259_v16  ;;  %v4231_v50 = vadd.f32 %v4230_v55, %v4229_v61  ;;  %v4237_v22 = vrot.slane %v4236_v59, 4 }
 0x45d   :  { %v4228_v19 = vadd.f32 %v4227_v52, %v4226_v30  ;;  %v5089_v3 = vsub.f32 %v4221_v39, %v11851_v49  ;;  %v4268_v26 = vadd.f32 %v4267_v44, %v4266_v40  ;;  %v5770_v53 = vrot.slane %v2643_v35, %v9803_v34 }
 0x45e   :  { %v11904_v23 = vmul.f32 0.33333334, %v5090_v62  ;;  %v4262_v41 = vrot.slane %v4261_v54, 1  ;;  %v11908_v63 = vrot.slane %v3075_v57, %v9820_v2  ;;  %v4232_v37 = vrot.slane %v4231_v50, 2  ;;  %v14621_v62 = vld [vmem:[#allocation46_spill] sm:$0xff] }
 0x45f   :  { %v5537_v6 = vsub.f32 %v4228_v19, %v11891_v58  ;;  %v4269_v17 = vrot.slane %v4268_v26, 1  ;;  %v4238_v9 = vadd.f32 %v4237_v22, %v4236_v59  ;;  %v11912_v49 = vsel %vm6785_vm4, %v5770_v53, %v11812_v5 }
 0x460   :  { %14617 = vst [vmem:[#allocation64_spill] sm:$0xff] %v11904_v23  ;;  %v11914_v30 = vmul.f32 0.33333334, %v5538_v7  ;;  %v11916_v16 = vmul.f32 0.33333334, %v5089_v3  ;;  %v4263_v35 = vadd.f32 %v4262_v41, %v4261_v54  ;;  %v11921_v44 = vsel %vm6785_vm4, %v11908_v63, %v11818_v56 }
 0x461   :  { %v11923_v40 = vmul.f32 0.33333334, %v5537_v6  ;;  %v4233_v57 = vadd.f32 %v4232_v37, %v4231_v50  ;;  %v4239_v61 = vrot.slane %v4238_v9, 2  ;;  %v11927_v39 = vadd.f32 %v11448_v14, %v14621_v62 }
 0x462   :  { %14618 = vst [vmem:[#allocation73_spill] sm:$0xff] %v11914_v30  ;;  %14619 = vst [vmem:[#allocation74_spill] sm:$0xff] %v11916_v16  ;;  %v4270_v52 = vadd.f32 %v4269_v17, %v4268_v26  ;;  %v11931_v46 = vrot.slane %v3077_v25, %v9820_v2  ;;  %v11935_v55 = vadd.f32 %v11448_v14, %v11375_v60 }
 0x463   :  { %14620 = vst [vmem:[#allocation85_spill] sm:$0xff] %v11923_v40  ;;  %14622 = vst [vmem:[#allocation46_spill] sm:$0xff] %v11927_v39  ;;  %v5986_v56 = vsub.f32 %v4263_v35, %v11898_v43  ;;  %v4234_v6 = vrot.slane %v4233_v57, 1  ;;  %v4240_v59 = vadd.f32 %v4239_v61, %v4238_v9  ;;  %v3080_v37 = vcombine.high %v11927_v39, %v11927_v39  ;;  %v11954_v61 = vpop.f32.mrb[153].mxu0 }
 0x464   :  { %14623 = vst [vmem:[#allocation86_spill] sm:$0xff] %v11935_v55  ;;  %v4299_v17 = vsel %vm3262_vm2, %v11927_v39, 0.0  ;;  %v3078_v25 = vcombine.high %v11935_v55, %v11935_v55  ;;  %v6434_v50 = vsub.f32 %v4270_v52, %v11931_v46  ;;  %v4271_v41 = vsel %vm3262_vm2, %v11935_v55, 0.0  ;;  %14625 = vst [vmem:[#allocation87_spill] sm:$0xff] %v11954_v61 }
 0x465   :  { %v4235_v3 = vadd.f32 %v4234_v6, %v4233_v57  ;;  %v4241_v54 = vrot.slane %v4240_v59, 1  ;;  %v4300_v26 = vrot.slane %v4299_v17, 4  ;;  %v4306_v22 = vsel %vm3262_vm2, %v3080_v37, 0.0  ;;  %v11958_v6 = vpop.f32.mrb[154].mxu0 }
 0x466   :  { %v14624_v9 = vrot.slane %v11685_v47, 2  ;;  %v11956_v62 = vmul.f32 0.33333334, %v5986_v56  ;;  %14626 = vst [vmem:[#allocation88_spill] sm:$0xff] %v11958_v6  ;;  %v4307_v5 = vrot.slane %v4306_v22, 4  ;;  %v4272_v19 = vrot.slane %v4271_v41, 4 }
 0x467   :  { %v4242_v7 = vadd.f32 %v4241_v54, %v4240_v59  ;;  %v5985_v60 = vsub.f32 %v4235_v3, %v5770_v53  ;;  %v4301_v57 = vadd.f32 %v4300_v26, %v4299_v17  ;;  %v4278_v30 = vsel %vm3262_vm2, %v3078_v25, 0.0 }
 0x468   :  { %v4135_v35 = vadd.f32 %v14624_v9, %v11685_v47  ;;  %v4279_v9 = vrot.slane %v4278_v30, 4  ;;  %v11964_v16 = vmul.f32 0.33333334, %v6434_v50  ;;  %v4308_v56 = vadd.f32 %v4307_v5, %v4306_v22  ;;  %v14629_v22 = vld [vmem:[#allocation31_spill] sm:$0xff] }
 0x469   :  { %v6049_v40 = vmul.f32 0.33333334, %v5985_v60  ;;  %v6433_v23 = vsub.f32 %v4242_v7, %v11908_v63  ;;  %v4302_v47 = vrot.slane %v4301_v57, 2  ;;  %v4273_v59 = vadd.f32 %v4272_v19, %v4271_v41 }
 0x46a   :  { %14627 = vst [vmem:[#allocation89_spill] sm:$0xff] %v11964_v16  ;;  %v4136_v53 = vrot.slane %v4135_v35, 1  ;;  %v4280_v26 = vadd.f32 %v4279_v9, %v4278_v30  ;;  %v11968_v52 = vrot.slane %v3080_v37, %v9797_v33  ;;  %v14628_v63 = vsub.f32 %v11749_v31, %v11649_v18 }
 0x46b   :  { %v7520_v3 = vrot.slane %v6049_v40, 6  ;;  %v4303_v54 = vadd.f32 %v4302_v47, %v4301_v57  ;;  %v4274_v6 = vrot.slane %v4273_v59, 2  ;;  %v11978_v50 = vrot.slane %v3078_v25, %v9797_v33  ;;  %v14631_v47 = vld [vmem:[#allocation61_spill] sm:$0xff] }
 0x46c   :  { %v4137_v61 = vadd.f32 %v4136_v53, %v4135_v35  ;;  %v5149_v7 = vmul.f32 0.33333334, %v14628_v63  ;;  %v4281_v19 = vrot.slane %v4280_v26, 2  ;;  %v4309_v40 = vrot.slane %v4308_v56, 2 }
 0x46d   :  { %v11975_v60 = vsel %vm6785_vm4, %v7520_v3, %v11871_v21  ;;  %v4304_v5 = vrot.slane %v4303_v54, 1  ;;  %v4275_v30 = vadd.f32 %v4274_v6, %v4273_v59  ;;  %v14630_v41 = vrot.slane %v11428_v0, 6 }
 0x46e   :  { %v5086_v37 = vsub.f32 %v4137_v61, %v11642_v27  ;;  %v4282_v57 = vadd.f32 %v4281_v19, %v4280_v26  ;;  %v14632_v9 = vrot.slane %v14631_v47, 5  ;;  %v6970_v53 = vrot.slane %v5149_v7, 2  ;;  %v14636_v26 = vld [vmem:[#allocation79_spill] sm:$0xff] }
 0x46f   :  { %v6963_v35 = vsel %vm6785_vm4, %v14630_v41, %v14629_v22  ;;  %v4305_v31 = vadd.f32 %v4304_v5, %v4303_v54  ;;  %v11988_v3 = vmul.f32 0.33333334, %v6433_v23  ;;  %v4276_v25 = vrot.slane %v4275_v30, 1 }
 0x470   :  { %v6965_v21 = vsel %vm6787_vm5, %v14632_v9, %v6963_v35  ;;  %v5150_v63 = vmul.f32 0.33333334, %v5086_v37  ;;  %v14634_v6 = vrot.slane %v11576_v8, 4  ;;  %v4283_v0 = vrot.slane %v4282_v57, 1  ;;  %v12005_v8 = vld [vmem:[%s14105_s6] ss:$0 sm:$0xff] }
 0x471   :  { %14633 = vst [vmem:[#allocation31_spill] sm:$0xff] %v11988_v3  ;;  %v5092_v59 = vsub.f32 %v4305_v31, %v11927_v39  ;;  %v14635_v22 = vrot.slane %v11517_v38, 3  ;;  %v2667_v5 = vadd.f32 %v11448_v14, %v14636_v26  ;;  %v11999_v19 = vadd.f32 %v4309_v40, %v4308_v56  ;;  %v12018_v9 = vpop.f32.mrb[155].mxu0 }
 0x472   :  { %v6967_v61 = vsel %vm6789_vm6, %v14634_v6, %v6965_v21  ;;  %v6972_v7 = vrot.slane %v5150_v63, 1  ;;  %v2659_v37 = vadd.f32 %v12005_v8, %v11491_v20  ;;  %v12009_v41 = vadd.f32 %v4276_v25, %v4275_v30 }
 0x473   :  { %v6969_v54 = vsel %vm6791_vm7, %v14635_v22, %v6967_v61  ;;  %v12011_v38 = vadd.f32 %v4283_v0, %v4282_v57  ;;  %v3081_v35 = vcombine.high %v2667_v5, %v2667_v5  ;;  %v4313_v14 = vsel %vm3262_vm2, %v2667_v5, 0.0 }
 0x474   :  { %v6971_v23 = vsel %vm6793_vm8, %v6970_v53, %v6969_v54  ;;  %v4314_v47 = vrot.slane %v4313_v14, 4  ;;  %v12021_v20 = vmul.f32 0.33333334, %v5092_v59  ;;  %v3079_v6 = vcombine.high %v2659_v37, %v2659_v37 }
 0x475   :  { %v6973_v31 = vsel %vm6795_vm9, %v6972_v7, %v6971_v23  ;;  %v5539_v30 = vsub.f32 %v12011_v38, %v11978_v50  ;;  %v4320_v57 = vsel %vm3262_vm2, %v3081_v35, 0.0  ;;  %v5091_v61 = vsub.f32 %v12009_v41, %v11935_v55 }
 0x476   :  { %7036 = vrot.lane.b32.xlu1 %v6973_v31, %s8796_s25  ;;  %v4315_v25 = vadd.f32 %v4314_v47, %v4313_v14  ;;  %v4321_v63 = vrot.slane %v4320_v57, 4  ;;  %v4285_v0 = vsel %vm3262_vm2, %v2659_v37, 0.0  ;;  %v12032_v59 = vrot.slane %v2659_v37, %v9803_v34 }
 0x477   :  { %v7364_v22 = vsel %vm6787_vm5, %v11898_v43, %v11912_v49  ;;  %v12038_v23 = vrot.slane %v2667_v5, %v9803_v34  ;;  %v4286_v7 = vrot.slane %v4285_v0, 4  ;;  %v12042_v14 = vrot.slane %v3081_v35, %v9820_v2 }
 0x478   :  { %v4316_v54 = vrot.slane %v4315_v25, 2  ;;  %v4322_v26 = vadd.f32 %v4321_v63, %v4320_v57  ;;  %v4292_v41 = vsel %vm3262_vm2, %v3079_v6, 0.0  ;;  %v12047_v37 = vsel %vm6789_vm6, %v12032_v59, %v7364_v22 }
 0x479   :  { %14637 = vst [vmem:[#allocation61_spill] sm:$0xff] %v12038_v23  ;;  %14638 = vst [vmem:[#allocation79_spill] sm:$0xff] %v12047_v37  ;;  %v4287_v43 = vadd.f32 %v4286_v7, %v4285_v0  ;;  %v4293_v49 = vrot.slane %v4292_v41, 4  ;;  %v14639_v5 = vsub.f32 %v11754_v11, %v11697_v45  ;;  %v14640_v63 = vrot.slane %v11463_v4, 5 }
 0x47a   :  { %v4317_v31 = vadd.f32 %v4316_v54, %v4315_v25  ;;  %v4323_v47 = vrot.slane %v4322_v26, 2  ;;  %v14641_v40 = vrot.slane %v11500_v15, 1  ;;  %v14642_v22 = vrot.slane %v11690_v51, 2 }
 0x47b   :  { %v6046_v57 = vmul.f32 0.33333334, %v14639_v5  ;;  %v7509_v35 = vsel %vm6787_vm5, %v14640_v63, %v11498_v24  ;;  %v4288_v7 = vrot.slane %v4287_v43, 2  ;;  %v4294_v21 = vadd.f32 %v4293_v49, %v4292_v41  ;;  %v12067_v63 = vpop.f32.mrb[156].mxu0 }
 0x47c   :  { %v4088_v56 = vadd.f32 %v14641_v40, %v11500_v15  ;;  %v4114_v25 = vadd.f32 %v14642_v22, %v11690_v51  ;;  %v4318_v54 = vrot.slane %v4317_v31, 1  ;;  %v4324_v0 = vadd.f32 %v4323_v47, %v4322_v26  ;;  %14644 = vst [vmem:[#allocation90_spill] sm:$0xff] %v12067_v63  ;;  %v12069_v51 = vpop.f32.mrb[157].mxu0 }
 0x47d   :  { %v14643_v11 = vrot.slane %v11653_v1, 4  ;;  %v4141_v4 = vrot.slane %v11883_v32, 2  ;;  %v4289_v17 = vadd.f32 %v4288_v7, %v4287_v43  ;;  %v4295_v38 = vrot.slane %v4294_v21, 2  ;;  %14645 = vst [vmem:[#allocation91_spill] sm:$0xff] %v12069_v51 }
 0x47e   :  { %v4115_v53 = vrot.slane %v4114_v25, 1  ;;  %v5532_v24 = vsub.f32 %v4088_v56, %v11482_v10  ;;  %v4319_v15 = vadd.f32 %v4318_v54, %v4317_v31  ;;  %v4325_v40 = vrot.slane %v4324_v0, 1 }
 0x47f   :  { %v7511_v5 = vsel %vm6789_vm6, %v14643_v11, %v7509_v35  ;;  %v14646_v26 = vrot.slane %v11605_v13, 3  ;;  %v7516_v1 = vrot.slane %v6046_v57, 1  ;;  %v4142_v49 = vadd.f32 %v4141_v4, %v11883_v32  ;;  %v14648_v11 = vld [vmem:[#allocation76_spill] sm:$0xff] }
 0x480   :  { %v4116_v47 = vadd.f32 %v4115_v53, %v4114_v25  ;;  %v4326_v35 = vadd.f32 %v4325_v40, %v4324_v0  ;;  %v5988_v22 = vsub.f32 %v4319_v15, %v12038_v23  ;;  %v4290_v10 = vrot.slane %v4289_v17, 1  ;;  %v14649_v13 = vld [vmem:[#allocation44_spill] sm:$0xff] }
 0x481   :  { %v7513_v41 = vsel %vm6791_vm7, %v14646_v26, %v7511_v5  ;;  %v4296_v56 = vadd.f32 %v4295_v38, %v4294_v21  ;;  %v14647_v31 = vrot.slane %v11760_v48, 2  ;;  %v4143_v54 = vrot.slane %v4142_v49, 1  ;;  %v14651_v5 = vld [vmem:[#allocation78_spill] sm:$0xff] }
 0x482   :  { %v5533_v7 = vsub.f32 %v4116_v47, %v11775_v36  ;;  %v14650_v39 = vrot.slane %v14649_v13, 7  ;;  %v12084_v53 = vmul.f32 0.33333334, %v5091_v61  ;;  %v6436_v32 = vsub.f32 %v4326_v35, %v12042_v14 }
 0x483   :  { %v7515_v43 = vsel %vm6793_vm8, %v14647_v31, %v7513_v41  ;;  %v4297_v25 = vrot.slane %v4296_v56, 1  ;;  %v5596_v0 = vmul.f32 0.33333334, %v5532_v24  ;;  %v4144_v38 = vadd.f32 %v4143_v54, %v4142_v49  ;;  %v14654_v41 = vld [vmem:[#allocation77_spill] sm:$0xff]  ;;  %v14656_v49 = vld [vmem:[#allocation36_spill] sm:$0xff]  ;;  %v14661_v54 = vld [vmem:[#allocation83_spill] sm:$0xff] }
 0x484   :  { %v7241_v57 = vsel %vm6783_vm3, %v14650_v39, %v14648_v11  ;;  %v7517_v21 = vsel %vm6795_vm9, %v7516_v1, %v7515_v43  ;;  %v5597_v48 = vmul.f32 0.33333334, %v5533_v7  ;;  %v14652_v4 = vrot.slane %v14651_v5, 6  ;;  %v14659_v43 = vld [vmem:[#allocation81_spill] sm:$0xff] }
 0x485   :  { %v12091_v36 = vmul.f32 0.33333334, %v5539_v30  ;;  %v4291_v40 = vadd.f32 %v4290_v10, %v4289_v17  ;;  %v4298_v26 = vadd.f32 %v4297_v25, %v4296_v56  ;;  %v12094_v39 = vrot.slane %v3079_v6, %v9820_v2  ;;  %7580 = vrot.lane.b32.xlu0 %v7517_v21, %s8796_s25  ;;  %v12107_v6 = vpop.f32.mrb[158].mxu0 }
 0x486   :  { %v7243_v15 = vsel %vm6785_vm4, %v14652_v4, %v7241_v57  ;;  %v12097_v61 = vmul.f32 0.33333334, %v5988_v22  ;;  %v5534_v24 = vsub.f32 %v4144_v38, %v11790_v12  ;;  %v14655_v1 = vrot.slane %v14654_v41, 5  ;;  %14658 = vst [vmem:[#allocation78_spill] sm:$0xff] %v12107_v6 }
 0x487   :  { %14653 = vst [vmem:[#allocation76_spill] sm:$0xff] %v12091_v36  ;;  %v7246_v35 = vrot.slane %v14656_v49, 4  ;;  %v12104_v31 = vmul.f32 0.33333334, %v6436_v32  ;;  %v6435_v17 = vsub.f32 %v4298_v26, %v12094_v39  ;;  %v7248_v30 = vrot.slane %v5596_v0, 3  ;;  %v14664_v49 = vld [vmem:[#allocation62_spill] sm:$0xff] }
 0x488   :  { %v7245_v47 = vsel %vm6787_vm5, %v14655_v1, %v7243_v15  ;;  %v7250_v10 = vrot.slane %v5597_v48, 2  ;;  %v5598_v56 = vmul.f32 0.33333334, %v5534_v24  ;;  %v12112_v12 = vadd.f32 %v12005_v8, %v14659_v43 }
 0x489   :  { %14657 = vst [vmem:[#allocation44_spill] sm:$0xff] %v12104_v31  ;;  %v7247_v22 = vsel %vm6789_vm6, %v7246_v35, %v7245_v47  ;;  %v12116_v7 = vadd.f32 %v12005_v8, %v14661_v54  ;;  %v5987_v13 = vsub.f32 %v4291_v40, %v12032_v59  ;;  %v4157_v32 = vrot.slane %v11758_v42, 1  ;;  %v14663_v47 = vld [vmem:[#allocation69_spill] sm:$0xff] }
 0x48a   :  { %14660 = vst [vmem:[#allocation77_spill] sm:$0xff] %v12112_v12  ;;  %v7249_v57 = vsel %vm6791_vm7, %v7248_v30, %v7247_v22  ;;  %v7252_v0 = vrot.slane %v5598_v56, 1  ;;  %v4355_v21 = vsel %vm3262_vm2, %v12112_v12, 0.0  ;;  %v14665_v35 = vsub.f32 %v14663_v47, %v14664_v49  ;;  %v14667_v56 = vld [vmem:[#allocation39_spill] sm:$0xff]  ;;  %v14675_v49 = vld [vmem:[#allocation24_spill] sm:$0xff] }
 0x48b   :  { %14662 = vst [vmem:[#allocation36_spill] sm:$0xff] %v12116_v7  ;;  %v7251_v25 = vsel %vm6793_vm8, %v7250_v10, %v7249_v57  ;;  %v12127_v38 = vcombine.high %v12116_v7, %v12116_v7  ;;  %v4356_v4 = vrot.slane %v4355_v21, 4  ;;  %v4327_v59 = vsel %vm3262_vm2, %v12116_v7, 0.0  ;;  %v14666_v10 = vld [vmem:[#allocation75_spill] sm:$0xff] }
 0x48c   :  { %v7253_v15 = vsel %vm6795_vm9, %v7252_v0, %v7251_v25  ;;  %v4328_v40 = vrot.slane %v4327_v59, 4  ;;  %v4158_v24 = vadd.f32 %v4157_v32, %v11758_v42  ;;  %v12137_v41 = vmul.f32 0.33333334, %v5987_v13  ;;  %v14669_v57 = vld [vmem:[#allocation7_spill] sm:$0xff]  ;;  %v14670_v0 = vld [vmem:[#allocation80_spill] sm:$0xff] }
 0x48d   :  { %v4334_v26 = vsel %vm3262_vm2, %v12127_v38, 0.0  ;;  %7316 = vrot.lane.b32.xlu1 %v7253_v15, %s8797_s26  ;;  %v6493_v30 = vmul.f32 0.33333334, %v14665_v35  ;;  %v14668_v22 = vrot.slane %v14667_v56, 6  ;;  %v14671_v5 = vrot.slane %v14670_v0, 5  ;;  %v14672_v13 = vld [vmem:[#allocation63_spill] sm:$0xff] }
 0x48e   :  { %v4335_v1 = vrot.slane %v4334_v26, 4  ;;  %v4329_v54 = vadd.f32 %v4328_v40, %v4327_v59  ;;  %v6430_v25 = vsub.f32 %v4158_v24, %v14669_v57  ;;  %v2683_v32 = vadd.f32 %v12005_v8, %v14672_v13  ;;  %v12153_v15 = vpop.f32.mrb[159].mxu0  ;;  %v14677_v56 = vld [vmem:[#allocation66_spill] sm:$0xff] }
 0x48f   :  { %v7787_v43 = vsel %vm6785_vm4, %v14668_v22, %v14666_v10  ;;  %14673 = vst [vmem:[#allocation81_spill] sm:$0xff] %v12153_v15  ;;  %v12155_v48 = vmul.f32 0.33333334, %v6435_v17  ;;  %v12157_v47 = vadd.f32 %v4356_v4, %v4355_v21  ;;  %v14676_v35 = vrot.slane %v14675_v49, 4 }
 0x490   :  { %v7789_v42 = vsel %vm6787_vm5, %v14671_v5, %v7787_v43  ;;  %v7794_v59 = vrot.slane %v6493_v30, 2  ;;  %v4330_v40 = vrot.slane %v4329_v54, 2  ;;  %v6494_v24 = vmul.f32 0.33333334, %v6430_v25 }
 0x491   :  { %14674 = vst [vmem:[#allocation83_spill] sm:$0xff] %v12155_v48  ;;  %v7791_v10 = vsel %vm6789_vm6, %v14676_v35, %v7789_v42  ;;  %v14678_v22 = vrot.slane %v14677_v56, 3  ;;  %v12165_v43 = vcombine.high %v2683_v32, %v2683_v32  ;;  %v12168_v0 = vadd.f32 %v4335_v1, %v4334_v26  ;;  %v14679_v35 = vld [vmem:[#allocation65_spill] sm:$0xff]  ;;  %v12181_v1 = vpop.f32.mrb[160].mxu0 }
 0x492   :  { %v4369_v21 = vsel %vm3262_vm2, %v2683_v32, 0.0  ;;  %v4331_v4 = vadd.f32 %v4330_v40, %v4329_v54  ;;  %v7796_v13 = vrot.slane %v6494_v24, 1  ;;  %v14680_v56 = vld [vmem:[#allocation21_spill] sm:$0xff]  ;;  %14681 = vst [vmem:[#allocation69_spill] sm:$0xff] %v12181_v1  ;;  %v12195_v54 = vrot.slane %v2683_v32, %v9803_v34  ;;  %v12215_v18 = vpop.f32.mrb[161].mxu0 }
 0x493   :  { %v7793_v5 = vsel %vm6791_vm7, %v14678_v22, %v7791_v10  ;;  %v4370_v42 = vrot.slane %v4369_v21, 4  ;;  %v4376_v30 = vsel %vm3262_vm2, %v12165_v43, 0.0  ;;  %v2675_v10 = vadd.f32 %v12005_v8, %v14679_v35  ;;  %14686 = vst [vmem:[#allocation39_spill] sm:$0xff] %v12215_v18  ;;  %v12233_v48 = vpop.f32.mrb[162].mxu0 }
 0x494   :  { %v7795_v17 = vsel %vm6793_vm8, %v7794_v59, %v7793_v5  ;;  %v4377_v49 = vrot.slane %v4376_v30, 4  ;;  %v12179_v26 = vadd.f32 %v12005_v8, %v14680_v56  ;;  %v4332_v22 = vrot.slane %v4331_v4, 1  ;;  %14682 = vst [vmem:[#allocation62_spill] sm:$0xff] %v12195_v54  ;;  %v14685_v56 = vld [vmem:[#allocation45_spill] sm:$0xff]  ;;  %14688 = vst [vmem:[#allocation80_spill] sm:$0xff] %v12233_v48 }
 0x495   :  { %v7797_v40 = vsel %vm6795_vm9, %v7796_v13, %v7795_v17  ;;  %v4371_v24 = vadd.f32 %v4370_v42, %v4369_v21  ;;  %v3083_v35 = vcombine.high %v2675_v10, %v2675_v10  ;;  %v4341_v25 = vsel %vm3262_vm2, %v2675_v10, 0.0  ;;  %v14683_v13 = vld [vmem:[#allocation9_spill] sm:$0xff] }
 0x496   :  { %7860 = vrot.lane.b32.xlu1 %v7797_v40, %s8797_s26  ;;  %v12188_v5 = vadd.f32 %v4377_v49, %v4376_v30  ;;  %v4342_v11 = vrot.slane %v4341_v25, 4  ;;  %v3088_v59 = vcombine.high %v12179_v26, %v12179_v26  ;;  %v4411_v21 = vsel %vm3262_vm2, %v12179_v26, 0.0 }
 0x497   :  { %v4372_v57 = vrot.slane %v4371_v24, 2  ;;  %v4348_v17 = vsel %vm3262_vm2, %v3083_v35, 0.0  ;;  %v12202_v42 = vadd.f32 %v12005_v8, %v14683_v13  ;;  %v12205_v40 = vrot.slane %v2675_v10, %v9803_v34 }
 0x498   :  { %v4343_v30 = vadd.f32 %v4342_v11, %v4341_v25  ;;  %v4349_v49 = vrot.slane %v4348_v17, 4  ;;  %v12209_v23 = vadd.f32 %v12005_v8, %v14685_v56  ;;  %v12211_v32 = vadd.f32 %v4332_v22, %v4331_v4 }
 0x499   :  { %14684 = vst [vmem:[#allocation75_spill] sm:$0xff] %v12205_v40  ;;  %v4379_v37 = vrot.slane %v12188_v5, 2  ;;  %v4412_v55 = vrot.slane %v4411_v21, 4  ;;  %v4418_v45 = vsel %vm3262_vm2, %v3088_v59, 0.0  ;;  %v4373_v13 = vadd.f32 %v4372_v57, %v4371_v24 }
 0x49a   :  { %v4344_v27 = vrot.slane %v4343_v30, 2  ;;  %v4350_v11 = vadd.f32 %v4349_v49, %v4348_v17  ;;  %v4419_v25 = vrot.slane %v4418_v45, 4  ;;  %v12218_v10 = vrot.slane %v3088_v59, %v9797_v33 }
 0x49b   :  { %v4413_v1 = vadd.f32 %v4412_v55, %v4411_v21  ;;  %v3086_v56 = vcombine.high %v12202_v42, %v12202_v42  ;;  %v4383_v4 = vsel %vm3262_vm2, %v12202_v42, 0.0  ;;  %v6694_v18 = vrot.slane %v12179_v26, %v9773_v28 }
 0x49c   :  { %v4345_v22 = vadd.f32 %v4344_v27, %v4343_v30  ;;  %v4351_v15 = vrot.slane %v4350_v11, 2  ;;  %v4420_v6 = vadd.f32 %v4419_v25, %v4418_v45  ;;  %v4384_v24 = vrot.slane %v4383_v4, 4 }
 0x49d   :  { %v4414_v57 = vrot.slane %v4413_v1, 2  ;;  %v4390_v17 = vsel %vm3262_vm2, %v3086_v56, 0.0  ;;  %v12228_v55 = vrot.slane %v3086_v56, %v9797_v33  ;;  %v12231_v49 = vrot.slane %v3083_v35, %v9820_v2 }
 0x49e   :  { %v4346_v59 = vrot.slane %v4345_v22, 1  ;;  %v4352_v21 = vadd.f32 %v4351_v15, %v4350_v11  ;;  %v4421_v31 = vrot.slane %v4420_v6, 2  ;;  %v4385_v45 = vadd.f32 %v4384_v24, %v4383_v4 }
 0x49f   :  { %14687 = vst [vmem:[#allocation7_spill] sm:$0xff] %v12231_v49  ;;  %v4415_v27 = vadd.f32 %v4414_v57, %v4413_v1  ;;  %v4391_v30 = vrot.slane %v4390_v17, 4  ;;  %v6690_v25 = vrot.slane %v12202_v42, %v9773_v28  ;;  %v4374_v16 = vrot.slane %v4373_v13, 1 }
 0x4a0   :  { %v4353_v3 = vrot.slane %v4352_v21, 1  ;;  %v4422_v51 = vadd.f32 %v4421_v31, %v4420_v6  ;;  %v12240_v56 = vsel %vm6783_vm3, %v12218_v10, %v12228_v55  ;;  %v4386_v35 = vrot.slane %v4385_v45, 2 }
 0x4a1   :  { %14689 = vst [vmem:[#allocation63_spill] sm:$0xff] %v12240_v56  ;;  %v4416_v15 = vrot.slane %v4415_v27, 1  ;;  %v4392_v11 = vadd.f32 %v4391_v30, %v4390_v17  ;;  %v12243_v63 = vsel %vm6783_vm3, %v6694_v18, %v6690_v25  ;;  %v4347_v1 = vadd.f32 %v4346_v59, %v4345_v22  ;;  %v12257_v25 = vpop.f32.mrb[163].mxu0 }
 0x4a2   :  { %v12245_v4 = vadd.f32 %v4353_v3, %v4352_v21  ;;  %v4423_v57 = vrot.slane %v4422_v51, 1  ;;  %v3089_v24 = vcombine.high %v12209_v23, %v12209_v23  ;;  %v4387_v31 = vadd.f32 %v4386_v35, %v4385_v45  ;;  %14691 = vst [vmem:[#allocation66_spill] sm:$0xff] %v12257_v25 }
 0x4a3   :  { %v4417_v48 = vadd.f32 %v4416_v15, %v4415_v27  ;;  %v4393_v6 = vrot.slane %v4392_v11, 2  ;;  %v4425_v36 = vsel %vm3262_vm2, %v12209_v23, 0.0  ;;  %v12251_v56 = vadd.f32 %v4374_v16, %v4373_v13  ;;  %v14704_v13 = vld [vmem:[#allocation22_spill] sm:$0xff] }
 0x4a4   :  { %14690 = vst [vmem:[#allocation24_spill] sm:$0xff] %v12245_v4  ;;  %v4424_v18 = vadd.f32 %v4423_v57, %v4422_v51  ;;  %v4426_v30 = vrot.slane %v4425_v36, 4  ;;  %v4388_v22 = vrot.slane %v4387_v31, 1  ;;  %v4432_v21 = vsel %vm3262_vm2, %v3089_v24, 0.0 }
 0x4a5   :  { %v5096_v3 = vsub.f32 %v4417_v48, %v12179_v26  ;;  %v4394_v59 = vadd.f32 %v4393_v6, %v4392_v11  ;;  %v5989_v27 = vsub.f32 %v4347_v1, %v12205_v40  ;;  %v4433_v16 = vrot.slane %v4432_v21, 4 }
 0x4a6   :  { %v5544_v45 = vsub.f32 %v4424_v18, %v12218_v10  ;;  %v4427_v15 = vadd.f32 %v4426_v30, %v4425_v36  ;;  %v4389_v51 = vadd.f32 %v4388_v22, %v4387_v31  ;;  %v12264_v48 = vadd.f32 %v4379_v37, %v12188_v5 }
 0x4a7   :  { %v5160_v35 = vmul.f32 0.33333334, %v5096_v3  ;;  %v4395_v57 = vrot.slane %v4394_v59, 1  ;;  %v4434_v6 = vadd.f32 %v4433_v16, %v4432_v21  ;;  %v3084_v36 = vcombine.high %v12112_v12, %v12112_v12 }
 0x4a8   :  { %14692 = vst [vmem:[#allocation65_spill] sm:$0xff] %v12264_v48  ;;  %v4428_v11 = vrot.slane %v4427_v15, 2  ;;  %v5095_v10 = vsub.f32 %v4389_v51, %v12202_v42  ;;  %v12271_v18 = vmul.f32 0.33333334, %v5989_v27  ;;  %v5798_v37 = vrot.slane %v12209_v23, %v9803_v34  ;;  %v14694_v27 = vld [vmem:[#allocation68_spill] sm:$0xff] }
 0x4a9   :  { %v6988_v17 = vrot.slane %v5160_v35, 7  ;;  %v4396_v1 = vadd.f32 %v4395_v57, %v4394_v59  ;;  %v4435_v31 = vrot.slane %v4434_v6, 2  ;;  %v12275_v5 = vmul.f32 0.33333334, %v5544_v45 }
 0x4aa   :  { %v4429_v30 = vadd.f32 %v4428_v11, %v4427_v15  ;;  %v5159_v3 = vmul.f32 0.33333334, %v5095_v10  ;;  %v6246_v21 = vrot.slane %v3089_v24, %v9820_v2  ;;  %v12281_v42 = vrot.slane %v12127_v38, %v9797_v33  ;;  %v14696_v24 = vld [vmem:[#allocation6_spill] sm:$0xff]  ;;  %v7111_v11 = vpop.permute.xlu0 %7110 }
 0x4ab   :  { %14693 = vst [vmem:[#allocation21_spill] sm:$0xff] %v12275_v5  ;;  %v5543_v22 = vsub.f32 %v4396_v1, %v12228_v55  ;;  %v4436_v16 = vadd.f32 %v4435_v31, %v4434_v6  ;;  %v7083_v15 = vsel %vm6785_vm4, %v11891_v58, %v14694_v27  ;;  %v12290_v23 = vsel %vm3262_vm2, %v3084_v36, 0.0 }
 0x4ac   :  { %v4430_v59 = vrot.slane %v4429_v30, 1  ;;  %v12287_v35 = vsel %vm6783_vm3, %v6988_v17, %v5159_v3  ;;  %v7084_v55 = vsel %vm6787_vm5, %v11886_v29, %v7083_v15  ;;  %v2691_v45 = vadd.f32 %v12005_v8, %v14696_v24 }
 0x4ad   :  { %14695 = vst [vmem:[#allocation9_spill] sm:$0xff] %v12287_v35  ;;  %v4437_v57 = vrot.slane %v4436_v16, 1  ;;  %v12297_v38 = vrot.slane %v3084_v36, %v9797_v33  ;;  %v7085_v58 = vsel %vm6789_vm6, %v11978_v50, %v7084_v55  ;;  %v12333_v15 = vmul.f32 0.33333334, %v5543_v22 }
 0x4ae   :  { %v4431_v51 = vadd.f32 %v4430_v59, %v4429_v30  ;;  %v7086_v17 = vsel %vm6791_vm7, %v11968_v52, %v7085_v58  ;;  %v3087_v6 = vcombine.high %v2691_v45, %v2691_v45  ;;  %v4397_v1 = vsel %vm3262_vm2, %v2691_v45, 0.0 }
 0x4af   :  { %14697 = vst [vmem:[#allocation45_spill] sm:$0xff] %v12297_v38  ;;  %v12305_v29 = vrot.slane %v2691_v45, %v9803_v34  ;;  %v4438_v10 = vadd.f32 %v4437_v57, %v4436_v16  ;;  %v7087_v30 = vsel %vm6793_vm8, %v12281_v42, %v7086_v17  ;;  %v4398_v36 = vrot.slane %v4397_v1, 4  ;;  %v12321_v45 = vpop.f32.mrb[164].mxu0  ;;  %v14699_v17 = vld [vmem:[#allocation12_spill] sm:$0xff]  ;;  %14702 = vst [vmem:[#allocation6_spill] sm:$0xff] %v12333_v15 }
 0x4b0   :  { %v5992_v31 = vsub.f32 %v4431_v51, %v5798_v37  ;;  %v7088_v3 = vsel %vm6795_vm9, %v12297_v38, %v7087_v30  ;;  %v4404_v50 = vsel %vm3262_vm2, %v3087_v6, 0.0  ;;  %v12313_v59 = vrot.slane %v3087_v6, %v9820_v2  ;;  %14698 = vst [vmem:[#allocation68_spill] sm:$0xff] %v12321_v45  ;;  %v14700_v6 = vld [vmem:[#allocation8_spill] sm:$0xff] }
 0x4b1   :  { %v12317_v27 = vsel %vm6783_vm3, %v5798_v37, %v12305_v29  ;;  %v6440_v16 = vsub.f32 %v4438_v10, %v6246_v21  ;;  %7118 = vrot.lane.b32.xlu0 %v7088_v3, %s8795_s24  ;;  %v4399_v55 = vadd.f32 %v4398_v36, %v4397_v1  ;;  %v4405_v24 = vrot.slane %v4404_v50, 4  ;;  %v7031_v10 = vpop.permute.xlu0 %7030 }
 0x4b2   :  { %v6056_v57 = vmul.f32 0.33333334, %v5992_v31  ;;  %v12326_v58 = vsel %vm6783_vm3, %v6246_v21, %v12313_v59  ;;  %v14701_v37 = vrot.slane %v14700_v6, %v9773_v28  ;;  %v4363_v1 = vrot.slane %v12290_v23, 4  ;;  %v14703_v31 = vld [vmem:[#allocation32_spill] sm:$0xff] }
 0x4b3   :  { %v4400_v36 = vrot.slane %v4399_v55, 2  ;;  %v4406_v3 = vadd.f32 %v4405_v24, %v4404_v50  ;;  %v6504_v26 = vmul.f32 0.33333334, %v6440_v16  ;;  %v6558_v51 = vrot.slane %v14703_v31, %v9773_v28  ;;  %v14709_v31 = vld [vmem:[#allocation33_spill] sm:$0xff] }
 0x4b4   :  { %v6788_v30 = vsel %vm6787_vm5, %v14701_v37, %v14699_v17  ;;  %v14705_v21 = vrot.slane %v14704_v13, %v9773_v28  ;;  %v12344_v6 = vrot.slane %v12165_v43, %v9820_v2  ;;  %v14707_v37 = vld [vmem:[#allocation20_spill] sm:$0xff]  ;;  %v7628_v16 = vsel %vm6787_vm5, %v11931_v46, %v11921_v44 }
 0x4b5   :  { %v4401_v17 = vadd.f32 %v4400_v36, %v4399_v55  ;;  %v4407_v22 = vrot.slane %v4406_v3, 2  ;;  %v14708_v5 = vrot.slane %v14707_v37, %v9773_v28  ;;  %v7532_v24 = vrot.slane %v6056_v57, 7  ;;  %v7311_v46 = vpop.permute.xlu0 %7310  ;;  %v14711_v57 = vld [vmem:[#allocation49_spill] sm:$0xff] }
 0x4b6   :  { %v6790_v40 = vsel %vm6789_vm6, %v14705_v21, %v6788_v30  ;;  %14706 = vst [vmem:[#allocation12_spill] sm:$0xff] %v12344_v6  ;;  %v14710_v13 = vrot.slane %v14709_v31, %v9773_v28  ;;  %v7629_v43 = vsel %vm6789_vm6, %v12094_v39, %v7628_v16  ;;  %v12367_v37 = vadd.f32 %v12005_v8, %v14711_v57 }
 0x4b7   :  { %v6792_v50 = vsel %vm6791_vm7, %v14708_v5, %v6790_v40  ;;  %v4402_v55 = vrot.slane %v4401_v17, 1  ;;  %v4408_v36 = vadd.f32 %v4407_v22, %v4406_v3  ;;  %v7630_v40 = vsel %vm6791_vm7, %v12042_v14, %v7629_v43  ;;  %v14714_v22 = vld [vmem:[#allocation29_spill] sm:$0xff] }
 0x4b8   :  { %v6794_v30 = vsel %vm6793_vm8, %v14710_v13, %v6792_v50  ;;  %v7631_v44 = vsel %vm6793_vm8, %v12231_v49, %v7630_v40  ;;  %14712 = vst [vmem:[#allocation8_spill] sm:$0xff] %v12367_v37  ;;  %v7812_v16 = vrot.slane %v6504_v26, 7  ;;  %v3092_v31 = vcombine.high %v12367_v37, %v12367_v37 }
 0x4b9   :  { %v6796_v21 = vsel %vm6795_vm9, %v6558_v51, %v6794_v30  ;;  %v4403_v39 = vadd.f32 %v4402_v55, %v4401_v17  ;;  %v4409_v50 = vrot.slane %v4408_v36, 1  ;;  %v7632_v3 = vsel %vm6795_vm9, %v12344_v6, %v7631_v44  ;;  %v14713_v51 = vld [vmem:[#allocation30_spill] sm:$0xff]  ;;  %v14716_v44 = vld [vmem:[#allocation40_spill] sm:$0xff] }
 0x4ba   :  { %v7878_v5 = vsel %vm1188_vm1, %v6796_v21, %v7031_v10  ;;  %v7338_v14 = vsel %vm6791_vm7, %v14714_v22, %v14713_v51  ;;  %7662 = vrot.lane.b32.xlu1 %v7632_v3, %s8795_s24  ;;  %v4467_v13 = vsel %vm3262_vm2, %v12367_v37, 0.0  ;;  %v14715_v21 = vld [vmem:[#allocation43_spill] sm:$0xff]  ;;  %v4474_v26 = vsel %vm3262_vm2, %v3092_v31, 0.0  ;;  %v12396_v3 = vpop.f32.mrb[165].mxu0 }
 0x4bb   :  { %v7887_v10 = vsel %vm7886_vm10, %v7878_v5, %v7111_v11  ;;  %v4410_v17 = vadd.f32 %v4409_v50, %v4408_v36  ;;  %v5991_v30 = vsub.f32 %v4403_v39, %v12305_v29  ;;  %v4468_v55 = vrot.slane %v4467_v13, 4  ;;  %v14717_v5 = vld [vmem:[#allocation57_spill] sm:$0xff]  ;;  %v12393_v36 = vpop.permute.xlu1 %7654  ;;  %14718 = vst [vmem:[#allocation32_spill] sm:$0xff] %v12396_v3 }
 0x4bc   :  { %v7896_v43 = vsel %vm7895_vm11, %v7887_v10, %v7311_v46  ;;  %v7339_v40 = vsel %vm6793_vm8, %v14715_v21, %v7338_v14  ;;  %v12387_v11 = vadd.f32 %v12005_v8, %v14716_v44  ;;  %v12391_v57 = vadd.f32 %v12005_v8, %v14717_v5 }
 0x4bd   :  { %7928 = vst [vmem:[#allocation2] sm:$0xff] %v7896_v43  ;;  %v6055_v29 = vmul.f32 0.33333334, %v5991_v30  ;;  %v6439_v46 = vsub.f32 %v4410_v17, %v12313_v59  ;;  %v4469_v39 = vadd.f32 %v4468_v55, %v4467_v13  ;;  %v4475_v50 = vrot.slane %v4474_v26, 4  ;;  %v12408_v30 = vpop.f32.mrb[166].mxu0 }
 0x4be   :  { %v3090_v51 = vcombine.high %v12387_v11, %v12387_v11  ;;  %v4439_v22 = vsel %vm3262_vm2, %v12387_v11, 0.0  ;;  %v6698_v14 = vrot.slane %v12387_v11, %v9773_v28  ;;  %v12406_v10 = vcombine.high %v12391_v57, %v12391_v57  ;;  %14719 = vst [vmem:[#allocation22_spill] sm:$0xff] %v12408_v30  ;;  %v12433_v45 = vpop.f32.mrb[167].mxu0 }
 0x4bf   :  { %v6503_v59 = vmul.f32 0.33333334, %v6439_v46  ;;  %v12411_v13 = vsel %vm6783_vm3, %v7532_v24, %v6055_v29  ;;  %v4470_v17 = vrot.slane %v4469_v39, 2  ;;  %v4476_v43 = vadd.f32 %v4475_v50, %v4474_v26  ;;  %v7575_v35 = vpop.permute.xlu1 %7574  ;;  %v14722_v29 = vld [vmem:[#allocation41_spill] sm:$0xff]  ;;  %14724 = vst [vmem:[#allocation49_spill] sm:$0xff] %v12433_v45 }
 0x4c0   :  { %v12414_v55 = vadd.f32 %v4363_v1, %v12290_v23  ;;  %v4440_v21 = vrot.slane %v4439_v22, 4  ;;  %v4446_v44 = vsel %vm3262_vm2, %v3090_v51, 0.0  ;;  %v12419_v5 = vsel %vm6785_vm4, %v6698_v14, %v12243_v63 }
 0x4c1   :  { %14720 = vst [vmem:[#allocation20_spill] sm:$0xff] %v12419_v5  ;;  %v12422_v15 = vsel %vm6783_vm3, %v7812_v16, %v6503_v59  ;;  %v4471_v46 = vadd.f32 %v4470_v17, %v4469_v39  ;;  %v4477_v30 = vrot.slane %v4476_v43, 2  ;;  %v4447_v24 = vrot.slane %v4446_v44, 4  ;;  %v14723_v17 = vld [vmem:[#allocation37_spill] sm:$0xff] }
 0x4c2   :  { %14721 = vst [vmem:[#allocation33_spill] sm:$0xff] %v12422_v15  ;;  %v7340_v26 = vsel %vm6795_vm9, %v14722_v29, %v7339_v40  ;;  %v4441_v50 = vadd.f32 %v4440_v21, %v4439_v22  ;;  %v4481_v23 = vsel %vm3262_vm2, %v12391_v57, 0.0  ;;  %v4488_v1 = vsel %vm3262_vm2, %v12406_v10, 0.0 }
 0x4c3   :  { %v4472_v3 = vrot.slane %v4471_v46, 1  ;;  %v4478_v63 = vadd.f32 %v4477_v30, %v4476_v43  ;;  %v4448_v14 = vadd.f32 %v4447_v24, %v4446_v44  ;;  %v4482_v5 = vrot.slane %v4481_v23, 4 }
 0x4c4   :  { %v7904_v16 = vsel %vm1188_vm1, %v7340_v26, %v7575_v35  ;;  %v4442_v59 = vrot.slane %v4441_v50, 2  ;;  %v4489_v39 = vrot.slane %v4488_v1, 4  ;;  %v2707_v15 = vadd.f32 %v12005_v8, %v14723_v17 }
 0x4c5   :  { %v4473_v40 = vadd.f32 %v4472_v3, %v4471_v46  ;;  %v4479_v22 = vrot.slane %v4478_v63, 1  ;;  %v4449_v21 = vrot.slane %v4448_v14, 2  ;;  %v4483_v29 = vadd.f32 %v4482_v5, %v4481_v23 }
 0x4c6   :  { %v4443_v25 = vadd.f32 %v4442_v59, %v4441_v50  ;;  %v4490_v49 = vadd.f32 %v4489_v39, %v4488_v1  ;;  %v3091_v4 = vcombine.high %v2707_v15, %v2707_v15  ;;  %v4453_v30 = vsel %vm3262_vm2, %v2707_v15, 0.0 }
 0x4c7   :  { %v4480_v43 = vadd.f32 %v4479_v22, %v4478_v63  ;;  %v12437_v44 = vrot.slane %v3092_v31, %v9797_v33  ;;  %v4450_v35 = vadd.f32 %v4449_v21, %v4448_v14  ;;  %v4484_v24 = vrot.slane %v4483_v29, 2  ;;  %v12444_v31 = vpop.f32.mrb[168].mxu0 }
 0x4c8   :  { %v4444_v26 = vrot.slane %v4443_v25, 1  ;;  %v4491_v6 = vrot.slane %v4490_v49, 2  ;;  %v4454_v17 = vrot.slane %v4453_v30, 4  ;;  %v4460_v45 = vsel %vm3262_vm2, %v3091_v4, 0.0 }
 0x4c9   :  { %v5098_v3 = vsub.f32 %v4473_v40, %v12367_v37  ;;  %v4451_v46 = vrot.slane %v4450_v35, 1  ;;  %v12442_v5 = vrot.slane %v3090_v51, %v9797_v33  ;;  %v4485_v50 = vadd.f32 %v4484_v24, %v4483_v29 }
 0x4ca   :  { %v4445_v23 = vadd.f32 %v4444_v26, %v4443_v25  ;;  %v4492_v1 = vadd.f32 %v4491_v6, %v4490_v49  ;;  %v4455_v63 = vadd.f32 %v4454_v17, %v4453_v30  ;;  %v4461_v59 = vrot.slane %v4460_v45, 4 }
 0x4cb   :  { %v5546_v14 = vsub.f32 %v4480_v43, %v12437_v44  ;;  %v4452_v39 = vadd.f32 %v4451_v46, %v4450_v35  ;;  %v4486_v22 = vrot.slane %v4485_v50, 1  ;;  %v12449_v21 = vrot.slane %v12391_v57, %v9803_v34 }
 0x4cc   :  { %v5097_v40 = vsub.f32 %v4445_v23, %v12387_v11  ;;  %v4493_v48 = vrot.slane %v4492_v1, 1  ;;  %v4456_v51 = vrot.slane %v4455_v63, 2  ;;  %v4462_v38 = vadd.f32 %v4461_v59, %v4460_v45 }
 0x4cd   :  { %v5545_v25 = vsub.f32 %v4452_v39, %v12442_v5  ;;  %v4487_v49 = vadd.f32 %v4486_v22, %v4485_v50  ;;  %v12455_v6 = vrot.slane %v12406_v10, %v9820_v2  ;;  %v5802_v29 = vrot.slane %v2707_v15, %v9803_v34  ;;  %v7855_v10 = vpop.permute.xlu0 %7854  ;;  %v14727_v22 = vld [vmem:[#allocation48_spill] sm:$0xff] }
 0x4ce   :  { %v12458_v30 = vmul.f32 0.33333334, %v5098_v3  ;;  %v4494_v43 = vadd.f32 %v4493_v48, %v4492_v1  ;;  %v4457_v35 = vadd.f32 %v4456_v51, %v4455_v63  ;;  %v4463_v57 = vrot.slane %v4462_v38, 2 }
 0x4cf   :  { %v12460_v24 = vmul.f32 0.33333334, %v5546_v14  ;;  %v12462_v11 = vmul.f32 0.33333334, %v5097_v40  ;;  %v12465_v45 = vrot.slane %v3091_v4, %v9820_v2  ;;  %v12469_v26 = vsel %vm6785_vm4, %v5802_v29, %v12317_v27  ;;  %v14729_v40 = vld [vmem:[#allocation87_spill] sm:$0xff] }
 0x4d0   :  { %v12471_v17 = vmul.f32 0.33333334, %v5545_v25  ;;  %v5994_v15 = vsub.f32 %v4487_v49, %v12449_v21  ;;  %v4458_v3 = vrot.slane %v4457_v35, 1  ;;  %v4464_v48 = vadd.f32 %v4463_v57, %v4462_v38  ;;  %v12486_v38 = vpop.f32.mrb[169].mxu0 }
 0x4d1   :  { %14725 = vst [vmem:[#allocation30_spill] sm:$0xff] %v12460_v24  ;;  %v6442_v50 = vsub.f32 %v4494_v43, %v12455_v6  ;;  %v12480_v4 = vsel %vm6785_vm4, %v12465_v45, %v12326_v58  ;;  %v7912_v27 = vsel %vm7886_vm10, %v7904_v16, %v12393_v36  ;;  %v12492_v58 = vadd.f32 %v12005_v8, %v14727_v22  ;;  %v12517_v22 = vpop.f32.mrb[170].mxu0 }
 0x4d2   :  { %14726 = vst [vmem:[#allocation29_spill] sm:$0xff] %v12471_v17  ;;  %v4459_v1 = vadd.f32 %v4458_v3, %v4457_v35  ;;  %v4465_v63 = vrot.slane %v4464_v48, 1  ;;  %v7920_v59 = vsel %vm7895_vm11, %v7912_v27, %v7855_v10  ;;  %v12496_v36 = vadd.f32 %v12005_v8, %v14729_v40 }
 0x4d3   :  { %7929 = vst [vmem:[#allocation2 + $0x8] sm:$0xff] %v7920_v59  ;;  %14728 = vst [vmem:[#allocation43_spill] sm:$0xff] %v12492_v58  ;;  %v12499_v51 = vmul.f32 0.33333334, %v5994_v15  ;;  %v12501_v43 = vmul.f32 0.33333334, %v6442_v50  ;;  %v3096_v35 = vcombine.high %v12492_v58, %v12492_v58 }
 0x4d4   :  { %14730 = vst [vmem:[#allocation40_spill] sm:$0xff] %v12496_v36  ;;  %v4466_v25 = vadd.f32 %v4465_v63, %v4464_v48  ;;  %v5993_v49 = vsub.f32 %v4459_v1, %v5802_v29  ;;  %v4523_v57 = vsel %vm3262_vm2, %v12492_v58, 0.0  ;;  %v3094_v10 = vcombine.high %v12496_v36, %v12496_v36 }
 0x4d5   :  { %14731 = vst [vmem:[#allocation57_spill] sm:$0xff] %v12499_v51  ;;  %14732 = vst [vmem:[#allocation41_spill] sm:$0xff] %v12501_v43  ;;  %v4524_v59 = vrot.slane %v4523_v57, 4  ;;  %v4495_v15 = vsel %vm3262_vm2, %v12496_v36, 0.0  ;;  %v4530_v29 = vsel %vm3262_vm2, %v3096_v35, 0.0  ;;  %v14733_v1 = vrot.slane %v12157_v47, 2 }
 0x4d6   :  { %v6057_v3 = vmul.f32 0.33333334, %v5993_v49  ;;  %v6441_v27 = vsub.f32 %v4466_v25, %v12465_v45  ;;  %v4496_v48 = vrot.slane %v4495_v15, 4  ;;  %v4502_v50 = vsel %vm3262_vm2, %v3094_v10, 0.0 }
 0x4d7   :  { %v4359_v63 = vadd.f32 %v14733_v1, %v12157_v47  ;;  %v4525_v46 = vadd.f32 %v4524_v59, %v4523_v57  ;;  %v4531_v49 = vrot.slane %v4530_v29, 4  ;;  %v14734_v45 = vsub.f32 %v12211_v32, %v12116_v7  ;;  %v14735_v32 = vld [vmem:[#allocation17_spill] sm:$0xff] }
 0x4d8   :  { %v7534_v40 = vrot.slane %v6057_v3, 6  ;;  %v4497_v23 = vadd.f32 %v4496_v48, %v4495_v15  ;;  %v4503_v39 = vrot.slane %v4502_v50, 4  ;;  %v14738_v48 = vld [vmem:[#allocation64_spill] sm:$0xff]  ;;  %v14740_v57 = vrot.slane %v12084_v53, 4 }
 0x4d9   :  { %v5157_v25 = vmul.f32 0.33333334, %v14734_v45  ;;  %v4526_v47 = vrot.slane %v4525_v46, 2  ;;  %v4532_v1 = vadd.f32 %v4531_v49, %v4530_v29  ;;  %v4360_v24 = vrot.slane %v4359_v63, 1  ;;  %v14736_v45 = vld [vmem:[#allocation74_spill] sm:$0xff] }
 0x4da   :  { %v12526_v37 = vsel %vm6785_vm4, %v7534_v40, %v12411_v13  ;;  %v4498_v3 = vrot.slane %v4497_v23, 2  ;;  %v4504_v59 = vadd.f32 %v4503_v39, %v4502_v50  ;;  %v14737_v7 = vrot.slane %v14736_v45, 6 }
 0x4db   :  { %v4527_v16 = vadd.f32 %v4526_v47, %v4525_v46  ;;  %v4533_v15 = vrot.slane %v4532_v1, 2  ;;  %v14739_v43 = vrot.slane %v14738_v48, 5  ;;  %v6984_v40 = vrot.slane %v5157_v25, 2  ;;  %v14743_v46 = vld [vmem:[#allocation88_spill] sm:$0xff] }
 0x4dc   :  { %v6977_v14 = vsel %vm6785_vm4, %v14737_v7, %v14735_v32  ;;  %v4499_v17 = vadd.f32 %v4498_v3, %v4497_v23  ;;  %v4505_v29 = vrot.slane %v4504_v59, 2  ;;  %v4361_v49 = vadd.f32 %v4360_v24, %v4359_v63 }
 0x4dd   :  { %v6979_v13 = vsel %vm6787_vm5, %v14739_v43, %v6977_v14  ;;  %v12540_v50 = vmul.f32 0.33333334, %v6441_v27  ;;  %v4528_v51 = vrot.slane %v4527_v16, 1  ;;  %v14742_v45 = vrot.slane %v12021_v20, 3 }
 0x4de   :  { %v6981_v39 = vsel %vm6789_vm6, %v14740_v57, %v6979_v13  ;;  %v2731_v47 = vadd.f32 %v12005_v8, %v14743_v46  ;;  %v4500_v32 = vrot.slane %v4499_v17, 1  ;;  %v4506_v14 = vadd.f32 %v4505_v29, %v4504_v59 }
 0x4df   :  { %14741 = vst [vmem:[#allocation37_spill] sm:$0xff] %v12540_v50  ;;  %v6983_v7 = vsel %vm6791_vm7, %v14742_v45, %v6981_v39  ;;  %v5094_v23 = vsub.f32 %v4361_v49, %v12112_v12  ;;  %v4529_v43 = vadd.f32 %v4528_v51, %v4527_v16  ;;  %v12550_v53 = vrot.slane %v3096_v35, %v9797_v33  ;;  %v12562_v51 = vpop.f32.mrb[171].mxu0 }
 0x4e0   :  { %v6985_v24 = vsel %vm6793_vm8, %v6984_v40, %v6983_v7  ;;  %v3097_v27 = vcombine.high %v2731_v47, %v2731_v47  ;;  %v4537_v63 = vsel %vm3262_vm2, %v2731_v47, 0.0  ;;  %v12553_v25 = vadd.f32 %v4533_v15, %v4532_v1 }
 0x4e1   :  { %v4507_v20 = vrot.slane %v4506_v14, 1  ;;  %v5158_v57 = vmul.f32 0.33333334, %v5094_v23  ;;  %v4538_v3 = vrot.slane %v4537_v63, 4  ;;  %v12557_v59 = vrot.slane %v3094_v10, %v9797_v33 }
 0x4e2   :  { %v4544_v16 = vsel %vm3262_vm2, %v3097_v27, 0.0  ;;  %v4501_v35 = vadd.f32 %v4500_v32, %v4499_v17  ;;  %v5100_v29 = vsub.f32 %v4529_v43, %v12492_v58  ;;  %v2723_v39 = vadd.f32 %v12005_v8, %v12018_v9 }
 0x4e3   :  { %v12564_v40 = vadd.f32 %v4507_v20, %v4506_v14  ;;  %v6986_v1 = vrot.slane %v5158_v57, 1  ;;  %v4539_v15 = vadd.f32 %v4538_v3, %v4537_v63  ;;  %v4545_v49 = vrot.slane %v4544_v16, 4 }
 0x4e4   :  { %v7371_v10 = vsel %vm6787_vm5, %v12449_v21, %v12469_v26  ;;  %v12578_v14 = vrot.slane %v2731_v47, %v9803_v34  ;;  %v3095_v23 = vcombine.high %v2723_v39, %v2723_v39  ;;  %v4509_v8 = vsel %vm3262_vm2, %v2723_v39, 0.0 }
 0x4e5   :  { %v5547_v7 = vsub.f32 %v12564_v40, %v12557_v59  ;;  %v6987_v17 = vsel %vm6795_vm9, %v6986_v1, %v6985_v24  ;;  %v4540_v46 = vrot.slane %v4539_v15, 2  ;;  %v4546_v32 = vadd.f32 %v4545_v49, %v4544_v16 }
 0x4e6   :  { %7038 = vrot.lane.b32.xlu0 %v6987_v17, %s8796_s25  ;;  %14744 = vst [vmem:[#allocation48_spill] sm:$0xff] %v12578_v14  ;;  %v5099_v9 = vsub.f32 %v4501_v35, %v12496_v36  ;;  %v12583_v26 = vrot.slane %v3097_v27, %v9820_v2  ;;  %v4510_v43 = vrot.slane %v4509_v8, 4  ;;  %v12585_v63 = vmul.f32 0.33333334, %v5100_v29 }
 0x4e7   :  { %v4541_v21 = vadd.f32 %v4540_v46, %v4539_v15  ;;  %v4547_v24 = vrot.slane %v4546_v32, 2  ;;  %v4516_v20 = vsel %vm3262_vm2, %v3095_v23, 0.0  ;;  %v12589_v57 = vrot.slane %v2723_v39, %v9803_v34 }
 0x4e8   :  { %v4511_v3 = vadd.f32 %v4510_v43, %v4509_v8  ;;  %v4517_v16 = vrot.slane %v4516_v20, 4  ;;  %v14745_v1 = vsub.f32 %v12251_v56, %v12195_v54  ;;  %v14747_v29 = vrot.slane %v11956_v62, 5 }
 0x4e9   :  { %v4542_v47 = vrot.slane %v4541_v21, 1  ;;  %v4548_v15 = vadd.f32 %v4547_v24, %v4546_v32  ;;  %v12596_v27 = vsel %vm6789_vm6, %v12589_v57, %v7371_v10  ;;  %v14748_v39 = vrot.slane %v11999_v19, 1  ;;  %v12608_v24 = vpop.f32.mrb[172].mxu0 }
 0x4ea   :  { %v6054_v35 = vmul.f32 0.33333334, %v14745_v1  ;;  %14746 = vst [vmem:[#allocation87_spill] sm:$0xff] %v12596_v27  ;;  %v7523_v49 = vsel %vm6787_vm5, %v14747_v29, %v11975_v60  ;;  %v4512_v8 = vrot.slane %v4511_v3, 2  ;;  %v4518_v43 = vadd.f32 %v4517_v16, %v4516_v20  ;;  %14750 = vst [vmem:[#allocation17_spill] sm:$0xff] %v12608_v24 }
 0x4eb   :  { %v4312_v17 = vadd.f32 %v14748_v39, %v11999_v19  ;;  %v4543_v46 = vadd.f32 %v4542_v47, %v4541_v21  ;;  %v14749_v56 = vrot.slane %v12137_v41, 4  ;;  %v4549_v10 = vrot.slane %v4548_v15, 1  ;;  %v12616_v19 = vpop.f32.mrb[173].mxu0 }
 0x4ec   :  { %v14751_v1 = vrot.slane %v12097_v61, 3  ;;  %v7530_v13 = vrot.slane %v6054_v35, 1  ;;  %v14752_v60 = vrot.slane %v12168_v0, 2  ;;  %14753 = vst [vmem:[#allocation74_spill] sm:$0xff] %v12616_v19  ;;  %v12618_v21 = vmul.f32 0.33333334, %v5099_v9 }
 0x4ed   :  { %v7525_v32 = vsel %vm6789_vm6, %v14749_v56, %v7523_v49  ;;  %v4513_v20 = vadd.f32 %v4512_v8, %v4511_v3  ;;  %v4519_v41 = vrot.slane %v4518_v43, 2  ;;  %v14754_v47 = vrot.slane %v12271_v18, 2 }
 0x4ee   :  { %v7527_v62 = vsel %vm6791_vm7, %v14751_v1, %v7525_v32  ;;  %v4338_v29 = vadd.f32 %v14752_v60, %v12168_v0  ;;  %v4550_v49 = vadd.f32 %v4549_v10, %v4548_v15  ;;  %v4365_v35 = vrot.slane %v12414_v55, 2  ;;  %v14755_v1 = vld [vmem:[#allocation54_spill] sm:$0xff]  ;;  %v14756_v15 = vld [vmem:[#allocation72_spill] sm:$0xff] }
 0x4ef   :  { %v7529_v16 = vsel %vm6793_vm8, %v14754_v47, %v7527_v62  ;;  %v5996_v56 = vsub.f32 %v4543_v46, %v12578_v14  ;;  %v4514_v32 = vrot.slane %v4513_v20, 1  ;;  %v4520_v0 = vadd.f32 %v4519_v41, %v4518_v43  ;;  %v14782_v14 = vld [vmem:[#allocation89_spill] sm:$0xff] }
 0x4f0   :  { %v7531_v61 = vsel %vm6795_vm9, %v7530_v13, %v7529_v16  ;;  %v4339_v39 = vrot.slane %v4338_v29, 1  ;;  %v5540_v9 = vsub.f32 %v4312_v17, %v11968_v52  ;;  %v6444_v3 = vsub.f32 %v4550_v49, %v12583_v26  ;;  %v14758_v17 = vld [vmem:[#allocation85_spill] sm:$0xff] }
 0x4f1   :  { %7582 = vrot.lane.b32.xlu1 %v7531_v61, %s8796_s25  ;;  %v4366_v18 = vadd.f32 %v4365_v35, %v12414_v55  ;;  %v14757_v10 = vrot.slane %v14756_v15, 7  ;;  %v4515_v60 = vadd.f32 %v4514_v32, %v4513_v20  ;;  %v4521_v46 = vrot.slane %v4520_v0, 1  ;;  %v14761_v61 = vld [vmem:[#allocation73_spill] sm:$0xff]  ;;  %v14763_v20 = vld [vmem:[#allocation76_spill] sm:$0xff] }
 0x4f2   :  { %v4340_v8 = vadd.f32 %v4339_v39, %v4338_v29  ;;  %v5604_v47 = vmul.f32 0.33333334, %v5540_v9  ;;  %v12636_v43 = vrot.slane %v3095_v23, %v9820_v2  ;;  %v14759_v29 = vrot.slane %v14758_v17, 6 }
 0x4f3   :  { %v7255_v13 = vsel %vm6783_vm3, %v14757_v10, %v14755_v1  ;;  %v4367_v41 = vrot.slane %v4366_v18, 1  ;;  %v12642_v16 = vmul.f32 0.33333334, %v5996_v56  ;;  %v4522_v49 = vadd.f32 %v4521_v46, %v4520_v0  ;;  %v12650_v10 = vpop.f32.mrb[174].mxu0  ;;  %v12658_v0 = vld [vmem:[%s14105_s6] ss:$0 sm:$0xff] }
 0x4f4   :  { %v5541_v52 = vsub.f32 %v4340_v8, %v12281_v42  ;;  %v7257_v55 = vsel %vm6785_vm4, %v14759_v29, %v7255_v13  ;;  %v14762_v39 = vrot.slane %v14761_v61, 5  ;;  %v7260_v32 = vrot.slane %v14763_v20, 4  ;;  %14765 = vst [vmem:[#allocation54_spill] sm:$0xff] %v12650_v10  ;;  %v14766_v13 = vld [vmem:[#allocation90_spill] sm:$0xff]  ;;  %v14778_v61 = vld [vmem:[#allocation31_spill] sm:$0xff]  ;;  %v12701_v17 = vpop.f32.mrb[175].mxu0 }
 0x4f5   :  { %14760 = vst [vmem:[#allocation64_spill] sm:$0xff] %v12642_v16  ;;  %v12648_v9 = vmul.f32 0.33333334, %v6444_v3  ;;  %v4368_v23 = vadd.f32 %v4367_v41, %v4366_v18  ;;  %v7262_v15 = vrot.slane %v5604_v47, 3  ;;  %v5995_v42 = vsub.f32 %v4515_v60, %v12589_v57  ;;  %v14768_v18 = vld [vmem:[#allocation45_spill] sm:$0xff]  ;;  %14780 = vst [vmem:[#allocation76_spill] sm:$0xff] %v12701_v17 }
 0x4f6   :  { %v7259_v35 = vsel %vm6787_vm5, %v14762_v39, %v7257_v55  ;;  %v5605_v1 = vmul.f32 0.33333334, %v5541_v52  ;;  %v6443_v8 = vsub.f32 %v4522_v49, %v12636_v43  ;;  %v12662_v3 = vadd.f32 %v12658_v0, %v14766_v13  ;;  %v14769_v52 = vld [vmem:[#allocation91_spill] sm:$0xff]  ;;  %v14772_v55 = vld [vmem:[#allocation65_spill] sm:$0xff] }
 0x4f7   :  { %14764 = vst [vmem:[#allocation88_spill] sm:$0xff] %v12648_v9  ;;  %v7261_v56 = vsel %vm6789_vm6, %v7260_v32, %v7259_v35  ;;  %v5542_v46 = vsub.f32 %v4368_v23, %v14768_v18  ;;  %v12668_v57 = vadd.f32 %v12658_v0, %v14769_v52  ;;  %v12673_v60 = vmul.f32 0.33333334, %v5547_v7  ;;  %v14775_v52 = vld [vmem:[#allocation7_spill] sm:$0xff] }
 0x4f8   :  { %14767 = vst [vmem:[#allocation72_spill] sm:$0xff] %v12662_v3  ;;  %v7263_v47 = vsel %vm6791_vm7, %v7262_v15, %v7261_v56  ;;  %v7264_v41 = vrot.slane %v5605_v1, 2  ;;  %v4579_v29 = vsel %vm3262_vm2, %v12662_v3, 0.0  ;;  %v4381_v49 = vrot.slane %v14772_v55, 1 }
 0x4f9   :  { %14770 = vst [vmem:[#allocation85_spill] sm:$0xff] %v12668_v57  ;;  %14771 = vst [vmem:[#allocation73_spill] sm:$0xff] %v12673_v60  ;;  %v5606_v39 = vmul.f32 0.33333334, %v5542_v46  ;;  %v12683_v20 = vcombine.high %v12668_v57, %v12668_v57  ;;  %v12686_v7 = vmul.f32 0.33333334, %v5995_v42 }
 0x4fa   :  { %v7265_v35 = vsel %vm6793_vm8, %v7264_v41, %v7263_v47  ;;  %v4551_v32 = vsel %vm3262_vm2, %v12668_v57, 0.0  ;;  %v4382_v23 = vadd.f32 %v4381_v49, %v14772_v55  ;;  %v4580_v15 = vrot.slane %v4579_v29, 4  ;;  %v14773_v46 = vld [vmem:[#allocation12_spill] sm:$0xff]  ;;  %v14777_v42 = vld [vmem:[#allocation23_spill] sm:$0xff] }
 0x4fb   :  { %v7266_v1 = vrot.slane %v5606_v39, 1  ;;  %v4552_v56 = vrot.slane %v4551_v32, 4  ;;  %v4558_v13 = vsel %vm3262_vm2, %v12683_v20, 0.0  ;;  %v14774_v41 = vld [vmem:[#allocation24_spill] sm:$0xff]  ;;  %v14779_v45 = vrot.slane %v14778_v61, 6 }
 0x4fc   :  { %v4559_v18 = vrot.slane %v4558_v13, 4  ;;  %v6438_v47 = vsub.f32 %v4382_v23, %v14773_v46  ;;  %v14776_v48 = vsub.f32 %v14774_v41, %v14775_v52  ;;  %v12703_v55 = vmul.f32 0.33333334, %v6443_v8  ;;  %v14784_v41 = vld [vmem:[#allocation83_spill] sm:$0xff]  ;;  %v14786_v8 = vld [vmem:[#allocation44_spill] sm:$0xff] }
 0x4fd   :  { %v7801_v62 = vsel %vm6785_vm4, %v14779_v45, %v14777_v42  ;;  %v7267_v49 = vsel %vm6795_vm9, %v7266_v1, %v7265_v35  ;;  %v4553_v39 = vadd.f32 %v4552_v56, %v4551_v32  ;;  %v14783_v27 = vrot.slane %v14782_v14, 5  ;;  %v14788_v32 = vld [vmem:[#allocation78_spill] sm:$0xff] }
 0x4fe   :  { %v6501_v40 = vmul.f32 0.33333334, %v14776_v48  ;;  %14781 = vst [vmem:[#allocation90_spill] sm:$0xff] %v12703_v55  ;;  %7318 = vrot.lane.b32.xlu0 %v7267_v49, %s8797_s26  ;;  %v6502_v48 = vmul.f32 0.33333334, %v6438_v47  ;;  %v14785_v61 = vrot.slane %v14784_v41, 4  ;;  %v12719_v14 = vadd.f32 %v12658_v0, %v14788_v32 }
 0x4ff   :  { %v7803_v23 = vsel %vm6787_vm5, %v14783_v27, %v7801_v62  ;;  %v4554_v42 = vrot.slane %v4553_v39, 2  ;;  %v14787_v58 = vrot.slane %v14786_v8, 3  ;;  %v14789_v27 = vld [vmem:[#allocation81_spill] sm:$0xff]  ;;  %v12723_v1 = vadd.f32 %v4580_v15, %v4579_v29 }
 0x500   :  { %v7805_v45 = vsel %vm6789_vm6, %v14785_v61, %v7803_v23  ;;  %v7808_v52 = vrot.slane %v6501_v40, 2  ;;  %v2739_v62 = vadd.f32 %v12658_v0, %v14789_v27  ;;  %v12725_v56 = vadd.f32 %v4559_v18, %v4558_v13  ;;  %v14791_v41 = vld [vmem:[#allocation69_spill] sm:$0xff] }
 0x501   :  { %v7807_v35 = vsel %vm6791_vm7, %v14787_v58, %v7805_v45  ;;  %v7810_v49 = vrot.slane %v6502_v48, 1  ;;  %v4555_v40 = vadd.f32 %v4554_v42, %v4553_v39  ;;  %v12730_v23 = vcombine.high %v12719_v14, %v12719_v14  ;;  %v12746_v42 = vpop.f32.mrb[176].mxu0 }
 0x502   :  { %14790 = vst [vmem:[#allocation45_spill] sm:$0xff] %v12725_v56  ;;  %v7809_v47 = vsel %vm6793_vm8, %v7808_v52, %v7807_v35  ;;  %v4593_v58 = vsel %vm3262_vm2, %v12719_v14, 0.0  ;;  %v12736_v61 = vadd.f32 %v12658_v0, %v14791_v41  ;;  %v3099_v13 = vcombine.high %v2739_v62, %v2739_v62  ;;  %14792 = vst [vmem:[#allocation91_spill] sm:$0xff] %v12746_v42 }
 0x503   :  { %v7811_v29 = vsel %vm6795_vm9, %v7810_v49, %v7809_v47  ;;  %v4594_v15 = vrot.slane %v4593_v58, 4  ;;  %v4565_v18 = vsel %vm3262_vm2, %v2739_v62, 0.0  ;;  %v4600_v45 = vsel %vm3262_vm2, %v12730_v23, 0.0  ;;  %v12760_v47 = vpop.f32.mrb[177].mxu0 }
 0x504   :  { %7862 = vrot.lane.b32.xlu0 %v7811_v29, %s8797_s26  ;;  %v4566_v52 = vrot.slane %v4565_v18, 4  ;;  %v4556_v8 = vrot.slane %v4555_v40, 1  ;;  %v4601_v32 = vrot.slane %v4600_v45, 4  ;;  %v4572_v27 = vsel %vm3262_vm2, %v3099_v13, 0.0  ;;  %14794 = vst [vmem:[#allocation12_spill] sm:$0xff] %v12760_v47 }
 0x505   :  { %v4595_v35 = vadd.f32 %v4594_v15, %v4593_v58  ;;  %v4573_v41 = vrot.slane %v4572_v27, 4  ;;  %v3104_v39 = vcombine.high %v12736_v61, %v12736_v61  ;;  %v4635_v36 = vsel %vm3262_vm2, %v12736_v61, 0.0 }
 0x506   :  { %v4567_v49 = vadd.f32 %v4566_v52, %v4565_v18  ;;  %v12753_v46 = vadd.f32 %v4601_v32, %v4600_v45  ;;  %v12758_v15 = vrot.slane %v2739_v62, %v9803_v34  ;;  %v4636_v12 = vrot.slane %v4635_v36, 4 }
 0x507   :  { %v4596_v48 = vrot.slane %v4595_v35, 2  ;;  %v4574_v58 = vadd.f32 %v4573_v41, %v4572_v27  ;;  %v12762_v18 = vadd.f32 %v4556_v8, %v4555_v40  ;;  %v12765_v42 = vrot.slane %v3099_v13, %v9820_v2  ;;  %v14795_v40 = vld [vmem:[#allocation39_spill] sm:$0xff]  ;;  %v12778_v13 = vpop.f32.mrb[178].mxu0 }
 0x508   :  { %v4568_v54 = vrot.slane %v4567_v49, 2  ;;  %14793 = vst [vmem:[#allocation65_spill] sm:$0xff] %v12758_v15  ;;  %v4642_v45 = vsel %vm3262_vm2, %v3104_v39, 0.0  ;;  %v4637_v17 = vadd.f32 %v4636_v12, %v4635_v36  ;;  %v4603_v27 = vrot.slane %v12753_v46, 2  ;;  %14796 = vst [vmem:[#allocation24_spill] sm:$0xff] %v12778_v13 }
 0x509   :  { %v4597_v52 = vadd.f32 %v4596_v48, %v4595_v35  ;;  %v4575_v29 = vrot.slane %v4574_v58, 2  ;;  %v4643_v9 = vrot.slane %v4642_v45, 4  ;;  %v12770_v62 = vrot.slane %v3104_v39, %v9797_v33 }
 0x50a   :  { %v4569_v32 = vadd.f32 %v4568_v54, %v4567_v49  ;;  %v6726_v41 = vrot.slane %v12736_v61, %v9773_v28  ;;  %v12776_v48 = vadd.f32 %v12658_v0, %v14795_v40  ;;  %v4638_v54 = vrot.slane %v4637_v17, 2 }
 0x50b   :  { %v4576_v35 = vadd.f32 %v4575_v29, %v4574_v58  ;;  %v4644_v49 = vadd.f32 %v4643_v9, %v4642_v45  ;;  %v4598_v12 = vrot.slane %v4597_v52, 1  ;;  %v14797_v9 = vld [vmem:[#allocation80_spill] sm:$0xff] }
 0x50c   :  { %v4570_v8 = vrot.slane %v4569_v32, 1  ;;  %v3102_v36 = vcombine.high %v12776_v48, %v12776_v48  ;;  %v4607_v39 = vsel %vm3262_vm2, %v12776_v48, 0.0  ;;  %v6722_v47 = vrot.slane %v12776_v48, %v9773_v28 }
 0x50d   :  { %v4577_v10 = vrot.slane %v4576_v35, 1  ;;  %v4639_v40 = vadd.f32 %v4638_v54, %v4637_v17  ;;  %v4645_v50 = vrot.slane %v4644_v49, 2  ;;  %v4608_v19 = vrot.slane %v4607_v39, 4 }
 0x50e   :  { %v4571_v55 = vadd.f32 %v4570_v8, %v4569_v32  ;;  %v4614_v13 = vsel %vm3262_vm2, %v3102_v36, 0.0  ;;  %v12788_v29 = vrot.slane %v3102_v36, %v9797_v33  ;;  %v2763_v58 = vadd.f32 %v12658_v0, %v14797_v9 }
 0x50f   :  { %v12792_v45 = vadd.f32 %v4577_v10, %v4576_v35  ;;  %v4640_v60 = vrot.slane %v4639_v40, 1  ;;  %v4646_v56 = vadd.f32 %v4645_v50, %v4644_v49  ;;  %v4609_v16 = vadd.f32 %v4608_v19, %v4607_v39 }
 0x510   :  { %v5997_v24 = vsub.f32 %v4571_v55, %v12758_v15  ;;  %v4615_v32 = vrot.slane %v4614_v13, 4  ;;  %v12796_v17 = vsel %vm6783_vm3, %v6726_v41, %v6722_v47  ;;  %v12801_v8 = vsel %vm6783_vm3, %v12770_v62, %v12788_v29 }
 0x511   :  { %14798 = vst [vmem:[#allocation7_spill] sm:$0xff] %v12792_v45  ;;  %14799 = vst [vmem:[#allocation23_spill] sm:$0xff] %v12801_v8  ;;  %v12803_v54 = vadd.f32 %v4598_v12, %v4597_v52  ;;  %v4641_v35 = vadd.f32 %v4640_v60, %v4639_v40  ;;  %v4647_v36 = vrot.slane %v4646_v56, 1  ;;  %v4610_v55 = vrot.slane %v4609_v16, 2  ;;  %v12817_v8 = vpop.f32.mrb[179].mxu0  ;;  %v14816_v45 = vld [vmem:[#allocation11_spill] sm:$0xff] }
 0x512   :  { %v4616_v9 = vadd.f32 %v4615_v32, %v4614_v13  ;;  %v3105_v50 = vcombine.high %v2763_v58, %v2763_v58  ;;  %v4649_v19 = vsel %vm3262_vm2, %v2763_v58, 0.0  ;;  %v12808_v49 = vmul.f32 0.33333334, %v5997_v24  ;;  %14801 = vst [vmem:[#allocation89_spill] sm:$0xff] %v12817_v8 }
 0x513   :  { %v4648_v47 = vadd.f32 %v4647_v36, %v4646_v56  ;;  %v5104_v41 = vsub.f32 %v4641_v35, %v12736_v61  ;;  %v4650_v39 = vrot.slane %v4649_v19, 4  ;;  %v12813_v52 = vrot.slane %v12719_v14, %v9803_v34  ;;  %v12881_v35 = vpop.f32.mrb[180].mxu0 }
 0x514   :  { %v4611_v12 = vadd.f32 %v4610_v55, %v4609_v16  ;;  %v4617_v15 = vrot.slane %v4616_v9, 2  ;;  %v4656_v60 = vsel %vm3262_vm2, %v3105_v50, 0.0  ;;  %v12822_v56 = vadd.f32 %v4603_v27, %v12753_v46  ;;  %14810 = vst [vmem:[#allocation81_spill] sm:$0xff] %v12881_v35 }
 0x515   :  { %14800 = vst [vmem:[#allocation31_spill] sm:$0xff] %v12813_v52  ;;  %v5168_v40 = vmul.f32 0.33333334, %v5104_v41  ;;  %v5552_v13 = vsub.f32 %v4648_v47, %v12770_v62  ;;  %v4651_v32 = vadd.f32 %v4650_v39, %v4649_v19  ;;  %v4657_v10 = vrot.slane %v4656_v60, 4 }
 0x516   :  { %14802 = vst [vmem:[#allocation83_spill] sm:$0xff] %v12822_v56  ;;  %v4612_v61 = vrot.slane %v4611_v12, 1  ;;  %v4618_v14 = vadd.f32 %v4617_v15, %v4616_v9  ;;  %v5830_v47 = vrot.slane %v2763_v58, %v9803_v34  ;;  %v6278_v41 = vrot.slane %v3105_v50, %v9820_v2 }
 0x517   :  { %v4652_v36 = vrot.slane %v4651_v32, 2  ;;  %v4658_v55 = vadd.f32 %v4657_v10, %v4656_v60  ;;  %v7002_v39 = vrot.slane %v5168_v40, 7  ;;  %v3100_v46 = vcombine.high %v12662_v3, %v12662_v3  ;;  %v14803_v10 = vld [vmem:[#allocation63_spill] sm:$0xff] }
 0x518   :  { %v4613_v62 = vadd.f32 %v4612_v61, %v4611_v12  ;;  %v4619_v19 = vrot.slane %v4618_v14, 1  ;;  %v12836_v9 = vrot.slane %v12683_v20, %v9797_v33  ;;  %v7090_v58 = vsel %vm6785_vm4, %v12442_v5, %v14803_v10 }
 0x519   :  { %v4653_v24 = vadd.f32 %v4652_v36, %v4651_v32  ;;  %v4659_v8 = vrot.slane %v4658_v55, 2  ;;  %v12841_v12 = vmul.f32 0.33333334, %v5552_v13  ;;  %v7091_v40 = vsel %vm6787_vm5, %v12437_v44, %v7090_v58  ;;  %v12845_v32 = vpop.permute.xlu0 %7656 }
 0x51a   :  { %v12831_v15 = vadd.f32 %v4619_v19, %v4618_v14  ;;  %v5103_v27 = vsub.f32 %v4613_v62, %v12776_v48  ;;  %v7092_v20 = vsel %vm6789_vm6, %v12557_v59, %v7091_v40  ;;  %v14805_v14 = vld [vmem:[#allocation66_spill] sm:$0xff]  ;;  %v12854_v62 = vrot.slane %v3100_v46, %v9797_v33  ;;  %v14811_v48 = vld [vmem:[#allocation56_spill] sm:$0xff] }
 0x51b   :  { %14804 = vst [vmem:[#allocation44_spill] sm:$0xff] %v12841_v12  ;;  %v4654_v50 = vrot.slane %v4653_v24, 1  ;;  %v4660_v60 = vadd.f32 %v4659_v8, %v4658_v55  ;;  %v2755_v36 = vadd.f32 %v12658_v0, %v14805_v14  ;;  %v7093_v44 = vsel %vm6791_vm7, %v12550_v53, %v7092_v20  ;;  %v7113_v20 = vpop.permute.xlu1 %7112 }
 0x51c   :  { %v5167_v61 = vmul.f32 0.33333334, %v5103_v27  ;;  %v12862_v55 = vsel %vm3262_vm2, %v3100_v46, 0.0  ;;  %v7094_v59 = vsel %vm6793_vm8, %v12836_v9, %v7093_v44  ;;  %v14808_v44 = vld [vmem:[#allocation15_spill] sm:$0xff] }
 0x51d   :  { %v4655_v5 = vadd.f32 %v4654_v50, %v4653_v24  ;;  %v4661_v13 = vrot.slane %v4660_v60, 1  ;;  %v3103_v19 = vcombine.high %v2755_v36, %v2755_v36  ;;  %v7095_v24 = vsel %vm6795_vm9, %v12854_v62, %v7094_v59 }
 0x51e   :  { %v12859_v8 = vsel %vm6783_vm3, %v7002_v39, %v5167_v61  ;;  %v4621_v58 = vsel %vm3262_vm2, %v2755_v36, 0.0  ;;  %7120 = vrot.lane.b32.xlu1 %v7095_v24, %s8795_s24  ;;  %v5826_v40 = vrot.slane %v2755_v36, %v9803_v34  ;;  %v7033_v61 = vpop.permute.xlu0 %7032  ;;  %v14809_v59 = vrot.slane %v14808_v44, %v9773_v28  ;;  %v14813_v44 = vld [vmem:[#allocation34_spill] sm:$0xff] }
 0x51f   :  { %14806 = vst [vmem:[#allocation78_spill] sm:$0xff] %v12859_v8  ;;  %v4662_v27 = vadd.f32 %v4661_v13, %v4660_v60  ;;  %v6000_v10 = vsub.f32 %v4655_v5, %v5830_v47  ;;  %v4622_v50 = vrot.slane %v4621_v58, 4  ;;  %v4628_v39 = vsel %vm3262_vm2, %v3103_v19, 0.0  ;;  %v14807_v13 = vld [vmem:[#allocation16_spill] sm:$0xff] }
 0x520   :  { %v12873_v46 = vrot.slane %v3103_v19, %v9820_v2  ;;  %v4629_v5 = vrot.slane %v4628_v39, 4  ;;  %v6799_v24 = vsel %vm6787_vm5, %v14809_v59, %v14807_v13  ;;  %v12884_v36 = vsel %vm6783_vm3, %v5830_v47, %v5826_v40  ;;  %v14814_v59 = vld [vmem:[#allocation18_spill] sm:$0xff] }
 0x521   :  { %v6448_v14 = vsub.f32 %v4662_v27, %v6278_v41  ;;  %v4623_v16 = vadd.f32 %v4622_v50, %v4621_v58  ;;  %v14812_v27 = vrot.slane %v14811_v48, %v9773_v28  ;;  %v6064_v12 = vmul.f32 0.33333334, %v6000_v10 }
 0x522   :  { %v12888_v19 = vsel %vm6783_vm3, %v6278_v41, %v12873_v46  ;;  %v4630_v8 = vadd.f32 %v4629_v5, %v4628_v39  ;;  %v6590_v13 = vrot.slane %v14813_v44, %v9773_v28  ;;  %v14815_v58 = vrot.slane %v14814_v59, %v9773_v28  ;;  %v14818_v44 = vld [vmem:[#allocation60_spill] sm:$0xff]  ;;  %v14819_v59 = vld [vmem:[#allocation58_spill] sm:$0xff] }
 0x523   :  { %v6800_v60 = vsel %vm6789_vm6, %v14812_v27, %v6799_v24  ;;  %v6512_v50 = vmul.f32 0.33333334, %v6448_v14  ;;  %v4624_v35 = vrot.slane %v4623_v16, 2  ;;  %v14817_v41 = vrot.slane %v14816_v45, %v9773_v28  ;;  %v7313_v14 = vpop.permute.xlu1 %7312 }
 0x524   :  { %v6801_v47 = vsel %vm6791_vm7, %v14815_v58, %v6800_v60  ;;  %v7635_v48 = vsel %vm6787_vm5, %v12455_v6, %v12480_v4  ;;  %v4631_v10 = vrot.slane %v4630_v8, 2  ;;  %v12910_v5 = vrot.slane %v12730_v23, %v9820_v2  ;;  %v7577_v4 = vpop.permute.xlu0 %7576  ;;  %v14820_v58 = vld [vmem:[#allocation25_spill] sm:$0xff] }
 0x525   :  { %v6802_v56 = vsel %vm6793_vm8, %v14817_v41, %v6801_v47  ;;  %v7636_v60 = vsel %vm6789_vm6, %v12636_v43, %v7635_v48  ;;  %v4625_v24 = vadd.f32 %v4624_v35, %v4623_v16  ;;  %v7345_v6 = vsel %vm6791_vm7, %v14819_v59, %v14818_v44  ;;  %v14822_v48 = vld [vmem:[#allocation68_spill] sm:$0xff] }
 0x526   :  { %v6803_v39 = vsel %vm6795_vm9, %v6590_v13, %v6802_v56  ;;  %v7637_v27 = vsel %vm6791_vm7, %v12583_v26, %v7636_v60  ;;  %v4632_v56 = vadd.f32 %v4631_v10, %v4630_v8  ;;  %v7346_v43 = vsel %vm6793_vm8, %v14820_v58, %v7345_v6  ;;  %v14824_v10 = vld [vmem:[#allocation32_spill] sm:$0xff] }
 0x527   :  { %v7879_v45 = vsel %vm1188_vm1, %v6803_v39, %v7033_v61  ;;  %v7638_v23 = vsel %vm6793_vm8, %v12765_v42, %v7637_v27  ;;  %v4626_v16 = vrot.slane %v4625_v24, 1  ;;  %v14821_v61 = vld [vmem:[#allocation10_spill] sm:$0xff]  ;;  %v12938_v39 = vadd.f32 %v12658_v0, %v14824_v10  ;;  %v14828_v10 = vld [vmem:[#allocation49_spill] sm:$0xff] }
 0x528   :  { %v7888_v13 = vsel %vm7886_vm10, %v7879_v45, %v7113_v20  ;;  %v7639_v35 = vsel %vm6795_vm9, %v12910_v5, %v7638_v23  ;;  %v7347_v47 = vsel %vm6795_vm9, %v14821_v61, %v7346_v43  ;;  %v4633_v41 = vrot.slane %v4632_v56, 1  ;;  %v14825_v43 = vld [vmem:[#allocation22_spill] sm:$0xff] }
 0x529   :  { %v7897_v26 = vsel %vm7895_vm11, %v7888_v13, %v7313_v14  ;;  %7664 = vrot.lane.b32.xlu0 %v7639_v35, %s8795_s24  ;;  %v7905_v8 = vsel %vm1188_vm1, %v7347_v47, %v7577_v4  ;;  %v12934_v20 = vadd.f32 %v12658_v0, %v14822_v48  ;;  %v7546_v60 = vrot.slane %v6064_v12, 7  ;;  %v12957_v35 = vpop.f32.mrb[181].mxu0  ;;  %v7857_v47 = vpop.permute.xlu1 %7856 }
 0x52a   :  { %7930 = vst [vmem:[#allocation2 + $0x10] sm:$0xff] %v7897_v26  ;;  %v7826_v45 = vrot.slane %v6512_v50, 7  ;;  %v4587_v14 = vrot.slane %v12862_v55, 4  ;;  %v4627_v27 = vadd.f32 %v4626_v16, %v4625_v24  ;;  %v4634_v44 = vadd.f32 %v4633_v41, %v4632_v56  ;;  %14826 = vst [vmem:[#allocation39_spill] sm:$0xff] %v12957_v35  ;;  %v12960_v41 = vpop.f32.mrb[182].mxu0 }
 0x52b   :  { %14823 = vst [vmem:[#allocation69_spill] sm:$0xff] %v12934_v20  ;;  %v3108_v59 = vcombine.high %v12934_v20, %v12934_v20  ;;  %v4691_v6 = vsel %vm3262_vm2, %v12934_v20, 0.0  ;;  %v7913_v4 = vsel %vm7886_vm10, %v7905_v8, %v12845_v32  ;;  %v3106_v58 = vcombine.high %v12938_v39, %v12938_v39  ;;  %14827 = vst [vmem:[#allocation80_spill] sm:$0xff] %v12960_v41 }
 0x52c   :  { %v5999_v23 = vsub.f32 %v4627_v27, %v5826_v40  ;;  %v4692_v13 = vrot.slane %v4691_v6, 4  ;;  %v4663_v12 = vsel %vm3262_vm2, %v12938_v39, 0.0  ;;  %v6447_v50 = vsub.f32 %v4634_v44, %v12873_v46 }
 0x52d   :  { %v4698_v24 = vsel %vm3262_vm2, %v3108_v59, 0.0  ;;  %v4664_v56 = vrot.slane %v4663_v12, 4  ;;  %v12955_v16 = vadd.f32 %v12658_v0, %v14825_v43  ;;  %v4670_v61 = vsel %vm3262_vm2, %v3106_v58, 0.0 }
 0x52e   :  { %v6063_v32 = vmul.f32 0.33333334, %v5999_v23  ;;  %v4693_v40 = vadd.f32 %v4692_v13, %v4691_v6  ;;  %v4699_v26 = vrot.slane %v4698_v24, 4  ;;  %v6511_v8 = vmul.f32 0.33333334, %v6447_v50 }
 0x52f   :  { %v4665_v48 = vadd.f32 %v4664_v56, %v4663_v12  ;;  %v4671_v46 = vrot.slane %v4670_v61, 4  ;;  %v12964_v27 = vadd.f32 %v12658_v0, %v14828_v10  ;;  %v6730_v6 = vrot.slane %v12938_v39, %v9773_v28 }
 0x530   :  { %v12967_v44 = vsel %vm6783_vm3, %v7546_v60, %v6063_v32  ;;  %v4694_v43 = vrot.slane %v4693_v40, 2  ;;  %v4700_v35 = vadd.f32 %v4699_v26, %v4698_v24  ;;  %v12972_v23 = vsel %vm6783_vm3, %v7826_v45, %v6511_v8 }
 0x531   :  { %14829 = vst [vmem:[#allocation63_spill] sm:$0xff] %v12972_v23  ;;  %v4666_v13 = vrot.slane %v4665_v48, 2  ;;  %v4672_v41 = vadd.f32 %v4671_v46, %v4670_v61  ;;  %v7921_v12 = vsel %vm7895_vm11, %v7913_v4, %v7857_v47  ;;  %v12977_v10 = vsel %vm6785_vm4, %v6730_v6, %v12796_v17  ;;  %v12986_v61 = vpop.f32.mrb[183].mxu0 }
 0x532   :  { %v4695_v50 = vadd.f32 %v4694_v43, %v4693_v40  ;;  %v4701_v56 = vrot.slane %v4700_v35, 2  ;;  %14830 = vst [vmem:[#allocation66_spill] sm:$0xff] %v12977_v10  ;;  %7931 = vst [vmem:[#allocation2 + $0x18] sm:$0xff] %v7921_v12  ;;  %v3109_v60 = vcombine.high %v12955_v16, %v12955_v16  ;;  %v12982_v24 = vadd.f32 %v4587_v14, %v12862_v55 }
 0x533   :  { %v4667_v32 = vadd.f32 %v4666_v13, %v4665_v48  ;;  %v4673_v45 = vrot.slane %v4672_v41, 2  ;;  %v4705_v26 = vsel %vm3262_vm2, %v12955_v16, 0.0  ;;  %14831 = vst [vmem:[#allocation16_spill] sm:$0xff] %v12986_v61  ;;  %v14832_v8 = vsub.f32 %v12831_v15, %v12788_v29 }
 0x534   :  { %v4696_v4 = vrot.slane %v4695_v50, 1  ;;  %v4702_v40 = vadd.f32 %v4701_v56, %v4700_v35  ;;  %v4706_v47 = vrot.slane %v4705_v26, 4  ;;  %v4712_v17 = vsel %vm3262_vm2, %v3109_v60, 0.0 }
 0x535   :  { %v12992_v46 = vmul.f32 0.33333334, %v14832_v8  ;;  %v4668_v43 = vrot.slane %v4667_v32, 1  ;;  %v4674_v55 = vadd.f32 %v4673_v45, %v4672_v41  ;;  %v4713_v14 = vrot.slane %v4712_v17, 4 }
 0x536   :  { %v4697_v48 = vadd.f32 %v4696_v4, %v4695_v50  ;;  %v4703_v6 = vrot.slane %v4702_v40, 1  ;;  %v4707_v13 = vadd.f32 %v4706_v47, %v4705_v26  ;;  %v3107_v12 = vcombine.high %v12964_v27, %v12964_v27 }
 0x537   :  { %14833 = vst [vmem:[#allocation15_spill] sm:$0xff] %v12992_v46  ;;  %v4669_v10 = vadd.f32 %v4668_v43, %v4667_v32  ;;  %v4675_v23 = vrot.slane %v4674_v55, 1  ;;  %v4714_v35 = vadd.f32 %v4713_v14, %v4712_v17  ;;  %v4677_v56 = vsel %vm3262_vm2, %v12964_v27, 0.0  ;;  %v13007_v43 = vpop.f32.mrb[184].mxu0 }
 0x538   :  { %v4704_v61 = vadd.f32 %v4703_v6, %v4702_v40  ;;  %v12999_v29 = vrot.slane %v3108_v59, %v9797_v33  ;;  %v4708_v15 = vrot.slane %v4707_v13, 2  ;;  %v4678_v8 = vrot.slane %v4677_v56, 4 }
 0x539   :  { %v5106_v41 = vsub.f32 %v4697_v48, %v12934_v20  ;;  %v4676_v50 = vadd.f32 %v4675_v23, %v4674_v55  ;;  %v4715_v45 = vrot.slane %v4714_v35, 2  ;;  %v4684_v26 = vsel %vm3262_vm2, %v3107_v12, 0.0 }
 0x53a   :  { %v5105_v4 = vsub.f32 %v4669_v10, %v12938_v39  ;;  %v13005_v32 = vrot.slane %v3106_v58, %v9797_v33  ;;  %v4709_v47 = vadd.f32 %v4708_v15, %v4707_v13  ;;  %v4679_v17 = vadd.f32 %v4678_v8, %v4677_v56 }
 0x53b   :  { %v5554_v59 = vsub.f32 %v4704_v61, %v12999_v29  ;;  %v4716_v14 = vadd.f32 %v4715_v45, %v4714_v35  ;;  %v4685_v48 = vrot.slane %v4684_v26, 4  ;;  %v13015_v39 = vrot.slane %v12955_v16, %v9803_v34 }
 0x53c   :  { %v5553_v23 = vsub.f32 %v4676_v50, %v13005_v32  ;;  %v4710_v55 = vrot.slane %v4709_v47, 1  ;;  %v4680_v58 = vrot.slane %v4679_v17, 2  ;;  %v13017_v10 = vmul.f32 0.33333334, %v5106_v41 }
 0x53d   :  { %v4717_v6 = vrot.slane %v4716_v14, 1  ;;  %v13020_v13 = vrot.slane %v3109_v60, %v9820_v2  ;;  %v4686_v61 = vadd.f32 %v4685_v48, %v4684_v26  ;;  %v13022_v56 = vmul.f32 0.33333334, %v5105_v4 }
 0x53e   :  { %v4711_v15 = vadd.f32 %v4710_v55, %v4709_v47  ;;  %v4681_v35 = vadd.f32 %v4680_v58, %v4679_v17  ;;  %v5834_v8 = vrot.slane %v12964_v27, %v9803_v34  ;;  %v13026_v50 = vmul.f32 0.33333334, %v5554_v59 }
 0x53f   :  { %v4718_v45 = vadd.f32 %v4717_v6, %v4716_v14  ;;  %v4687_v16 = vrot.slane %v4686_v61, 2  ;;  %v6282_v40 = vrot.slane %v3107_v12, %v9820_v2  ;;  %v13029_v41 = vmul.f32 0.33333334, %v5553_v23  ;;  %v13053_v14 = vpop.f32.mrb[185].mxu0 }
 0x540   :  { %14834 = vst [vmem:[#allocation56_spill] sm:$0xff] %v13026_v50  ;;  %v4682_v20 = vrot.slane %v4681_v35, 1  ;;  %v13033_v60 = vsel %vm6785_vm4, %v5834_v8, %v12884_v36  ;;  %v13037_v26 = vadd.f32 %v12658_v0, %v12444_v31  ;;  %v6002_v4 = vsub.f32 %v4711_v15, %v13015_v39 }
 0x541   :  { %14835 = vst [vmem:[#allocation34_spill] sm:$0xff] %v13029_v41  ;;  %v6450_v27 = vsub.f32 %v4718_v45, %v13020_v13  ;;  %v4688_v47 = vadd.f32 %v4687_v16, %v4686_v61  ;;  %v13043_v17 = vsel %vm6785_vm4, %v6282_v40, %v12888_v19  ;;  %v13051_v31 = vadd.f32 %v12658_v0, %v12486_v38 }
 0x542   :  { %14836 = vst [vmem:[#allocation18_spill] sm:$0xff] %v13037_v26  ;;  %v4683_v12 = vadd.f32 %v4682_v20, %v4681_v35  ;;  %v3112_v59 = vcombine.high %v13037_v26, %v13037_v26  ;;  %v4747_v36 = vsel %vm3262_vm2, %v13037_v26, 0.0  ;;  %v13060_v15 = vmul.f32 0.33333334, %v6002_v4 }
 0x543   :  { %14837 = vst [vmem:[#allocation11_spill] sm:$0xff] %v13051_v31  ;;  %v4689_v55 = vrot.slane %v4688_v47, 1  ;;  %v4748_v19 = vrot.slane %v4747_v36, 4  ;;  %v13062_v16 = vmul.f32 0.33333334, %v6450_v27  ;;  %v3110_v48 = vcombine.high %v13051_v31, %v13051_v31 }
 0x544   :  { %v6001_v6 = vsub.f32 %v4683_v12, %v5834_v8  ;;  %v4754_v61 = vsel %vm3262_vm2, %v3112_v59, 0.0  ;;  %14838 = vst [vmem:[#allocation60_spill] sm:$0xff] %v13060_v15  ;;  %v4719_v23 = vsel %vm3262_vm2, %v13051_v31, 0.0  ;;  %v13068_v12 = vpop.f32.mrb[186].mxu0 }
 0x545   :  { %v4690_v35 = vadd.f32 %v4689_v55, %v4688_v47  ;;  %v4749_v38 = vadd.f32 %v4748_v19, %v4747_v36  ;;  %v4755_v45 = vrot.slane %v4754_v61, 4  ;;  %14839 = vst [vmem:[#allocation58_spill] sm:$0xff] %v13062_v16  ;;  %v4720_v8 = vrot.slane %v4719_v23, 4  ;;  %14840 = vst [vmem:[#allocation25_spill] sm:$0xff] %v13068_v12 }
 0x546   :  { %v6065_v46 = vmul.f32 0.33333334, %v6001_v6  ;;  %v4726_v27 = vsel %vm3262_vm2, %v3110_v48, 0.0  ;;  %v14841_v36 = vrot.slane %v12723_v1, 2  ;;  %v14843_v47 = vsub.f32 %v12762_v18, %v12668_v57 }
 0x547   :  { %v6449_v20 = vsub.f32 %v4690_v35, %v6282_v40  ;;  %v4750_v50 = vrot.slane %v4749_v38, 2  ;;  %v4756_v58 = vadd.f32 %v4755_v45, %v4754_v61  ;;  %v13078_v40 = vrot.slane %v3112_v59, %v9797_v33  ;;  %v14844_v59 = vld [vmem:[#allocation9_spill] sm:$0xff] }
 0x548   :  { %v7548_v4 = vrot.slane %v6065_v46, 6  ;;  %v4583_v55 = vadd.f32 %v14841_v36, %v12723_v1  ;;  %v4721_v61 = vadd.f32 %v4720_v8, %v4719_v23  ;;  %v4727_v46 = vrot.slane %v4726_v27, 4 }
 0x549   :  { %v4751_v6 = vadd.f32 %v4750_v50, %v4749_v38  ;;  %v5165_v41 = vmul.f32 0.33333334, %v14843_v47  ;;  %v4757_v36 = vrot.slane %v4756_v58, 2  ;;  %v14845_v23 = vrot.slane %v12462_v11, 6 }
 0x54a   :  { %v13082_v35 = vsel %vm6785_vm4, %v7548_v4, %v12967_v44  ;;  %v4584_v45 = vrot.slane %v4583_v55, 1  ;;  %v4722_v19 = vrot.slane %v4721_v61, 2  ;;  %v4728_v50 = vadd.f32 %v4727_v46, %v4726_v27 }
 0x54b   :  { %14842 = vst [vmem:[#allocation10_spill] sm:$0xff] %v13082_v35  ;;  %v4752_v1 = vrot.slane %v4751_v6, 1  ;;  %v6991_v8 = vsel %vm6785_vm4, %v14845_v23, %v14844_v59  ;;  %v6998_v44 = vrot.slane %v5165_v41, 2  ;;  %v13092_v4 = vmul.f32 0.33333334, %v6449_v20 }
 0x54c   :  { %v4585_v38 = vadd.f32 %v4584_v45, %v4583_v55  ;;  %v4723_v35 = vadd.f32 %v4722_v19, %v4721_v61  ;;  %v14847_v18 = vrot.slane %v12458_v30, 5  ;;  %v4729_v12 = vrot.slane %v4728_v50, 2 }
 0x54d   :  { %14846 = vst [vmem:[#allocation68_spill] sm:$0xff] %v13092_v4  ;;  %v4753_v15 = vadd.f32 %v4752_v1, %v4751_v6  ;;  %v14848_v27 = vrot.slane %v12618_v21, 4  ;;  %v2795_v11 = vadd.f32 %v12658_v0, %v12517_v22  ;;  %v13103_v46 = vadd.f32 %v4757_v36, %v4756_v58 }
 0x54e   :  { %v6993_v47 = vsel %vm6787_vm5, %v14847_v18, %v6991_v8  ;;  %v5102_v57 = vsub.f32 %v4585_v38, %v12662_v3  ;;  %v4724_v41 = vrot.slane %v4723_v35, 1  ;;  %v14849_v20 = vrot.slane %v12585_v63, 3  ;;  %v13122_v18 = vpop.f32.mrb[187].mxu0 }
 0x54f   :  { %v6995_v55 = vsel %vm6789_vm6, %v14848_v27, %v6993_v47  ;;  %v2787_v30 = vadd.f32 %v12658_v0, %v12562_v51  ;;  %v4730_v6 = vadd.f32 %v4729_v12, %v4728_v50  ;;  %v3113_v21 = vcombine.high %v2795_v11, %v2795_v11 }
 0x550   :  { %v6997_v19 = vsel %vm6791_vm7, %v14849_v20, %v6995_v55  ;;  %v5166_v61 = vmul.f32 0.33333334, %v5102_v57  ;;  %v5108_v1 = vsub.f32 %v4753_v15, %v13037_v26  ;;  %v13113_v38 = vrot.slane %v3110_v48, %v9797_v33 }
 0x551   :  { %v6999_v45 = vsel %vm6793_vm8, %v6998_v44, %v6997_v19  ;;  %v4761_v63 = vsel %vm3262_vm2, %v2795_v11, 0.0  ;;  %v4731_v58 = vrot.slane %v4730_v6, 1  ;;  %v4768_v51 = vsel %vm3262_vm2, %v3113_v21, 0.0 }
 0x552   :  { %v7000_v36 = vrot.slane %v5166_v61, 1  ;;  %v4762_v59 = vrot.slane %v4761_v63, 4  ;;  %v4725_v50 = vadd.f32 %v4724_v41, %v4723_v35  ;;  %v4769_v23 = vrot.slane %v4768_v51, 4 }
 0x553   :  { %v4732_v15 = vadd.f32 %v4731_v58, %v4730_v6  ;;  %v3111_v44 = vcombine.high %v2787_v30, %v2787_v30  ;;  %v13124_v47 = vmul.f32 0.33333334, %v5108_v1  ;;  %v4733_v55 = vsel %vm3262_vm2, %v2787_v30, 0.0 }
 0x554   :  { %v7001_v48 = vsel %vm6795_vm9, %v7000_v36, %v6999_v45  ;;  %v4763_v8 = vadd.f32 %v4762_v59, %v4761_v63  ;;  %v4770_v27 = vadd.f32 %v4769_v23, %v4768_v51  ;;  %v13129_v20 = vrot.slane %v2787_v30, %v9803_v34 }
 0x555   :  { %7040 = vrot.lane.b32.xlu1 %v7001_v48, %s8796_s25  ;;  %v5555_v35 = vsub.f32 %v4732_v15, %v13113_v38  ;;  %v4734_v19 = vrot.slane %v4733_v55, 4  ;;  %v4740_v6 = vsel %vm3262_vm2, %v3111_v44, 0.0  ;;  %v5107_v61 = vsub.f32 %v4725_v50, %v13051_v31 }
 0x556   :  { %v4764_v41 = vrot.slane %v4763_v8, 2  ;;  %v4771_v45 = vrot.slane %v4770_v27, 2  ;;  %v13135_v1 = vrot.slane %v2795_v11, %v9803_v34  ;;  %v4741_v63 = vrot.slane %v4740_v6, 4 }
 0x557   :  { %v13138_v36 = vrot.slane %v3113_v21, %v9820_v2  ;;  %v4735_v59 = vadd.f32 %v4734_v19, %v4733_v55  ;;  %v7378_v30 = vsel %vm6787_vm5, %v13015_v39, %v13033_v60  ;;  %v14852_v11 = vsub.f32 %v12803_v54, %v12813_v52  ;;  %v14853_v21 = vld [vmem:[#allocation57_spill] sm:$0xff] }
 0x558   :  { %14850 = vst [vmem:[#allocation32_spill] sm:$0xff] %v13135_v1  ;;  %v4765_v58 = vadd.f32 %v4764_v41, %v4763_v8  ;;  %v4772_v51 = vadd.f32 %v4771_v45, %v4770_v27  ;;  %v4742_v23 = vadd.f32 %v4741_v63, %v4740_v6  ;;  %v13145_v15 = vsel %vm6789_vm6, %v13129_v20, %v7378_v30  ;;  %v13157_v27 = vpop.f32.mrb[188].mxu0 }
 0x559   :  { %14851 = vst [vmem:[#allocation22_spill] sm:$0xff] %v13145_v15  ;;  %v6062_v50 = vmul.f32 0.33333334, %v14852_v11  ;;  %v4736_v8 = vrot.slane %v4735_v59, 2  ;;  %v14854_v41 = vrot.slane %v14853_v21, 5  ;;  %v14855_v39 = vrot.slane %v12553_v25, 1 }
 0x55a   :  { %v4766_v48 = vrot.slane %v4765_v58, 1  ;;  %14856 = vst [vmem:[#allocation49_spill] sm:$0xff] %v13157_v27  ;;  %v4773_v19 = vrot.slane %v4772_v51, 1  ;;  %v4743_v6 = vrot.slane %v4742_v23, 2  ;;  %v14857_v45 = vrot.slane %v12686_v7, 4  ;;  %v13162_v30 = vpop.f32.mrb[189].mxu0 }
 0x55b   :  { %v7537_v55 = vsel %vm6787_vm5, %v14854_v41, %v12526_v37  ;;  %v4536_v60 = vadd.f32 %v14855_v39, %v12553_v25  ;;  %v7544_v63 = vrot.slane %v6062_v50, 1  ;;  %14858 = vst [vmem:[#allocation9_spill] sm:$0xff] %v13162_v30  ;;  %v4737_v22 = vadd.f32 %v4736_v8, %v4735_v59  ;;  %v14859_v21 = vld [vmem:[#allocation64_spill] sm:$0xff]  ;;  %v14861_v41 = vld [vmem:[#allocation45_spill] sm:$0xff] }
 0x55c   :  { %v7539_v54 = vsel %vm6789_vm6, %v14857_v45, %v7537_v55  ;;  %v4767_v11 = vadd.f32 %v4766_v48, %v4765_v58  ;;  %v14860_v57 = vrot.slane %v14859_v21, 3  ;;  %v14862_v25 = vrot.slane %v14861_v41, 2  ;;  %v14865_v45 = vld [vmem:[#allocation21_spill] sm:$0xff] }
 0x55d   :  { %v4774_v12 = vadd.f32 %v4773_v19, %v4772_v51  ;;  %v4744_v15 = vadd.f32 %v4743_v6, %v4742_v23  ;;  %v14863_v26 = vrot.slane %v12808_v49, 2  ;;  %v4589_v50 = vrot.slane %v12982_v24, 2  ;;  %v14864_v6 = vld [vmem:[#allocation6_spill] sm:$0xff] }
 0x55e   :  { %v7541_v37 = vsel %vm6791_vm7, %v14860_v57, %v7539_v54  ;;  %v4562_v39 = vadd.f32 %v14862_v25, %v14861_v41  ;;  %v6004_v55 = vsub.f32 %v4767_v11, %v13135_v1  ;;  %v4738_v58 = vrot.slane %v4737_v22, 1 }
 0x55f   :  { %v7543_v7 = vsel %vm6793_vm8, %v14863_v26, %v7541_v37  ;;  %v6452_v57 = vsub.f32 %v4774_v12, %v13138_v36  ;;  %v4745_v8 = vrot.slane %v4744_v15, 1  ;;  %v4590_v51 = vadd.f32 %v4589_v50, %v12982_v24 }
 0x560   :  { %v7545_v59 = vsel %vm6795_vm9, %v7544_v63, %v7543_v7  ;;  %v4563_v48 = vrot.slane %v4562_v39, 1  ;;  %v5548_v23 = vsub.f32 %v4536_v60, %v12550_v53  ;;  %v13181_v26 = vmul.f32 0.33333334, %v5107_v61  ;;  %v14868_v60 = vld [vmem:[#allocation29_spill] sm:$0xff] }
 0x561   :  { %7584 = vrot.lane.b32.xlu0 %v7545_v59, %s8796_s25  ;;  %v14866_v54 = vrot.slane %v14865_v45, 7  ;;  %v4746_v11 = vadd.f32 %v4745_v8, %v4744_v15  ;;  %v13188_v12 = vrot.slane %v3111_v44, %v9820_v2  ;;  %v4591_v21 = vrot.slane %v4590_v51, 1  ;;  %v14870_v15 = vld [vmem:[#allocation30_spill] sm:$0xff]  ;;  %v13215_v45 = vpop.f32.mrb[190].mxu0 }
 0x562   :  { %v4564_v19 = vadd.f32 %v4563_v48, %v4562_v39  ;;  %v5612_v37 = vmul.f32 0.33333334, %v5548_v23  ;;  %v13190_v41 = vmul.f32 0.33333334, %v5555_v35  ;;  %v4739_v24 = vadd.f32 %v4738_v58, %v4737_v22  ;;  %v14873_v58 = vld [vmem:[#allocation73_spill] sm:$0xff]  ;;  %14877 = vst [vmem:[#allocation6_spill] sm:$0xff] %v13215_v45 }
 0x563   :  { %v7269_v63 = vsel %vm6783_vm3, %v14866_v54, %v14864_v6  ;;  %v14869_v61 = vrot.slane %v14868_v60, 6  ;;  %v13196_v39 = vmul.f32 0.33333334, %v6004_v55  ;;  %v6451_v7 = vsub.f32 %v4746_v11, %v13188_v12  ;;  %v14876_v6 = vld [vmem:[#allocation74_spill] sm:$0xff]  ;;  %v14878_v11 = vld [vmem:[#allocation83_spill] sm:$0xff] }
 0x564   :  { %14867 = vst [vmem:[#allocation57_spill] sm:$0xff] %v13190_v41  ;;  %v5549_v53 = vsub.f32 %v4564_v19, %v12836_v9  ;;  %v4592_v50 = vadd.f32 %v4591_v21, %v4590_v51  ;;  %v14871_v59 = vrot.slane %v14870_v15, 5  ;;  %v13203_v35 = vmul.f32 0.33333334, %v6452_v57  ;;  %v14874_v19 = vld [vmem:[#allocation17_spill] sm:$0xff]  ;;  %v14889_v48 = vld [vmem:[#allocation90_spill] sm:$0xff] }
 0x565   :  { %v7271_v25 = vsel %vm6785_vm4, %v14869_v61, %v7269_v63  ;;  %v7274_v9 = vrot.slane %v14873_v58, 4  ;;  %v7276_v23 = vrot.slane %v5612_v37, 3  ;;  %v13209_v55 = vadd.f32 %v12658_v0, %v14874_v19 }
 0x566   :  { %v7273_v44 = vsel %vm6787_vm5, %v14871_v59, %v7271_v25  ;;  %14872 = vst [vmem:[#allocation64_spill] sm:$0xff] %v13203_v35  ;;  %v5613_v22 = vmul.f32 0.33333334, %v5549_v53  ;;  %v5550_v8 = vsub.f32 %v4592_v50, %v12854_v62  ;;  %v13213_v51 = vadd.f32 %v12658_v0, %v14876_v6  ;;  %v13220_v53 = vpop.f32.mrb[191].mxu0  ;;  %v14882_v6 = vld [vmem:[#allocation33_spill] sm:$0xff] }
 0x567   :  { %14875 = vst [vmem:[#allocation45_spill] sm:$0xff] %v13209_v55  ;;  %v6003_v54 = vsub.f32 %v4739_v24, %v13129_v20  ;;  %v7275_v57 = vsel %vm6789_vm6, %v7274_v9, %v7273_v44  ;;  %v4605_v21 = vrot.slane %v14878_v11, 1  ;;  %14879 = vst [vmem:[#allocation21_spill] sm:$0xff] %v13220_v53  ;;  %v4803_v61 = vsel %vm3262_vm2, %v13209_v55, 0.0 }
 0x568   :  { %v7278_v63 = vrot.slane %v5613_v22, 2  ;;  %v5614_v37 = vmul.f32 0.33333334, %v5550_v8  ;;  %v7277_v60 = vsel %vm6791_vm7, %v7276_v23, %v7275_v57  ;;  %v4804_v50 = vrot.slane %v4803_v61, 4  ;;  %v14880_v8 = vld [vmem:[#allocation7_spill] sm:$0xff]  ;;  %v14883_v57 = vld [vmem:[#allocation37_spill] sm:$0xff] }
 0x569   :  { %v13229_v20 = vcombine.high %v13213_v51, %v13213_v51  ;;  %v4775_v24 = vsel %vm3262_vm2, %v13213_v51, 0.0  ;;  %v4606_v22 = vadd.f32 %v4605_v21, %v14878_v11  ;;  %v13235_v58 = vmul.f32 0.33333334, %v6003_v54  ;;  %v14886_v21 = vld [vmem:[#allocation41_spill] sm:$0xff] }
 0x56a   :  { %v7279_v25 = vsel %vm6793_vm8, %v7278_v63, %v7277_v60  ;;  %v7280_v59 = vrot.slane %v5614_v37, 1  ;;  %v4776_v44 = vrot.slane %v4775_v24, 4  ;;  %v14881_v23 = vsub.f32 %v14880_v8, %v12765_v42 }
 0x56b   :  { %v4782_v9 = vsel %vm3262_vm2, %v13229_v20, 0.0  ;;  %v14884_v63 = vrot.slane %v14883_v57, 6  ;;  %v13246_v62 = vmul.f32 0.33333334, %v6451_v7  ;;  %v6446_v54 = vsub.f32 %v4606_v22, %v12910_v5  ;;  %v14897_v5 = vld [vmem:[#allocation12_spill] sm:$0xff] }
 0x56c   :  { %v6509_v19 = vmul.f32 0.33333334, %v14881_v23  ;;  %v7281_v37 = vsel %vm6795_vm9, %v7280_v59, %v7279_v25  ;;  %v4777_v15 = vadd.f32 %v4776_v44, %v4775_v24  ;;  %v13251_v11 = vadd.f32 %v4804_v50, %v4803_v61  ;;  %v14888_v23 = vld [vmem:[#allocation54_spill] sm:$0xff]  ;;  %v14891_v59 = vld [vmem:[#allocation88_spill] sm:$0xff] }
 0x56d   :  { %v7815_v60 = vsel %vm6785_vm4, %v14884_v63, %v14882_v6  ;;  %14885 = vst [vmem:[#allocation29_spill] sm:$0xff] %v13246_v62  ;;  %7320 = vrot.lane.b32.xlu1 %v7281_v37, %s8797_s26  ;;  %v14887_v49 = vrot.slane %v14886_v21, 5  ;;  %v2811_v57 = vadd.f32 %v12658_v0, %v14888_v23  ;;  %v4783_v7 = vrot.slane %v4782_v9, 4  ;;  %v14893_v21 = vld [vmem:[#allocation76_spill] sm:$0xff]  ;;  %v14894_v23 = vld [vmem:[#allocation91_spill] sm:$0xff] }
 0x56e   :  { %v7822_v8 = vrot.slane %v6509_v19, 2  ;;  %v4778_v6 = vrot.slane %v4777_v15, 2  ;;  %v6510_v63 = vmul.f32 0.33333334, %v6446_v54  ;;  %v14890_v25 = vrot.slane %v14889_v48, 4 }
 0x56f   :  { %v7817_v42 = vsel %vm6787_vm5, %v14887_v49, %v7815_v60  ;;  %v14892_v61 = vrot.slane %v14891_v59, 3  ;;  %v13265_v44 = vcombine.high %v2811_v57, %v2811_v57  ;;  %v4817_v49 = vsel %vm3262_vm2, %v2811_v57, 0.0  ;;  %v13275_v54 = vld [vmem:[%s14105_s6] ss:$0 sm:$0xff]  ;;  %s8798_s6 = smov [#allocation2]  }
 0x570   :  { %v7819_v24 = vsel %vm6789_vm6, %v14890_v25, %v7817_v42  ;;  %v4779_v0 = vadd.f32 %v4778_v6, %v4777_v15  ;;  %v7824_v60 = vrot.slane %v6510_v63, 1  ;;  %v4818_v37 = vrot.slane %v4817_v49, 4  ;;  %s7949_s12 = sshll.u32 %s8798_s6, 4  ;;  %s7950_s12 = int_to_ptr.vmem [resolvable:$true] %s7949_s12 }
 0x571   :  { %v7821_v50 = vsel %vm6791_vm7, %v14892_v61, %v7819_v24  ;;  %v4824_v48 = vsel %vm3262_vm2, %v13265_v44, 0.0  ;;  %v2803_v42 = vadd.f32 %v13275_v54, %v14893_v21  ;;  %v13281_v25 = vadd.f32 %v13275_v54, %v14894_v23  ;;  %s8771_s13 = scalar_lea.vmem %s7950_s12, 2048  ;;  %p8776_p1 = scmp.lt.s32.totalorder %s7950_s12, %s7950_s12 }
 0x572   :  { %v7823_v19 = vsel %vm6793_vm8, %v7822_v8, %v7821_v50  ;;  %v13284_v8 = vadd.f32 %v4783_v7, %v4782_v9  ;;  %v4825_v63 = vrot.slane %v4824_v48, 4  ;;  %v4780_v24 = vrot.slane %v4779_v0, 1  ;;  %p8772_p0 = scmp.ne.s32.totalorder %s7950_s12, %s8771_s13  ;;  %p8777_p2 = scmp.lt.s32.totalorder %s8771_s13, %s8771_s13 }
 0x573   :  { %v7825_v6 = vsel %vm6795_vm9, %v7824_v60, %v7823_v19  ;;  %v4819_v59 = vadd.f32 %v4818_v37, %v4817_v49  ;;  %v3115_v61 = vcombine.high %v2803_v42, %v2803_v42  ;;  %v4789_v50 = vsel %vm3262_vm2, %v2803_v42, 0.0 }
 0x574   :  { %14895 = vst [vmem:[#allocation30_spill] sm:$0xff] %v13284_v8  ;;  %7864 = vrot.lane.b32.xlu1 %v7825_v6, %s8797_s26  ;;  %v13290_v21 = vrot.slane %v2811_v57, %v9803_v34  ;;  %v4790_v22 = vrot.slane %v4789_v50, 4  ;;  %v3120_v23 = vcombine.high %v13281_v25, %v13281_v25  ;;  %v13296_v9 = vadd.f32 %v13275_v54, %v14897_v5  ;;  %p8778_p3 = por %p8777_p2, %p8776_p1 }
 0x575   :  { %v4820_v7 = vrot.slane %v4819_v59, 2  ;;  %v13298_v19 = vadd.f32 %v4825_v63, %v4824_v48  ;;  %v4796_v60 = vsel %vm3262_vm2, %v3115_v61, 0.0  ;;  %v4859_v49 = vsel %vm3262_vm2, %v13281_v25, 0.0 }
 0x576   :  { %14896 = vst [vmem:[#allocation73_spill] sm:$0xff] %v13290_v21  ;;  %v4791_v57 = vadd.f32 %v4790_v22, %v4789_v50  ;;  %v4797_v6 = vrot.slane %v4796_v60, 4  ;;  %v13305_v15 = vrot.slane %v2803_v42, %v9803_v34  ;;  %v13307_v1 = vadd.f32 %v4780_v24, %v4779_v0  ;;  %p8779_p4 = pnand %p8778_p3, %p8772_p0 }
 0x577   :  { %v4821_v31 = vadd.f32 %v4820_v7, %v4819_v59  ;;  %v4860_v5 = vrot.slane %v4859_v49, 4  ;;  %v4866_v52 = vsel %vm3262_vm2, %v3120_v23, 0.0  ;;  %v13311_v3 = vrot.slane %v3115_v61, %v9820_v2 }
 0x578   :  { %14898 = vst [vmem:[#allocation17_spill] sm:$0xff] %v13305_v15  ;;  %v4792_v48 = vrot.slane %v4791_v57, 2  ;;  %v4798_v63 = vadd.f32 %v4797_v6, %v4796_v60  ;;  %v4867_v35 = vrot.slane %v4866_v52, 4  ;;  %v4827_v62 = vrot.slane %v13298_v19, 2 }
 0x579   :  { %14899 = vst [vmem:[#allocation74_spill] sm:$0xff] %v13311_v3  ;;  %v4861_v37 = vadd.f32 %v4860_v5, %v4859_v49  ;;  %v5414_v22 = vrot.slane %v3120_v23, %v9797_v33  ;;  %v3118_v42 = vcombine.high %v13296_v9, %v13296_v9  ;;  %v4831_v50 = vsel %vm3262_vm2, %v13296_v9, 0.0 }
 0x57a   :  { %v4793_v0 = vadd.f32 %v4792_v48, %v4791_v57  ;;  %v4799_v24 = vrot.slane %v4798_v63, 2  ;;  %v4868_v59 = vadd.f32 %v4867_v35, %v4866_v52  ;;  %v4822_v7 = vrot.slane %v4821_v31, 1 }
 0x57b   :  { %v4862_v60 = vrot.slane %v4861_v37, 2  ;;  %v4832_v6 = vrot.slane %v4831_v50, 4  ;;  %v4838_v61 = vsel %vm3262_vm2, %v3118_v42, 0.0  ;;  %v6758_v23 = vrot.slane %v13281_v25, %v9773_v28 }
 0x57c   :  { %v4794_v16 = vrot.slane %v4793_v0, 1  ;;  %v4800_v4 = vadd.f32 %v4799_v24, %v4798_v63  ;;  %v4869_v53 = vrot.slane %v4868_v59, 2  ;;  %v4839_v49 = vrot.slane %v4838_v61, 4 }
 0x57d   :  { %v4863_v5 = vadd.f32 %v4862_v60, %v4861_v37  ;;  %v4833_v45 = vadd.f32 %v4832_v6, %v4831_v50  ;;  %v13323_v57 = vrot.slane %v3118_v42, %v9797_v33  ;;  %v6754_v8 = vrot.slane %v13296_v9, %v9773_v28 }
 0x57e   :  { %v4795_v52 = vadd.f32 %v4794_v16, %v4793_v0  ;;  %v4801_v35 = vrot.slane %v4800_v4, 1  ;;  %v4870_v48 = vadd.f32 %v4869_v53, %v4868_v59  ;;  %v4840_v30 = vadd.f32 %v4839_v49, %v4838_v61  ;;  %v14901_v0 = vld [vmem:[#allocation24_spill] sm:$0xff] }
 0x57f   :  { %v4864_v41 = vrot.slane %v4863_v5, 1  ;;  %v4834_v27 = vrot.slane %v4833_v45, 2  ;;  %v13329_v63 = vsel %vm6783_vm3, %v5414_v22, %v13323_v57  ;;  %v13335_v53 = vsel %vm6783_vm3, %v6758_v23, %v6754_v8 }
 0x580   :  { %v13331_v37 = vadd.f32 %v4801_v35, %v4800_v4  ;;  %v6005_v24 = vsub.f32 %v4795_v52, %v13305_v15  ;;  %v4871_v50 = vrot.slane %v4870_v48, 1  ;;  %v4841_v42 = vrot.slane %v4840_v30, 2 }
 0x581   :  { %v4865_v60 = vadd.f32 %v4864_v41, %v4863_v5  ;;  %v4835_v16 = vadd.f32 %v4834_v27, %v4833_v45  ;;  %v2827_v59 = vadd.f32 %v13275_v54, %v14901_v0  ;;  %v13339_v6 = vadd.f32 %v4822_v7, %v4821_v31 }
 0x582   :  { %14900 = vst [vmem:[#allocation83_spill] sm:$0xff] %v13331_v37  ;;  %v4872_v49 = vadd.f32 %v4871_v50, %v4870_v48  ;;  %v4842_v4 = vadd.f32 %v4841_v42, %v4840_v30  ;;  %v13345_v27 = vmul.f32 0.33333334, %v6005_v24  ;;  %v13353_v42 = vadd.f32 %v4827_v62, %v13298_v19 }
 0x583   :  { %v5112_v35 = vsub.f32 %v4865_v60, %v13281_v25  ;;  %v4836_v52 = vrot.slane %v4835_v16, 1  ;;  %v3121_v15 = vcombine.high %v2827_v59, %v2827_v59  ;;  %v4873_v41 = vsel %vm3262_vm2, %v2827_v59, 0.0 }
 0x584   :  { %v5560_v45 = vsub.f32 %v4872_v49, %v5414_v22  ;;  %v4843_v8 = vrot.slane %v4842_v4, 1  ;;  %v4874_v5 = vrot.slane %v4873_v41, 4  ;;  %14903 = vst [vmem:[#allocation33_spill] sm:$0xff] %v13353_v42  ;;  %v3116_v60 = vcombine.high %v13209_v55, %v13209_v55  ;;  %v14908_v49 = vld [vmem:[#allocation47_spill] sm:$0xff] }
 0x585   :  { %v5176_v7 = vmul.f32 0.33333334, %v5112_v35  ;;  %v4837_v23 = vadd.f32 %v4836_v52, %v4835_v16  ;;  %v4880_v0 = vsel %vm3262_vm2, %v3121_v15, 0.0  ;;  %v6310_v62 = vrot.slane %v3121_v15, %v9820_v2  ;;  %v14907_v16 = vld [vmem:[#allocation14_spill] sm:$0xff] }
 0x586   :  { %v13350_v48 = vmul.f32 0.33333334, %v5560_v45  ;;  %v4844_v30 = vadd.f32 %v4843_v8, %v4842_v4  ;;  %v4875_v25 = vadd.f32 %v4874_v5, %v4873_v41  ;;  %v4881_v50 = vrot.slane %v4880_v0, 4 }
 0x587   :  { %v7016_v24 = vrot.slane %v5176_v7, 7  ;;  %v5111_v22 = vsub.f32 %v4837_v23, %v13296_v9  ;;  %v5862_v45 = vrot.slane %v2827_v59, %v9803_v34  ;;  %v13366_v5 = vsel %vm3262_vm2, %v3116_v60, 0.0  ;;  %v13368_v7 = vpop.permute.xlu1 %7658  ;;  %v14905_v59 = vld [vmem:[#allocation89_spill] sm:$0xff] }
 0x588   :  { %14902 = vst [vmem:[#allocation7_spill] sm:$0xff] %v13350_v48  ;;  %v4876_v35 = vrot.slane %v4875_v25, 2  ;;  %v4882_v52 = vadd.f32 %v4881_v50, %v4880_v0  ;;  %v5559_v19 = vsub.f32 %v4844_v30, %v13323_v57  ;;  %v13375_v0 = vrot.slane %v13229_v20, %v9797_v33  ;;  %v14904_v50 = vld [vmem:[#allocation23_spill] sm:$0xff]  ;;  %v14913_v48 = vld [vmem:[#allocation52_spill] sm:$0xff] }
 0x589   :  { %v5175_v41 = vmul.f32 0.33333334, %v5111_v22  ;;  %v7097_v15 = vsel %vm6785_vm4, %v13005_v32, %v14904_v50  ;;  %v2819_v57 = vadd.f32 %v13275_v54, %v14905_v59  ;;  %v13383_v22 = vrot.slane %v3116_v60, %v9797_v33 }
 0x58a   :  { %v4877_v9 = vadd.f32 %v4876_v35, %v4875_v25  ;;  %v4883_v8 = vrot.slane %v4882_v52, 2  ;;  %v7115_v35 = vpop.permute.xlu0 %7114  ;;  %v13407_v4 = vmul.f32 0.33333334, %v5559_v19  ;;  %v14909_v31 = vrot.slane %v14908_v49, %v9773_v28 }
 0x58b   :  { %v13371_v23 = vsel %vm6783_vm3, %v7016_v24, %v5175_v41  ;;  %v7098_v24 = vsel %vm6787_vm5, %v12999_v29, %v7097_v15  ;;  %v3119_v41 = vcombine.high %v2819_v57, %v2819_v57  ;;  %v4845_v61 = vsel %vm3262_vm2, %v2819_v57, 0.0 }
 0x58c   :  { %v4878_v30 = vrot.slane %v4877_v9, 1  ;;  %v4884_v25 = vadd.f32 %v4883_v8, %v4882_v52  ;;  %v7099_v20 = vsel %vm6789_vm6, %v13113_v38, %v7098_v24  ;;  %v13391_v32 = vrot.slane %v2819_v57, %v9803_v34  ;;  %v7035_v57 = vpop.permute.xlu1 %7034  ;;  %14906 = vst [vmem:[#allocation37_spill] sm:$0xff] %v13407_v4 }
 0x58d   :  { %v7100_v52 = vsel %vm6791_vm7, %v13078_v40, %v7099_v20  ;;  %v4846_v60 = vrot.slane %v4845_v61, 4  ;;  %v4852_v29 = vsel %vm3262_vm2, %v3119_v41, 0.0  ;;  %v13399_v15 = vrot.slane %v3119_v41, %v9820_v2 }
 0x58e   :  { %v4879_v50 = vadd.f32 %v4878_v30, %v4877_v9  ;;  %v4885_v59 = vrot.slane %v4884_v25, 1  ;;  %v7101_v8 = vsel %vm6793_vm8, %v13375_v0, %v7100_v52  ;;  %v13403_v38 = vsel %vm6783_vm3, %v5862_v45, %v13391_v32 }
 0x58f   :  { %v7102_v30 = vsel %vm6795_vm9, %v13383_v22, %v7101_v8  ;;  %v4847_v20 = vadd.f32 %v4846_v60, %v4845_v61  ;;  %v4853_v52 = vrot.slane %v4852_v29, 4  ;;  %v13412_v41 = vsel %vm6783_vm3, %v6310_v62, %v13399_v15  ;;  %v14910_v61 = vld [vmem:[#allocation19_spill] sm:$0xff]  ;;  %v14911_v60 = vld [vmem:[#allocation53_spill] sm:$0xff] }
 0x590   :  { %v4886_v24 = vadd.f32 %v4885_v59, %v4884_v25  ;;  %v6008_v9 = vsub.f32 %v4879_v50, %v5862_v45  ;;  %7122 = vrot.lane.b32.xlu0 %v7102_v30, %s8795_s24  ;;  %v6806_v25 = vsel %vm6787_vm5, %v14909_v31, %v14907_v16  ;;  %v7315_v45 = vpop.permute.xlu0 %7314  ;;  %v6622_v19 = vrot.slane %v14910_v61, %v9773_v28 }
 0x591   :  { %v4848_v59 = vrot.slane %v4847_v20, 2  ;;  %v14912_v8 = vrot.slane %v14911_v60, %v9773_v28  ;;  %v4854_v42 = vadd.f32 %v4853_v52, %v4852_v29  ;;  %v14914_v4 = vrot.slane %v14913_v48, %v9773_v28  ;;  %v14918_v29 = vld [vmem:[#allocation71_spill] sm:$0xff]  ;;  %v7579_v60 = vpop.permute.xlu1 %7578 }
 0x592   :  { %v6456_v50 = vsub.f32 %v4886_v24, %v6310_v62  ;;  %v6072_v37 = vmul.f32 0.33333334, %v6008_v9  ;;  %v13431_v31 = vrot.slane %v13265_v44, %v9820_v2  ;;  %v14916_v62 = vld [vmem:[#allocation38_spill] sm:$0xff]  ;;  %v7642_v9 = vsel %vm6787_vm5, %v13020_v13, %v13043_v17  ;;  %v14919_v52 = vld [vmem:[#allocation51_spill] sm:$0xff] }
 0x593   :  { %v6807_v30 = vsel %vm6789_vm6, %v14912_v8, %v6806_v25  ;;  %v4849_v16 = vadd.f32 %v4848_v59, %v4847_v20  ;;  %v14917_v24 = vrot.slane %v14916_v62, %v9773_v28  ;;  %v7352_v48 = vsel %vm6791_vm7, %v14919_v52, %v14918_v29  ;;  %v14920_v20 = vld [vmem:[#allocation59_spill] sm:$0xff] }
 0x594   :  { %v6808_v49 = vsel %vm6791_vm7, %v14914_v4, %v6807_v30  ;;  %14915 = vst [vmem:[#allocation41_spill] sm:$0xff] %v13431_v31  ;;  %v4855_v25 = vrot.slane %v4854_v42, 2  ;;  %v7643_v44 = vsel %vm6789_vm6, %v13188_v12, %v7642_v9  ;;  %v7353_v59 = vsel %vm6793_vm8, %v14920_v20, %v7352_v48 }
 0x595   :  { %v6809_v61 = vsel %vm6793_vm8, %v14917_v24, %v6808_v49  ;;  %v6520_v8 = vmul.f32 0.33333334, %v6456_v50  ;;  %v4850_v30 = vrot.slane %v4849_v16, 1  ;;  %v7644_v13 = vsel %vm6791_vm7, %v13138_v36, %v7643_v44  ;;  %v14921_v24 = vld [vmem:[#allocation28_spill] sm:$0xff]  ;;  %v14922_v36 = vld [vmem:[#allocation81_spill] sm:$0xff] }
 0x596   :  { %v6810_v4 = vsel %vm6795_vm9, %v6622_v19, %v6809_v61  ;;  %v4856_v17 = vadd.f32 %v4855_v25, %v4854_v42  ;;  %v7645_v62 = vsel %vm6793_vm8, %v13311_v3, %v7644_v13  ;;  %v7354_v12 = vsel %vm6795_vm9, %v14921_v24, %v7353_v59  ;;  %v7859_v61 = vpop.permute.xlu0 %7858 }
 0x597   :  { %v7880_v49 = vsel %vm1188_vm1, %v6810_v4, %v7035_v57  ;;  %v4851_v9 = vadd.f32 %v4850_v30, %v4849_v16  ;;  %v7646_v50 = vsel %vm6795_vm9, %v13431_v31, %v7645_v62  ;;  %v7906_v57 = vsel %vm1188_vm1, %v7354_v12, %v7579_v60  ;;  %v14925_v30 = vld [vmem:[#allocation80_spill] sm:$0xff] }
 0x598   :  { %v7889_v19 = vsel %vm7886_vm10, %v7880_v49, %v7115_v35  ;;  %v4857_v52 = vrot.slane %v4856_v17, 1  ;;  %7666 = vrot.lane.b32.xlu1 %v7646_v50, %s8795_s24  ;;  %v13463_v42 = vadd.f32 %v13275_v54, %v14922_v36  ;;  %v14924_v35 = vld [vmem:[#allocation39_spill] sm:$0xff]  ;;  %v7914_v16 = vsel %vm7886_vm10, %v7906_v57, %v13368_v7  ;;  %v14926_v36 = vld [vmem:[#allocation16_spill] sm:$0xff] }
 0x599   :  { %v7898_v29 = vsel %vm7895_vm11, %v7889_v19, %v7315_v45  ;;  %v13467_v48 = vadd.f32 %v13275_v54, %v14924_v35  ;;  %v7560_v25 = vrot.slane %v6072_v37, 7  ;;  %v6007_v4 = vsub.f32 %v4851_v9, %v13391_v32 }
 0x59a   :  { %7932 = vst [vmem:[#allocation2 + $0x20] sm:$0xff] %v7898_v29  ;;  %14923 = vst [vmem:[#allocation54_spill] sm:$0xff] %v13463_v42  ;;  %v7922_v44 = vsel %vm7895_vm11, %v7914_v16, %v7859_v61  ;;  %v4858_v20 = vadd.f32 %v4857_v52, %v4856_v17  ;;  %v3124_v59 = vcombine.high %v13463_v42, %v13463_v42  ;;  %v4915_v60 = vsel %vm3262_vm2, %v13463_v42, 0.0 }
 0x59b   :  { %7933 = vst [vmem:[#allocation2 + $0x28] sm:$0xff] %v7922_v44  ;;  %v13480_v49 = vadd.f32 %v13275_v54, %v14925_v30  ;;  %v6071_v7 = vmul.f32 0.33333334, %v6007_v4  ;;  %v4916_v37 = vrot.slane %v4915_v60, 4  ;;  %v3122_v13 = vcombine.high %v13467_v48, %v13467_v48 }
 0x59c   :  { %v4887_v32 = vsel %vm3262_vm2, %v13467_v48, 0.0  ;;  %v7840_v17 = vrot.slane %v6520_v8, 7  ;;  %v6455_v62 = vsub.f32 %v4858_v20, %v13399_v15  ;;  %v4922_v19 = vsel %vm3262_vm2, %v3124_v59, 0.0 }
 0x59d   :  { %v4888_v24 = vrot.slane %v4887_v32, 4  ;;  %v13489_v12 = vsel %vm6783_vm3, %v7560_v25, %v6071_v7  ;;  %v4917_v61 = vadd.f32 %v4916_v37, %v4915_v60  ;;  %v4923_v9 = vrot.slane %v4922_v19, 4 }
 0x59e   :  { %v4894_v50 = vsel %vm3262_vm2, %v3122_v13, 0.0  ;;  %v6519_v29 = vmul.f32 0.33333334, %v6455_v62  ;;  %v2835_v35 = vadd.f32 %v13275_v54, %v14926_v36  ;;  %v6762_v15 = vrot.slane %v13467_v48, %v9773_v28 }
 0x59f   :  { %v4889_v57 = vadd.f32 %v4888_v24, %v4887_v32  ;;  %v4895_v52 = vrot.slane %v4894_v50, 4  ;;  %v4918_v16 = vrot.slane %v4917_v61, 2  ;;  %v4924_v8 = vadd.f32 %v4923_v9, %v4922_v19 }
 0x5a0   :  { %v3125_v4 = vcombine.high %v13480_v49, %v13480_v49  ;;  %v13499_v25 = vsel %vm6783_vm3, %v7840_v17, %v6519_v29  ;;  %v4929_v60 = vsel %vm3262_vm2, %v13480_v49, 0.0  ;;  %v13505_v37 = vsel %vm6785_vm4, %v6762_v15, %v13335_v53 }
 0x5a1   :  { %14927 = vst [vmem:[#allocation90_spill] sm:$0xff] %v13499_v25  ;;  %v4890_v44 = vrot.slane %v4889_v57, 2  ;;  %v4896_v20 = vadd.f32 %v4895_v52, %v4894_v50  ;;  %v4919_v30 = vadd.f32 %v4918_v16, %v4917_v61  ;;  %v4925_v7 = vrot.slane %v4924_v8, 2  ;;  %14928 = vst [vmem:[#allocation88_spill] sm:$0xff] %v13505_v37 }
 0x5a2   :  { %v4930_v32 = vrot.slane %v4929_v60, 4  ;;  %v13508_v62 = vrot.slane %v3124_v59, %v9797_v33  ;;  %v4936_v17 = vsel %vm3262_vm2, %v3125_v4, 0.0  ;;  %v13512_v61 = vrot.slane %v3122_v13, %v9797_v33 }
 0x5a3   :  { %v4891_v19 = vadd.f32 %v4890_v44, %v4889_v57  ;;  %v4897_v24 = vrot.slane %v4896_v20, 2  ;;  %v4920_v9 = vrot.slane %v4919_v30, 1  ;;  %v4926_v29 = vadd.f32 %v4925_v7, %v4924_v8 }
 0x5a4   :  { %v4931_v50 = vadd.f32 %v4930_v32, %v4929_v60  ;;  %v4937_v52 = vrot.slane %v4936_v17, 4  ;;  %v3123_v16 = vcombine.high %v2835_v35, %v2835_v35  ;;  %v4901_v57 = vsel %vm3262_vm2, %v2835_v35, 0.0 }
 0x5a5   :  { %v4892_v36 = vrot.slane %v4891_v19, 1  ;;  %v4898_v45 = vadd.f32 %v4897_v24, %v4896_v20  ;;  %v4921_v53 = vadd.f32 %v4920_v9, %v4919_v30  ;;  %v4927_v15 = vrot.slane %v4926_v29, 1 }
 0x5a6   :  { %v4932_v37 = vrot.slane %v4931_v50, 2  ;;  %v4938_v25 = vadd.f32 %v4937_v52, %v4936_v17  ;;  %v4908_v44 = vsel %vm3262_vm2, %v3123_v16, 0.0  ;;  %v4902_v32 = vrot.slane %v4901_v57, 4 }
 0x5a7   :  { %v4893_v59 = vadd.f32 %v4892_v36, %v4891_v19  ;;  %v4899_v31 = vrot.slane %v4898_v45, 1  ;;  %v4928_v3 = vadd.f32 %v4927_v15, %v4926_v29  ;;  %v5114_v8 = vsub.f32 %v4921_v53, %v13463_v42 }
 0x5a8   :  { %v4933_v60 = vadd.f32 %v4932_v37, %v4931_v50  ;;  %v4939_v7 = vrot.slane %v4938_v25, 2  ;;  %v4909_v24 = vrot.slane %v4908_v44, 4  ;;  %v14929_v52 = vrot.slane %v13366_v5, 4 }
 0x5a9   :  { %v4900_v20 = vadd.f32 %v4899_v31, %v4898_v45  ;;  %v5113_v13 = vsub.f32 %v4893_v59, %v13467_v48  ;;  %v13518_v30 = vmul.f32 0.33333334, %v5114_v8  ;;  %v5562_v17 = vsub.f32 %v4928_v3, %v13508_v62 }
 0x5aa   :  { %v4934_v19 = vrot.slane %v4933_v60, 1  ;;  %v4940_v9 = vadd.f32 %v4939_v7, %v4938_v25  ;;  %v13524_v36 = vadd.f32 %v14929_v52, %v13366_v5  ;;  %v4903_v37 = vadd.f32 %v4902_v32, %v4901_v57 }
 0x5ab   :  { %v5561_v29 = vsub.f32 %v4900_v20, %v13512_v61  ;;  %v4910_v50 = vadd.f32 %v4909_v24, %v4908_v44  ;;  %v13529_v48 = vrot.slane %v13480_v49, %v9803_v34  ;;  %v13532_v53 = vrot.slane %v3125_v4, %v9820_v2 }
 0x5ac   :  { %v4935_v31 = vadd.f32 %v4934_v19, %v4933_v60  ;;  %v4941_v45 = vrot.slane %v4940_v9, 1  ;;  %v13534_v3 = vmul.f32 0.33333334, %v5562_v17  ;;  %v13536_v25 = vmul.f32 0.33333334, %v5113_v13 }
 0x5ad   :  { %v4904_v15 = vrot.slane %v4903_v37, 2  ;;  %v4911_v5 = vrot.slane %v4910_v50, 2  ;;  %v5866_v44 = vrot.slane %v2835_v35, %v9803_v34  ;;  %v13541_v60 = vmul.f32 0.33333334, %v5561_v29 }
 0x5ae   :  { %14930 = vst [vmem:[#allocation76_spill] sm:$0xff] %v13534_v3  ;;  %v4942_v8 = vadd.f32 %v4941_v45, %v4940_v9  ;;  %v6010_v57 = vsub.f32 %v4935_v31, %v13529_v48  ;;  %v6314_v4 = vrot.slane %v3123_v16, %v9820_v2  ;;  %v13551_v24 = vadd.f32 %v13275_v54, %v13007_v43 }
 0x5af   :  { %v4905_v49 = vadd.f32 %v4904_v15, %v4903_v37  ;;  %v4912_v7 = vadd.f32 %v4911_v5, %v4910_v50  ;;  %v7384_v32 = vsel %vm6785_vm4, %v5866_v44, %v13403_v38  ;;  %v13559_v16 = vadd.f32 %v13275_v54, %v13053_v14 }
 0x5b0   :  { %v13544_v20 = vmul.f32 0.33333334, %v6010_v57  ;;  %v6458_v13 = vsub.f32 %v4942_v8, %v13532_v53  ;;  %14931 = vst [vmem:[#allocation91_spill] sm:$0xff] %v13551_v24  ;;  %v13555_v35 = vsel %vm6785_vm4, %v6314_v4, %v13412_v41  ;;  %v3128_v38 = vcombine.high %v13551_v24, %v13551_v24 }
 0x5b1   :  { %v4906_v17 = vrot.slane %v4905_v49, 1  ;;  %v4913_v19 = vrot.slane %v4912_v7, 1  ;;  %v4971_v43 = vsel %vm3262_vm2, %v13551_v24, 0.0  ;;  %v3126_v15 = vcombine.high %v13559_v16, %v13559_v16 }
 0x5b2   :  { %v13562_v52 = vmul.f32 0.33333334, %v6458_v13  ;;  %v4972_v41 = vrot.slane %v4971_v43, 4  ;;  %v4978_v45 = vsel %vm3262_vm2, %v3128_v38, 0.0  ;;  %v13576_v29 = vrot.slane %v3128_v38, %v9797_v33 }
 0x5b3   :  { %v4907_v37 = vadd.f32 %v4906_v17, %v4905_v49  ;;  %v4914_v50 = vadd.f32 %v4913_v19, %v4912_v7  ;;  %v4979_v13 = vrot.slane %v4978_v45, 4  ;;  %v4943_v49 = vsel %vm3262_vm2, %v13559_v16, 0.0 }
 0x5b4   :  { %14932 = vst [vmem:[#allocation12_spill] sm:$0xff] %v13562_v52  ;;  %v4973_v57 = vadd.f32 %v4972_v41, %v4971_v43  ;;  %v4950_v7 = vsel %vm3262_vm2, %v3126_v15, 0.0  ;;  %v4944_v9 = vrot.slane %v4943_v49, 4  ;;  %v14933_v43 = vrot.slane %v13251_v11, 2 }
 0x5b5   :  { %v6009_v5 = vsub.f32 %v4907_v37, %v5866_v44  ;;  %v6457_v8 = vsub.f32 %v4914_v50, %v6314_v4  ;;  %v4980_v14 = vadd.f32 %v4979_v13, %v4978_v45  ;;  %v4951_v44 = vrot.slane %v4950_v7, 4  ;;  %v14935_v45 = vld [vmem:[#allocation78_spill] sm:$0xff] }
 0x5b6   :  { %v4974_v31 = vrot.slane %v4973_v57, 2  ;;  %v13584_v4 = vrot.slane %v3126_v15, %v9797_v33  ;;  %v4807_v38 = vadd.f32 %v14933_v43, %v13251_v11  ;;  %v14934_v59 = vsub.f32 %v13307_v1, %v13213_v51  ;;  %v14944_v11 = vld [vmem:[#allocation10_spill] sm:$0xff] }
 0x5b7   :  { %v6073_v17 = vmul.f32 0.33333334, %v6009_v5  ;;  %v13581_v19 = vmul.f32 0.33333334, %v6457_v8  ;;  %v4981_v41 = vrot.slane %v4980_v14, 2  ;;  %v4945_v8 = vadd.f32 %v4944_v9, %v4943_v49 }
 0x5b8   :  { %v4975_v50 = vadd.f32 %v4974_v31, %v4973_v57  ;;  %v5173_v5 = vmul.f32 0.33333334, %v14934_v59  ;;  %v4952_v42 = vadd.f32 %v4951_v44, %v4950_v7  ;;  %v4808_v52 = vrot.slane %v4807_v38, 1 }
 0x5b9   :  { %v7562_v37 = vrot.slane %v6073_v17, 6  ;;  %v14936_v13 = vrot.slane %v13022_v56, 6  ;;  %v14937_v57 = vrot.slane %v13017_v10, 5  ;;  %v4946_v59 = vrot.slane %v4945_v8, 2 }
 0x5ba   :  { %v4976_v31 = vrot.slane %v4975_v50, 1  ;;  %v4953_v9 = vrot.slane %v4952_v42, 2  ;;  %v4809_v49 = vadd.f32 %v4808_v52, %v4807_v38  ;;  %v14938_v7 = vrot.slane %v13181_v26, 4 }
 0x5bb   :  { %v7005_v15 = vsel %vm6785_vm4, %v14936_v13, %v14935_v45  ;;  %v13598_v3 = vsel %vm6785_vm4, %v7562_v37, %v13489_v12  ;;  %v13607_v44 = vadd.f32 %v4981_v41, %v4980_v14  ;;  %v14939_v12 = vrot.slane %v13124_v47, 3 }
 0x5bc   :  { %v7007_v1 = vsel %vm6787_vm5, %v14937_v57, %v7005_v15  ;;  %v4977_v17 = vadd.f32 %v4976_v31, %v4975_v50  ;;  %v7012_v37 = vrot.slane %v5173_v5, 2  ;;  %v4947_v45 = vadd.f32 %v4946_v59, %v4945_v8  ;;  %v14940_v15 = vld [vmem:[#allocation25_spill] sm:$0xff] }
 0x5bd   :  { %v7009_v56 = vsel %vm6789_vm6, %v14938_v7, %v7007_v1  ;;  %v4954_v13 = vadd.f32 %v4953_v9, %v4952_v42  ;;  %v5110_v10 = vsub.f32 %v4809_v49, %v13209_v55  ;;  %v2859_v57 = vadd.f32 %v13275_v54, %v14940_v15 }
 0x5be   :  { %v7011_v43 = vsel %vm6791_vm7, %v14939_v12, %v7009_v56  ;;  %v5116_v52 = vsub.f32 %v4977_v17, %v13551_v24  ;;  %v2851_v14 = vadd.f32 %v13275_v54, %v13122_v18  ;;  %v7385_v47 = vsel %vm6787_vm5, %v13529_v48, %v7384_v32  ;;  %v14945_v18 = vld [vmem:[#allocation60_spill] sm:$0xff] }
 0x5bf   :  { %v7013_v26 = vsel %vm6793_vm8, %v7012_v37, %v7011_v43  ;;  %v4948_v38 = vrot.slane %v4947_v45, 1  ;;  %v4955_v50 = vrot.slane %v4954_v13, 1  ;;  %v5174_v41 = vmul.f32 0.33333334, %v5110_v10 }
 0x5c0   :  { %v3129_v5 = vcombine.high %v2859_v57, %v2859_v57  ;;  %v13622_v8 = vmul.f32 0.33333334, %v5116_v52  ;;  %v4985_v31 = vsel %vm3262_vm2, %v2859_v57, 0.0  ;;  %v3127_v1 = vcombine.high %v2851_v14, %v2851_v14 }
 0x5c1   :  { %v4949_v59 = vadd.f32 %v4948_v38, %v4947_v45  ;;  %v4956_v9 = vadd.f32 %v4955_v50, %v4954_v13  ;;  %v7014_v49 = vrot.slane %v5174_v41, 1  ;;  %v4986_v7 = vrot.slane %v4985_v31, 4 }
 0x5c2   :  { %v4992_v56 = vsel %vm3262_vm2, %v3129_v5, 0.0  ;;  %v13628_v48 = vrot.slane %v2859_v57, %v9803_v34  ;;  %v4957_v32 = vsel %vm3262_vm2, %v2851_v14, 0.0  ;;  %v4964_v10 = vsel %vm3262_vm2, %v3127_v1, 0.0 }
 0x5c3   :  { %v5115_v17 = vsub.f32 %v4949_v59, %v13559_v16  ;;  %v5563_v12 = vsub.f32 %v4956_v9, %v13584_v4  ;;  %v7015_v43 = vsel %vm6795_vm9, %v7014_v49, %v7013_v26  ;;  %v4987_v37 = vadd.f32 %v4986_v7, %v4985_v31 }
 0x5c4   :  { %14941 = vst [vmem:[#allocation24_spill] sm:$0xff] %v13628_v48  ;;  %7042 = vrot.lane.b32.xlu0 %v7015_v43, %s8796_s25  ;;  %v4993_v45 = vrot.slane %v4992_v56, 4  ;;  %v4958_v13 = vrot.slane %v4957_v32, 4  ;;  %v5874_v15 = vrot.slane %v2851_v14, %v9803_v34  ;;  %v13640_v38 = vrot.slane %v3129_v5, %v9820_v2 }
 0x5c5   :  { %v13637_v52 = vmul.f32 0.33333334, %v5115_v17  ;;  %v4988_v57 = vrot.slane %v4987_v37, 2  ;;  %v4965_v50 = vrot.slane %v4964_v10, 4  ;;  %v13642_v41 = vmul.f32 0.33333334, %v5563_v12 }
 0x5c6   :  { %v4994_v59 = vadd.f32 %v4993_v45, %v4992_v56  ;;  %v4959_v26 = vadd.f32 %v4958_v13, %v4957_v32  ;;  %v13645_v31 = vsel %vm6789_vm6, %v5874_v15, %v7385_v47  ;;  %v13648_v7 = vrot.slane %v3127_v1, %v9820_v2 }
 0x5c7   :  { %14942 = vst [vmem:[#allocation23_spill] sm:$0xff] %v13645_v31  ;;  %v4989_v9 = vadd.f32 %v4988_v57, %v4987_v37  ;;  %v4966_v49 = vadd.f32 %v4965_v50, %v4964_v10  ;;  %v14943_v14 = vsub.f32 %v13339_v6, %v13290_v21  ;;  %v14946_v12 = vrot.slane %v14945_v18, 5  ;;  %v14950_v18 = vld [vmem:[#allocation30_spill] sm:$0xff] }
 0x5c8   :  { %v4995_v43 = vrot.slane %v4994_v59, 2  ;;  %v4960_v5 = vrot.slane %v4959_v26, 2  ;;  %v14947_v47 = vrot.slane %v13103_v46, 1  ;;  %v14948_v1 = vrot.slane %v13235_v58, 4 }
 0x5c9   :  { %v6070_v17 = vmul.f32 0.33333334, %v14943_v14  ;;  %v7551_v56 = vsel %vm6787_vm5, %v14946_v12, %v14944_v11  ;;  %v4990_v37 = vrot.slane %v4989_v9, 1  ;;  %v4967_v45 = vrot.slane %v4966_v49, 2 }
 0x5ca   :  { %v4760_v32 = vadd.f32 %v14947_v47, %v13103_v46  ;;  %v7553_v13 = vsel %vm6789_vm6, %v14948_v1, %v7551_v56  ;;  %v4996_v6 = vadd.f32 %v4995_v43, %v4994_v59  ;;  %v4961_v57 = vadd.f32 %v4960_v5, %v4959_v26  ;;  %v14954_v1 = vld [vmem:[#allocation44_spill] sm:$0xff] }
 0x5cb   :  { %v7558_v10 = vrot.slane %v6070_v17, 1  ;;  %v14949_v50 = vrot.slane %v13196_v39, 3  ;;  %v14951_v11 = vrot.slane %v14950_v18, 2  ;;  %v4991_v42 = vadd.f32 %v4990_v37, %v4989_v9 }
 0x5cc   :  { %v4968_v21 = vadd.f32 %v4967_v45, %v4966_v49  ;;  %v14952_v46 = vrot.slane %v13345_v27, 2  ;;  %v4813_v58 = vrot.slane %v13524_v36, 2  ;;  %v4997_v56 = vrot.slane %v4996_v6, 1  ;;  %v14953_v45 = vld [vmem:[#allocation15_spill] sm:$0xff] }
 0x5cd   :  { %v7555_v14 = vsel %vm6791_vm7, %v14949_v50, %v7553_v13  ;;  %v4786_v12 = vadd.f32 %v14951_v11, %v14950_v18  ;;  %v4962_v17 = vrot.slane %v4961_v57, 1  ;;  %v6012_v39 = vsub.f32 %v4991_v42, %v13628_v48 }
 0x5ce   :  { %v7557_v47 = vsel %vm6793_vm8, %v14952_v46, %v7555_v14  ;;  %v4969_v43 = vrot.slane %v4968_v21, 1  ;;  %v4814_v5 = vadd.f32 %v4813_v58, %v13524_v36  ;;  %v5556_v9 = vsub.f32 %v4760_v32, %v13078_v40  ;;  %v14958_v58 = vld [vmem:[#allocation56_spill] sm:$0xff] }
 0x5cf   :  { %v7559_v59 = vsel %vm6795_vm9, %v7558_v10, %v7557_v47  ;;  %v4787_v26 = vrot.slane %v4786_v12, 1  ;;  %v4998_v49 = vadd.f32 %v4997_v56, %v4996_v6  ;;  %v4963_v27 = vadd.f32 %v4962_v17, %v4961_v57  ;;  %v14956_v47 = vld [vmem:[#allocation34_spill] sm:$0xff] }
 0x5d0   :  { %7586 = vrot.lane.b32.xlu1 %v7559_v59, %s8796_s25  ;;  %v14955_v13 = vrot.slane %v14954_v1, 7  ;;  %v13682_v14 = vmul.f32 0.33333334, %v6012_v39  ;;  %v4970_v10 = vadd.f32 %v4969_v43, %v4968_v21  ;;  %v4815_v18 = vrot.slane %v4814_v5, 1 }
 0x5d1   :  { %v4788_v37 = vadd.f32 %v4787_v26, %v4786_v12  ;;  %v5620_v42 = vmul.f32 0.33333334, %v5556_v9  ;;  %v6460_v11 = vsub.f32 %v4998_v49, %v13640_v38  ;;  %v6011_v46 = vsub.f32 %v4963_v27, %v5874_v15  ;;  %v14960_v26 = vld [vmem:[#allocation49_spill] sm:$0xff] }
 0x5d2   :  { %v7283_v50 = vsel %vm6783_vm3, %v14955_v13, %v14953_v45  ;;  %v14957_v40 = vrot.slane %v14956_v47, 6  ;;  %v6459_v57 = vsub.f32 %v4970_v10, %v13648_v7  ;;  %v4816_v12 = vadd.f32 %v4815_v18, %v4814_v5  ;;  %v14961_v5 = vld [vmem:[#allocation57_spill] sm:$0xff]  ;;  %v14963_v47 = vld [vmem:[#allocation6_spill] sm:$0xff] }
 0x5d3   :  { %v5557_v36 = vsub.f32 %v4788_v37, %v13375_v0  ;;  %v14959_v56 = vrot.slane %v14958_v58, 5  ;;  %v13694_v17 = vmul.f32 0.33333334, %v6460_v11  ;;  %v13696_v59 = vmul.f32 0.33333334, %v6011_v46 }
 0x5d4   :  { %v7285_v32 = vsel %vm6785_vm4, %v14957_v40, %v7283_v50  ;;  %v13700_v0 = vadd.f32 %v13275_v54, %v14960_v26  ;;  %v13703_v43 = vmul.f32 0.33333334, %v6459_v57  ;;  %v5558_v9 = vsub.f32 %v4816_v12, %v13383_v22  ;;  %v14962_v22 = vld [vmem:[#allocation9_spill] sm:$0xff] }
 0x5d5   :  { %v7287_v21 = vsel %vm6787_vm5, %v14959_v56, %v7285_v32  ;;  %v5621_v15 = vmul.f32 0.33333334, %v5557_v36  ;;  %v7288_v49 = vrot.slane %v14961_v5, 4  ;;  %v7290_v37 = vrot.slane %v5620_v42, 3  ;;  %v14964_v12 = vld [vmem:[#allocation21_spill] sm:$0xff] }
 0x5d6   :  { %v5027_v1 = vsel %vm3262_vm2, %v13700_v0, 0.0  ;;  %v5622_v50 = vmul.f32 0.33333334, %v5558_v9  ;;  %v13716_v36 = vadd.f32 %v13275_v54, %v14962_v22  ;;  %v2875_v42 = vadd.f32 %v13275_v54, %v14963_v47  ;;  %v13733_v9 = vpop.permute.xlu1 %7116 }
 0x5d7   :  { %v7292_v45 = vrot.slane %v5621_v15, 2  ;;  %v7289_v10 = vsel %vm6789_vm6, %v7288_v49, %v7287_v21  ;;  %v5028_v18 = vrot.slane %v5027_v1, 4  ;;  %v2867_v58 = vadd.f32 %v13275_v54, %v14964_v12 }
 0x5d8   :  { %v7291_v46 = vsel %vm6791_vm7, %v7290_v37, %v7289_v10  ;;  %v7294_v32 = vrot.slane %v5622_v50, 1  ;;  %v3130_v56 = vcombine.high %v13716_v36, %v13716_v36  ;;  %v4999_v21 = vsel %vm3262_vm2, %v13716_v36, 0.0 }
 0x5d9   :  { %v7293_v40 = vsel %vm6793_vm8, %v7292_v45, %v7291_v46  ;;  %v13721_v57 = vadd.f32 %v5028_v18, %v5027_v1  ;;  %v13729_v15 = vcombine.high %v2875_v42, %v2875_v42  ;;  %v3132_v26 = vcombine.high %v13700_v0, %v13700_v0 }
 0x5da   :  { %v7295_v5 = vsel %vm6795_vm9, %v7294_v32, %v7293_v40  ;;  %v5000_v37 = vrot.slane %v4999_v21, 4  ;;  %v5041_v54 = vsel %vm3262_vm2, %v2875_v42, 0.0  ;;  %v5006_v45 = vsel %vm3262_vm2, %v3130_v56, 0.0  ;;  %v7037_v6 = vpop.permute.xlu1 %7036 }
 0x5db   :  { %7322 = vrot.lane.b32.xlu0 %v7295_v5, %s8797_s26  ;;  %v5042_v1 = vrot.slane %v5041_v54, 4  ;;  %v5048_v50 = vsel %vm3262_vm2, %v13729_v15, 0.0  ;;  %v13743_v10 = vrot.slane %v2875_v42, %v9803_v34  ;;  %v5007_v46 = vrot.slane %v5006_v45, 4 }
 0x5dc   :  { %v5001_v18 = vadd.f32 %v5000_v37, %v4999_v21  ;;  %v5049_v22 = vrot.slane %v5048_v50, 4  ;;  %v3131_v47 = vcombine.high %v2867_v58, %v2867_v58  ;;  %v5013_v32 = vsel %vm3262_vm2, %v2867_v58, 0.0 }
 0x5dd   :  { %v5043_v40 = vadd.f32 %v5042_v1, %v5041_v54  ;;  %v13747_v12 = vrot.slane %v2867_v58, %v9803_v34  ;;  %v5034_v5 = vsel %vm3262_vm2, %v3132_v26, 0.0  ;;  %v13750_v11 = vadd.f32 %v5007_v46, %v5006_v45 }
 0x5de   :  { %v5002_v27 = vrot.slane %v5001_v18, 2  ;;  %v5050_v39 = vadd.f32 %v5049_v22, %v5048_v50  ;;  %v5014_v13 = vrot.slane %v5013_v32, 4  ;;  %v5020_v21 = vsel %vm3262_vm2, %v3131_v47, 0.0 }
 0x5df   :  { %v5044_v42 = vrot.slane %v5043_v40, 2  ;;  %v13754_v37 = vrot.slane %v3131_v47, %v9820_v2  ;;  %v5035_v54 = vrot.slane %v5034_v5, 4  ;;  %v5009_v49 = vrot.slane %v13750_v11, 2 }
 0x5e0   :  { %v5003_v1 = vadd.f32 %v5002_v27, %v5001_v18  ;;  %v5051_v34 = vrot.slane %v5050_v39, 2  ;;  %v5015_v58 = vadd.f32 %v5014_v13, %v5013_v32  ;;  %v5021_v48 = vrot.slane %v5020_v21, 4  ;;  %v14965_v18 = vld [vmem:[#allocation70_spill] sm:$0xff]  ;;  %v7661_v32 = vpop.permute.xlu0 %7660 }
 0x5e1   :  { %v5045_v55 = vadd.f32 %v5044_v42, %v5043_v40  ;;  %v13757_v31 = vadd.f32 %v5035_v54, %v5034_v5  ;;  %v13760_v45 = vrot.slane %v3130_v56, %v9797_v33  ;;  %v13765_v47 = vrot.slane %v3132_v26, %v9797_v33  ;;  %v14966_v42 = vld [vmem:[#allocation50_spill] sm:$0xff]  ;;  %v14967_v54 = vld [vmem:[#allocation35_spill] sm:$0xff] }
 0x5e2   :  { %v5004_v50 = vrot.slane %v5003_v1, 1  ;;  %v13762_v46 = vadd.f32 %v5051_v34, %v5050_v39  ;;  %v5016_v22 = vrot.slane %v5015_v58, 2  ;;  %v5022_v27 = vadd.f32 %v5021_v48, %v5020_v21  ;;  %v7317_v48 = vpop.permute.xlu1 %7316 }
 0x5e3   :  { %v5046_v24 = vrot.slane %v5045_v55, 1  ;;  %v7104_v13 = vsel %vm6785_vm4, %v13512_v61, %v13329_v63  ;;  %v6654_v40 = vrot.slane %v14965_v18, %v9773_v28  ;;  %v14968_v33 = vrot.slane %v14967_v54, %v9773_v28  ;;  %v14969_v61 = vld [vmem:[#allocation13_spill] sm:$0xff] }
 0x5e4   :  { %v5005_v5 = vadd.f32 %v5004_v50, %v5003_v1  ;;  %v5017_v56 = vadd.f32 %v5016_v22, %v5015_v58  ;;  %v7105_v39 = vsel %vm6787_vm5, %v13508_v62, %v7104_v13  ;;  %v5023_v34 = vrot.slane %v5022_v27, 2  ;;  %v14971_v22 = vld [vmem:[#allocation5_spill] sm:$0xff] }
 0x5e5   :  { %v6813_v26 = vsel %vm6787_vm5, %v14968_v33, %v14966_v42  ;;  %v5047_v21 = vadd.f32 %v5046_v24, %v5045_v55  ;;  %v7106_v63 = vsel %vm6789_vm6, %v13584_v4, %v7105_v39  ;;  %v14970_v18 = vrot.slane %v14969_v61, %v9773_v28  ;;  %v14973_v39 = vld [vmem:[#allocation67_spill] sm:$0xff] }
 0x5e6   :  { %v5117_v58 = vsub.f32 %v5005_v5, %v13716_v36  ;;  %v5018_v62 = vrot.slane %v5017_v56, 1  ;;  %v7107_v50 = vsel %vm6791_vm7, %v13576_v29, %v7106_v63  ;;  %v14972_v13 = vrot.slane %v14971_v22, %v9773_v28 }
 0x5e7   :  { %v6814_v1 = vsel %vm6789_vm6, %v14970_v18, %v6813_v26  ;;  %v6014_v24 = vsub.f32 %v5047_v21, %v13743_v10  ;;  %v5024_v42 = vadd.f32 %v5023_v34, %v5022_v27  ;;  %v7108_v4 = vsel %vm6793_vm8, %v13760_v45, %v7107_v50  ;;  %v7581_v21 = vpop.permute.xlu0 %7580 }
 0x5e8   :  { %v6815_v55 = vsel %vm6791_vm7, %v14972_v13, %v6814_v1  ;;  %v14974_v54 = vrot.slane %v14973_v39, %v9773_v28  ;;  %v5019_v33 = vadd.f32 %v5018_v62, %v5017_v56  ;;  %v7109_v26 = vsel %vm6795_vm9, %v13765_v47, %v7108_v4  ;;  %v14975_v56 = vld [vmem:[#allocation84_spill] sm:$0xff]  ;;  %v14976_v1 = vld [vmem:[#allocation82_spill] sm:$0xff] }
 0x5e9   :  { %v13804_v61 = vrot.slane %v13729_v15, %v9820_v2  ;;  %v5025_v27 = vrot.slane %v5024_v42, 1  ;;  %7124 = vrot.lane.b32.xlu1 %v7109_v26, %s8795_s24  ;;  %v7649_v18 = vsel %vm6787_vm5, %v13532_v53, %v13555_v35  ;;  %v7359_v62 = vsel %vm6791_vm7, %v14976_v1, %v14975_v56  ;;  %v14977_v15 = vld [vmem:[#allocation26_spill] sm:$0xff]  ;;  %v14978_v35 = vld [vmem:[#allocation27_spill] sm:$0xff] }
 0x5ea   :  { %v6816_v5 = vsel %vm6793_vm8, %v14974_v54, %v6815_v55  ;;  %v7650_v2 = vsel %vm6789_vm6, %v13648_v7, %v7649_v18  ;;  %v7360_v50 = vsel %vm6793_vm8, %v14977_v15, %v7359_v62  ;;  %v5181_v26 = vmul.f32 0.33333334, %v5117_v58 }
 0x5eb   :  { %v6817_v63 = vsel %vm6795_vm9, %v6654_v40, %v6816_v5  ;;  %v6013_v40 = vsub.f32 %v5019_v33, %v13747_v12  ;;  %v13821_v13 = vadd.f32 %v5025_v27, %v5024_v42  ;;  %v7651_v53 = vsel %vm6791_vm7, %v13640_v38, %v7650_v2  ;;  %v13834_v5 = vpop.permute.xlu0 %7118 }
 0x5ec   :  { %v7881_v34 = vsel %vm1188_vm1, %v6817_v63, %v7037_v6  ;;  %v7861_v6 = vpop.permute.xlu1 %7860  ;;  %v7361_v55 = vsel %vm6795_vm9, %v14978_v35, %v7360_v50  ;;  %v7652_v7 = vsel %vm6793_vm8, %v13754_v37, %v7651_v53  ;;  %v14981_v56 = vrot.slane %v13518_v30, 5 }
 0x5ed   :  { %v7890_v22 = vsel %vm7886_vm10, %v7881_v34, %v13733_v9  ;;  %v6077_v39 = vmul.f32 0.33333334, %v6013_v40  ;;  %v7907_v54 = vsel %vm1188_vm1, %v7361_v55, %v7581_v21  ;;  %v14979_v9 = vrot.slane %v13721_v57, 2 }
 0x5ee   :  { %v7899_v4 = vsel %vm7895_vm11, %v7890_v22, %v7317_v48  ;;  %v6461_v38 = vsub.f32 %v13821_v13, %v13754_v37  ;;  %v7653_v33 = vsel %vm6795_vm9, %v13804_v61, %v7652_v7  ;;  %v7915_v48 = vsel %vm7886_vm10, %v7907_v54, %v7661_v32  ;;  %v14988_v54 = vld [vmem:[#allocation37_spill] sm:$0xff] }
 0x5ef   :  { %7934 = vst [vmem:[#allocation2 + $0x30] sm:$0xff] %v7899_v4  ;;  %v5031_v42 = vadd.f32 %v14979_v9, %v13721_v57  ;;  %v7570_v63 = vrot.slane %v6077_v39, 2  ;;  %7668 = vrot.lane.b32.xlu0 %v7653_v33, %s8795_s24  ;;  %v7923_v21 = vsel %vm7895_vm11, %v7915_v48, %v7861_v6  ;;  %v14980_v57 = vrot.slane %v13536_v25, 6  ;;  %v13865_v6 = vpop.permute.xlu0 %7038  ;;  %v14989_v9 = vld [vmem:[#allocation7_spill] sm:$0xff] }
 0x5f0   :  { %v13847_v18 = vpop.permute.xlu1 %7662  ;;  %7935 = vst [vmem:[#allocation2 + $0x38] sm:$0xff] %v7923_v21  ;;  %v7026_v32 = vrot.slane %v5181_v26, 2  ;;  %v6078_v58 = vmul.f32 0.33333334, %v6014_v24  ;;  %v14982_v62 = vrot.slane %v13544_v20, 5  ;;  %v14983_v15 = vrot.slane %v13637_v52, 4 }
 0x5f1   :  { %v5032_v27 = vrot.slane %v5031_v42, 1  ;;  %v7019_v34 = vsel %vm6785_vm4, %v14980_v57, %v13371_v23  ;;  %v14984_v23 = vrot.slane %v13696_v59, 4  ;;  %v14985_v30 = vrot.slane %v13607_v44, 1  ;;  %v14992_v57 = vld [vmem:[#allocation76_spill] sm:$0xff] }
 0x5f2   :  { %v7021_v1 = vsel %vm6787_vm5, %v14981_v56, %v7019_v34  ;;  %v7565_v40 = vsel %vm6787_vm5, %v14982_v62, %v13598_v3  ;;  %v14986_v24 = vrot.slane %v13622_v8, 3  ;;  %v14987_v3 = vrot.slane %v13682_v14, 3  ;;  %v14994_v56 = vld [vmem:[#allocation33_spill] sm:$0xff] }
 0x5f3   :  { %v5033_v2 = vadd.f32 %v5032_v27, %v5031_v42  ;;  %v7023_v25 = vsel %vm6789_vm6, %v14983_v15, %v7021_v1  ;;  %v7567_v50 = vsel %vm6789_vm6, %v14984_v23, %v7565_v40  ;;  %v4984_v22 = vadd.f32 %v14985_v30, %v13607_v44  ;;  %v14995_v40 = vld [vmem:[#allocation83_spill] sm:$0xff]  ;;  %v13902_v15 = vpop.permute.xlu0 %7318 }
 0x5f4   :  { %v7025_v20 = vsel %vm6791_vm7, %v14986_v24, %v7023_v25  ;;  %v7569_v52 = vsel %vm6791_vm7, %v14987_v3, %v7567_v50  ;;  %v7572_v53 = vrot.slane %v6078_v58, 1  ;;  %v5010_v59 = vadd.f32 %v5009_v49, %v13750_v11  ;;  %v13880_v8 = vpop.permute.xlu1 %7582  ;;  %v14998_v30 = vld [vmem:[#allocation63_spill] sm:$0xff] }
 0x5f5   :  { %v5118_v35 = vsub.f32 %v5033_v2, %v13700_v0  ;;  %v7027_v55 = vsel %vm6793_vm8, %v7026_v32, %v7025_v20  ;;  %v7571_v44 = vsel %vm6793_vm8, %v7570_v63, %v7569_v52  ;;  %v5037_v4 = vrot.slane %v13757_v31, 2 }
 0x5f6   :  { %v7573_v39 = vsel %vm6795_vm9, %v7572_v53, %v7571_v44  ;;  %v5011_v14 = vrot.slane %v5010_v59, 1  ;;  %v5564_v7 = vsub.f32 %v4984_v22, %v13576_v29  ;;  %v14990_v42 = vrot.slane %v14989_v9, 7  ;;  %v14999_v22 = vld [vmem:[#allocation68_spill] sm:$0xff]  ;;  %v15001_v53 = vld [vmem:[#allocation58_spill] sm:$0xff] }
 0x5f7   :  { %v5182_v49 = vmul.f32 0.33333334, %v5118_v35  ;;  %7588 = vrot.lane.b32.xlu0 %v7573_v39, %s8796_s25  ;;  %v5038_v33 = vadd.f32 %v5037_v4, %v13757_v31  ;;  %v14991_v48 = vrot.slane %v13541_v60, 6  ;;  %v7302_v63 = vrot.slane %v13642_v41, 4  ;;  %v14996_v31 = vld [vmem:[#allocation74_spill] sm:$0xff]  ;;  %v15003_v39 = vld [vmem:[#allocation41_spill] sm:$0xff]  ;;  %v7863_v37 = vpop.permute.xlu0 %7862 }
 0x5f8   :  { %v7297_v11 = vsel %vm6783_vm3, %v14990_v42, %v14988_v54  ;;  %v5012_v21 = vadd.f32 %v5011_v14, %v5010_v59  ;;  %v5628_v27 = vmul.f32 0.33333334, %v5564_v7  ;;  %v14993_v29 = vrot.slane %v14992_v57, 5  ;;  %v13904_v25 = vpop.permute.xlu1 %7120  ;;  %v15004_v7 = vld [vmem:[#allocation29_spill] sm:$0xff]  ;;  %v15008_v57 = vld [vmem:[#allocation90_spill] sm:$0xff] }
 0x5f9   :  { %v7299_v26 = vsel %vm6785_vm4, %v14991_v48, %v7297_v11  ;;  %v4829_v1 = vrot.slane %v14994_v56, 1  ;;  %v7028_v32 = vrot.slane %v5182_v49, 1  ;;  %v5039_v58 = vrot.slane %v5038_v33, 1 }
 0x5fa   :  { %v7301_v34 = vsel %vm6787_vm5, %v14993_v29, %v7299_v26  ;;  %v14997_v2 = vsub.f32 %v14995_v40, %v14996_v31  ;;  %v5565_v41 = vsub.f32 %v5012_v21, %v13760_v45  ;;  %v7304_v23 = vrot.slane %v5628_v27, 3 }
 0x5fb   :  { %v7303_v62 = vsel %vm6789_vm6, %v7302_v63, %v7301_v34  ;;  %v4830_v50 = vadd.f32 %v4829_v1, %v14994_v56  ;;  %v15000_v24 = vrot.slane %v14999_v22, 6  ;;  %v7029_v3 = vsel %vm6795_vm9, %v7028_v32, %v7027_v55  ;;  %v15006_v55 = vld [vmem:[#allocation64_spill] sm:$0xff] }
 0x5fc   :  { %v6517_v60 = vmul.f32 0.33333334, %v14997_v2  ;;  %v5040_v52 = vadd.f32 %v5039_v58, %v5038_v33  ;;  %v15002_v59 = vrot.slane %v15001_v53, 5  ;;  %7044 = vrot.lane.b32.xlu1 %v7029_v3, %s8796_s25  ;;  %v5629_v4 = vmul.f32 0.33333334, %v5565_v41  ;;  %v7041_v26 = vpop.permute.xlu1 %7040  ;;  %v15010_v1 = vld [vmem:[#allocation12_spill] sm:$0xff] }
 0x5fd   :  { %v7829_v20 = vsel %vm6785_vm4, %v15000_v24, %v14998_v30  ;;  %v7305_v45 = vsel %vm6791_vm7, %v7304_v23, %v7303_v62  ;;  %v6454_v14 = vsub.f32 %v4830_v50, %v15003_v39  ;;  %v15005_v54 = vrot.slane %v15004_v7, 4  ;;  %v15015_v50 = vld [vmem:[#allocation55_spill] sm:$0xff]  ;;  %v15016_v30 = vld [vmem:[#allocation42_spill] sm:$0xff] }
 0x5fe   :  { %v7831_v35 = vsel %vm6787_vm5, %v15002_v59, %v7829_v20  ;;  %v7836_v44 = vrot.slane %v6517_v60, 2  ;;  %v5566_v42 = vsub.f32 %v5040_v52, %v13765_v47  ;;  %v15007_v11 = vrot.slane %v15006_v55, 3  ;;  %v15018_v3 = vld [vmem:[#allocation86_spill] sm:$0xff]  ;;  %v15021_v59 = vld [vmem:[#allocation61_spill] sm:$0xff] }
 0x5ff   :  { %v7833_v9 = vsel %vm6789_vm6, %v15005_v54, %v7831_v35  ;;  %v5053_v33 = vrot.slane %v13762_v46, 1  ;;  %v6525_v48 = vmul.f32 0.33333334, %v6461_v38  ;;  %v7306_v63 = vrot.slane %v5629_v4, 2  ;;  %v15022_v4 = vld [vmem:[#allocation46_spill] sm:$0xff]  ;;  %v7665_v54 = vpop.permute.xlu0 %7664 }
 0x600   :  { %v7835_v49 = vsel %vm6791_vm7, %v15007_v11, %v7833_v9  ;;  %v6518_v21 = vmul.f32 0.33333334, %v6454_v14  ;;  %v15009_v29 = vrot.slane %v13581_v19, 6  ;;  %v5630_v34 = vmul.f32 0.33333334, %v5566_v42  ;;  %v15013_v19 = vld [vmem:[#allocation77_spill] sm:$0xff]  ;;  %v7321_v9 = vpop.permute.xlu1 %7320 }
 0x601   :  { %v7837_v27 = vsel %vm6793_vm8, %v7836_v44, %v7835_v49  ;;  %v5054_v56 = vadd.f32 %v5053_v33, %v13762_v46  ;;  %v15011_v32 = vrot.slane %v15010_v1, 5  ;;  %v7850_v62 = vrot.slane %v6525_v48, 2  ;;  %v15024_v14 = vld [vmem:[#allocation75_spill] sm:$0xff]  ;;  %v15025_v42 = vld [vmem:[#allocation36_spill] sm:$0xff]  ;;  %v15027_v49 = vld [vmem:[#allocation62_spill] sm:$0xff] }
 0x602   :  { %v7843_v47 = vsel %vm6785_vm4, %v15009_v29, %v15008_v57  ;;  %v7307_v13 = vsel %vm6793_vm8, %v7306_v63, %v7305_v45  ;;  %v7838_v38 = vrot.slane %v6518_v21, 1  ;;  %v15012_v40 = vrot.slane %v13703_v43, 4  ;;  %v15028_v48 = vld [vmem:[#allocation72_spill] sm:$0xff] }
 0x603   :  { %v7845_v58 = vsel %vm6787_vm5, %v15011_v32, %v7843_v47  ;;  %v6686_v2 = vrot.slane %v15013_v19, %v9773_v28  ;;  %v7308_v60 = vrot.slane %v5630_v34, 1  ;;  %v6462_v41 = vsub.f32 %v5054_v56, %v13804_v61  ;;  %v15020_v61 = vld [vmem:[#allocation79_spill] sm:$0xff]  ;;  %v15029_v21 = vld [vmem:[#allocation20_spill] sm:$0xff] }
 0x604   :  { %v7847_v31 = vsel %vm6789_vm6, %v15012_v40, %v7845_v58  ;;  %v15014_v46 = vrot.slane %v13694_v17, 3  ;;  %v15017_v22 = vrot.slane %v15016_v30, %v9773_v28  ;;  %v7839_v43 = vsel %vm6795_vm9, %v7838_v38, %v7837_v27  ;;  %v15030_v27 = vld [vmem:[#allocation8_spill] sm:$0xff]  ;;  %v15034_v38 = vld [vmem:[#allocation43_spill] sm:$0xff] }
 0x605   :  { %v15019_v52 = vrot.slane %v15018_v3, %v9773_v28  ;;  %v7366_v17 = vsel %vm6791_vm7, %v15021_v59, %v15020_v61  ;;  %v7309_v35 = vsel %vm6795_vm9, %v7308_v60, %v7307_v13  ;;  %7866 = vrot.lane.b32.xlu0 %v7839_v43, %s8797_s26  ;;  %v6526_v44 = vmul.f32 0.33333334, %v6462_v41  ;;  %v15032_v1 = vld [vmem:[#allocation40_spill] sm:$0xff]  ;;  %v15036_v19 = vld [vmem:[#allocation87_spill] sm:$0xff]  ;;  %v15043_v61 = vld [vmem:[#allocation69_spill] sm:$0xff] }
 0x606   :  { %v7849_v23 = vsel %vm6791_vm7, %v15014_v46, %v7847_v31  ;;  %v6820_v24 = vsel %vm6787_vm5, %v15017_v22, %v15015_v50  ;;  %v15023_v45 = vrot.slane %v15022_v4, %v9773_v28  ;;  %v7367_v7 = vsel %vm6793_vm8, %v15024_v14, %v7366_v17  ;;  %7324 = vrot.lane.b32.xlu1 %v7309_v35, %s8797_s26  ;;  %v7585_v50 = vpop.permute.xlu0 %7584  ;;  %v15041_v3 = vld [vmem:[#allocation31_spill] sm:$0xff]  ;;  %v15045_v17 = vld [vmem:[#allocation54_spill] sm:$0xff] }
 0x607   :  { %v7851_v20 = vsel %vm6793_vm8, %v7850_v62, %v7849_v23  ;;  %v6821_v53 = vsel %vm6789_vm6, %v15019_v52, %v6820_v24  ;;  %v15026_v55 = vrot.slane %v15025_v42, %v9773_v28  ;;  %v7368_v33 = vsel %vm6795_vm9, %v15027_v49, %v7367_v7  ;;  %v7865_v52 = vpop.permute.xlu1 %7864  ;;  %v15046_v4 = vld [vmem:[#allocation11_spill] sm:$0xff]  ;;  %v15048_v42 = vld [vmem:[#allocation18_spill] sm:$0xff] }
 0x608   :  { %v6822_v39 = vsel %vm6791_vm7, %v15023_v45, %v6821_v53  ;;  %v6718_v63 = vrot.slane %v15028_v48, %v9773_v28  ;;  %v15031_v57 = vrot.slane %v15030_v27, %v9773_v28  ;;  %v7852_v47 = vrot.slane %v6526_v44, 1  ;;  %v15042_v53 = vld [vmem:[#allocation66_spill] sm:$0xff]  ;;  %v15050_v49 = vld [vmem:[#allocation91_spill] sm:$0xff] }
 0x609   :  { %v6823_v11 = vsel %vm6793_vm8, %v15026_v55, %v6822_v39  ;;  %v7908_v56 = vsel %vm1188_vm1, %v7368_v33, %v13880_v8  ;;  %v15033_v32 = vrot.slane %v15032_v1, %v9773_v28  ;;  %v15035_v40 = vrot.slane %v15034_v38, %v9773_v28 }
 0x60a   :  { %v6827_v29 = vsel %vm6787_vm5, %v15031_v57, %v15029_v21  ;;  %v6824_v34 = vsel %vm6795_vm9, %v6686_v2, %v6823_v11  ;;  %v7916_v13 = vsel %vm7886_vm10, %v7908_v56, %v13847_v18  ;;  %v15037_v2 = vld [vmem:[#allocation48_spill] sm:$0xff]  ;;  %v7853_v60 = vsel %vm6795_vm9, %v7852_v47, %v7851_v20 }
 0x60b   :  { %v6828_v58 = vsel %vm6789_vm6, %v15033_v32, %v6827_v29  ;;  %v7882_v62 = vsel %vm1188_vm1, %v6824_v34, %v13865_v6  ;;  %v7373_v8 = vsel %vm6791_vm7, %v15037_v2, %v15036_v19  ;;  %v7924_v46 = vsel %vm7895_vm11, %v7916_v13, %v7863_v37  ;;  %v15038_v6 = vld [vmem:[#allocation85_spill] sm:$0xff]  ;;  %7868 = vrot.lane.b32.xlu1 %v7853_v60, %s8797_s26  ;;  %v15053_v21 = vld [vmem:[#allocation24_spill] sm:$0xff]  ;;  %v7123_v32 = vpop.permute.xlu0 %7122  ;;  %v7667_v19 = vpop.permute.xlu1 %7666  ;;  %v15055_v60 = vld [vmem:[#allocation22_spill] sm:$0xff] }
 0x60c   :  { %v6829_v31 = vsel %vm6791_vm7, %v15035_v40, %v6828_v58  ;;  %v7891_v41 = vsel %vm7886_vm10, %v7882_v62, %v13834_v5  ;;  %v15039_v23 = vrot.slane %v15038_v6, %v9773_v28  ;;  %v6746_v30 = vrot.slane %v13213_v51, %v9773_v28  ;;  %7937 = vst [vmem:[#allocation2 + $0x48] sm:$0xff] %v7924_v46  ;;  %v15040_v5 = vld [vmem:[#allocation65_spill] sm:$0xff] }
 0x60d   :  { %v7900_v22 = vsel %vm7895_vm11, %v7891_v41, %v13902_v15  ;;  %v7374_v37 = vsel %vm6793_vm8, %v15040_v5, %v7373_v8  ;;  %v6770_v43 = vrot.slane %v13559_v16, %v9773_v28  ;;  %v15044_v15 = vrot.slane %v15043_v61, %v9773_v28  ;;  %v15054_v58 = vld [vmem:[#allocation45_spill] sm:$0xff]  ;;  %v15056_v41 = vld [vmem:[#allocation32_spill] sm:$0xff] }
 0x60e   :  { %v6830_v18 = vsel %vm6793_vm8, %v15039_v23, %v6829_v31  ;;  %7936 = vst [vmem:[#allocation2 + $0x40] sm:$0xff] %v7900_v22  ;;  %v7375_v51 = vsel %vm6795_vm9, %v15041_v3, %v7374_v37  ;;  %v6766_v35 = vrot.slane %v15045_v17, %v9773_v28  ;;  %v6778_v39 = vrot.slane %v13716_v36, %v9773_v28 }
 0x60f   :  { %v6831_v24 = vsel %vm6795_vm9, %v6718_v63, %v6830_v18  ;;  %v6834_v59 = vsel %vm6787_vm5, %v15044_v15, %v15042_v53  ;;  %v7909_v44 = vsel %vm1188_vm1, %v7375_v51, %v7585_v50  ;;  %v15049_v55 = vrot.slane %v15048_v42, %v9773_v28  ;;  %v15051_v63 = vld [vmem:[#allocation88_spill] sm:$0xff]  ;;  %v15058_v50 = vld [vmem:[#allocation73_spill] sm:$0xff] }
 0x610   :  { %v7883_v20 = vsel %vm1188_vm1, %v6831_v24, %v7041_v26  ;;  %v15047_v26 = vrot.slane %v15046_v4, %v9773_v28  ;;  %v7917_v7 = vsel %vm7886_vm10, %v7909_v44, %v7665_v54  ;;  %v6841_v36 = vsel %vm6787_vm5, %v6766_v35, %v15051_v63  ;;  %v15052_v54 = vld [vmem:[#allocation23_spill] sm:$0xff] }
 0x611   :  { %v7892_v16 = vsel %vm7886_vm10, %v7883_v20, %v13904_v25  ;;  %v6774_v25 = vrot.slane %v15050_v49, %v9773_v28  ;;  %v7925_v33 = vsel %vm7895_vm11, %v7917_v7, %v7865_v52  ;;  %v7387_v27 = vsel %vm6791_vm7, %v15053_v21, %v15052_v54 }
 0x612   :  { %v6835_v45 = vsel %vm6789_vm6, %v15047_v26, %v6834_v59  ;;  %v7901_v14 = vsel %vm7895_vm11, %v7892_v16, %v7321_v9  ;;  %7939 = vst [vmem:[#allocation2 + $0x58] sm:$0xff] %v7925_v33  ;;  %v6842_v9 = vsel %vm6789_vm6, %v6770_v43, %v6841_v36  ;;  %v6782_v57 = vrot.slane %v13700_v0, %v9773_v28 }
 0x613   :  { %v6836_v11 = vsel %vm6791_vm7, %v15049_v55, %v6835_v45  ;;  %7938 = vst [vmem:[#allocation2 + $0x50] sm:$0xff] %v7901_v14  ;;  %v6843_v29 = vsel %vm6791_vm7, %v6774_v25, %v6842_v9  ;;  %v7388_v47 = vsel %vm6793_vm8, %v13747_v12, %v7387_v27  ;;  %v6750_v62 = vrot.slane %v15054_v58, %v9773_v28  ;;  %v15057_v28 = vld [vmem:[#allocation17_spill] sm:$0xff] }
 0x614   :  { %v6837_v48 = vsel %vm6793_vm8, %v6746_v30, %v6836_v11  ;;  %v6844_v34 = vsel %vm6793_vm8, %v6778_v39, %v6843_v29  ;;  %v7389_v56 = vsel %vm6795_vm9, %v13743_v10, %v7388_v47  ;;  %v7380_v46 = vsel %vm6791_vm7, %v15056_v41, %v15055_v60 }
 0x615   :  { %v6845_v1 = vsel %vm6795_vm9, %v6782_v57, %v6844_v34  ;;  %v6838_v38 = vsel %vm6795_vm9, %v6750_v62, %v6837_v48  ;;  %v7381_v6 = vsel %vm6793_vm8, %v15057_v28, %v7380_v46 }
 0x616   :  { %v7382_v30 = vsel %vm6795_vm9, %v15058_v50, %v7381_v6 }
 0x636   :  { %v7043_v13 = vpop.permute.xlu0 %7042 }
 0x637   :  { %v7884_v0 = vsel %vm1188_vm1, %v6838_v38, %v7043_v13 }
 0x638   :  { %v7893_v40 = vsel %vm7886_vm10, %v7884_v0, %v7123_v32 }
 0x642   :  { %v7587_v2 = vpop.permute.xlu1 %7586 }
 0x643   :  { %v7910_v22 = vsel %vm1188_vm1, %v7382_v30, %v7587_v2 }
 0x644   :  { %v7918_v5 = vsel %vm7886_vm10, %v7910_v22, %v7667_v19 }
 0x64d   :  { %v7323_v31 = vpop.permute.xlu0 %7322 }
 0x64e   :  { %v7902_v12 = vsel %vm7895_vm11, %v7893_v40, %v7323_v31 }
 0x64f   :  { %7940 = vst [vmem:[#allocation2 + $0x60] sm:$0xff] %v7902_v12 }
 0x65b   :  { %v7125_v8 = vpop.permute.xlu1 %7124 }
 0x661   :  { %v7669_v10 = vpop.permute.xlu0 %7668 }
 0x669   :  { %v7589_v23 = vpop.permute.xlu0 %7588 }
 0x66a   :  { %v7911_v51 = vsel %vm1188_vm1, %v7389_v56, %v7589_v23 }
 0x66b   :  { %v7919_v61 = vsel %vm7886_vm10, %v7911_v51, %v7669_v10 }
 0x66e   :  { %v7045_v18 = vpop.permute.xlu1 %7044 }
 0x66f   :  { %v7885_v24 = vsel %vm1188_vm1, %v6845_v1, %v7045_v18 }
 0x670   :  { %v7894_v43 = vsel %vm7886_vm10, %v7885_v24, %v7125_v8 }
 0x677   :  { %v7867_v37 = vpop.permute.xlu0 %7866 }
 0x678   :  { %v7325_v20 = vpop.permute.xlu1 %7324  ;;  %v7926_v3 = vsel %vm7895_vm11, %v7918_v5, %v7867_v37 }
 0x679   :  { %v7903_v52 = vsel %vm7895_vm11, %v7894_v43, %v7325_v20  ;;  %7941 = vst [vmem:[#allocation2 + $0x68] sm:$0xff] %v7926_v3 }
 0x67a   :  { %7942 = vst [vmem:[#allocation2 + $0x70] sm:$0xff] %v7903_v52 }
 0x67d   :  { %v7869_v53 = vpop.permute.xlu1 %7868 }
 0x67e   :  { %v7927_v15 = vsel %vm7895_vm11, %v7919_v61, %v7869_v53 }
 0x67f   :  { %7943 = vst [vmem:[#allocation2 + $0x78] sm:$0xff] %v7927_v15 }
 0x680   :  { %8782 = shalt.err (!%p8779_p4)
}
 0x681   :  { %s8783_s16 = scalar_lea.hbm %s14106_s7, 2048 }
 0x682   :  { %p8784_p5 = scmp.ne.s32.totalorder %s14106_s7, %s8783_s16  ;;  %p8787_p6 = scmp.lt.u32.totalorder %s8783_s16, %s14106_s7 }
 0x684   :  { %p8789_p7 = pnand %p8787_p6, %p8784_p5 }
 0x686   :  { %8792 = shalt.err (!%p8789_p7)
}
 0x687   :  { %s8799_s18 = smov 256   ;;  %s8800_s19 = smov 16  }
 0x688   :  { %7955 = dma.vmem_to_hbm [thread:$0]  %s7950_s12, 2048, %s14106_s7, [#allocation3], %s8799_s18, %s8799_s18, %s8800_s19  }
 0x689   :  { %8793 = dma.done.wait [#allocation3], 2048  }
 0x68a   :  { %8794 = vsyncadd [#allocation3], 4294965248 }
 0x68b   :  { %7959 = vsyncpa [#allocation3], 1 }

</bundles_post_ra>
